<compile_context>
chip_gen: v6e
topology: v6e:2x2x1
jax: 0.10.0
libtpu: 0.0.40
codegen_flags: <defaults>
</compile_context>

<pallas_src>
import jax
import jax.numpy as jnp
from jax.experimental import pallas as pl
from jax.experimental.pallas import tpu as pltpu

EPS = 1e-5


def _bn_kernel(x_ref, gb_ref, o_ref):
    # x_ref: (C_tile, L)   gb_ref: (C_tile, 2) [gamma | beta]   o_ref: (C_tile, L)
    x = x_ref[...].astype(jnp.float32)
    inv_l = 1.0 / x.shape[-1]  # static constant

    # One pass over the tile: sum and sum-of-squares (lane-axis XLU reductions).
    s1 = jnp.sum(x, axis=-1, keepdims=True)           # (C_tile, 1)
    s2 = jnp.sum(x * x, axis=-1, keepdims=True)       # (C_tile, 1)
    mean = s1 * inv_l
    var = jnp.maximum(s2 * inv_l - mean * mean, 0.0)   # clamp tiny negatives

    gamma = gb_ref[:, 0:1].astype(jnp.float32)         # (C_tile, 1)
    beta = gb_ref[:, 1:2].astype(jnp.float32)          # (C_tile, 1)

    # Fold everything into one per-channel scale/shift; the big tile only
    # sees a single fused multiply-add for the output.
    scale = jax.lax.rsqrt(var + EPS) * gamma           # (C_tile, 1)
    shift = beta - mean * scale                        # (C_tile, 1)

    o_ref[...] = (x * scale + shift).astype(o_ref.dtype)


def _tensorcores_per_chip():
    """Best-effort detection: 2 TCs/chip only on v7x; default to 1."""
    try:
        dev = jax.devices()[0]
        if dev.platform != "tpu":
            return 1
        kind = (getattr(dev, "device_kind", "") or "").lower()
        if "v7" in kind:
            return 2
    except Exception:
        pass
    return 1


def batchnorm2d_pallas(x_nchw, gamma, beta):
    """x_nchw: (N, C, H, W);  gamma, beta: (C,).  Returns (N, C, H, W)."""
    N, C, H, W = x_nchw.shape
    L = N * H * W

    # (N, C, H, W) -> (C, N*H*W).  Pure reshape when N == 1 (no HBM transpose).
    if N == 1:
        x_cl = x_nchw.reshape(C, L)
    else:
        # TODO(synk): for N>1, fold N into an extra 'arbitrary' grid axis with
        # VMEM scratch accumulation instead of this explicit HBM transpose.
        x_cl = jnp.transpose(x_nchw, (1, 0, 2, 3)).reshape(C, L)

    # Pack affine params into a single (C, 2) array -> one narrow DMA.
    gb = jnp.stack(
        [gamma.astype(jnp.float32), beta.astype(jnp.float32)], axis=1
    )  # (C, 2)

    # Single block on single-TC chips (v5e/v6e); 2-way core-parallel split on v7x.
    num_blocks = 1
    if _tensorcores_per_chip() >= 2 and C % 2 == 0 and (C // 2) % 8 == 0:
        num_blocks = 2
    c_tile = C // num_blocks

    if num_blocks == 2:
        dim_sem = (pltpu.CORE_PARALLEL,)
    else:
        dim_sem = ("arbitrary",)

    out_cl = pl.pallas_call(
        _bn_kernel,
        out_shape=jax.ShapeDtypeStruct((C, L), x_nchw.dtype),
        grid=(num_blocks,),
        in_specs=[
            pl.BlockSpec((c_tile, L), lambda i: (i, 0)),
            pl.BlockSpec((c_tile, 2), lambda i: (i, 0)),
        ],
        out_specs=pl.BlockSpec((c_tile, L), lambda i: (i, 0)),
        compiler_params=pltpu.CompilerParams(dimension_semantics=dim_sem),
    )(x_cl, gb)

    if N == 1:
        return out_cl.reshape(N, C, H, W)
    return jnp.transpose(out_cl.reshape(C, N, H, W), (1, 0, 2, 3))


def _reference_bn(x_nchw, gamma, beta):
    x = x_nchw.astype(jnp.float32)
    mean = jnp.mean(x, axis=(0, 2, 3), keepdims=True)
    var = jnp.mean((x - mean) ** 2, axis=(0, 2, 3), keepdims=True)
    y = (x - mean) * jax.lax.rsqrt(var + EPS)
    return y * gamma.reshape(1, -1, 1, 1) + beta.reshape(1, -1, 1, 1)


if __name__ == "__main__":
    key = jax.random.PRNGKey(0)
    kx, kg, kb = jax.random.split(key, 3)

    N, C, H, W = 1, 1152, 7, 7
    x = jax.random.normal(kx, (N, C, H, W), dtype=jnp.float32)
    # deterministic affine parameters (synthetic; PyTorch default would be ones/zeros)
    gamma = 1.0 + 0.1 * jax.random.normal(kg, (C,), dtype=jnp.float32)
    beta = 0.1 * jax.random.normal(kb, (C,), dtype=jnp.float32)

    out = batchnorm2d_pallas(x, gamma, beta)
    out = jax.block_until_ready(out)

    ref = _reference_bn(x, gamma, beta)
    assert out.shape == (N, C, H, W)
    assert jnp.allclose(out, ref, atol=1e-4, rtol=1e-4)

    print("KERNEL_OK")
</pallas_src>

<mosaic_0001>
module attributes {stable_mosaic.version = 11 : i64} {
  func.func @_bn_kernel(%arg0: i32, %arg1: memref<1152x49xf32, #tpu.memory_space<vmem>>, %arg2: memref<1152x2xf32, #tpu.memory_space<vmem>>, %arg3: memref<1152x49xf32, #tpu.memory_space<vmem>>) attributes {dimension_semantics = [#tpu.dimension_semantics<arbitrary>], iteration_bounds = array<i64: 1>, scalar_prefetch = 0 : i64, scratch_operands = 0 : i64, tpu.core_type = #tpu.core_type<tc>, window_params = [{transform_indices = @transform_0, window_bounds = array<i64: 1152, 49>}, {transform_indices = @transform_1, window_bounds = array<i64: 1152, 2>}, {transform_indices = @transform_2, window_bounds = array<i64: 1152, 49>}]} {
    %c0 = arith.constant 0 : index
    %c0_0 = arith.constant 0 : index
    %0 = vector.load %arg1[%c0, %c0_0] : memref<1152x49xf32, #tpu.memory_space<vmem>>, vector<1152x49xf32>
    %cst = arith.constant dense<0.000000e+00> : vector<1152xf32>
    %1 = vector.multi_reduction <add>, %0, %cst [1] : vector<1152x49xf32> to vector<1152xf32>
    %2 = vector.shape_cast %1 : vector<1152xf32> to vector<1152x1xf32>
    %3 = arith.mulf %0, %0 : vector<1152x49xf32>
    %cst_1 = arith.constant dense<0.000000e+00> : vector<1152xf32>
    %4 = vector.multi_reduction <add>, %3, %cst_1 [1] : vector<1152x49xf32> to vector<1152xf32>
    %5 = vector.shape_cast %4 : vector<1152xf32> to vector<1152x1xf32>
    %cst_2 = arith.constant 0.0204081628 : f32
    %6 = vector.broadcast %cst_2 : f32 to vector<1152x1xf32>
    %7 = arith.mulf %2, %6 : vector<1152x1xf32>
    %cst_3 = arith.constant 0.0204081628 : f32
    %8 = vector.broadcast %cst_3 : f32 to vector<1152x1xf32>
    %9 = arith.mulf %5, %8 : vector<1152x1xf32>
    %10 = arith.mulf %7, %7 : vector<1152x1xf32>
    %11 = arith.subf %9, %10 : vector<1152x1xf32>
    %cst_4 = arith.constant 0.000000e+00 : f32
    %12 = vector.broadcast %cst_4 : f32 to vector<1152x1xf32>
    %13 = arith.maximumf %11, %12 : vector<1152x1xf32>
    %c0_5 = arith.constant 0 : index
    %c0_6 = arith.constant 0 : index
    %14 = vector.load %arg2[%c0_5, %c0_6] : memref<1152x2xf32, #tpu.memory_space<vmem>>, vector<1152x1xf32>
    %c0_7 = arith.constant 0 : index
    %c1 = arith.constant 1 : index
    %15 = vector.load %arg2[%c0_7, %c1] : memref<1152x2xf32, #tpu.memory_space<vmem>>, vector<1152x1xf32>
    %cst_8 = arith.constant 9.99999974E-6 : f32
    %16 = vector.broadcast %cst_8 : f32 to vector<1152x1xf32>
    %17 = arith.addf %13, %16 : vector<1152x1xf32>
    %18 = math.rsqrt %17 : vector<1152x1xf32>
    %19 = arith.mulf %18, %14 : vector<1152x1xf32>
    %20 = arith.mulf %7, %19 : vector<1152x1xf32>
    %21 = arith.subf %15, %20 : vector<1152x1xf32>
    %22 = vector.broadcast %19 : vector<1152x1xf32> to vector<1152x49xf32>
    %23 = arith.mulf %0, %22 : vector<1152x49xf32>
    %24 = vector.broadcast %21 : vector<1152x1xf32> to vector<1152x49xf32>
    %25 = arith.addf %23, %24 : vector<1152x49xf32>
    %c0_9 = arith.constant 0 : index
    %c0_10 = arith.constant 0 : index
    %26 = vector.load %arg3[%c0_9, %c0_10] : memref<1152x49xf32, #tpu.memory_space<vmem>>, vector<1152x49xf32>
    tpu.vector_store %arg3[%c0_9, %c0_10], %25 {strides = array<i32>} : memref<1152x49xf32, #tpu.memory_space<vmem>>, vector<1152x49xf32>,
    return
  }
  func.func @transform_0(%arg0: i32) -> (i32, i32) {
    %c0_i32 = arith.constant 0 : i32
    %c0_i32_0 = arith.constant 0 : i32
    return %arg0, %c0_i32 : i32, i32
  }
  func.func @transform_1(%arg0: i32) -> (i32, i32) {
    %c0_i32 = arith.constant 0 : i32
    %c0_i32_0 = arith.constant 0 : i32
    return %arg0, %c0_i32 : i32, i32
  }
  func.func @transform_2(%arg0: i32) -> (i32, i32) {
    %c0_i32 = arith.constant 0 : i32
    %c0_i32_0 = arith.constant 0 : i32
    return %arg0, %c0_i32 : i32, i32
  }
}

</mosaic_0001>

<bundles_post_ra>
// kernel: tpu_custom_call.1
= control target key start
LH: loop header
LB: loop body
LE: loop exit
PB: predicated region body
PF: predicated region fallthrough
CT: control target
= control target key end

     0   :  { %vm155_vm0 = vcmask 400384   ;;  %s5922_s23 = smov 1   ;;  %s12700_s0 = inlined_call_operand.vmem [shape: f32[1152,49], index: 0, kind: input, shape index: {}]   ;;  %s12701_s1 = inlined_call_operand.vmem [shape: f32[1152,2], index: 1, kind: input, shape index: {}]   ;;  %s12702_s2 = inlined_call_operand.vmem [shape: f32[1152,49], index: 2, kind: output, shape index: {}]  }
   0x1   :  { %v13_v0 = vld [vmem:[%s12700_s0 + $0x10] sm:$0xff]  ;;  %v5946_v1 = vld [vmem:[%s12700_s0] sm:$0xff]  ;;  %v5951_v2 = vld [vmem:[%s12700_s0 + $0x18] sm:$0xff] }
   0x2   :  { %v162_v3 = vsel %vm155_vm0, %v13_v0, 0.0  ;;  %v156_v4 = vsel %vm155_vm0, %v5946_v1, 0.0  ;;  %v5959_v5 = vld [vmem:[%s12700_s0 + $0x8] sm:$0xff]  ;;  %v165_v6 = vsel %vm155_vm0, %v5951_v2, 0.0  ;;  %v5973_v9 = vld [vmem:[%s12700_s0 + $0x20] sm:$0xff]  ;;  %v18_v12 = vld [vmem:[%s12700_s0 + $0x38] sm:$0xff] }
   0x3   :  { %163 = vadd.xlane.f32.xlu1 %v162_v3  ;;  %157 = vadd.xlane.f32.xlu0 %v156_v4  ;;  %v159_v7 = vsel %vm155_vm0, %v5959_v5, 0.0  ;;  %v5968_v8 = vld [vmem:[%s12700_s0 + $0x28] sm:$0xff]  ;;  %v168_v11 = vsel %vm155_vm0, %v5973_v9, 0.0  ;;  %v17_v13 = vld [vmem:[%s12700_s0 + $0x30] sm:$0xff]  ;;  %v177_v14 = vsel %vm155_vm0, %v18_v12, 0.0  ;;  %v19_v17 = vld [vmem:[%s12700_s0 + $0x40] sm:$0xff] }
   0x4   :  { %v171_v10 = vsel %vm155_vm0, %v5968_v8, 0.0  ;;  %v174_v15 = vsel %vm155_vm0, %v17_v13, 0.0  ;;  %v20_v16 = vld [vmem:[%s12700_s0 + $0x48] sm:$0xff]  ;;  %v180_v19 = vsel %vm155_vm0, %v19_v17, 0.0  ;;  %v22_v20 = vld [vmem:[%s12700_s0 + $0x58] sm:$0xff]  ;;  %v21_v21 = vld [vmem:[%s12700_s0 + $0x50] sm:$0xff] }
   0x5   :  { %v183_v18 = vsel %vm155_vm0, %v20_v16, 0.0  ;;  %v189_v22 = vsel %vm155_vm0, %v22_v20, 0.0  ;;  %v186_v23 = vsel %vm155_vm0, %v21_v21, 0.0  ;;  %v24_v24 = vld [vmem:[%s12700_s0 + $0x68] sm:$0xff]  ;;  %v23_v25 = vld [vmem:[%s12700_s0 + $0x60] sm:$0xff]  ;;  %v26_v28 = vld [vmem:[%s12700_s0 + $0x78] sm:$0xff] }
   0x6   :  { %v195_v26 = vsel %vm155_vm0, %v24_v24, 0.0  ;;  %v192_v27 = vsel %vm155_vm0, %v23_v25, 0.0  ;;  %v25_v29 = vld [vmem:[%s12700_s0 + $0x70] sm:$0xff]  ;;  %v201_v30 = vsel %vm155_vm0, %v26_v28, 0.0  ;;  %v28_v32 = vld [vmem:[%s12700_s0 + $0x88] sm:$0xff]  ;;  %v27_v33 = vld [vmem:[%s12700_s0 + $0x80] sm:$0xff] }
   0x7   :  { %166 = vadd.xlane.f32.xlu1 %v165_v6  ;;  %160 = vadd.xlane.f32.xlu0 %v159_v7  ;;  %v198_v31 = vsel %vm155_vm0, %v25_v29, 0.0  ;;  %v207_v34 = vsel %vm155_vm0, %v28_v32, 0.0  ;;  %v204_v35 = vsel %vm155_vm0, %v27_v33, 0.0  ;;  %v30_v36 = vld [vmem:[%s12700_s0 + $0x98] sm:$0xff]  ;;  %v29_v37 = vld [vmem:[%s12700_s0 + $0x90] sm:$0xff]  ;;  %v32_v40 = vld [vmem:[%s12700_s0 + $0xa8] sm:$0xff] }
   0x8   :  { %v213_v38 = vsel %vm155_vm0, %v30_v36, 0.0  ;;  %v210_v39 = vsel %vm155_vm0, %v29_v37, 0.0  ;;  %v31_v41 = vld [vmem:[%s12700_s0 + $0xa0] sm:$0xff]  ;;  %v219_v42 = vsel %vm155_vm0, %v32_v40, 0.0  ;;  %v34_v44 = vld [vmem:[%s12700_s0 + $0xb8] sm:$0xff]  ;;  %v33_v45 = vld [vmem:[%s12700_s0 + $0xb0] sm:$0xff] }
   0x9   :  { %v216_v43 = vsel %vm155_vm0, %v31_v41, 0.0  ;;  %v225_v46 = vsel %vm155_vm0, %v34_v44, 0.0  ;;  %v222_v47 = vsel %vm155_vm0, %v33_v45, 0.0  ;;  %v36_v48 = vld [vmem:[%s12700_s0 + $0xc8] sm:$0xff]  ;;  %v35_v49 = vld [vmem:[%s12700_s0 + $0xc0] sm:$0xff]  ;;  %v38_v52 = vld [vmem:[%s12700_s0 + $0xd8] sm:$0xff] }
   0xa   :  { %v231_v50 = vsel %vm155_vm0, %v36_v48, 0.0  ;;  %v228_v51 = vsel %vm155_vm0, %v35_v49, 0.0  ;;  %v37_v53 = vld [vmem:[%s12700_s0 + $0xd0] sm:$0xff]  ;;  %v237_v54 = vsel %vm155_vm0, %v38_v52, 0.0  ;;  %v40_v56 = vld [vmem:[%s12700_s0 + $0xe8] sm:$0xff]  ;;  %v39_v57 = vld [vmem:[%s12700_s0 + $0xe0] sm:$0xff] }
   0xb   :  { %172 = vadd.xlane.f32.xlu1 %v171_v10  ;;  %169 = vadd.xlane.f32.xlu0 %v168_v11  ;;  %v234_v55 = vsel %vm155_vm0, %v37_v53, 0.0  ;;  %v243_v58 = vsel %vm155_vm0, %v40_v56, 0.0  ;;  %v240_v59 = vsel %vm155_vm0, %v39_v57, 0.0  ;;  %v42_v60 = vld [vmem:[%s12700_s0 + $0xf8] sm:$0xff]  ;;  %v41_v61 = vld [vmem:[%s12700_s0 + $0xf0] sm:$0xff]  ;;  %v44_v0 = vld [vmem:[%s12700_s0 + $0x108] sm:$0xff] }
   0xc   :  { %v249_v62 = vsel %vm155_vm0, %v42_v60, 0.0  ;;  %v246_v63 = vsel %vm155_vm0, %v41_v61, 0.0  ;;  %v43_v3 = vld [vmem:[%s12700_s0 + $0x100] sm:$0xff]  ;;  %v255_v4 = vsel %vm155_vm0, %v44_v0, 0.0  ;;  %v46_v7 = vld [vmem:[%s12700_s0 + $0x118] sm:$0xff]  ;;  %v45_v10 = vld [vmem:[%s12700_s0 + $0x110] sm:$0xff] }
   0xd   :  { %v252_v6 = vsel %vm155_vm0, %v43_v3, 0.0  ;;  %v261_v11 = vsel %vm155_vm0, %v46_v7, 0.0  ;;  %v258_v12 = vsel %vm155_vm0, %v45_v10, 0.0  ;;  %v48_v13 = vld [vmem:[%s12700_s0 + $0x128] sm:$0xff]  ;;  %v50_v17 = vld [vmem:[%s12700_s0 + $0x138] sm:$0xff] }
   0xe   :  { %v52_v21 = vld [vmem:[%s12700_s0 + $0x148] sm:$0xff]  ;;  %v54_v25 = vld [vmem:[%s12700_s0 + $0x158] sm:$0xff] }
   0xf   :  { %178 = vadd.xlane.f32.xlu1 %v177_v14  ;;  %175 = vadd.xlane.f32.xlu0 %v174_v15  ;;  %v47_v14 = vld [vmem:[%s12700_s0 + $0x120] sm:$0xff]  ;;  %v267_v15 = vsel %vm155_vm0, %v48_v13, 0.0  ;;  %v56_v29 = vld [vmem:[%s12700_s0 + $0x168] sm:$0xff]  ;;  %v58_v33 = vld [vmem:[%s12700_s0 + $0x178] sm:$0xff] }
  0x10   :  { %v264_v16 = vsel %vm155_vm0, %v47_v14, 0.0  ;;  %v60_v37 = vld [vmem:[%s12700_s0 + $0x188] sm:$0xff]  ;;  %v62_v41 = vld [vmem:[%s12700_s0 + $0x198] sm:$0xff] }
  0x11   :  { %v64_v45 = vld [vmem:[%s12700_s0 + $0x1a8] sm:$0xff]  ;;  %v66_v49 = vld [vmem:[%s12700_s0 + $0x1b8] sm:$0xff] }
  0x12   :  { %v68_v53 = vld [vmem:[%s12700_s0 + $0x1c8] sm:$0xff]  ;;  %v70_v57 = vld [vmem:[%s12700_s0 + $0x1d8] sm:$0xff] }
  0x13   :  { %184 = vadd.xlane.f32.xlu1 %v183_v18  ;;  %181 = vadd.xlane.f32.xlu0 %v180_v19  ;;  %v49_v18 = vld [vmem:[%s12700_s0 + $0x130] sm:$0xff]  ;;  %v273_v19 = vsel %vm155_vm0, %v50_v17, 0.0  ;;  %v72_v61 = vld [vmem:[%s12700_s0 + $0x1e8] sm:$0xff]  ;;  %v74_v3 = vld [vmem:[%s12700_s0 + $0x1f8] sm:$0xff] }
  0x14   :  { %v270_v20 = vsel %vm155_vm0, %v49_v18, 0.0  ;;  %v76_v10 = vld [vmem:[%s12700_s0 + $0x208] sm:$0xff]  ;;  %v78_v14 = vld [vmem:[%s12700_s0 + $0x218] sm:$0xff] }
  0x15   :  { %v80_v18 = vld [vmem:[%s12700_s0 + $0x228] sm:$0xff] }
  0x17   :  { %190 = vadd.xlane.f32.xlu1 %v189_v22  ;;  %187 = vadd.xlane.f32.xlu0 %v186_v23  ;;  %v51_v22 = vld [vmem:[%s12700_s0 + $0x140] sm:$0xff]  ;;  %v279_v23 = vsel %vm155_vm0, %v52_v21, 0.0 }
  0x18   :  { %v276_v24 = vsel %vm155_vm0, %v51_v22, 0.0  ;;  %v82_v22 = vld [vmem:[%s12700_s0 + $0x238] sm:$0xff] }
  0x1b   :  { %196 = vadd.xlane.f32.xlu1 %v195_v26  ;;  %193 = vadd.xlane.f32.xlu0 %v192_v27  ;;  %v53_v26 = vld [vmem:[%s12700_s0 + $0x150] sm:$0xff]  ;;  %v285_v27 = vsel %vm155_vm0, %v54_v25, 0.0 }
  0x1c   :  { %v282_v28 = vsel %vm155_vm0, %v53_v26, 0.0  ;;  %v369_v26 = vsel %vm155_vm0, %v82_v22, 0.0 }
  0x1f   :  { %202 = vadd.xlane.f32.xlu1 %v201_v30  ;;  %199 = vadd.xlane.f32.xlu0 %v198_v31  ;;  %v55_v30 = vld [vmem:[%s12700_s0 + $0x160] sm:$0xff]  ;;  %v291_v31 = vsel %vm155_vm0, %v56_v29, 0.0 }
  0x20   :  { %v288_v32 = vsel %vm155_vm0, %v55_v30, 0.0  ;;  %v83_v29 = vld [vmem:[%s12700_s0 + $0x240] sm:$0xff] }
  0x23   :  { %208 = vadd.xlane.f32.xlu1 %v207_v34  ;;  %205 = vadd.xlane.f32.xlu0 %v204_v35  ;;  %v57_v34 = vld [vmem:[%s12700_s0 + $0x170] sm:$0xff]  ;;  %v297_v35 = vsel %vm155_vm0, %v58_v33, 0.0  ;;  %v372_v33 = vsel %vm155_vm0, %v83_v29, 0.0 }
  0x24   :  { %v294_v36 = vsel %vm155_vm0, %v57_v34, 0.0  ;;  %v86_v34 = vld [vmem:[%s12700_s0 + $0x258] sm:$0xff] }
  0x27   :  { %214 = vadd.xlane.f32.xlu1 %v213_v38  ;;  %211 = vadd.xlane.f32.xlu0 %v210_v39  ;;  %v59_v38 = vld [vmem:[%s12700_s0 + $0x180] sm:$0xff]  ;;  %v303_v39 = vsel %vm155_vm0, %v60_v37, 0.0 }
  0x28   :  { %v300_v40 = vsel %vm155_vm0, %v59_v38, 0.0  ;;  %v381_v38 = vsel %vm155_vm0, %v86_v34, 0.0  ;;  %v103_v34 = vld [vmem:[%s12700_s0 + $0x2e0] sm:$0xff] }
  0x2b   :  { %220 = vadd.xlane.f32.xlu1 %v219_v42  ;;  %217 = vadd.xlane.f32.xlu0 %v216_v43  ;;  %v61_v42 = vld [vmem:[%s12700_s0 + $0x190] sm:$0xff]  ;;  %v309_v43 = vsel %vm155_vm0, %v62_v41, 0.0  ;;  %v87_v41 = vld [vmem:[%s12700_s0 + $0x260] sm:$0xff] }
  0x2c   :  { %v306_v44 = vsel %vm155_vm0, %v61_v42, 0.0 }
  0x2f   :  { %226 = vadd.xlane.f32.xlu1 %v225_v46  ;;  %223 = vadd.xlane.f32.xlu0 %v222_v47  ;;  %v63_v46 = vld [vmem:[%s12700_s0 + $0x1a0] sm:$0xff]  ;;  %v315_v47 = vsel %vm155_vm0, %v64_v45, 0.0  ;;  %v384_v45 = vsel %vm155_vm0, %v87_v41, 0.0  ;;  %v106_v41 = vld [vmem:[%s12700_s0 + $0x2f8] sm:$0xff] }
  0x30   :  { %v312_v48 = vsel %vm155_vm0, %v63_v46, 0.0  ;;  %v90_v46 = vld [vmem:[%s12700_s0 + $0x278] sm:$0xff] }
  0x33   :  { %232 = vadd.xlane.f32.xlu1 %v231_v50  ;;  %229 = vadd.xlane.f32.xlu0 %v228_v51  ;;  %v65_v50 = vld [vmem:[%s12700_s0 + $0x1b0] sm:$0xff]  ;;  %v321_v51 = vsel %vm155_vm0, %v66_v49, 0.0 }
  0x34   :  { %v318_v52 = vsel %vm155_vm0, %v65_v50, 0.0  ;;  %v393_v50 = vsel %vm155_vm0, %v90_v46, 0.0 }
  0x37   :  { %238 = vadd.xlane.f32.xlu1 %v237_v54  ;;  %235 = vadd.xlane.f32.xlu0 %v234_v55  ;;  %v67_v54 = vld [vmem:[%s12700_s0 + $0x1c0] sm:$0xff]  ;;  %v327_v55 = vsel %vm155_vm0, %v68_v53, 0.0 }
  0x38   :  { %v324_v56 = vsel %vm155_vm0, %v67_v54, 0.0  ;;  %v91_v53 = vld [vmem:[%s12700_s0 + $0x280] sm:$0xff] }
  0x3b   :  { %244 = vadd.xlane.f32.xlu1 %v243_v58  ;;  %241 = vadd.xlane.f32.xlu0 %v240_v59  ;;  %v69_v58 = vld [vmem:[%s12700_s0 + $0x1d0] sm:$0xff]  ;;  %v333_v59 = vsel %vm155_vm0, %v70_v57, 0.0  ;;  %v396_v57 = vsel %vm155_vm0, %v91_v53, 0.0 }
  0x3c   :  { %v330_v60 = vsel %vm155_vm0, %v69_v58, 0.0  ;;  %v94_v58 = vld [vmem:[%s12700_s0 + $0x298] sm:$0xff] }
  0x3f   :  { %250 = vadd.xlane.f32.xlu1 %v249_v62  ;;  %247 = vadd.xlane.f32.xlu0 %v246_v63  ;;  %v71_v62 = vld [vmem:[%s12700_s0 + $0x1e0] sm:$0xff]  ;;  %v339_v63 = vsel %vm155_vm0, %v72_v61, 0.0 }
  0x40   :  { %v336_v0 = vsel %vm155_vm0, %v71_v62, 0.0  ;;  %v405_v62 = vsel %vm155_vm0, %v94_v58, 0.0 }
  0x43   :  { %256 = vadd.xlane.f32.xlu1 %v255_v4  ;;  %253 = vadd.xlane.f32.xlu0 %v252_v6  ;;  %v73_v4 = vld [vmem:[%s12700_s0 + $0x1f0] sm:$0xff]  ;;  %v345_v6 = vsel %vm155_vm0, %v74_v3, 0.0  ;;  %v95_v3 = vld [vmem:[%s12700_s0 + $0x2a0] sm:$0xff] }
  0x44   :  { %v342_v7 = vsel %vm155_vm0, %v73_v4, 0.0 }
  0x47   :  { %262 = vadd.xlane.f32.xlu1 %v261_v11  ;;  %259 = vadd.xlane.f32.xlu0 %v258_v12  ;;  %v75_v11 = vld [vmem:[%s12700_s0 + $0x200] sm:$0xff]  ;;  %v351_v12 = vsel %vm155_vm0, %v76_v10, 0.0  ;;  %v408_v10 = vsel %vm155_vm0, %v95_v3, 0.0 }
  0x48   :  { %v348_v13 = vsel %vm155_vm0, %v75_v11, 0.0  ;;  %v98_v11 = vld [vmem:[%s12700_s0 + $0x2b8] sm:$0xff] }
  0x4b   :  { %268 = vadd.xlane.f32.xlu1 %v267_v15  ;;  %265 = vadd.xlane.f32.xlu0 %v264_v16  ;;  %v77_v15 = vld [vmem:[%s12700_s0 + $0x210] sm:$0xff]  ;;  %v357_v16 = vsel %vm155_vm0, %v78_v14, 0.0 }
  0x4c   :  { %v354_v17 = vsel %vm155_vm0, %v77_v15, 0.0  ;;  %v417_v15 = vsel %vm155_vm0, %v98_v11, 0.0  ;;  %v111_v11 = vld [vmem:[%s12700_s0 + $0x320] sm:$0xff] }
  0x4f   :  { %274 = vadd.xlane.f32.xlu1 %v273_v19  ;;  %271 = vadd.xlane.f32.xlu0 %v270_v20  ;;  %v79_v19 = vld [vmem:[%s12700_s0 + $0x220] sm:$0xff]  ;;  %v363_v20 = vsel %vm155_vm0, %v80_v18, 0.0 }
  0x50   :  { %v360_v21 = vsel %vm155_vm0, %v79_v19, 0.0  ;;  %v99_v18 = vld [vmem:[%s12700_s0 + $0x2c0] sm:$0xff] }
  0x51   :  { %v420_v22 = vsel %vm155_vm0, %v99_v18, 0.0  ;;  %v114_v18 = vld [vmem:[%s12700_s0 + $0x338] sm:$0xff] }
  0x53   :  { %280 = vadd.xlane.f32.xlu1 %v279_v23  ;;  %277 = vadd.xlane.f32.xlu0 %v276_v24  ;;  %v81_v23 = vld [vmem:[%s12700_s0 + $0x230] sm:$0xff] }
  0x57   :  { %286 = vadd.xlane.f32.xlu1 %v285_v27  ;;  %283 = vadd.xlane.f32.xlu0 %v282_v28  ;;  %v366_v27 = vsel %vm155_vm0, %v81_v23, 0.0  ;;  %v84_v28 = vld [vmem:[%s12700_s0 + $0x248] sm:$0xff]  ;;  %v102_v23 = vld [vmem:[%s12700_s0 + $0x2d8] sm:$0xff] }
  0x58   :  { %v429_v29 = vsel %vm155_vm0, %v102_v23, 0.0 }
  0x5b   :  { %292 = vadd.xlane.f32.xlu1 %v291_v31  ;;  %289 = vadd.xlane.f32.xlu0 %v288_v32  ;;  %v375_v32 = vsel %vm155_vm0, %v84_v28, 0.0 }
  0x5f   :  { %298 = vadd.xlane.f32.xlu1 %v297_v35  ;;  %295 = vadd.xlane.f32.xlu0 %v294_v36  ;;  %v85_v35 = vld [vmem:[%s12700_s0 + $0x250] sm:$0xff] }
  0x63   :  { %304 = vadd.xlane.f32.xlu1 %v303_v39  ;;  %301 = vadd.xlane.f32.xlu0 %v300_v40  ;;  %v378_v39 = vsel %vm155_vm0, %v85_v35, 0.0  ;;  %v88_v40 = vld [vmem:[%s12700_s0 + $0x268] sm:$0xff] }
  0x67   :  { %310 = vadd.xlane.f32.xlu1 %v309_v43  ;;  %307 = vadd.xlane.f32.xlu0 %v306_v44  ;;  %v387_v44 = vsel %vm155_vm0, %v88_v40, 0.0  ;;  %v432_v40 = vsel %vm155_vm0, %v103_v34, 0.0 }
  0x6b   :  { %316 = vadd.xlane.f32.xlu1 %v315_v47  ;;  %313 = vadd.xlane.f32.xlu0 %v312_v48  ;;  %v89_v47 = vld [vmem:[%s12700_s0 + $0x270] sm:$0xff] }
  0x6f   :  { %322 = vadd.xlane.f32.xlu1 %v321_v51  ;;  %319 = vadd.xlane.f32.xlu0 %v318_v52  ;;  %v390_v51 = vsel %vm155_vm0, %v89_v47, 0.0  ;;  %v92_v52 = vld [vmem:[%s12700_s0 + $0x288] sm:$0xff]  ;;  %v441_v47 = vsel %vm155_vm0, %v106_v41, 0.0 }
  0x73   :  { %328 = vadd.xlane.f32.xlu1 %v327_v55  ;;  %325 = vadd.xlane.f32.xlu0 %v324_v56  ;;  %v399_v56 = vsel %vm155_vm0, %v92_v52, 0.0  ;;  %v107_v52 = vld [vmem:[%s12700_s0 + $0x300] sm:$0xff] }
  0x74   :  { %v444_v58 = vsel %vm155_vm0, %v107_v52, 0.0 }
  0x77   :  { %334 = vadd.xlane.f32.xlu1 %v333_v59  ;;  %331 = vadd.xlane.f32.xlu0 %v330_v60  ;;  %v93_v59 = vld [vmem:[%s12700_s0 + $0x290] sm:$0xff] }
  0x7b   :  { %340 = vadd.xlane.f32.xlu1 %v339_v63  ;;  %337 = vadd.xlane.f32.xlu0 %v336_v0  ;;  %v402_v63 = vsel %vm155_vm0, %v93_v59, 0.0  ;;  %v96_v0 = vld [vmem:[%s12700_s0 + $0x2a8] sm:$0xff]  ;;  %v110_v59 = vld [vmem:[%s12700_s0 + $0x318] sm:$0xff] }
  0x7c   :  { %v453_v3 = vsel %vm155_vm0, %v110_v59, 0.0  ;;  %v119_v59 = vld [vmem:[%s12700_s0 + $0x360] sm:$0xff] }
  0x7f   :  { %346 = vadd.xlane.f32.xlu1 %v345_v6  ;;  %343 = vadd.xlane.f32.xlu0 %v342_v7  ;;  %v411_v7 = vsel %vm155_vm0, %v96_v0, 0.0 }
  0x83   :  { %352 = vadd.xlane.f32.xlu1 %v351_v12  ;;  %349 = vadd.xlane.f32.xlu0 %v348_v13  ;;  %v97_v12 = vld [vmem:[%s12700_s0 + $0x2b0] sm:$0xff] }
  0x87   :  { %358 = vadd.xlane.f32.xlu1 %v357_v16  ;;  %355 = vadd.xlane.f32.xlu0 %v354_v17  ;;  %v414_v16 = vsel %vm155_vm0, %v97_v12, 0.0  ;;  %v100_v17 = vld [vmem:[%s12700_s0 + $0x2c8] sm:$0xff] }
  0x8b   :  { %364 = vadd.xlane.f32.xlu1 %v363_v20  ;;  %361 = vadd.xlane.f32.xlu0 %v360_v21  ;;  %v423_v21 = vsel %vm155_vm0, %v100_v17, 0.0  ;;  %v456_v17 = vsel %vm155_vm0, %v111_v11, 0.0  ;;  %v122_v11 = vld [vmem:[%s12700_s0 + $0x378] sm:$0xff] }
  0x8c   :  { %v6241_v24 = vpop.xlane.xlu1 %163  ;;  %v6243_v25 = vpop.xlane.xlu0 %157 }
  0x8f   :  { %370 = vadd.xlane.f32.xlu1 %v369_v26  ;;  %367 = vadd.xlane.f32.xlu0 %v366_v27  ;;  %v101_v26 = vld [vmem:[%s12700_s0 + $0x2d0] sm:$0xff] }
  0x90   :  { %v6253_v30 = vpop.xlane.xlu1 %166  ;;  %v6255_v31 = vpop.xlane.xlu0 %160 }
  0x93   :  { %376 = vadd.xlane.f32.xlu1 %v375_v32  ;;  %373 = vadd.xlane.f32.xlu0 %v372_v33  ;;  %v426_v32 = vsel %vm155_vm0, %v101_v26, 0.0  ;;  %v104_v33 = vld [vmem:[%s12700_s0 + $0x2e8] sm:$0xff]  ;;  %v465_v26 = vsel %vm155_vm0, %v114_v18, 0.0 }
  0x94   :  { %v6265_v36 = vpop.xlane.xlu1 %172  ;;  %v6267_v37 = vpop.xlane.xlu0 %169 }
  0x97   :  { %382 = vadd.xlane.f32.xlu1 %v381_v38  ;;  %379 = vadd.xlane.f32.xlu0 %v378_v39  ;;  %v435_v39 = vsel %vm155_vm0, %v104_v33, 0.0  ;;  %v115_v33 = vld [vmem:[%s12700_s0 + $0x340] sm:$0xff] }
  0x98   :  { %v6277_v42 = vpop.xlane.xlu1 %178  ;;  %v6279_v43 = vpop.xlane.xlu0 %175  ;;  %v468_v41 = vsel %vm155_vm0, %v115_v33, 0.0 }
  0x9b   :  { %388 = vadd.xlane.f32.xlu1 %v387_v44  ;;  %385 = vadd.xlane.f32.xlu0 %v384_v45  ;;  %v105_v44 = vld [vmem:[%s12700_s0 + $0x2f0] sm:$0xff] }
  0x9c   :  { %v6289_v48 = vpop.xlane.xlu1 %184  ;;  %v6291_v49 = vpop.xlane.xlu0 %181 }
  0x9f   :  { %394 = vadd.xlane.f32.xlu1 %v393_v50  ;;  %391 = vadd.xlane.f32.xlu0 %v390_v51  ;;  %v438_v50 = vsel %vm155_vm0, %v105_v44, 0.0  ;;  %v108_v51 = vld [vmem:[%s12700_s0 + $0x308] sm:$0xff]  ;;  %v118_v44 = vld [vmem:[%s12700_s0 + $0x358] sm:$0xff] }
  0xa0   :  { %v6301_v54 = vpop.xlane.xlu1 %190  ;;  %v6303_v55 = vpop.xlane.xlu0 %187  ;;  %v477_v52 = vsel %vm155_vm0, %v118_v44, 0.0 }
  0xa3   :  { %400 = vadd.xlane.f32.xlu1 %v399_v56  ;;  %397 = vadd.xlane.f32.xlu0 %v396_v57  ;;  %v447_v57 = vsel %vm155_vm0, %v108_v51, 0.0 }
  0xa4   :  { %v6313_v60 = vpop.xlane.xlu1 %196  ;;  %v6315_v61 = vpop.xlane.xlu0 %193 }
  0xa7   :  { %406 = vadd.xlane.f32.xlu1 %v405_v62  ;;  %403 = vadd.xlane.f32.xlu0 %v402_v63  ;;  %v109_v62 = vld [vmem:[%s12700_s0 + $0x310] sm:$0xff] }
  0xa8   :  { %v6325_v4 = vpop.xlane.xlu1 %202  ;;  %v6327_v6 = vpop.xlane.xlu0 %199 }
  0xab   :  { %412 = vadd.xlane.f32.xlu1 %v411_v7  ;;  %409 = vadd.xlane.f32.xlu0 %v408_v10  ;;  %v450_v7 = vsel %vm155_vm0, %v109_v62, 0.0  ;;  %v112_v10 = vld [vmem:[%s12700_s0 + $0x328] sm:$0xff] }
  0xac   :  { %v6337_v13 = vpop.xlane.xlu1 %208  ;;  %v6339_v14 = vpop.xlane.xlu0 %205 }
  0xaf   :  { %418 = vadd.xlane.f32.xlu1 %v417_v15  ;;  %415 = vadd.xlane.f32.xlu0 %v414_v16  ;;  %v459_v16 = vsel %vm155_vm0, %v112_v10, 0.0  ;;  %v480_v10 = vsel %vm155_vm0, %v119_v59, 0.0 }
  0xb0   :  { %v6349_v19 = vpop.xlane.xlu1 %214  ;;  %v6351_v20 = vpop.xlane.xlu0 %211 }
  0xb3   :  { %424 = vadd.xlane.f32.xlu1 %v423_v21  ;;  %421 = vadd.xlane.f32.xlu0 %v420_v22  ;;  %v113_v21 = vld [vmem:[%s12700_s0 + $0x330] sm:$0xff] }
  0xb4   :  { %v6361_v27 = vpop.xlane.xlu1 %220  ;;  %v6363_v28 = vpop.xlane.xlu0 %217 }
  0xb7   :  { %430 = vadd.xlane.f32.xlu1 %v429_v29  ;;  %427 = vadd.xlane.f32.xlu0 %v426_v32  ;;  %v462_v29 = vsel %vm155_vm0, %v113_v21, 0.0  ;;  %v116_v32 = vld [vmem:[%s12700_s0 + $0x348] sm:$0xff]  ;;  %v489_v21 = vsel %vm155_vm0, %v122_v11, 0.0  ;;  %v127_v11 = vld [vmem:[%s12700_s0 + $0x3a0] sm:$0xff] }
  0xb8   :  { %v6373_v35 = vpop.xlane.xlu1 %226  ;;  %v6375_v38 = vpop.xlane.xlu0 %223 }
  0xbb   :  { %436 = vadd.xlane.f32.xlu1 %v435_v39  ;;  %433 = vadd.xlane.f32.xlu0 %v432_v40  ;;  %v471_v40 = vsel %vm155_vm0, %v116_v32, 0.0  ;;  %v123_v32 = vld [vmem:[%s12700_s0 + $0x380] sm:$0xff] }
  0xbc   :  { %v6385_v45 = vpop.xlane.xlu1 %232  ;;  %v6387_v46 = vpop.xlane.xlu0 %229  ;;  %v492_v44 = vsel %vm155_vm0, %v123_v32, 0.0  ;;  %v130_v32 = vld [vmem:[%s12700_s0 + $0x3b8] sm:$0xff] }
  0xbf   :  { %442 = vadd.xlane.f32.xlu1 %v441_v47  ;;  %439 = vadd.xlane.f32.xlu0 %v438_v50  ;;  %v117_v47 = vld [vmem:[%s12700_s0 + $0x350] sm:$0xff] }
  0xc0   :  { %v6397_v53 = vpop.xlane.xlu1 %238  ;;  %v6399_v56 = vpop.xlane.xlu0 %235 }
  0xc3   :  { %448 = vadd.xlane.f32.xlu1 %v447_v57  ;;  %445 = vadd.xlane.f32.xlu0 %v444_v58  ;;  %v474_v57 = vsel %vm155_vm0, %v117_v47, 0.0  ;;  %v120_v58 = vld [vmem:[%s12700_s0 + $0x368] sm:$0xff]  ;;  %v126_v47 = vld [vmem:[%s12700_s0 + $0x398] sm:$0xff] }
  0xc4   :  { %v6409_v63 = vpop.xlane.xlu1 %244  ;;  %v6411_v0 = vpop.xlane.xlu0 %241  ;;  %v501_v59 = vsel %vm155_vm0, %v126_v47, 0.0 }
  0xc7   :  { %454 = vadd.xlane.f32.xlu1 %v453_v3  ;;  %451 = vadd.xlane.f32.xlu0 %v450_v7  ;;  %v483_v7 = vsel %vm155_vm0, %v120_v58, 0.0 }
  0xc8   :  { %v6421_v12 = vpop.xlane.xlu1 %250  ;;  %v6423_v15 = vpop.xlane.xlu0 %247 }
  0xcb   :  { %460 = vadd.xlane.f32.xlu1 %v459_v16  ;;  %457 = vadd.xlane.f32.xlu0 %v456_v17  ;;  %v121_v16 = vld [vmem:[%s12700_s0 + $0x370] sm:$0xff] }
  0xcc   :  { %v6433_v22 = vpop.xlane.xlu1 %256  ;;  %v6435_v23 = vpop.xlane.xlu0 %253 }
  0xcf   :  { %466 = vadd.xlane.f32.xlu1 %v465_v26  ;;  %463 = vadd.xlane.f32.xlu0 %v462_v29  ;;  %v486_v26 = vsel %vm155_vm0, %v121_v16, 0.0  ;;  %v124_v29 = vld [vmem:[%s12700_s0 + $0x388] sm:$0xff] }
  0xd0   :  { %v6445_v34 = vpop.xlane.xlu1 %262  ;;  %v6447_v39 = vpop.xlane.xlu0 %259 }
  0xd3   :  { %472 = vadd.xlane.f32.xlu1 %v471_v40  ;;  %469 = vadd.xlane.f32.xlu0 %v468_v41  ;;  %v495_v41 = vsel %vm155_vm0, %v124_v29, 0.0  ;;  %v504_v29 = vsel %vm155_vm0, %v127_v11, 0.0 }
  0xd4   :  { %v6457_v50 = vpop.xlane.xlu1 %268  ;;  %v6459_v51 = vpop.xlane.xlu0 %265 }
  0xd7   :  { %478 = vadd.xlane.f32.xlu1 %v477_v52  ;;  %475 = vadd.xlane.f32.xlu0 %v474_v57  ;;  %v125_v52 = vld [vmem:[%s12700_s0 + $0x390] sm:$0xff] }
  0xd8   :  { %v6469_v62 = vpop.xlane.xlu1 %274  ;;  %v6471_v3 = vpop.xlane.xlu0 %271 }
  0xdb   :  { %484 = vadd.xlane.f32.xlu1 %v483_v7  ;;  %481 = vadd.xlane.f32.xlu0 %v480_v10  ;;  %v498_v7 = vsel %vm155_vm0, %v125_v52, 0.0  ;;  %v128_v10 = vld [vmem:[%s12700_s0 + $0x3a8] sm:$0xff]  ;;  %v513_v52 = vsel %vm155_vm0, %v130_v32, 0.0 }
  0xdc   :  { %v6481_v17 = vpop.xlane.xlu1 %280  ;;  %v6483_v18 = vpop.xlane.xlu0 %277 }
  0xdf   :  { %490 = vadd.xlane.f32.xlu1 %v489_v21  ;;  %487 = vadd.xlane.f32.xlu0 %v486_v26  ;;  %v507_v26 = vsel %vm155_vm0, %v128_v10, 0.0  ;;  %v131_v10 = vld [vmem:[%s12700_s0 + $0x3c0] sm:$0xff] }
  0xe0   :  { %v6493_v33 = vpop.xlane.xlu1 %286  ;;  %v6495_v40 = vpop.xlane.xlu0 %283  ;;  %v516_v32 = vsel %vm155_vm0, %v131_v10, 0.0  ;;  %v136_v10 = vld [vmem:[%s12700_s0 + $0x3e8] sm:$0xff] }
  0xe3   :  { %496 = vadd.xlane.f32.xlu1 %v495_v41  ;;  %493 = vadd.xlane.f32.xlu0 %v492_v44  ;;  %v129_v41 = vld [vmem:[%s12700_s0 + $0x3b0] sm:$0xff] }
  0xe4   :  { %v6505_v57 = vpop.xlane.xlu1 %292  ;;  %v6507_v58 = vpop.xlane.xlu0 %289 }
  0xe7   :  { %502 = vadd.xlane.f32.xlu1 %v501_v59  ;;  %499 = vadd.xlane.f32.xlu0 %v498_v7  ;;  %v510_v59 = vsel %vm155_vm0, %v129_v41, 0.0  ;;  %v132_v7 = vld [vmem:[%s12700_s0 + $0x3c8] sm:$0xff]  ;;  %v134_v41 = vld [vmem:[%s12700_s0 + $0x3d8] sm:$0xff] }
  0xe8   :  { %v6517_v16 = vpop.xlane.xlu1 %298  ;;  %v6519_v21 = vpop.xlane.xlu0 %295 }
  0xe9   :  { %12964 = vst [vmem:[#allocation2_spill] sm:$0xff] %v6517_v16  ;;  %12965 = vst [vmem:[#allocation3_spill] sm:$0xff] %v6519_v21 }
  0xeb   :  { %508 = vadd.xlane.f32.xlu1 %v507_v26  ;;  %505 = vadd.xlane.f32.xlu0 %v504_v29  ;;  %v519_v29 = vsel %vm155_vm0, %v132_v7, 0.0 }
  0xec   :  { %v6529_v44 = vpop.xlane.xlu1 %304  ;;  %v6531_v47 = vpop.xlane.xlu0 %301 }
  0xed   :  { %12966 = vst [vmem:[#allocation4_spill] sm:$0xff] %v6529_v44  ;;  %12967 = vst [vmem:[#allocation5_spill] sm:$0xff] %v6531_v47  ;;  %v133_v47 = vld [vmem:[%s12700_s0 + $0x3d0] sm:$0xff] }
  0xee   :  { %v522_v7 = vsel %vm155_vm0, %v133_v47, 0.0  ;;  %v138_v47 = vld [vmem:[%s12700_s0 + $0x3f8] sm:$0xff] }
  0xef   :  { %514 = vadd.xlane.f32.xlu1 %v513_v52  ;;  %511 = vadd.xlane.f32.xlu0 %v510_v59 }
  0xf0   :  { %v6541_v11 = vpop.xlane.xlu1 %310  ;;  %v6543_v26 = vpop.xlane.xlu0 %307 }
  0xf1   :  { %12968 = vst [vmem:[#allocation6_spill] sm:$0xff] %v6541_v11  ;;  %12969 = vst [vmem:[#allocation7_spill] sm:$0xff] %v6543_v26  ;;  %v525_v26 = vsel %vm155_vm0, %v134_v41, 0.0  ;;  %v135_v11 = vld [vmem:[%s12700_s0 + $0x3e0] sm:$0xff] }
  0xf2   :  { %v528_v41 = vsel %vm155_vm0, %v135_v11, 0.0  ;;  %v140_v11 = vld [vmem:[%s12700_s0 + $0x408] sm:$0xff] }
  0xf3   :  { %520 = vadd.xlane.f32.xlu1 %v519_v29  ;;  %517 = vadd.xlane.f32.xlu0 %v516_v32 }
  0xf4   :  { %v6553_v52 = vpop.xlane.xlu1 %316  ;;  %v6555_v59 = vpop.xlane.xlu0 %313 }
  0xf5   :  { %12970 = vst [vmem:[#allocation8_spill] sm:$0xff] %v6553_v52  ;;  %12971 = vst [vmem:[#allocation9_spill] sm:$0xff] %v6555_v59  ;;  %v531_v59 = vsel %vm155_vm0, %v136_v10, 0.0  ;;  %v137_v52 = vld [vmem:[%s12700_s0 + $0x3f0] sm:$0xff] }
  0xf6   :  { %v534_v10 = vsel %vm155_vm0, %v137_v52, 0.0  ;;  %v142_v52 = vld [vmem:[%s12700_s0 + $0x418] sm:$0xff] }
  0xf7   :  { %526 = vadd.xlane.f32.xlu1 %v525_v26  ;;  %523 = vadd.xlane.f32.xlu0 %v522_v7 }
  0xf8   :  { %v6565_v29 = vpop.xlane.xlu1 %322  ;;  %v6567_v32 = vpop.xlane.xlu0 %319 }
  0xf9   :  { %12972 = vst [vmem:[#allocation10_spill] sm:$0xff] %v6565_v29  ;;  %12973 = vst [vmem:[#allocation11_spill] sm:$0xff] %v6567_v32  ;;  %v537_v32 = vsel %vm155_vm0, %v138_v47, 0.0  ;;  %v139_v29 = vld [vmem:[%s12700_s0 + $0x400] sm:$0xff] }
  0xfa   :  { %v540_v47 = vsel %vm155_vm0, %v139_v29, 0.0  ;;  %v144_v29 = vld [vmem:[%s12700_s0 + $0x428] sm:$0xff] }
  0xfb   :  { %532 = vadd.xlane.f32.xlu1 %v531_v59  ;;  %529 = vadd.xlane.f32.xlu0 %v528_v41 }
  0xfc   :  { %v6577_v26 = vpop.xlane.xlu1 %328  ;;  %v6579_v7 = vpop.xlane.xlu0 %325 }
  0xfd   :  { %12974 = vst [vmem:[#allocation12_spill] sm:$0xff] %v6577_v26  ;;  %12975 = vst [vmem:[#allocation13_spill] sm:$0xff] %v6579_v7  ;;  %v543_v7 = vsel %vm155_vm0, %v140_v11, 0.0  ;;  %v141_v26 = vld [vmem:[%s12700_s0 + $0x410] sm:$0xff] }
  0xfe   :  { %v546_v11 = vsel %vm155_vm0, %v141_v26, 0.0  ;;  %v146_v26 = vld [vmem:[%s12700_s0 + $0x438] sm:$0xff] }
  0xff   :  { %538 = vadd.xlane.f32.xlu1 %v537_v32  ;;  %535 = vadd.xlane.f32.xlu0 %v534_v10 }
 0x100   :  { %v6589_v59 = vpop.xlane.xlu1 %334  ;;  %v6591_v41 = vpop.xlane.xlu0 %331 }
 0x101   :  { %12976 = vst [vmem:[#allocation14_spill] sm:$0xff] %v6589_v59  ;;  %12977 = vst [vmem:[#allocation15_spill] sm:$0xff] %v6591_v41  ;;  %v549_v41 = vsel %vm155_vm0, %v142_v52, 0.0  ;;  %v143_v59 = vld [vmem:[%s12700_s0 + $0x420] sm:$0xff] }
 0x102   :  { %v552_v52 = vsel %vm155_vm0, %v143_v59, 0.0  ;;  %v148_v59 = vld [vmem:[%s12700_s0 + $0x448] sm:$0xff] }
 0x103   :  { %544 = vadd.xlane.f32.xlu1 %v543_v7  ;;  %541 = vadd.xlane.f32.xlu0 %v540_v47 }
 0x104   :  { %v6601_v32 = vpop.xlane.xlu1 %340  ;;  %v6603_v10 = vpop.xlane.xlu0 %337 }
 0x105   :  { %12978 = vst [vmem:[#allocation16_spill] sm:$0xff] %v6601_v32  ;;  %12979 = vst [vmem:[#allocation17_spill] sm:$0xff] %v6603_v10  ;;  %v555_v10 = vsel %vm155_vm0, %v144_v29, 0.0  ;;  %v145_v32 = vld [vmem:[%s12700_s0 + $0x430] sm:$0xff] }
 0x106   :  { %v558_v29 = vsel %vm155_vm0, %v145_v32, 0.0  ;;  %v150_v32 = vld [vmem:[%s12700_s0 + $0x458] sm:$0xff] }
 0x107   :  { %550 = vadd.xlane.f32.xlu1 %v549_v41  ;;  %547 = vadd.xlane.f32.xlu0 %v546_v11 }
 0x108   :  { %v6613_v7 = vpop.xlane.xlu1 %346  ;;  %v6615_v47 = vpop.xlane.xlu0 %343 }
 0x109   :  { %12980 = vst [vmem:[#allocation18_spill] sm:$0xff] %v6613_v7  ;;  %12981 = vst [vmem:[#allocation19_spill] sm:$0xff] %v6615_v47  ;;  %v561_v47 = vsel %vm155_vm0, %v146_v26, 0.0  ;;  %v147_v7 = vld [vmem:[%s12700_s0 + $0x440] sm:$0xff] }
 0x10a   :  { %v564_v26 = vsel %vm155_vm0, %v147_v7, 0.0  ;;  %v152_v7 = vld [vmem:[%s12700_s0 + $0x468] sm:$0xff] }
 0x10b   :  { %556 = vadd.xlane.f32.xlu1 %v555_v10  ;;  %553 = vadd.xlane.f32.xlu0 %v552_v52 }
 0x10c   :  { %v6625_v41 = vpop.xlane.xlu1 %352  ;;  %v6627_v11 = vpop.xlane.xlu0 %349 }
 0x10d   :  { %12982 = vst [vmem:[#allocation20_spill] sm:$0xff] %v6625_v41  ;;  %12983 = vst [vmem:[#allocation21_spill] sm:$0xff] %v6627_v11  ;;  %v567_v11 = vsel %vm155_vm0, %v148_v59, 0.0  ;;  %v149_v41 = vld [vmem:[%s12700_s0 + $0x450] sm:$0xff] }
 0x10e   :  { %v570_v59 = vsel %vm155_vm0, %v149_v41, 0.0  ;;  %v154_v41 = vld [vmem:[%s12700_s0 + $0x478] sm:$0xff] }
 0x10f   :  { %562 = vadd.xlane.f32.xlu1 %v561_v47  ;;  %559 = vadd.xlane.f32.xlu0 %v558_v29 }
 0x110   :  { %v6637_v10 = vpop.xlane.xlu1 %358  ;;  %v6639_v52 = vpop.xlane.xlu0 %355 }
 0x111   :  { %12984 = vst [vmem:[#allocation22_spill] sm:$0xff] %v6637_v10  ;;  %12985 = vst [vmem:[#allocation23_spill] sm:$0xff] %v6639_v52  ;;  %v573_v52 = vsel %vm155_vm0, %v150_v32, 0.0  ;;  %v151_v10 = vld [vmem:[%s12700_s0 + $0x460] sm:$0xff] }
 0x112   :  { %v576_v32 = vsel %vm155_vm0, %v151_v10, 0.0  ;;  %v589_v10 = vmul.f32 %v5959_v5, %v5959_v5  ;;  %v5495_v5 = vld [vmem:[%s12700_s0 + $0x10] sm:$0xff] }
 0x113   :  { %568 = vadd.xlane.f32.xlu1 %v567_v11  ;;  %565 = vadd.xlane.f32.xlu0 %v564_v26 }
 0x114   :  { %v6649_v47 = vpop.xlane.xlu1 %364  ;;  %v6651_v29 = vpop.xlane.xlu0 %361 }
 0x115   :  { %12986 = vst [vmem:[#allocation24_spill] sm:$0xff] %v6649_v47  ;;  %12987 = vst [vmem:[#allocation25_spill] sm:$0xff] %v6651_v29  ;;  %v579_v29 = vsel %vm155_vm0, %v152_v7, 0.0  ;;  %v153_v47 = vld [vmem:[%s12700_s0 + $0x470] sm:$0xff] }
 0x116   :  { %v582_v7 = vsel %vm155_vm0, %v153_v47, 0.0  ;;  %v590_v47 = vmul.f32 %v5495_v5, %v5495_v5 }
 0x117   :  { %574 = vadd.xlane.f32.xlu1 %v573_v52  ;;  %571 = vadd.xlane.f32.xlu0 %v570_v59 }
 0x118   :  { %v6661_v11 = vpop.xlane.xlu1 %370  ;;  %v6663_v26 = vpop.xlane.xlu0 %367 }
 0x119   :  { %12988 = vst [vmem:[#allocation26_spill] sm:$0xff] %v6661_v11  ;;  %12989 = vst [vmem:[#allocation27_spill] sm:$0xff] %v6663_v26  ;;  %v585_v26 = vsel %vm155_vm0, %v154_v41, 0.0  ;;  %v588_v11 = vmul.f32 %v5946_v1, %v5946_v1  ;;  %v591_v41 = vmul.f32 %v5951_v2, %v5951_v2  ;;  %v592_v2 = vmul.f32 %v5973_v9, %v5973_v9 }
 0x11b   :  { %580 = vadd.xlane.f32.xlu1 %v579_v29  ;;  %577 = vadd.xlane.f32.xlu0 %v576_v32  ;;  %v735_v32 = vsel %vm155_vm0, %v589_v10, 0.0  ;;  %v738_v10 = vsel %vm155_vm0, %v590_v47, 0.0  ;;  %v744_v5 = vsel %vm155_vm0, %v592_v2, 0.0 }
 0x11c   :  { %v6673_v52 = vpop.xlane.xlu1 %376  ;;  %v6675_v59 = vpop.xlane.xlu0 %373 }
 0x11d   :  { %12990 = vst [vmem:[#allocation28_spill] sm:$0xff] %v6673_v52  ;;  %12991 = vst [vmem:[#allocation29_spill] sm:$0xff] %v6675_v59  ;;  %v732_v59 = vsel %vm155_vm0, %v588_v11, 0.0  ;;  %v593_v11 = vmul.f32 %v5968_v8, %v5968_v8  ;;  %v5497_v8 = vld [vmem:[%s12700_s0 + $0x30] sm:$0xff] }
 0x11e   :  { %v594_v9 = vmul.f32 %v5497_v8, %v5497_v8 }
 0x11f   :  { %586 = vadd.xlane.f32.xlu1 %v585_v26  ;;  %583 = vadd.xlane.f32.xlu0 %v582_v7  ;;  %v741_v7 = vsel %vm155_vm0, %v591_v41, 0.0  ;;  %v5496_v41 = vld [vmem:[%s12700_s0 + $0x38] sm:$0xff] }
 0x120   :  { %v6683_v44 = vpop.xlane.xlu1 %382  ;;  %v6685_v29 = vpop.xlane.xlu0 %379  ;;  %v595_v47 = vmul.f32 %v5496_v41, %v5496_v41  ;;  %v750_v2 = vsel %vm155_vm0, %v594_v9, 0.0 }
 0x121   :  { %12992 = vst [vmem:[#allocation30_spill] sm:$0xff] %v6683_v44  ;;  %12993 = vst [vmem:[#allocation31_spill] sm:$0xff] %v6685_v29 }
 0x123   :  { %736 = vadd.xlane.f32.xlu1 %v735_v32  ;;  %733 = vadd.xlane.f32.xlu0 %v732_v59  ;;  %v747_v59 = vsel %vm155_vm0, %v593_v11, 0.0  ;;  %v753_v11 = vsel %vm155_vm0, %v595_v47, 0.0 }
 0x124   :  { %v6694_v1 = vpop.xlane.xlu1 %388  ;;  %v6696_v26 = vpop.xlane.xlu0 %385 }
 0x125   :  { %12994 = vst [vmem:[#allocation32_spill] sm:$0xff] %v6694_v1  ;;  %12995 = vst [vmem:[#allocation33_spill] sm:$0xff] %v6696_v26  ;;  %v7122_v1 = vmul.f32 0.020408163, %v6253_v30 }
 0x127   :  { %742 = vadd.xlane.f32.xlu1 %v741_v7  ;;  %739 = vadd.xlane.f32.xlu0 %v738_v10  ;;  %13065 = vst [vmem:[#allocation103_spill] sm:$0xff] %v7122_v1 }
 0x128   :  { %v6704_v29 = vpop.xlane.xlu1 %394  ;;  %v6706_v32 = vpop.xlane.xlu0 %391 }
 0x129   :  { %12996 = vst [vmem:[#allocation34_spill] sm:$0xff] %v6704_v29  ;;  %12997 = vst [vmem:[#allocation35_spill] sm:$0xff] %v6706_v32  ;;  %v5498_v32 = vld [vmem:[%s12700_s0 + $0x48] sm:$0xff]  ;;  %v5499_v29 = vld [vmem:[%s12700_s0 + $0x40] sm:$0xff] }
 0x12a   :  { %v597_v41 = vmul.f32 %v5498_v32, %v5498_v32  ;;  %v596_v8 = vmul.f32 %v5499_v29, %v5499_v29 }
 0x12b   :  { %748 = vadd.xlane.f32.xlu1 %v747_v59  ;;  %745 = vadd.xlane.f32.xlu0 %v744_v5 }
 0x12c   :  { %v6716_v7 = vpop.xlane.xlu1 %400  ;;  %v6718_v10 = vpop.xlane.xlu0 %397  ;;  %v759_v47 = vsel %vm155_vm0, %v597_v41, 0.0  ;;  %v756_v9 = vsel %vm155_vm0, %v596_v8, 0.0 }
 0x12d   :  { %12998 = vst [vmem:[#allocation36_spill] sm:$0xff] %v6716_v7  ;;  %12999 = vst [vmem:[#allocation37_spill] sm:$0xff] %v6718_v10  ;;  %v5500_v10 = vld [vmem:[%s12700_s0 + $0x58] sm:$0xff]  ;;  %v5501_v7 = vld [vmem:[%s12700_s0 + $0x50] sm:$0xff] }
 0x12e   :  { %v599_v32 = vmul.f32 %v5500_v10, %v5500_v10  ;;  %v598_v29 = vmul.f32 %v5501_v7, %v5501_v7 }
 0x12f   :  { %754 = vadd.xlane.f32.xlu1 %v753_v11  ;;  %751 = vadd.xlane.f32.xlu0 %v750_v2 }
 0x130   :  { %v6728_v59 = vpop.xlane.xlu1 %406  ;;  %v6730_v5 = vpop.xlane.xlu0 %403  ;;  %v765_v41 = vsel %vm155_vm0, %v599_v32, 0.0  ;;  %v762_v8 = vsel %vm155_vm0, %v598_v29, 0.0 }
 0x131   :  { %13000 = vst [vmem:[#allocation38_spill] sm:$0xff] %v6728_v59  ;;  %13001 = vst [vmem:[#allocation39_spill] sm:$0xff] %v6730_v5  ;;  %v5502_v5 = vld [vmem:[%s12700_s0 + $0x68] sm:$0xff]  ;;  %v5503_v59 = vld [vmem:[%s12700_s0 + $0x60] sm:$0xff] }
 0x132   :  { %v601_v10 = vmul.f32 %v5502_v5, %v5502_v5  ;;  %v600_v7 = vmul.f32 %v5503_v59, %v5503_v59 }
 0x133   :  { %760 = vadd.xlane.f32.xlu1 %v759_v47  ;;  %757 = vadd.xlane.f32.xlu0 %v756_v9 }
 0x134   :  { %v6740_v11 = vpop.xlane.xlu1 %412  ;;  %v6742_v2 = vpop.xlane.xlu0 %409  ;;  %v771_v32 = vsel %vm155_vm0, %v601_v10, 0.0  ;;  %v768_v29 = vsel %vm155_vm0, %v600_v7, 0.0 }
 0x135   :  { %13002 = vst [vmem:[#allocation40_spill] sm:$0xff] %v6740_v11  ;;  %13003 = vst [vmem:[#allocation41_spill] sm:$0xff] %v6742_v2  ;;  %v5504_v2 = vld [vmem:[%s12700_s0 + $0x78] sm:$0xff]  ;;  %v5505_v11 = vld [vmem:[%s12700_s0 + $0x70] sm:$0xff] }
 0x136   :  { %v603_v5 = vmul.f32 %v5504_v2, %v5504_v2  ;;  %v602_v59 = vmul.f32 %v5505_v11, %v5505_v11 }
 0x137   :  { %766 = vadd.xlane.f32.xlu1 %v765_v41  ;;  %763 = vadd.xlane.f32.xlu0 %v762_v8 }
 0x138   :  { %v6752_v47 = vpop.xlane.xlu1 %418  ;;  %v6754_v9 = vpop.xlane.xlu0 %415  ;;  %v777_v10 = vsel %vm155_vm0, %v603_v5, 0.0  ;;  %v774_v7 = vsel %vm155_vm0, %v602_v59, 0.0 }
 0x139   :  { %13004 = vst [vmem:[#allocation42_spill] sm:$0xff] %v6752_v47  ;;  %13005 = vst [vmem:[#allocation43_spill] sm:$0xff] %v6754_v9  ;;  %v5506_v9 = vld [vmem:[%s12700_s0 + $0x88] sm:$0xff]  ;;  %v5507_v47 = vld [vmem:[%s12700_s0 + $0x80] sm:$0xff] }
 0x13a   :  { %v605_v2 = vmul.f32 %v5506_v9, %v5506_v9  ;;  %v604_v11 = vmul.f32 %v5507_v47, %v5507_v47 }
 0x13b   :  { %772 = vadd.xlane.f32.xlu1 %v771_v32  ;;  %769 = vadd.xlane.f32.xlu0 %v768_v29 }
 0x13c   :  { %v6764_v41 = vpop.xlane.xlu1 %424  ;;  %v6766_v8 = vpop.xlane.xlu0 %421  ;;  %v783_v5 = vsel %vm155_vm0, %v605_v2, 0.0  ;;  %v780_v59 = vsel %vm155_vm0, %v604_v11, 0.0 }
 0x13d   :  { %13006 = vst [vmem:[#allocation44_spill] sm:$0xff] %v6764_v41  ;;  %13007 = vst [vmem:[#allocation45_spill] sm:$0xff] %v6766_v8  ;;  %v5508_v8 = vld [vmem:[%s12700_s0 + $0x98] sm:$0xff]  ;;  %v5509_v41 = vld [vmem:[%s12700_s0 + $0x90] sm:$0xff] }
 0x13e   :  { %v607_v9 = vmul.f32 %v5508_v8, %v5508_v8  ;;  %v606_v47 = vmul.f32 %v5509_v41, %v5509_v41 }
 0x13f   :  { %778 = vadd.xlane.f32.xlu1 %v777_v10  ;;  %775 = vadd.xlane.f32.xlu0 %v774_v7 }
 0x140   :  { %v6776_v32 = vpop.xlane.xlu1 %430  ;;  %v6778_v29 = vpop.xlane.xlu0 %427  ;;  %v789_v2 = vsel %vm155_vm0, %v607_v9, 0.0  ;;  %v786_v11 = vsel %vm155_vm0, %v606_v47, 0.0 }
 0x141   :  { %13008 = vst [vmem:[#allocation46_spill] sm:$0xff] %v6776_v32  ;;  %13009 = vst [vmem:[#allocation47_spill] sm:$0xff] %v6778_v29  ;;  %v5510_v29 = vld [vmem:[%s12700_s0 + $0xa8] sm:$0xff]  ;;  %v5511_v32 = vld [vmem:[%s12700_s0 + $0xa0] sm:$0xff] }
 0x142   :  { %v609_v8 = vmul.f32 %v5510_v29, %v5510_v29  ;;  %v608_v41 = vmul.f32 %v5511_v32, %v5511_v32 }
 0x143   :  { %784 = vadd.xlane.f32.xlu1 %v783_v5  ;;  %781 = vadd.xlane.f32.xlu0 %v780_v59 }
 0x144   :  { %v6788_v10 = vpop.xlane.xlu1 %436  ;;  %v6790_v7 = vpop.xlane.xlu0 %433  ;;  %v795_v9 = vsel %vm155_vm0, %v609_v8, 0.0  ;;  %v792_v47 = vsel %vm155_vm0, %v608_v41, 0.0 }
 0x145   :  { %13010 = vst [vmem:[#allocation48_spill] sm:$0xff] %v6788_v10  ;;  %13011 = vst [vmem:[#allocation49_spill] sm:$0xff] %v6790_v7  ;;  %v5512_v7 = vld [vmem:[%s12700_s0 + $0xb8] sm:$0xff]  ;;  %v5513_v10 = vld [vmem:[%s12700_s0 + $0xb0] sm:$0xff] }
 0x146   :  { %v611_v29 = vmul.f32 %v5512_v7, %v5512_v7  ;;  %v610_v32 = vmul.f32 %v5513_v10, %v5513_v10 }
 0x147   :  { %790 = vadd.xlane.f32.xlu1 %v789_v2  ;;  %787 = vadd.xlane.f32.xlu0 %v786_v11 }
 0x148   :  { %v6800_v5 = vpop.xlane.xlu1 %442  ;;  %v6802_v59 = vpop.xlane.xlu0 %439  ;;  %v801_v8 = vsel %vm155_vm0, %v611_v29, 0.0  ;;  %v798_v41 = vsel %vm155_vm0, %v610_v32, 0.0 }
 0x149   :  { %13012 = vst [vmem:[#allocation50_spill] sm:$0xff] %v6800_v5  ;;  %13013 = vst [vmem:[#allocation51_spill] sm:$0xff] %v6802_v59  ;;  %v5514_v59 = vld [vmem:[%s12700_s0 + $0xc8] sm:$0xff]  ;;  %v5515_v5 = vld [vmem:[%s12700_s0 + $0xc0] sm:$0xff] }
 0x14a   :  { %v613_v7 = vmul.f32 %v5514_v59, %v5514_v59  ;;  %v612_v10 = vmul.f32 %v5515_v5, %v5515_v5 }
 0x14b   :  { %796 = vadd.xlane.f32.xlu1 %v795_v9  ;;  %793 = vadd.xlane.f32.xlu0 %v792_v47 }
 0x14c   :  { %v6812_v2 = vpop.xlane.xlu1 %448  ;;  %v6814_v11 = vpop.xlane.xlu0 %445  ;;  %v807_v29 = vsel %vm155_vm0, %v613_v7, 0.0  ;;  %v804_v32 = vsel %vm155_vm0, %v612_v10, 0.0 }
 0x14d   :  { %13014 = vst [vmem:[#allocation52_spill] sm:$0xff] %v6812_v2  ;;  %13015 = vst [vmem:[#allocation53_spill] sm:$0xff] %v6814_v11  ;;  %v5516_v11 = vld [vmem:[%s12700_s0 + $0xd8] sm:$0xff]  ;;  %v5517_v2 = vld [vmem:[%s12700_s0 + $0xd0] sm:$0xff] }
 0x14e   :  { %v615_v59 = vmul.f32 %v5516_v11, %v5516_v11  ;;  %v614_v5 = vmul.f32 %v5517_v2, %v5517_v2 }
 0x14f   :  { %802 = vadd.xlane.f32.xlu1 %v801_v8  ;;  %799 = vadd.xlane.f32.xlu0 %v798_v41 }
 0x150   :  { %v6824_v9 = vpop.xlane.xlu1 %454  ;;  %v6826_v47 = vpop.xlane.xlu0 %451  ;;  %v813_v7 = vsel %vm155_vm0, %v615_v59, 0.0  ;;  %v810_v10 = vsel %vm155_vm0, %v614_v5, 0.0 }
 0x151   :  { %13016 = vst [vmem:[#allocation54_spill] sm:$0xff] %v6824_v9  ;;  %13017 = vst [vmem:[#allocation55_spill] sm:$0xff] %v6826_v47  ;;  %v5518_v47 = vld [vmem:[%s12700_s0 + $0xe8] sm:$0xff]  ;;  %v5519_v9 = vld [vmem:[%s12700_s0 + $0xe0] sm:$0xff] }
 0x152   :  { %v617_v11 = vmul.f32 %v5518_v47, %v5518_v47  ;;  %v616_v2 = vmul.f32 %v5519_v9, %v5519_v9 }
 0x153   :  { %808 = vadd.xlane.f32.xlu1 %v807_v29  ;;  %805 = vadd.xlane.f32.xlu0 %v804_v32 }
 0x154   :  { %v6836_v8 = vpop.xlane.xlu1 %460  ;;  %v6838_v41 = vpop.xlane.xlu0 %457  ;;  %v819_v59 = vsel %vm155_vm0, %v617_v11, 0.0  ;;  %v816_v5 = vsel %vm155_vm0, %v616_v2, 0.0 }
 0x155   :  { %13018 = vst [vmem:[#allocation56_spill] sm:$0xff] %v6836_v8  ;;  %13019 = vst [vmem:[#allocation57_spill] sm:$0xff] %v6838_v41  ;;  %v5520_v41 = vld [vmem:[%s12700_s0 + $0xf8] sm:$0xff]  ;;  %v5521_v8 = vld [vmem:[%s12700_s0 + $0xf0] sm:$0xff] }
 0x156   :  { %v619_v47 = vmul.f32 %v5520_v41, %v5520_v41  ;;  %v618_v9 = vmul.f32 %v5521_v8, %v5521_v8 }
 0x157   :  { %814 = vadd.xlane.f32.xlu1 %v813_v7  ;;  %811 = vadd.xlane.f32.xlu0 %v810_v10 }
 0x158   :  { %v6848_v29 = vpop.xlane.xlu1 %466  ;;  %v6850_v32 = vpop.xlane.xlu0 %463  ;;  %v825_v11 = vsel %vm155_vm0, %v619_v47, 0.0  ;;  %v822_v2 = vsel %vm155_vm0, %v618_v9, 0.0 }
 0x159   :  { %13020 = vst [vmem:[#allocation58_spill] sm:$0xff] %v6848_v29  ;;  %13021 = vst [vmem:[#allocation59_spill] sm:$0xff] %v6850_v32  ;;  %v5522_v32 = vld [vmem:[%s12700_s0 + $0x108] sm:$0xff]  ;;  %v5523_v29 = vld [vmem:[%s12700_s0 + $0x100] sm:$0xff] }
 0x15a   :  { %v621_v41 = vmul.f32 %v5522_v32, %v5522_v32  ;;  %v620_v8 = vmul.f32 %v5523_v29, %v5523_v29 }
 0x15b   :  { %820 = vadd.xlane.f32.xlu1 %v819_v59  ;;  %817 = vadd.xlane.f32.xlu0 %v816_v5 }
 0x15c   :  { %v6860_v7 = vpop.xlane.xlu1 %472  ;;  %v6862_v10 = vpop.xlane.xlu0 %469  ;;  %v831_v47 = vsel %vm155_vm0, %v621_v41, 0.0  ;;  %v828_v9 = vsel %vm155_vm0, %v620_v8, 0.0 }
 0x15d   :  { %13022 = vst [vmem:[#allocation60_spill] sm:$0xff] %v6860_v7  ;;  %13023 = vst [vmem:[#allocation61_spill] sm:$0xff] %v6862_v10  ;;  %v5524_v10 = vld [vmem:[%s12700_s0 + $0x118] sm:$0xff]  ;;  %v5525_v7 = vld [vmem:[%s12700_s0 + $0x110] sm:$0xff] }
 0x15e   :  { %v623_v32 = vmul.f32 %v5524_v10, %v5524_v10  ;;  %v622_v29 = vmul.f32 %v5525_v7, %v5525_v7 }
 0x15f   :  { %826 = vadd.xlane.f32.xlu1 %v825_v11  ;;  %823 = vadd.xlane.f32.xlu0 %v822_v2 }
 0x160   :  { %v6872_v59 = vpop.xlane.xlu1 %478  ;;  %v6874_v5 = vpop.xlane.xlu0 %475  ;;  %v837_v41 = vsel %vm155_vm0, %v623_v32, 0.0  ;;  %v834_v8 = vsel %vm155_vm0, %v622_v29, 0.0 }
 0x161   :  { %13024 = vst [vmem:[#allocation62_spill] sm:$0xff] %v6872_v59  ;;  %13025 = vst [vmem:[#allocation63_spill] sm:$0xff] %v6874_v5  ;;  %v5526_v5 = vld [vmem:[%s12700_s0 + $0x128] sm:$0xff]  ;;  %v5527_v59 = vld [vmem:[%s12700_s0 + $0x120] sm:$0xff] }
 0x162   :  { %v625_v10 = vmul.f32 %v5526_v5, %v5526_v5  ;;  %v624_v7 = vmul.f32 %v5527_v59, %v5527_v59 }
 0x163   :  { %832 = vadd.xlane.f32.xlu1 %v831_v47  ;;  %829 = vadd.xlane.f32.xlu0 %v828_v9 }
 0x164   :  { %v6884_v11 = vpop.xlane.xlu1 %484  ;;  %v6886_v2 = vpop.xlane.xlu0 %481  ;;  %v843_v32 = vsel %vm155_vm0, %v625_v10, 0.0  ;;  %v840_v29 = vsel %vm155_vm0, %v624_v7, 0.0 }
 0x165   :  { %13026 = vst [vmem:[#allocation64_spill] sm:$0xff] %v6884_v11  ;;  %13027 = vst [vmem:[#allocation65_spill] sm:$0xff] %v6886_v2  ;;  %v5528_v2 = vld [vmem:[%s12700_s0 + $0x138] sm:$0xff]  ;;  %v5529_v11 = vld [vmem:[%s12700_s0 + $0x130] sm:$0xff] }
 0x166   :  { %v627_v5 = vmul.f32 %v5528_v2, %v5528_v2  ;;  %v626_v59 = vmul.f32 %v5529_v11, %v5529_v11 }
 0x167   :  { %838 = vadd.xlane.f32.xlu1 %v837_v41  ;;  %835 = vadd.xlane.f32.xlu0 %v834_v8 }
 0x168   :  { %v6896_v47 = vpop.xlane.xlu1 %490  ;;  %v6898_v9 = vpop.xlane.xlu0 %487  ;;  %v849_v10 = vsel %vm155_vm0, %v627_v5, 0.0  ;;  %v846_v7 = vsel %vm155_vm0, %v626_v59, 0.0 }
 0x169   :  { %13028 = vst [vmem:[#allocation66_spill] sm:$0xff] %v6896_v47  ;;  %13029 = vst [vmem:[#allocation67_spill] sm:$0xff] %v6898_v9  ;;  %v5530_v9 = vld [vmem:[%s12700_s0 + $0x148] sm:$0xff]  ;;  %v5531_v47 = vld [vmem:[%s12700_s0 + $0x140] sm:$0xff] }
 0x16a   :  { %v629_v2 = vmul.f32 %v5530_v9, %v5530_v9  ;;  %v628_v11 = vmul.f32 %v5531_v47, %v5531_v47 }
 0x16b   :  { %844 = vadd.xlane.f32.xlu1 %v843_v32  ;;  %841 = vadd.xlane.f32.xlu0 %v840_v29 }
 0x16c   :  { %v6908_v41 = vpop.xlane.xlu1 %496  ;;  %v6910_v8 = vpop.xlane.xlu0 %493  ;;  %v855_v5 = vsel %vm155_vm0, %v629_v2, 0.0  ;;  %v852_v59 = vsel %vm155_vm0, %v628_v11, 0.0 }
 0x16d   :  { %13030 = vst [vmem:[#allocation68_spill] sm:$0xff] %v6908_v41  ;;  %13031 = vst [vmem:[#allocation69_spill] sm:$0xff] %v6910_v8  ;;  %v5532_v8 = vld [vmem:[%s12700_s0 + $0x158] sm:$0xff]  ;;  %v5533_v41 = vld [vmem:[%s12700_s0 + $0x150] sm:$0xff] }
 0x16e   :  { %v631_v9 = vmul.f32 %v5532_v8, %v5532_v8  ;;  %v630_v47 = vmul.f32 %v5533_v41, %v5533_v41 }
 0x16f   :  { %850 = vadd.xlane.f32.xlu1 %v849_v10  ;;  %847 = vadd.xlane.f32.xlu0 %v846_v7 }
 0x170   :  { %v6920_v32 = vpop.xlane.xlu1 %502  ;;  %v6922_v29 = vpop.xlane.xlu0 %499  ;;  %v861_v2 = vsel %vm155_vm0, %v631_v9, 0.0  ;;  %v858_v11 = vsel %vm155_vm0, %v630_v47, 0.0 }
 0x171   :  { %13032 = vst [vmem:[#allocation70_spill] sm:$0xff] %v6920_v32  ;;  %13033 = vst [vmem:[#allocation71_spill] sm:$0xff] %v6922_v29  ;;  %v5534_v29 = vld [vmem:[%s12700_s0 + $0x168] sm:$0xff]  ;;  %v5535_v32 = vld [vmem:[%s12700_s0 + $0x160] sm:$0xff] }
 0x172   :  { %v633_v8 = vmul.f32 %v5534_v29, %v5534_v29  ;;  %v632_v41 = vmul.f32 %v5535_v32, %v5535_v32 }
 0x173   :  { %856 = vadd.xlane.f32.xlu1 %v855_v5  ;;  %853 = vadd.xlane.f32.xlu0 %v852_v59 }
 0x174   :  { %v6932_v10 = vpop.xlane.xlu1 %508  ;;  %v6934_v7 = vpop.xlane.xlu0 %505  ;;  %v867_v9 = vsel %vm155_vm0, %v633_v8, 0.0  ;;  %v864_v47 = vsel %vm155_vm0, %v632_v41, 0.0 }
 0x175   :  { %13034 = vst [vmem:[#allocation72_spill] sm:$0xff] %v6932_v10  ;;  %13035 = vst [vmem:[#allocation73_spill] sm:$0xff] %v6934_v7  ;;  %v5536_v7 = vld [vmem:[%s12700_s0 + $0x178] sm:$0xff]  ;;  %v5537_v10 = vld [vmem:[%s12700_s0 + $0x170] sm:$0xff] }
 0x176   :  { %v635_v29 = vmul.f32 %v5536_v7, %v5536_v7  ;;  %v634_v32 = vmul.f32 %v5537_v10, %v5537_v10 }
 0x177   :  { %862 = vadd.xlane.f32.xlu1 %v861_v2  ;;  %859 = vadd.xlane.f32.xlu0 %v858_v11 }
 0x178   :  { %v6944_v5 = vpop.xlane.xlu1 %514  ;;  %v6946_v59 = vpop.xlane.xlu0 %511  ;;  %v873_v8 = vsel %vm155_vm0, %v635_v29, 0.0  ;;  %v870_v41 = vsel %vm155_vm0, %v634_v32, 0.0 }
 0x179   :  { %13036 = vst [vmem:[#allocation74_spill] sm:$0xff] %v6944_v5  ;;  %13037 = vst [vmem:[#allocation75_spill] sm:$0xff] %v6946_v59  ;;  %v5538_v59 = vld [vmem:[%s12700_s0 + $0x188] sm:$0xff]  ;;  %v5539_v5 = vld [vmem:[%s12700_s0 + $0x180] sm:$0xff] }
 0x17a   :  { %v637_v7 = vmul.f32 %v5538_v59, %v5538_v59  ;;  %v636_v10 = vmul.f32 %v5539_v5, %v5539_v5 }
 0x17b   :  { %868 = vadd.xlane.f32.xlu1 %v867_v9  ;;  %865 = vadd.xlane.f32.xlu0 %v864_v47 }
 0x17c   :  { %v6956_v2 = vpop.xlane.xlu1 %520  ;;  %v6958_v11 = vpop.xlane.xlu0 %517  ;;  %v879_v29 = vsel %vm155_vm0, %v637_v7, 0.0  ;;  %v876_v32 = vsel %vm155_vm0, %v636_v10, 0.0 }
 0x17d   :  { %13038 = vst [vmem:[#allocation76_spill] sm:$0xff] %v6956_v2  ;;  %13039 = vst [vmem:[#allocation77_spill] sm:$0xff] %v6958_v11  ;;  %v5540_v11 = vld [vmem:[%s12700_s0 + $0x198] sm:$0xff]  ;;  %v5541_v2 = vld [vmem:[%s12700_s0 + $0x190] sm:$0xff] }
 0x17e   :  { %v639_v59 = vmul.f32 %v5540_v11, %v5540_v11  ;;  %v638_v5 = vmul.f32 %v5541_v2, %v5541_v2 }
 0x17f   :  { %874 = vadd.xlane.f32.xlu1 %v873_v8  ;;  %871 = vadd.xlane.f32.xlu0 %v870_v41 }
 0x180   :  { %v6968_v9 = vpop.xlane.xlu1 %526  ;;  %v6970_v47 = vpop.xlane.xlu0 %523  ;;  %v885_v7 = vsel %vm155_vm0, %v639_v59, 0.0  ;;  %v882_v10 = vsel %vm155_vm0, %v638_v5, 0.0 }
 0x181   :  { %13040 = vst [vmem:[#allocation78_spill] sm:$0xff] %v6968_v9  ;;  %13041 = vst [vmem:[#allocation79_spill] sm:$0xff] %v6970_v47  ;;  %v5542_v47 = vld [vmem:[%s12700_s0 + $0x1a8] sm:$0xff]  ;;  %v5543_v9 = vld [vmem:[%s12700_s0 + $0x1a0] sm:$0xff] }
 0x182   :  { %v641_v11 = vmul.f32 %v5542_v47, %v5542_v47  ;;  %v640_v2 = vmul.f32 %v5543_v9, %v5543_v9 }
 0x183   :  { %880 = vadd.xlane.f32.xlu1 %v879_v29  ;;  %877 = vadd.xlane.f32.xlu0 %v876_v32 }
 0x184   :  { %v6980_v8 = vpop.xlane.xlu1 %532  ;;  %v6982_v41 = vpop.xlane.xlu0 %529  ;;  %v891_v59 = vsel %vm155_vm0, %v641_v11, 0.0  ;;  %v888_v5 = vsel %vm155_vm0, %v640_v2, 0.0 }
 0x185   :  { %13042 = vst [vmem:[#allocation80_spill] sm:$0xff] %v6980_v8  ;;  %13043 = vst [vmem:[#allocation81_spill] sm:$0xff] %v6982_v41  ;;  %v5544_v41 = vld [vmem:[%s12700_s0 + $0x1b8] sm:$0xff]  ;;  %v5545_v8 = vld [vmem:[%s12700_s0 + $0x1b0] sm:$0xff] }
 0x186   :  { %v643_v47 = vmul.f32 %v5544_v41, %v5544_v41  ;;  %v642_v9 = vmul.f32 %v5545_v8, %v5545_v8 }
 0x187   :  { %886 = vadd.xlane.f32.xlu1 %v885_v7  ;;  %883 = vadd.xlane.f32.xlu0 %v882_v10 }
 0x188   :  { %v6992_v29 = vpop.xlane.xlu1 %538  ;;  %v6994_v32 = vpop.xlane.xlu0 %535  ;;  %v897_v11 = vsel %vm155_vm0, %v643_v47, 0.0  ;;  %v894_v2 = vsel %vm155_vm0, %v642_v9, 0.0 }
 0x189   :  { %13044 = vst [vmem:[#allocation82_spill] sm:$0xff] %v6992_v29  ;;  %13045 = vst [vmem:[#allocation83_spill] sm:$0xff] %v6994_v32  ;;  %v5546_v32 = vld [vmem:[%s12700_s0 + $0x1c8] sm:$0xff]  ;;  %v5547_v29 = vld [vmem:[%s12700_s0 + $0x1c0] sm:$0xff] }
 0x18a   :  { %v645_v41 = vmul.f32 %v5546_v32, %v5546_v32  ;;  %v644_v8 = vmul.f32 %v5547_v29, %v5547_v29 }
 0x18b   :  { %892 = vadd.xlane.f32.xlu1 %v891_v59  ;;  %889 = vadd.xlane.f32.xlu0 %v888_v5 }
 0x18c   :  { %v7004_v7 = vpop.xlane.xlu1 %544  ;;  %v7006_v10 = vpop.xlane.xlu0 %541  ;;  %v903_v47 = vsel %vm155_vm0, %v645_v41, 0.0  ;;  %v900_v9 = vsel %vm155_vm0, %v644_v8, 0.0 }
 0x18d   :  { %13046 = vst [vmem:[#allocation84_spill] sm:$0xff] %v7004_v7  ;;  %13047 = vst [vmem:[#allocation85_spill] sm:$0xff] %v7006_v10  ;;  %v5548_v10 = vld [vmem:[%s12700_s0 + $0x1d8] sm:$0xff]  ;;  %v5549_v7 = vld [vmem:[%s12700_s0 + $0x1d0] sm:$0xff] }
 0x18e   :  { %v647_v32 = vmul.f32 %v5548_v10, %v5548_v10  ;;  %v646_v29 = vmul.f32 %v5549_v7, %v5549_v7 }
 0x18f   :  { %898 = vadd.xlane.f32.xlu1 %v897_v11  ;;  %895 = vadd.xlane.f32.xlu0 %v894_v2 }
 0x190   :  { %v7016_v59 = vpop.xlane.xlu1 %550  ;;  %v7018_v5 = vpop.xlane.xlu0 %547  ;;  %v909_v41 = vsel %vm155_vm0, %v647_v32, 0.0  ;;  %v906_v8 = vsel %vm155_vm0, %v646_v29, 0.0 }
 0x191   :  { %13048 = vst [vmem:[#allocation86_spill] sm:$0xff] %v7016_v59  ;;  %13049 = vst [vmem:[#allocation87_spill] sm:$0xff] %v7018_v5  ;;  %v5550_v5 = vld [vmem:[%s12700_s0 + $0x1e8] sm:$0xff]  ;;  %v5551_v59 = vld [vmem:[%s12700_s0 + $0x1e0] sm:$0xff] }
 0x192   :  { %v649_v10 = vmul.f32 %v5550_v5, %v5550_v5  ;;  %v648_v7 = vmul.f32 %v5551_v59, %v5551_v59 }
 0x193   :  { %904 = vadd.xlane.f32.xlu1 %v903_v47  ;;  %901 = vadd.xlane.f32.xlu0 %v900_v9 }
 0x194   :  { %v7028_v11 = vpop.xlane.xlu1 %556  ;;  %v7030_v2 = vpop.xlane.xlu0 %553  ;;  %v915_v32 = vsel %vm155_vm0, %v649_v10, 0.0  ;;  %v912_v29 = vsel %vm155_vm0, %v648_v7, 0.0 }
 0x195   :  { %13050 = vst [vmem:[#allocation88_spill] sm:$0xff] %v7028_v11  ;;  %13051 = vst [vmem:[#allocation89_spill] sm:$0xff] %v7030_v2  ;;  %v5552_v2 = vld [vmem:[%s12700_s0 + $0x1f8] sm:$0xff]  ;;  %v5553_v11 = vld [vmem:[%s12700_s0 + $0x1f0] sm:$0xff] }
 0x196   :  { %v651_v5 = vmul.f32 %v5552_v2, %v5552_v2  ;;  %v650_v59 = vmul.f32 %v5553_v11, %v5553_v11 }
 0x197   :  { %910 = vadd.xlane.f32.xlu1 %v909_v41  ;;  %907 = vadd.xlane.f32.xlu0 %v906_v8 }
 0x198   :  { %v7040_v47 = vpop.xlane.xlu1 %562  ;;  %v7042_v9 = vpop.xlane.xlu0 %559  ;;  %v921_v10 = vsel %vm155_vm0, %v651_v5, 0.0  ;;  %v918_v7 = vsel %vm155_vm0, %v650_v59, 0.0 }
 0x199   :  { %13052 = vst [vmem:[#allocation90_spill] sm:$0xff] %v7040_v47  ;;  %13053 = vst [vmem:[#allocation91_spill] sm:$0xff] %v7042_v9  ;;  %v5554_v9 = vld [vmem:[%s12700_s0 + $0x208] sm:$0xff]  ;;  %v5555_v47 = vld [vmem:[%s12700_s0 + $0x200] sm:$0xff] }
 0x19a   :  { %v653_v2 = vmul.f32 %v5554_v9, %v5554_v9  ;;  %v652_v11 = vmul.f32 %v5555_v47, %v5555_v47 }
 0x19b   :  { %916 = vadd.xlane.f32.xlu1 %v915_v32  ;;  %913 = vadd.xlane.f32.xlu0 %v912_v29 }
 0x19c   :  { %v7052_v41 = vpop.xlane.xlu1 %568  ;;  %v7054_v8 = vpop.xlane.xlu0 %565  ;;  %v927_v5 = vsel %vm155_vm0, %v653_v2, 0.0  ;;  %v924_v59 = vsel %vm155_vm0, %v652_v11, 0.0 }
 0x19d   :  { %13054 = vst [vmem:[#allocation92_spill] sm:$0xff] %v7052_v41  ;;  %13055 = vst [vmem:[#allocation93_spill] sm:$0xff] %v7054_v8  ;;  %v5556_v8 = vld [vmem:[%s12700_s0 + $0x218] sm:$0xff]  ;;  %v5557_v41 = vld [vmem:[%s12700_s0 + $0x210] sm:$0xff] }
 0x19e   :  { %v655_v9 = vmul.f32 %v5556_v8, %v5556_v8  ;;  %v654_v47 = vmul.f32 %v5557_v41, %v5557_v41 }
 0x19f   :  { %922 = vadd.xlane.f32.xlu1 %v921_v10  ;;  %919 = vadd.xlane.f32.xlu0 %v918_v7 }
 0x1a0   :  { %v7064_v32 = vpop.xlane.xlu1 %574  ;;  %v7066_v29 = vpop.xlane.xlu0 %571  ;;  %v933_v2 = vsel %vm155_vm0, %v655_v9, 0.0  ;;  %v930_v11 = vsel %vm155_vm0, %v654_v47, 0.0 }
 0x1a1   :  { %13056 = vst [vmem:[#allocation94_spill] sm:$0xff] %v7064_v32  ;;  %13057 = vst [vmem:[#allocation95_spill] sm:$0xff] %v7066_v29  ;;  %v5558_v29 = vld [vmem:[%s12700_s0 + $0x228] sm:$0xff]  ;;  %v5559_v32 = vld [vmem:[%s12700_s0 + $0x220] sm:$0xff] }
 0x1a2   :  { %v657_v8 = vmul.f32 %v5558_v29, %v5558_v29  ;;  %v656_v41 = vmul.f32 %v5559_v32, %v5559_v32  ;;  %v5560_v29 = vld [vmem:[%s12700_s0 + $0x238] sm:$0xff] }
 0x1a3   :  { %928 = vadd.xlane.f32.xlu1 %v927_v5  ;;  %925 = vadd.xlane.f32.xlu0 %v924_v59  ;;  %v7089_v5 = vmul.f32 0.020408163, %v6243_v25  ;;  %v5561_v25 = vld [vmem:[%s12700_s0 + $0x230] sm:$0xff] }
 0x1a4   :  { %v7076_v10 = vpop.xlane.xlu1 %580  ;;  %v7078_v7 = vpop.xlane.xlu0 %577  ;;  %v939_v47 = vsel %vm155_vm0, %v657_v8, 0.0  ;;  %v658_v32 = vmul.f32 %v5561_v25, %v5561_v25 }
 0x1a5   :  { %13058 = vst [vmem:[#allocation96_spill] sm:$0xff] %v7076_v10  ;;  %13059 = vst [vmem:[#allocation97_spill] sm:$0xff] %v7078_v7  ;;  %v936_v7 = vsel %vm155_vm0, %v656_v41, 0.0  ;;  %v659_v10 = vmul.f32 %v5560_v29, %v5560_v29  ;;  %v7111_v8 = vmul.f32 %v7089_v5, %v7089_v5 }
 0x1a6   :  { %13060 = vst [vmem:[#allocation98_spill] sm:$0xff] %v7089_v5 }
 0x1a7   :  { %934 = vadd.xlane.f32.xlu1 %v933_v2  ;;  %931 = vadd.xlane.f32.xlu0 %v930_v11  ;;  %v7104_v2 = vmul.f32 0.020408163, %v6255_v31  ;;  %v7107_v11 = vmul.f32 0.020408163, %v6241_v24  ;;  %v945_v29 = vsel %vm155_vm0, %v659_v10, 0.0  ;;  %v5562_v31 = vld [vmem:[%s12700_s0 + $0x248] sm:$0xff] }
 0x1a8   :  { %v7091_v59 = vpop.xlane.xlu1 %586  ;;  %v7093_v9 = vpop.xlane.xlu0 %583  ;;  %v661_v25 = vmul.f32 %v5562_v31, %v5562_v31  ;;  %v5563_v24 = vld [vmem:[%s12700_s0 + $0x240] sm:$0xff]  ;;  %v5565_v31 = vld [vmem:[%s12700_s0 + $0x250] sm:$0xff] }
 0x1a9   :  { %13061 = vst [vmem:[#allocation99_spill] sm:$0xff] %v7091_v59  ;;  %13062 = vst [vmem:[#allocation100_spill] sm:$0xff] %v7093_v9  ;;  %v942_v9 = vsel %vm155_vm0, %v658_v32, 0.0  ;;  %v660_v26 = vmul.f32 %v5563_v24, %v5563_v24  ;;  %v7134_v32 = vmul.f32 %v7107_v11, %v7107_v11  ;;  %v7160_v24 = vmul.f32 0.020408163, %v6267_v37 }
 0x1aa   :  { %13063 = vst [vmem:[#allocation101_spill] sm:$0xff] %v7104_v2  ;;  %13064 = vst [vmem:[#allocation102_spill] sm:$0xff] %v7107_v11  ;;  %v951_v52 = vsel %vm155_vm0, %v661_v25, 0.0  ;;  %v662_v11 = vmul.f32 %v5565_v31, %v5565_v31  ;;  %v5567_v31 = vld [vmem:[%s12700_s0 + $0x260] sm:$0xff] }
 0x1ab   :  { %940 = vadd.xlane.f32.xlu1 %v939_v47  ;;  %937 = vadd.xlane.f32.xlu0 %v936_v7  ;;  %v7126_v7 = vmul.f32 %v7104_v2, %v7104_v2  ;;  %13067 = vst [vmem:[#allocation105_spill] sm:$0xff] %v7160_v24  ;;  %v664_v21 = vmul.f32 %v5567_v31, %v5567_v31  ;;  %v5569_v31 = vld [vmem:[%s12700_s0 + $0x270] sm:$0xff] }
 0x1ac   :  { %v737_v41 = vpop.xlane.xlu1 %736  ;;  %v734_v59 = vpop.xlane.xlu0 %733 }
 0x1ad   :  { %v7128_v10 = vmul.f32 0.020408163, %v737_v41  ;;  %v7130_v47 = vmul.f32 0.020408163, %v734_v59  ;;  %v948_v41 = vsel %vm155_vm0, %v660_v26, 0.0  ;;  %v5564_v59 = vld [vmem:[%s12700_s0 + $0x258] sm:$0xff] }
 0x1ae   :  { %v663_v5 = vmul.f32 %v5564_v59, %v5564_v59  ;;  %v7163_v59 = vmul.f32 0.020408163, %v6277_v42  ;;  %v954_v42 = vsel %vm155_vm0, %v662_v11, 0.0 }
 0x1af   :  { %946 = vadd.xlane.f32.xlu1 %v945_v29  ;;  %943 = vadd.xlane.f32.xlu0 %v942_v9  ;;  %v7150_v29 = vmul.f32 %v7122_v1, %v7122_v1  ;;  %v7153_v9 = vmul.f32 0.020408163, %v6265_v36  ;;  %v5566_v36 = vld [vmem:[%s12700_s0 + $0x268] sm:$0xff] }
 0x1b0   :  { %v743_v30 = vpop.xlane.xlu1 %742  ;;  %v740_v44 = vpop.xlane.xlu0 %739  ;;  %13068 = vst [vmem:[#allocation106_spill] sm:$0xff] %v7163_v59  ;;  %v957_v37 = vsel %vm155_vm0, %v663_v5, 0.0  ;;  %v7194_v11 = vmul.f32 %v7163_v59, %v7163_v59 }
 0x1b1   :  { %13066 = vst [vmem:[#allocation104_spill] sm:$0xff] %v7153_v9  ;;  %v7155_v25 = vmul.f32 0.020408163, %v743_v30  ;;  %v7157_v26 = vmul.f32 0.020408163, %v740_v44  ;;  %v665_v44 = vmul.f32 %v5566_v36, %v5566_v36  ;;  %v7188_v36 = vmul.f32 %v7160_v24, %v7160_v24 }
 0x1b2   :  { %13072 = vst [vmem:[#allocation110_spill] sm:$0xff] %v7194_v11  ;;  %v960_v24 = vsel %vm155_vm0, %v664_v21, 0.0 }
 0x1b3   :  { %952 = vadd.xlane.f32.xlu1 %v951_v52  ;;  %949 = vadd.xlane.f32.xlu0 %v948_v41  ;;  %v7179_v52 = vmul.f32 %v7153_v9, %v7153_v9  ;;  %v7182_v41 = vmul.f32 0.020408163, %v6279_v43  ;;  %v963_v43 = vsel %vm155_vm0, %v665_v44, 0.0 }
 0x1b4   :  { %v749_v30 = vpop.xlane.xlu1 %748  ;;  %v746_v2 = vpop.xlane.xlu0 %745 }
 0x1b5   :  { %13069 = vst [vmem:[#allocation107_spill] sm:$0xff] %v7179_v52  ;;  %13070 = vst [vmem:[#allocation108_spill] sm:$0xff] %v7182_v41  ;;  %v7184_v1 = vmul.f32 0.020408163, %v749_v30  ;;  %v7190_v5 = vmul.f32 0.020408163, %v746_v2  ;;  %v7210_v44 = vmul.f32 %v7182_v41, %v7182_v41 }
 0x1b6   :  { %v5568_v2 = vld [vmem:[%s12700_s0 + $0x278] sm:$0xff]  ;;  %v7220_v52 = vmul.f32 0.020408163, %v6291_v49 }
 0x1b7   :  { %13071 = vst [vmem:[#allocation109_spill] sm:$0xff] %v7184_v1  ;;  %958 = vadd.xlane.f32.xlu1 %v957_v37  ;;  %955 = vadd.xlane.f32.xlu0 %v954_v42  ;;  %v667_v59 = vmul.f32 %v5568_v2, %v5568_v2  ;;  %v666_v37 = vmul.f32 %v5569_v31, %v5569_v31  ;;  %v7213_v42 = vmul.f32 0.020408163, %v6289_v48  ;;  %v7223_v2 = vmul.f32 0.020408163, %v6301_v54  ;;  %v5570_v48 = vld [vmem:[%s12700_s0 + $0x288] sm:$0xff] }
 0x1b8   :  { %v755_v9 = vpop.xlane.xlu1 %754  ;;  %v752_v16 = vpop.xlane.xlu0 %751  ;;  %13075 = vst [vmem:[#allocation113_spill] sm:$0xff] %v7220_v52  ;;  %v5571_v31 = vld [vmem:[%s12700_s0 + $0x280] sm:$0xff] }
 0x1b9   :  { %13073 = vst [vmem:[#allocation111_spill] sm:$0xff] %v7213_v42  ;;  %v7215_v30 = vmul.f32 0.020408163, %v755_v9  ;;  %v7217_v21 = vmul.f32 0.020408163, %v752_v16  ;;  %13076 = vst [vmem:[#allocation114_spill] sm:$0xff] %v7223_v2  ;;  %v669_v16 = vmul.f32 %v5570_v48, %v5570_v48  ;;  %v668_v11 = vmul.f32 %v5571_v31, %v5571_v31 }
 0x1ba   :  { %v969_v49 = vsel %vm155_vm0, %v667_v59, 0.0  ;;  %v966_v54 = vsel %vm155_vm0, %v666_v37, 0.0  ;;  %v7248_v48 = vmul.f32 %v7220_v52, %v7220_v52  ;;  %v7254_v37 = vmul.f32 %v7223_v2, %v7223_v2  ;;  %v5573_v31 = vld [vmem:[%s12700_s0 + $0x290] sm:$0xff] }
 0x1bb   :  { %13074 = vst [vmem:[#allocation112_spill] sm:$0xff] %v7215_v30  ;;  %964 = vadd.xlane.f32.xlu1 %v963_v43  ;;  %961 = vadd.xlane.f32.xlu0 %v960_v24  ;;  %v7239_v43 = vmul.f32 %v7213_v42, %v7213_v42  ;;  %v7242_v24 = vmul.f32 0.020408163, %v6303_v55  ;;  %v975_v55 = vsel %vm155_vm0, %v669_v16, 0.0  ;;  %v972_v52 = vsel %vm155_vm0, %v668_v11, 0.0 }
 0x1bc   :  { %v761_v9 = vpop.xlane.xlu1 %760  ;;  %v758_v1 = vpop.xlane.xlu0 %757  ;;  %13080 = vst [vmem:[#allocation118_spill] sm:$0xff] %v7254_v37 }
 0x1bd   :  { %13077 = vst [vmem:[#allocation115_spill] sm:$0xff] %v7239_v43  ;;  %13078 = vst [vmem:[#allocation116_spill] sm:$0xff] %v7242_v24  ;;  %v7244_v41 = vmul.f32 0.020408163, %v761_v9  ;;  %v7250_v59 = vmul.f32 0.020408163, %v758_v1  ;;  %v7270_v16 = vmul.f32 %v7242_v24, %v7242_v24 }
 0x1be   :  { %v5572_v1 = vld [vmem:[%s12700_s0 + $0x298] sm:$0xff]  ;;  %v7280_v43 = vmul.f32 0.020408163, %v6315_v61 }
 0x1bf   :  { %13079 = vst [vmem:[#allocation117_spill] sm:$0xff] %v7244_v41  ;;  %970 = vadd.xlane.f32.xlu1 %v969_v49  ;;  %967 = vadd.xlane.f32.xlu0 %v966_v54  ;;  %v671_v2 = vmul.f32 %v5572_v1, %v5572_v1  ;;  %v670_v49 = vmul.f32 %v5573_v31, %v5573_v31  ;;  %v7273_v54 = vmul.f32 0.020408163, %v6313_v60  ;;  %v7283_v1 = vmul.f32 0.020408163, %v6325_v4  ;;  %v5574_v60 = vld [vmem:[%s12700_s0 + $0x2a8] sm:$0xff] }
 0x1c0   :  { %v767_v42 = vpop.xlane.xlu1 %766  ;;  %v764_v30 = vpop.xlane.xlu0 %763  ;;  %13083 = vst [vmem:[#allocation121_spill] sm:$0xff] %v7280_v43  ;;  %v5575_v31 = vld [vmem:[%s12700_s0 + $0x2a0] sm:$0xff] }
 0x1c1   :  { %13081 = vst [vmem:[#allocation119_spill] sm:$0xff] %v7273_v54  ;;  %v7275_v9 = vmul.f32 0.020408163, %v767_v42  ;;  %v7277_v11 = vmul.f32 0.020408163, %v764_v30  ;;  %13084 = vst [vmem:[#allocation122_spill] sm:$0xff] %v7283_v1  ;;  %v673_v30 = vmul.f32 %v5574_v60, %v5574_v60  ;;  %v672_v37 = vmul.f32 %v5575_v31, %v5575_v31 }
 0x1c2   :  { %v981_v61 = vsel %vm155_vm0, %v671_v2, 0.0  ;;  %v978_v4 = vsel %vm155_vm0, %v670_v49, 0.0  ;;  %v7308_v60 = vmul.f32 %v7280_v43, %v7280_v43  ;;  %v7314_v49 = vmul.f32 %v7283_v1, %v7283_v1  ;;  %v5577_v31 = vld [vmem:[%s12700_s0 + $0x2b0] sm:$0xff] }
 0x1c3   :  { %13082 = vst [vmem:[#allocation120_spill] sm:$0xff] %v7275_v9  ;;  %976 = vadd.xlane.f32.xlu1 %v975_v55  ;;  %973 = vadd.xlane.f32.xlu0 %v972_v52  ;;  %v7299_v55 = vmul.f32 %v7273_v54, %v7273_v54  ;;  %v7302_v52 = vmul.f32 0.020408163, %v6327_v6  ;;  %v987_v6 = vsel %vm155_vm0, %v673_v30, 0.0  ;;  %v984_v43 = vsel %vm155_vm0, %v672_v37, 0.0 }
 0x1c4   :  { %v773_v42 = vpop.xlane.xlu1 %772  ;;  %v770_v41 = vpop.xlane.xlu0 %769  ;;  %13088 = vst [vmem:[#allocation126_spill] sm:$0xff] %v7314_v49 }
 0x1c5   :  { %13085 = vst [vmem:[#allocation123_spill] sm:$0xff] %v7299_v55  ;;  %13086 = vst [vmem:[#allocation124_spill] sm:$0xff] %v7302_v52  ;;  %v7304_v24 = vmul.f32 0.020408163, %v773_v42  ;;  %v7310_v2 = vmul.f32 0.020408163, %v770_v41  ;;  %v7330_v30 = vmul.f32 %v7302_v52, %v7302_v52 }
 0x1c6   :  { %v5576_v41 = vld [vmem:[%s12700_s0 + $0x2b8] sm:$0xff]  ;;  %v7340_v55 = vmul.f32 0.020408163, %v6339_v14 }
 0x1c7   :  { %13087 = vst [vmem:[#allocation125_spill] sm:$0xff] %v7304_v24  ;;  %982 = vadd.xlane.f32.xlu1 %v981_v61  ;;  %979 = vadd.xlane.f32.xlu0 %v978_v4  ;;  %v675_v1 = vmul.f32 %v5576_v41, %v5576_v41  ;;  %v674_v61 = vmul.f32 %v5577_v31, %v5577_v31  ;;  %v7333_v4 = vmul.f32 0.020408163, %v6337_v13  ;;  %v7343_v41 = vmul.f32 0.020408163, %v6349_v19  ;;  %v5578_v13 = vld [vmem:[%s12700_s0 + $0x2c8] sm:$0xff] }
 0x1c8   :  { %v779_v54 = vpop.xlane.xlu1 %778  ;;  %v776_v9 = vpop.xlane.xlu0 %775  ;;  %13091 = vst [vmem:[#allocation129_spill] sm:$0xff] %v7340_v55  ;;  %v5579_v31 = vld [vmem:[%s12700_s0 + $0x2c0] sm:$0xff] }
 0x1c9   :  { %13089 = vst [vmem:[#allocation127_spill] sm:$0xff] %v7333_v4  ;;  %v7335_v42 = vmul.f32 0.020408163, %v779_v54  ;;  %v7337_v37 = vmul.f32 0.020408163, %v776_v9  ;;  %13092 = vst [vmem:[#allocation130_spill] sm:$0xff] %v7343_v41  ;;  %v677_v9 = vmul.f32 %v5578_v13, %v5578_v13  ;;  %v676_v49 = vmul.f32 %v5579_v31, %v5579_v31 }
 0x1ca   :  { %v993_v14 = vsel %vm155_vm0, %v675_v1, 0.0  ;;  %v990_v19 = vsel %vm155_vm0, %v674_v61, 0.0  ;;  %v7368_v13 = vmul.f32 %v7340_v55, %v7340_v55  ;;  %v7374_v61 = vmul.f32 %v7343_v41, %v7343_v41  ;;  %v5581_v31 = vld [vmem:[%s12700_s0 + $0x2d0] sm:$0xff] }
 0x1cb   :  { %13090 = vst [vmem:[#allocation128_spill] sm:$0xff] %v7335_v42  ;;  %988 = vadd.xlane.f32.xlu1 %v987_v6  ;;  %985 = vadd.xlane.f32.xlu0 %v984_v43  ;;  %v7359_v6 = vmul.f32 %v7333_v4, %v7333_v4  ;;  %v7362_v43 = vmul.f32 0.020408163, %v6351_v20  ;;  %v999_v20 = vsel %vm155_vm0, %v677_v9, 0.0  ;;  %v996_v55 = vsel %vm155_vm0, %v676_v49, 0.0 }
 0x1cc   :  { %v785_v54 = vpop.xlane.xlu1 %784  ;;  %v782_v24 = vpop.xlane.xlu0 %781  ;;  %13096 = vst [vmem:[#allocation134_spill] sm:$0xff] %v7374_v61 }
 0x1cd   :  { %13093 = vst [vmem:[#allocation131_spill] sm:$0xff] %v7359_v6  ;;  %13094 = vst [vmem:[#allocation132_spill] sm:$0xff] %v7362_v43  ;;  %v7364_v52 = vmul.f32 0.020408163, %v785_v54  ;;  %v7370_v1 = vmul.f32 0.020408163, %v782_v24  ;;  %v7390_v9 = vmul.f32 %v7362_v43, %v7362_v43 }
 0x1ce   :  { %v5580_v24 = vld [vmem:[%s12700_s0 + $0x2d8] sm:$0xff]  ;;  %v7400_v6 = vmul.f32 0.020408163, %v6363_v28 }
 0x1cf   :  { %13095 = vst [vmem:[#allocation133_spill] sm:$0xff] %v7364_v52  ;;  %994 = vadd.xlane.f32.xlu1 %v993_v14  ;;  %991 = vadd.xlane.f32.xlu0 %v990_v19  ;;  %v679_v41 = vmul.f32 %v5580_v24, %v5580_v24  ;;  %v678_v14 = vmul.f32 %v5581_v31, %v5581_v31  ;;  %v7393_v19 = vmul.f32 0.020408163, %v6361_v27  ;;  %v7403_v24 = vmul.f32 0.020408163, %v6373_v35  ;;  %v5582_v27 = vld [vmem:[%s12700_s0 + $0x2e8] sm:$0xff] }
 0x1d0   :  { %v791_v4 = vpop.xlane.xlu1 %790  ;;  %v788_v42 = vpop.xlane.xlu0 %787  ;;  %13099 = vst [vmem:[#allocation137_spill] sm:$0xff] %v7400_v6  ;;  %v5583_v31 = vld [vmem:[%s12700_s0 + $0x2e0] sm:$0xff] }
 0x1d1   :  { %13097 = vst [vmem:[#allocation135_spill] sm:$0xff] %v7393_v19  ;;  %v7395_v54 = vmul.f32 0.020408163, %v791_v4  ;;  %v7397_v49 = vmul.f32 0.020408163, %v788_v42  ;;  %13100 = vst [vmem:[#allocation138_spill] sm:$0xff] %v7403_v24  ;;  %v681_v42 = vmul.f32 %v5582_v27, %v5582_v27  ;;  %v680_v61 = vmul.f32 %v5583_v31, %v5583_v31 }
 0x1d2   :  { %v1005_v28 = vsel %vm155_vm0, %v679_v41, 0.0  ;;  %v1002_v35 = vsel %vm155_vm0, %v678_v14, 0.0  ;;  %v7428_v27 = vmul.f32 %v7400_v6, %v7400_v6  ;;  %v7434_v14 = vmul.f32 %v7403_v24, %v7403_v24  ;;  %v5585_v31 = vld [vmem:[%s12700_s0 + $0x2f0] sm:$0xff] }
 0x1d3   :  { %13098 = vst [vmem:[#allocation136_spill] sm:$0xff] %v7395_v54  ;;  %1000 = vadd.xlane.f32.xlu1 %v999_v20  ;;  %997 = vadd.xlane.f32.xlu0 %v996_v55  ;;  %v7419_v20 = vmul.f32 %v7393_v19, %v7393_v19  ;;  %v7422_v55 = vmul.f32 0.020408163, %v6375_v38  ;;  %v1011_v38 = vsel %vm155_vm0, %v681_v42, 0.0  ;;  %v1008_v6 = vsel %vm155_vm0, %v680_v61, 0.0 }
 0x1d4   :  { %v797_v4 = vpop.xlane.xlu1 %796  ;;  %v794_v52 = vpop.xlane.xlu0 %793  ;;  %13104 = vst [vmem:[#allocation142_spill] sm:$0xff] %v7434_v14 }
 0x1d5   :  { %13101 = vst [vmem:[#allocation139_spill] sm:$0xff] %v7419_v20  ;;  %13102 = vst [vmem:[#allocation140_spill] sm:$0xff] %v7422_v55  ;;  %v7424_v43 = vmul.f32 0.020408163, %v797_v4  ;;  %v7430_v41 = vmul.f32 0.020408163, %v794_v52  ;;  %v7450_v42 = vmul.f32 %v7422_v55, %v7422_v55 }
 0x1d6   :  { %v5584_v52 = vld [vmem:[%s12700_s0 + $0x2f8] sm:$0xff]  ;;  %v7460_v20 = vmul.f32 0.020408163, %v6387_v46 }
 0x1d7   :  { %13103 = vst [vmem:[#allocation141_spill] sm:$0xff] %v7424_v43  ;;  %1006 = vadd.xlane.f32.xlu1 %v1005_v28  ;;  %1003 = vadd.xlane.f32.xlu0 %v1002_v35  ;;  %v683_v24 = vmul.f32 %v5584_v52, %v5584_v52  ;;  %v682_v28 = vmul.f32 %v5585_v31, %v5585_v31  ;;  %v7453_v35 = vmul.f32 0.020408163, %v6385_v45  ;;  %v7463_v52 = vmul.f32 0.020408163, %v6397_v53  ;;  %v5586_v45 = vld [vmem:[%s12700_s0 + $0x308] sm:$0xff] }
 0x1d8   :  { %v803_v19 = vpop.xlane.xlu1 %802  ;;  %v800_v54 = vpop.xlane.xlu0 %799  ;;  %13107 = vst [vmem:[#allocation145_spill] sm:$0xff] %v7460_v20  ;;  %v5587_v31 = vld [vmem:[%s12700_s0 + $0x300] sm:$0xff] }
 0x1d9   :  { %13105 = vst [vmem:[#allocation143_spill] sm:$0xff] %v7453_v35  ;;  %v7455_v4 = vmul.f32 0.020408163, %v803_v19  ;;  %v7457_v61 = vmul.f32 0.020408163, %v800_v54  ;;  %13108 = vst [vmem:[#allocation146_spill] sm:$0xff] %v7463_v52  ;;  %v685_v54 = vmul.f32 %v5586_v45, %v5586_v45  ;;  %v684_v14 = vmul.f32 %v5587_v31, %v5587_v31 }
 0x1da   :  { %v1017_v46 = vsel %vm155_vm0, %v683_v24, 0.0  ;;  %v1014_v53 = vsel %vm155_vm0, %v682_v28, 0.0  ;;  %v7488_v45 = vmul.f32 %v7460_v20, %v7460_v20  ;;  %v7494_v28 = vmul.f32 %v7463_v52, %v7463_v52  ;;  %v5589_v31 = vld [vmem:[%s12700_s0 + $0x310] sm:$0xff] }
 0x1db   :  { %13106 = vst [vmem:[#allocation144_spill] sm:$0xff] %v7455_v4  ;;  %1012 = vadd.xlane.f32.xlu1 %v1011_v38  ;;  %1009 = vadd.xlane.f32.xlu0 %v1008_v6  ;;  %v7479_v38 = vmul.f32 %v7453_v35, %v7453_v35  ;;  %v7482_v6 = vmul.f32 0.020408163, %v6399_v56  ;;  %v1023_v56 = vsel %vm155_vm0, %v685_v54, 0.0  ;;  %v1020_v20 = vsel %vm155_vm0, %v684_v14, 0.0 }
 0x1dc   :  { %v809_v19 = vpop.xlane.xlu1 %808  ;;  %v806_v43 = vpop.xlane.xlu0 %805  ;;  %13112 = vst [vmem:[#allocation150_spill] sm:$0xff] %v7494_v28 }
 0x1dd   :  { %13109 = vst [vmem:[#allocation147_spill] sm:$0xff] %v7479_v38  ;;  %13110 = vst [vmem:[#allocation148_spill] sm:$0xff] %v7482_v6  ;;  %v7484_v55 = vmul.f32 0.020408163, %v809_v19  ;;  %v7490_v24 = vmul.f32 0.020408163, %v806_v43  ;;  %v7510_v54 = vmul.f32 %v7482_v6, %v7482_v6 }
 0x1de   :  { %v5588_v43 = vld [vmem:[%s12700_s0 + $0x318] sm:$0xff]  ;;  %v7520_v38 = vmul.f32 0.020408163, %v6411_v0 }
 0x1df   :  { %13111 = vst [vmem:[#allocation149_spill] sm:$0xff] %v7484_v55  ;;  %1018 = vadd.xlane.f32.xlu1 %v1017_v46  ;;  %1015 = vadd.xlane.f32.xlu0 %v1014_v53  ;;  %v687_v52 = vmul.f32 %v5588_v43, %v5588_v43  ;;  %v686_v46 = vmul.f32 %v5589_v31, %v5589_v31  ;;  %v7513_v53 = vmul.f32 0.020408163, %v6409_v63  ;;  %v7523_v43 = vmul.f32 0.020408163, %v6421_v12  ;;  %v5590_v63 = vld [vmem:[%s12700_s0 + $0x328] sm:$0xff] }
 0x1e0   :  { %v815_v35 = vpop.xlane.xlu1 %814  ;;  %v812_v4 = vpop.xlane.xlu0 %811  ;;  %13115 = vst [vmem:[#allocation153_spill] sm:$0xff] %v7520_v38  ;;  %v5591_v31 = vld [vmem:[%s12700_s0 + $0x320] sm:$0xff] }
 0x1e1   :  { %13113 = vst [vmem:[#allocation151_spill] sm:$0xff] %v7513_v53  ;;  %v7515_v19 = vmul.f32 0.020408163, %v815_v35  ;;  %v7517_v14 = vmul.f32 0.020408163, %v812_v4  ;;  %13116 = vst [vmem:[#allocation154_spill] sm:$0xff] %v7523_v43  ;;  %v689_v4 = vmul.f32 %v5590_v63, %v5590_v63  ;;  %v688_v28 = vmul.f32 %v5591_v31, %v5591_v31 }
 0x1e2   :  { %v1029_v0 = vsel %vm155_vm0, %v687_v52, 0.0  ;;  %v1026_v12 = vsel %vm155_vm0, %v686_v46, 0.0  ;;  %v7548_v63 = vmul.f32 %v7520_v38, %v7520_v38  ;;  %v7554_v46 = vmul.f32 %v7523_v43, %v7523_v43  ;;  %v5593_v31 = vld [vmem:[%s12700_s0 + $0x330] sm:$0xff] }
 0x1e3   :  { %13114 = vst [vmem:[#allocation152_spill] sm:$0xff] %v7515_v19  ;;  %1024 = vadd.xlane.f32.xlu1 %v1023_v56  ;;  %1021 = vadd.xlane.f32.xlu0 %v1020_v20  ;;  %v7539_v56 = vmul.f32 %v7513_v53, %v7513_v53  ;;  %v7542_v20 = vmul.f32 0.020408163, %v6423_v15  ;;  %v1035_v15 = vsel %vm155_vm0, %v689_v4, 0.0  ;;  %v1032_v38 = vsel %vm155_vm0, %v688_v28, 0.0 }
 0x1e4   :  { %v821_v35 = vpop.xlane.xlu1 %820  ;;  %v818_v55 = vpop.xlane.xlu0 %817  ;;  %13120 = vst [vmem:[#allocation158_spill] sm:$0xff] %v7554_v46 }
 0x1e5   :  { %13117 = vst [vmem:[#allocation155_spill] sm:$0xff] %v7539_v56  ;;  %13118 = vst [vmem:[#allocation156_spill] sm:$0xff] %v7542_v20  ;;  %v7544_v6 = vmul.f32 0.020408163, %v821_v35  ;;  %v7550_v52 = vmul.f32 0.020408163, %v818_v55  ;;  %v7570_v4 = vmul.f32 %v7542_v20, %v7542_v20 }
 0x1e6   :  { %v5592_v55 = vld [vmem:[%s12700_s0 + $0x338] sm:$0xff]  ;;  %v7580_v56 = vmul.f32 0.020408163, %v6435_v23 }
 0x1e7   :  { %13119 = vst [vmem:[#allocation157_spill] sm:$0xff] %v7544_v6  ;;  %1030 = vadd.xlane.f32.xlu1 %v1029_v0  ;;  %1027 = vadd.xlane.f32.xlu0 %v1026_v12  ;;  %v691_v43 = vmul.f32 %v5592_v55, %v5592_v55  ;;  %v690_v0 = vmul.f32 %v5593_v31, %v5593_v31  ;;  %v7573_v12 = vmul.f32 0.020408163, %v6433_v22  ;;  %v7583_v55 = vmul.f32 0.020408163, %v6445_v34  ;;  %v5594_v22 = vld [vmem:[%s12700_s0 + $0x348] sm:$0xff] }
 0x1e8   :  { %v827_v53 = vpop.xlane.xlu1 %826  ;;  %v824_v19 = vpop.xlane.xlu0 %823  ;;  %13123 = vst [vmem:[#allocation161_spill] sm:$0xff] %v7580_v56  ;;  %v5595_v31 = vld [vmem:[%s12700_s0 + $0x340] sm:$0xff] }
 0x1e9   :  { %13121 = vst [vmem:[#allocation159_spill] sm:$0xff] %v7573_v12  ;;  %v7575_v35 = vmul.f32 0.020408163, %v827_v53  ;;  %v7577_v28 = vmul.f32 0.020408163, %v824_v19  ;;  %13124 = vst [vmem:[#allocation162_spill] sm:$0xff] %v7583_v55  ;;  %v693_v19 = vmul.f32 %v5594_v22, %v5594_v22  ;;  %v692_v46 = vmul.f32 %v5595_v31, %v5595_v31 }
 0x1ea   :  { %v1041_v23 = vsel %vm155_vm0, %v691_v43, 0.0  ;;  %v1038_v34 = vsel %vm155_vm0, %v690_v0, 0.0  ;;  %v7608_v22 = vmul.f32 %v7580_v56, %v7580_v56  ;;  %v7614_v0 = vmul.f32 %v7583_v55, %v7583_v55  ;;  %v5597_v31 = vld [vmem:[%s12700_s0 + $0x350] sm:$0xff] }
 0x1eb   :  { %13122 = vst [vmem:[#allocation160_spill] sm:$0xff] %v7575_v35  ;;  %1036 = vadd.xlane.f32.xlu1 %v1035_v15  ;;  %1033 = vadd.xlane.f32.xlu0 %v1032_v38  ;;  %v7599_v15 = vmul.f32 %v7573_v12, %v7573_v12  ;;  %v7602_v38 = vmul.f32 0.020408163, %v6447_v39  ;;  %v1047_v39 = vsel %vm155_vm0, %v693_v19, 0.0  ;;  %v1044_v56 = vsel %vm155_vm0, %v692_v46, 0.0 }
 0x1ec   :  { %v833_v53 = vpop.xlane.xlu1 %832  ;;  %v830_v6 = vpop.xlane.xlu0 %829  ;;  %13128 = vst [vmem:[#allocation166_spill] sm:$0xff] %v7614_v0 }
 0x1ed   :  { %13125 = vst [vmem:[#allocation163_spill] sm:$0xff] %v7599_v15  ;;  %13126 = vst [vmem:[#allocation164_spill] sm:$0xff] %v7602_v38  ;;  %v7604_v20 = vmul.f32 0.020408163, %v833_v53  ;;  %v7610_v43 = vmul.f32 0.020408163, %v830_v6  ;;  %v7630_v19 = vmul.f32 %v7602_v38, %v7602_v38 }
 0x1ee   :  { %v5596_v6 = vld [vmem:[%s12700_s0 + $0x358] sm:$0xff]  ;;  %v7640_v15 = vmul.f32 0.020408163, %v6459_v51 }
 0x1ef   :  { %13127 = vst [vmem:[#allocation165_spill] sm:$0xff] %v7604_v20  ;;  %1042 = vadd.xlane.f32.xlu1 %v1041_v23  ;;  %1039 = vadd.xlane.f32.xlu0 %v1038_v34  ;;  %v695_v55 = vmul.f32 %v5596_v6, %v5596_v6  ;;  %v694_v23 = vmul.f32 %v5597_v31, %v5597_v31  ;;  %v7633_v34 = vmul.f32 0.020408163, %v6457_v50  ;;  %v7643_v6 = vmul.f32 0.020408163, %v6469_v62  ;;  %v5598_v50 = vld [vmem:[%s12700_s0 + $0x368] sm:$0xff] }
 0x1f0   :  { %v839_v12 = vpop.xlane.xlu1 %838  ;;  %v836_v35 = vpop.xlane.xlu0 %835  ;;  %13131 = vst [vmem:[#allocation169_spill] sm:$0xff] %v7640_v15  ;;  %v5599_v31 = vld [vmem:[%s12700_s0 + $0x360] sm:$0xff] }
 0x1f1   :  { %13129 = vst [vmem:[#allocation167_spill] sm:$0xff] %v7633_v34  ;;  %v7635_v53 = vmul.f32 0.020408163, %v839_v12  ;;  %v7637_v46 = vmul.f32 0.020408163, %v836_v35  ;;  %13132 = vst [vmem:[#allocation170_spill] sm:$0xff] %v7643_v6  ;;  %v697_v35 = vmul.f32 %v5598_v50, %v5598_v50  ;;  %v696_v0 = vmul.f32 %v5599_v31, %v5599_v31 }
 0x1f2   :  { %v1053_v51 = vsel %vm155_vm0, %v695_v55, 0.0  ;;  %v1050_v62 = vsel %vm155_vm0, %v694_v23, 0.0  ;;  %v7668_v50 = vmul.f32 %v7640_v15, %v7640_v15  ;;  %v7674_v23 = vmul.f32 %v7643_v6, %v7643_v6  ;;  %v5601_v31 = vld [vmem:[%s12700_s0 + $0x370] sm:$0xff] }
 0x1f3   :  { %13130 = vst [vmem:[#allocation168_spill] sm:$0xff] %v7635_v53  ;;  %1048 = vadd.xlane.f32.xlu1 %v1047_v39  ;;  %1045 = vadd.xlane.f32.xlu0 %v1044_v56  ;;  %v7659_v39 = vmul.f32 %v7633_v34, %v7633_v34  ;;  %v7662_v56 = vmul.f32 0.020408163, %v6471_v3  ;;  %v1059_v3 = vsel %vm155_vm0, %v697_v35, 0.0  ;;  %v1056_v15 = vsel %vm155_vm0, %v696_v0, 0.0 }
 0x1f4   :  { %v845_v12 = vpop.xlane.xlu1 %844  ;;  %v842_v20 = vpop.xlane.xlu0 %841  ;;  %13136 = vst [vmem:[#allocation174_spill] sm:$0xff] %v7674_v23 }
 0x1f5   :  { %13133 = vst [vmem:[#allocation171_spill] sm:$0xff] %v7659_v39  ;;  %13134 = vst [vmem:[#allocation172_spill] sm:$0xff] %v7662_v56  ;;  %v7664_v38 = vmul.f32 0.020408163, %v845_v12  ;;  %v7670_v55 = vmul.f32 0.020408163, %v842_v20  ;;  %v7690_v35 = vmul.f32 %v7662_v56, %v7662_v56 }
 0x1f6   :  { %v5600_v20 = vld [vmem:[%s12700_s0 + $0x378] sm:$0xff]  ;;  %v7700_v39 = vmul.f32 0.020408163, %v6483_v18 }
 0x1f7   :  { %13135 = vst [vmem:[#allocation173_spill] sm:$0xff] %v7664_v38  ;;  %1054 = vadd.xlane.f32.xlu1 %v1053_v51  ;;  %1051 = vadd.xlane.f32.xlu0 %v1050_v62  ;;  %v699_v6 = vmul.f32 %v5600_v20, %v5600_v20  ;;  %v698_v51 = vmul.f32 %v5601_v31, %v5601_v31  ;;  %v7693_v62 = vmul.f32 0.020408163, %v6481_v17  ;;  %v7703_v20 = vmul.f32 0.020408163, %v6493_v33  ;;  %v5602_v17 = vld [vmem:[%s12700_s0 + $0x388] sm:$0xff] }
 0x1f8   :  { %v851_v34 = vpop.xlane.xlu1 %850  ;;  %v848_v53 = vpop.xlane.xlu0 %847  ;;  %13139 = vst [vmem:[#allocation177_spill] sm:$0xff] %v7700_v39  ;;  %v5603_v31 = vld [vmem:[%s12700_s0 + $0x380] sm:$0xff] }
 0x1f9   :  { %13137 = vst [vmem:[#allocation175_spill] sm:$0xff] %v7693_v62  ;;  %v7695_v12 = vmul.f32 0.020408163, %v851_v34  ;;  %v7697_v0 = vmul.f32 0.020408163, %v848_v53  ;;  %13140 = vst [vmem:[#allocation178_spill] sm:$0xff] %v7703_v20  ;;  %v701_v53 = vmul.f32 %v5602_v17, %v5602_v17  ;;  %v700_v23 = vmul.f32 %v5603_v31, %v5603_v31 }
 0x1fa   :  { %v1065_v18 = vsel %vm155_vm0, %v699_v6, 0.0  ;;  %v1062_v33 = vsel %vm155_vm0, %v698_v51, 0.0  ;;  %v7728_v17 = vmul.f32 %v7700_v39, %v7700_v39  ;;  %v7734_v51 = vmul.f32 %v7703_v20, %v7703_v20  ;;  %v5605_v31 = vld [vmem:[%s12700_s0 + $0x390] sm:$0xff] }
 0x1fb   :  { %13138 = vst [vmem:[#allocation176_spill] sm:$0xff] %v7695_v12  ;;  %1060 = vadd.xlane.f32.xlu1 %v1059_v3  ;;  %1057 = vadd.xlane.f32.xlu0 %v1056_v15  ;;  %v7719_v3 = vmul.f32 %v7693_v62, %v7693_v62  ;;  %v7722_v15 = vmul.f32 0.020408163, %v6495_v40  ;;  %v1071_v40 = vsel %vm155_vm0, %v701_v53, 0.0  ;;  %v1068_v39 = vsel %vm155_vm0, %v700_v23, 0.0 }
 0x1fc   :  { %v857_v34 = vpop.xlane.xlu1 %856  ;;  %v854_v38 = vpop.xlane.xlu0 %853  ;;  %13144 = vst [vmem:[#allocation182_spill] sm:$0xff] %v7734_v51 }
 0x1fd   :  { %13141 = vst [vmem:[#allocation179_spill] sm:$0xff] %v7719_v3  ;;  %13142 = vst [vmem:[#allocation180_spill] sm:$0xff] %v7722_v15  ;;  %v7724_v56 = vmul.f32 0.020408163, %v857_v34  ;;  %v7730_v6 = vmul.f32 0.020408163, %v854_v38  ;;  %v7750_v53 = vmul.f32 %v7722_v15, %v7722_v15 }
 0x1fe   :  { %v5604_v38 = vld [vmem:[%s12700_s0 + $0x398] sm:$0xff]  ;;  %v7760_v3 = vmul.f32 0.020408163, %v6507_v58 }
 0x1ff   :  { %13143 = vst [vmem:[#allocation181_spill] sm:$0xff] %v7724_v56  ;;  %1066 = vadd.xlane.f32.xlu1 %v1065_v18  ;;  %1063 = vadd.xlane.f32.xlu0 %v1062_v33  ;;  %v703_v20 = vmul.f32 %v5604_v38, %v5604_v38  ;;  %v702_v18 = vmul.f32 %v5605_v31, %v5605_v31  ;;  %v7753_v33 = vmul.f32 0.020408163, %v6505_v57  ;;  %v5606_v57 = vld [vmem:[%s12700_s0 + $0x3a8] sm:$0xff]  ;;  %v5607_v38 = vld [vmem:[%s12700_s0 + $0x3a0] sm:$0xff] }
 0x200   :  { %v863_v62 = vpop.xlane.xlu1 %862  ;;  %v860_v12 = vpop.xlane.xlu0 %859  ;;  %13147 = vst [vmem:[#allocation185_spill] sm:$0xff] %v7760_v3  ;;  %v705_v15 = vmul.f32 %v5606_v57, %v5606_v57  ;;  %v704_v51 = vmul.f32 %v5607_v38, %v5607_v38  ;;  %v7782_v57 = vmul.f32 %v7760_v3, %v7760_v3 }
 0x201   :  { %13145 = vst [vmem:[#allocation183_spill] sm:$0xff] %v7753_v33  ;;  %v7755_v34 = vmul.f32 0.020408163, %v863_v62  ;;  %v7757_v23 = vmul.f32 0.020408163, %v860_v12  ;;  %v1077_v12 = vsel %vm155_vm0, %v703_v20, 0.0 }
 0x202   :  { %v1074_v58 = vsel %vm155_vm0, %v702_v18, 0.0  ;;  %13150 = vst [vmem:[#allocation188_spill] sm:$0xff] %v7782_v57  ;;  %v1083_v18 = vsel %vm155_vm0, %v705_v15, 0.0 }
 0x203   :  { %13146 = vst [vmem:[#allocation184_spill] sm:$0xff] %v7755_v34  ;;  %1072 = vadd.xlane.f32.xlu1 %v1071_v40  ;;  %1069 = vadd.xlane.f32.xlu0 %v1068_v39  ;;  %v7776_v40 = vmul.f32 %v7753_v33, %v7753_v33  ;;  %v1080_v34 = vsel %vm155_vm0, %v704_v51, 0.0 }
 0x204   :  { %v869_v62 = vpop.xlane.xlu1 %868  ;;  %v866_v56 = vpop.xlane.xlu0 %865 }
 0x205   :  { %13148 = vst [vmem:[#allocation186_spill] sm:$0xff] %v7776_v40  ;;  %v7778_v39 = vmul.f32 0.020408163, %v869_v62  ;;  %v7784_v31 = vmul.f32 0.020408163, %v866_v56  ;;  %v5608_v56 = vld [vmem:[%s12700_s0 + $0x3b8] sm:$0xff] }
 0x206   :  { %v707_v3 = vmul.f32 %v5608_v56, %v5608_v56  ;;  %v5610_v40 = vld [vmem:[%s12700_s0 + $0x3c8] sm:$0xff] }
 0x207   :  { %13149 = vst [vmem:[#allocation187_spill] sm:$0xff] %v7778_v39  ;;  %1078 = vadd.xlane.f32.xlu1 %v1077_v12  ;;  %1075 = vadd.xlane.f32.xlu0 %v1074_v58  ;;  %v5609_v12 = vld [vmem:[%s12700_s0 + $0x3b0] sm:$0xff]  ;;  %v709_v56 = vmul.f32 %v5610_v40, %v5610_v40  ;;  %v5611_v39 = vld [vmem:[%s12700_s0 + $0x3c0] sm:$0xff] }
 0x208   :  { %v7791_v33 = vpop.xlane.xlu1 %874  ;;  %v7793_v62 = vpop.xlane.xlu0 %871  ;;  %v706_v58 = vmul.f32 %v5609_v12, %v5609_v12  ;;  %v1089_v38 = vsel %vm155_vm0, %v707_v3, 0.0  ;;  %v708_v12 = vmul.f32 %v5611_v39, %v5611_v39 }
 0x209   :  { %v1095_v3 = vsel %vm155_vm0, %v709_v56, 0.0 }
 0x20a   :  { %v1086_v51 = vsel %vm155_vm0, %v706_v58, 0.0  ;;  %v1092_v58 = vsel %vm155_vm0, %v708_v12, 0.0 }
 0x20b   :  { %1084 = vadd.xlane.f32.xlu1 %v1083_v18  ;;  %1081 = vadd.xlane.f32.xlu0 %v1080_v34 }
 0x20c   :  { %v7802_v15 = vpop.xlane.xlu1 %880  ;;  %v7804_v20 = vpop.xlane.xlu0 %877 }
 0x20d   :  { %13151 = vst [vmem:[#allocation189_spill] sm:$0xff] %v7802_v15  ;;  %13152 = vst [vmem:[#allocation190_spill] sm:$0xff] %v7804_v20  ;;  %v5612_v15 = vld [vmem:[%s12700_s0 + $0x3d8] sm:$0xff]  ;;  %v5613_v20 = vld [vmem:[%s12700_s0 + $0x3d0] sm:$0xff] }
 0x20e   :  { %v711_v40 = vmul.f32 %v5612_v15, %v5612_v15  ;;  %v710_v39 = vmul.f32 %v5613_v20, %v5613_v20 }
 0x20f   :  { %1090 = vadd.xlane.f32.xlu1 %v1089_v38  ;;  %1087 = vadd.xlane.f32.xlu0 %v1086_v51 }
 0x210   :  { %v7814_v34 = vpop.xlane.xlu1 %886  ;;  %v7816_v18 = vpop.xlane.xlu0 %883  ;;  %v1101_v56 = vsel %vm155_vm0, %v711_v40, 0.0  ;;  %v1098_v12 = vsel %vm155_vm0, %v710_v39, 0.0 }
 0x211   :  { %13153 = vst [vmem:[#allocation191_spill] sm:$0xff] %v7814_v34  ;;  %13154 = vst [vmem:[#allocation192_spill] sm:$0xff] %v7816_v18  ;;  %v5614_v34 = vld [vmem:[%s12700_s0 + $0x3e8] sm:$0xff]  ;;  %v5615_v18 = vld [vmem:[%s12700_s0 + $0x3e0] sm:$0xff] }
 0x212   :  { %v713_v15 = vmul.f32 %v5614_v34, %v5614_v34  ;;  %v712_v20 = vmul.f32 %v5615_v18, %v5615_v18 }
 0x213   :  { %1096 = vadd.xlane.f32.xlu1 %v1095_v3  ;;  %1093 = vadd.xlane.f32.xlu0 %v1092_v58 }
 0x214   :  { %v7826_v38 = vpop.xlane.xlu1 %892  ;;  %v7828_v51 = vpop.xlane.xlu0 %889  ;;  %v1107_v40 = vsel %vm155_vm0, %v713_v15, 0.0  ;;  %v1104_v39 = vsel %vm155_vm0, %v712_v20, 0.0 }
 0x215   :  { %13155 = vst [vmem:[#allocation193_spill] sm:$0xff] %v7826_v38  ;;  %13156 = vst [vmem:[#allocation194_spill] sm:$0xff] %v7828_v51  ;;  %v5616_v38 = vld [vmem:[%s12700_s0 + $0x3f8] sm:$0xff]  ;;  %v5617_v51 = vld [vmem:[%s12700_s0 + $0x3f0] sm:$0xff] }
 0x216   :  { %v715_v34 = vmul.f32 %v5616_v38, %v5616_v38  ;;  %v714_v18 = vmul.f32 %v5617_v51, %v5617_v51 }
 0x217   :  { %1102 = vadd.xlane.f32.xlu1 %v1101_v56  ;;  %1099 = vadd.xlane.f32.xlu0 %v1098_v12 }
 0x218   :  { %v7838_v3 = vpop.xlane.xlu1 %898  ;;  %v7840_v58 = vpop.xlane.xlu0 %895  ;;  %v1113_v15 = vsel %vm155_vm0, %v715_v34, 0.0  ;;  %v1110_v20 = vsel %vm155_vm0, %v714_v18, 0.0 }
 0x219   :  { %13157 = vst [vmem:[#allocation195_spill] sm:$0xff] %v7838_v3  ;;  %13158 = vst [vmem:[#allocation196_spill] sm:$0xff] %v7840_v58  ;;  %v5618_v3 = vld [vmem:[%s12700_s0 + $0x408] sm:$0xff]  ;;  %v5619_v58 = vld [vmem:[%s12700_s0 + $0x400] sm:$0xff] }
 0x21a   :  { %v717_v38 = vmul.f32 %v5618_v3, %v5618_v3  ;;  %v716_v51 = vmul.f32 %v5619_v58, %v5619_v58 }
 0x21b   :  { %1108 = vadd.xlane.f32.xlu1 %v1107_v40  ;;  %1105 = vadd.xlane.f32.xlu0 %v1104_v39 }
 0x21c   :  { %v7850_v56 = vpop.xlane.xlu1 %904  ;;  %v7852_v12 = vpop.xlane.xlu0 %901  ;;  %v1119_v34 = vsel %vm155_vm0, %v717_v38, 0.0  ;;  %v1116_v18 = vsel %vm155_vm0, %v716_v51, 0.0 }
 0x21d   :  { %13159 = vst [vmem:[#allocation197_spill] sm:$0xff] %v7850_v56  ;;  %13160 = vst [vmem:[#allocation198_spill] sm:$0xff] %v7852_v12  ;;  %v5620_v56 = vld [vmem:[%s12700_s0 + $0x418] sm:$0xff]  ;;  %v5621_v12 = vld [vmem:[%s12700_s0 + $0x410] sm:$0xff] }
 0x21e   :  { %v719_v3 = vmul.f32 %v5620_v56, %v5620_v56  ;;  %v718_v58 = vmul.f32 %v5621_v12, %v5621_v12 }
 0x21f   :  { %1114 = vadd.xlane.f32.xlu1 %v1113_v15  ;;  %1111 = vadd.xlane.f32.xlu0 %v1110_v20 }
 0x220   :  { %v7862_v40 = vpop.xlane.xlu1 %910  ;;  %v7864_v39 = vpop.xlane.xlu0 %907  ;;  %v1125_v38 = vsel %vm155_vm0, %v719_v3, 0.0  ;;  %v1122_v51 = vsel %vm155_vm0, %v718_v58, 0.0 }
 0x221   :  { %13161 = vst [vmem:[#allocation199_spill] sm:$0xff] %v7862_v40  ;;  %13162 = vst [vmem:[#allocation200_spill] sm:$0xff] %v7864_v39  ;;  %v5622_v40 = vld [vmem:[%s12700_s0 + $0x428] sm:$0xff]  ;;  %v5623_v39 = vld [vmem:[%s12700_s0 + $0x420] sm:$0xff] }
 0x222   :  { %v721_v56 = vmul.f32 %v5622_v40, %v5622_v40  ;;  %v720_v12 = vmul.f32 %v5623_v39, %v5623_v39 }
 0x223   :  { %1120 = vadd.xlane.f32.xlu1 %v1119_v34  ;;  %1117 = vadd.xlane.f32.xlu0 %v1116_v18 }
 0x224   :  { %v7874_v15 = vpop.xlane.xlu1 %916  ;;  %v7876_v20 = vpop.xlane.xlu0 %913  ;;  %v1131_v3 = vsel %vm155_vm0, %v721_v56, 0.0  ;;  %v1128_v58 = vsel %vm155_vm0, %v720_v12, 0.0 }
 0x225   :  { %13163 = vst [vmem:[#allocation201_spill] sm:$0xff] %v7874_v15  ;;  %13164 = vst [vmem:[#allocation202_spill] sm:$0xff] %v7876_v20  ;;  %v5624_v15 = vld [vmem:[%s12700_s0 + $0x438] sm:$0xff]  ;;  %v5625_v20 = vld [vmem:[%s12700_s0 + $0x430] sm:$0xff] }
 0x226   :  { %v723_v40 = vmul.f32 %v5624_v15, %v5624_v15  ;;  %v722_v39 = vmul.f32 %v5625_v20, %v5625_v20 }
 0x227   :  { %1126 = vadd.xlane.f32.xlu1 %v1125_v38  ;;  %1123 = vadd.xlane.f32.xlu0 %v1122_v51 }
 0x228   :  { %v7886_v34 = vpop.xlane.xlu1 %922  ;;  %v7888_v18 = vpop.xlane.xlu0 %919  ;;  %v1137_v56 = vsel %vm155_vm0, %v723_v40, 0.0  ;;  %v1134_v12 = vsel %vm155_vm0, %v722_v39, 0.0 }
 0x229   :  { %13165 = vst [vmem:[#allocation203_spill] sm:$0xff] %v7886_v34  ;;  %13166 = vst [vmem:[#allocation204_spill] sm:$0xff] %v7888_v18  ;;  %v5626_v34 = vld [vmem:[%s12700_s0 + $0x448] sm:$0xff]  ;;  %v5627_v18 = vld [vmem:[%s12700_s0 + $0x440] sm:$0xff] }
 0x22a   :  { %v725_v15 = vmul.f32 %v5626_v34, %v5626_v34  ;;  %v724_v20 = vmul.f32 %v5627_v18, %v5627_v18 }
 0x22b   :  { %1132 = vadd.xlane.f32.xlu1 %v1131_v3  ;;  %1129 = vadd.xlane.f32.xlu0 %v1128_v58 }
 0x22c   :  { %v7898_v38 = vpop.xlane.xlu1 %928  ;;  %v7900_v51 = vpop.xlane.xlu0 %925  ;;  %v1143_v40 = vsel %vm155_vm0, %v725_v15, 0.0  ;;  %v1140_v39 = vsel %vm155_vm0, %v724_v20, 0.0 }
 0x22d   :  { %13167 = vst [vmem:[#allocation205_spill] sm:$0xff] %v7898_v38  ;;  %13168 = vst [vmem:[#allocation206_spill] sm:$0xff] %v7900_v51  ;;  %v5628_v38 = vld [vmem:[%s12700_s0 + $0x458] sm:$0xff]  ;;  %v5629_v51 = vld [vmem:[%s12700_s0 + $0x450] sm:$0xff] }
 0x22e   :  { %v727_v34 = vmul.f32 %v5628_v38, %v5628_v38  ;;  %v726_v18 = vmul.f32 %v5629_v51, %v5629_v51  ;;  %v5630_v38 = vld [vmem:[%s12700_s0 + $0x468] sm:$0xff] }
 0x22f   :  { %1138 = vadd.xlane.f32.xlu1 %v1137_v56  ;;  %1135 = vadd.xlane.f32.xlu0 %v1134_v12  ;;  %v13171_v56 = vsub.f32 %v7128_v10, %v7126_v7  ;;  %v729_v57 = vmul.f32 %v5630_v38, %v5630_v38  ;;  %v5631_v7 = vld [vmem:[%s12700_s0 + $0x460] sm:$0xff] }
 0x230   :  { %v7910_v3 = vpop.xlane.xlu1 %934  ;;  %v7912_v58 = vpop.xlane.xlu0 %931  ;;  %v1149_v20 = vsel %vm155_vm0, %v727_v34, 0.0  ;;  %v728_v10 = vmul.f32 %v5631_v7, %v5631_v7  ;;  %v13175_v34 = vsub.f32 %v7130_v47, %v7111_v8  ;;  %v5633_v8 = vld [vmem:[%s12700_s0 + $0x470] sm:$0xff] }
 0x231   :  { %13169 = vst [vmem:[#allocation207_spill] sm:$0xff] %v7910_v3  ;;  %13170 = vst [vmem:[#allocation208_spill] sm:$0xff] %v7912_v58  ;;  %v1741_v12 = vmax.f32 %v13171_v56, 0.0  ;;  %v1146_v58 = vsel %vm155_vm0, %v726_v18, 0.0  ;;  %v1155_v38 = vsel %vm155_vm0, %v729_v57, 0.0  ;;  %v730_v47 = vmul.f32 %v5633_v8, %v5633_v8 }
 0x232   :  { %v1740_v56 = vmax.f32 %v13175_v34, 0.0  ;;  %v13179_v57 = vsub.f32 %v7190_v5, %v7188_v36  ;;  %v13185_v36 = vsub.f32 %v7217_v21, %v7210_v44  ;;  %v13191_v44 = vsub.f32 %v7250_v59, %v7248_v48 }
 0x233   :  { %1144 = vadd.xlane.f32.xlu1 %v1143_v40  ;;  %1141 = vadd.xlane.f32.xlu0 %v1140_v39  ;;  %v2029_v51 = vadd.f32 1e-05, %v1741_v12  ;;  %v13174_v40 = vsub.f32 %v7157_v26, %v7134_v32  ;;  %v5632_v12 = vld [vmem:[%s12700_s0 + $0x478] sm:$0xff]  ;;  %v13178_v26 = vsub.f32 %v7155_v25, %v7150_v29  ;;  %v1158_v8 = vsel %vm155_vm0, %v730_v47, 0.0  ;;  %v13183_v25 = vld [vmem:[#allocation107_spill] sm:$0xff]  ;;  %v13188_v47 = vld [vmem:[#allocation112_spill] sm:$0xff] }
 0x234   :  { %v7925_v3 = vpop.xlane.xlu1 %940  ;;  %v7927_v15 = vpop.xlane.xlu0 %937  ;;  %v731_v32 = vmul.f32 %v5632_v12, %v5632_v12  ;;  %v2028_v7 = vadd.f32 1e-05, %v1740_v56  ;;  %v13182_v29 = vld [vmem:[#allocation109_spill] sm:$0xff]  ;;  %v1746_v5 = vmax.f32 %v13185_v36, 0.0  ;;  %v1748_v21 = vmax.f32 %v13191_v44, 0.0 }
 0x235   :  { %13172 = vst [vmem:[#allocation209_spill] sm:$0xff] %v7925_v3  ;;  %13173 = vst [vmem:[#allocation210_spill] sm:$0xff] %v7927_v15  ;;  %v1742_v39 = vmax.f32 %v13174_v40, 0.0  ;;  %v1152_v15 = vsel %vm155_vm0, %v728_v10, 0.0  ;;  %5207 = vrsqrt.f32 %v2029_v51  ;;  %v1744_v10 = vmax.f32 %v13179_v57, 0.0 }
 0x236   :  { %v1161_v12 = vsel %vm155_vm0, %v731_v32, 0.0  ;;  %v13184_v51 = vsub.f32 %v13182_v29, %v13183_v25  ;;  %v2034_v29 = vadd.f32 1e-05, %v1746_v5  ;;  %v13199_v36 = vsub.f32 %v7277_v11, %v7270_v16  ;;  %v13206_v16 = vld [vmem:[#allocation120_spill] sm:$0xff]  ;;  %v13207_v11 = vld [vmem:[#allocation118_spill] sm:$0xff] }
 0x237   :  { %1150 = vadd.xlane.f32.xlu1 %v1149_v20  ;;  %1147 = vadd.xlane.f32.xlu0 %v1146_v58  ;;  %v1743_v58 = vmax.f32 %v13178_v26, 0.0  ;;  %v2030_v20 = vadd.f32 1e-05, %v1742_v39  ;;  %v13189_v26 = vld [vmem:[#allocation110_spill] sm:$0xff]  ;;  %v2036_v59 = vadd.f32 1e-05, %v1748_v21 }
 0x238   :  { %v7943_v18 = vpop.xlane.xlu1 %946  ;;  %v7945_v3 = vpop.xlane.xlu0 %943  ;;  %v1745_v39 = vmax.f32 %v13184_v51, 0.0  ;;  %v13197_v51 = vld [vmem:[#allocation2_spill] sm:$0xff]  ;;  %v1750_v5 = vmax.f32 %v13199_v36, 0.0 }
 0x239   :  { %13176 = vst [vmem:[#allocation211_spill] sm:$0xff] %v7943_v18  ;;  %13177 = vst [vmem:[#allocation212_spill] sm:$0xff] %v7945_v3  ;;  %v2031_v18 = vadd.f32 1e-05, %v1743_v58  ;;  %5209 = vrsqrt.f32 %v2030_v20  ;;  %v13190_v58 = vsub.f32 %v13188_v47, %v13189_v26  ;;  %v13202_v26 = vld [vmem:[#allocation4_spill] sm:$0xff] }
 0x23a   :  { %5211 = vrsqrt.f32 %v2028_v7  ;;  %v2033_v32 = vadd.f32 1e-05, %v1745_v39  ;;  %v7991_v39 = vmul.f32 0.020408163, %v13197_v51 }
 0x23b   :  { %1156 = vadd.xlane.f32.xlu1 %v1155_v38  ;;  %1153 = vadd.xlane.f32.xlu0 %v1152_v15  ;;  %v2032_v15 = vadd.f32 1e-05, %v1744_v10  ;;  %5213 = vrsqrt.f32 %v2031_v18  ;;  %v1747_v57 = vmax.f32 %v13190_v58, 0.0  ;;  %v8003_v58 = vmul.f32 0.020408163, %v13202_v26 }
 0x23c   :  { %v7961_v40 = vpop.xlane.xlu1 %952  ;;  %v7963_v34 = vpop.xlane.xlu0 %949 }
 0x23d   :  { %13180 = vst [vmem:[#allocation213_spill] sm:$0xff] %v7961_v40  ;;  %13181 = vst [vmem:[#allocation214_spill] sm:$0xff] %v7963_v34  ;;  %5215 = vrsqrt.f32 %v2032_v15  ;;  %v2035_v10 = vadd.f32 1e-05, %v1747_v57  ;;  %v1885_v15 = vld [vmem:[%s12701_s1 + $0x8] sm:$0xff] }
 0x23e   :  { %5217 = vrsqrt.f32 %v2033_v32  ;;  %v13200_v32 = vld [vmem:[#allocation3_spill] sm:$0xff]  ;;  %13203 = vst [vmem:[#allocation2_spill] sm:$0xff] %v8003_v58 }
 0x23f   :  { %1162 = vadd.xlane.f32.xlu1 %v1161_v12  ;;  %1159 = vadd.xlane.f32.xlu0 %v1158_v8  ;;  %v13194_v12 = vld [vmem:[#allocation117_spill] sm:$0xff]  ;;  %v13195_v8 = vld [vmem:[#allocation115_spill] sm:$0xff]  ;;  %5219 = vrsqrt.f32 %v2034_v29  ;;  %v8000_v47 = vmul.f32 0.020408163, %v13200_v32 }
 0x240   :  { %v7973_v56 = vpop.xlane.xlu1 %958  ;;  %v7975_v38 = vpop.xlane.xlu0 %955  ;;  %v13196_v18 = vsub.f32 %v13194_v12, %v13195_v8  ;;  %13198 = vst [vmem:[#allocation117_spill] sm:$0xff] %v7991_v39  ;;  %5221 = vrsqrt.f32 %v2035_v10  ;;  %v13208_v12 = vsub.f32 %v13206_v16, %v13207_v11  ;;  %v8014_v8 = vmul.f32 %v7991_v39, %v7991_v39  ;;  %v13210_v32 = vld [vmem:[#allocation5_spill] sm:$0xff]  ;;  %v1886_v16 = vld [vmem:[%s12701_s1 + $0x10] sm:$0xff]  ;;  %v13243_v39 = vld [vmem:[#allocation102_spill] sm:$0xff] }
 0x241   :  { %13186 = vst [vmem:[#allocation109_spill] sm:$0xff] %v7973_v56  ;;  %13187 = vst [vmem:[#allocation107_spill] sm:$0xff] %v7975_v38  ;;  %v8019_v26 = vmul.f32 0.020408163, %v13210_v32  ;;  %5223 = vrsqrt.f32 %v2036_v59  ;;  %v13214_v10 = vsub.f32 %v7310_v2, %v7308_v60  ;;  %v13217_v59 = vld [vmem:[#allocation8_spill] sm:$0xff]  ;;  %v1884_v32 = vld [vmem:[%s12701_s1] sm:$0xff] }
 0x242   :  { %v1749_v25 = vmax.f32 %v13196_v18, 0.0  ;;  %v5208_v48 = vpop.eup %5207  ;;  %13201 = vst [vmem:[#allocation115_spill] sm:$0xff] %v8000_v47  ;;  %v1751_v21 = vmax.f32 %v13208_v12, 0.0  ;;  %v2038_v18 = vadd.f32 1e-05, %v1750_v5  ;;  %v8032_v5 = vmul.f32 %v8000_v47, %v8000_v47  ;;  %v13223_v56 = vld [vmem:[#allocation125_spill] sm:$0xff] }
 0x243   :  { %v8016_v51 = vmul.f32 %v5208_v48, %v1885_v15  ;;  %13211 = vst [vmem:[#allocation118_spill] sm:$0xff] %v8019_v26  ;;  %v8036_v48 = vmul.f32 %v8003_v58, %v8003_v58  ;;  %v13215_v15 = vld [vmem:[#allocation7_spill] sm:$0xff]  ;;  %v8042_v12 = vmul.f32 0.020408163, %v13217_v59  ;;  %v13226_v59 = vsub.f32 %v7337_v37, %v7330_v30 }
 0x244   :  { %v7983_v20 = vpop.xlane.xlu1 %964  ;;  %v7985_v7 = vpop.xlane.xlu0 %961  ;;  %v2037_v29 = vadd.f32 1e-05, %v1749_v25  ;;  %v1752_v25 = vmax.f32 %v13214_v10, 0.0  ;;  %v13221_v10 = vld [vmem:[#allocation9_spill] sm:$0xff]  ;;  %v13224_v38 = vld [vmem:[#allocation123_spill] sm:$0xff] }
 0x245   :  { %13192 = vst [vmem:[#allocation112_spill] sm:$0xff] %v7983_v20  ;;  %13193 = vst [vmem:[#allocation110_spill] sm:$0xff] %v7985_v7  ;;  %v2039_v7 = vadd.f32 1e-05, %v1751_v21  ;;  %v8069_v21 = vmul.f32 %v8019_v26, %v8019_v26 }
 0x246   :  { %13209 = vst [vmem:[#allocation120_spill] sm:$0xff] %v8016_v51  ;;  %v5210_v36 = vpop.eup %5209  ;;  %13218 = vst [vmem:[#allocation7_spill] sm:$0xff] %v8042_v12  ;;  %5225 = vrsqrt.f32 %v2037_v29  ;;  %v1887_v29 = vld [vmem:[%s12701_s1 + $0x18] sm:$0xff] }
 0x247   :  { %v5212_v11 = vpop.eup %5211  ;;  %5227 = vrsqrt.f32 %v2038_v18  ;;  %v8062_v58 = vmul.f32 %v5210_v36, %v1886_v16  ;;  %v8083_v36 = vmul.f32 %v8042_v12, %v8042_v12  ;;  %v13231_v16 = vld [vmem:[#allocation10_spill] sm:$0xff]  ;;  %v13238_v12 = vld [vmem:[#allocation12_spill] sm:$0xff] }
 0x248   :  { %v8005_v57 = vpop.xlane.xlu1 %970  ;;  %v8007_v44 = vpop.xlane.xlu0 %967  ;;  %v8075_v30 = vmul.f32 %v5212_v11, %v1884_v32  ;;  %v1888_v11 = vld [vmem:[%s12701_s1 + $0x20] sm:$0xff]  ;;  %5229 = vrsqrt.f32 %v2039_v7 }
 0x249   :  { %13204 = vst [vmem:[#allocation3_spill] sm:$0xff] %v8005_v57  ;;  %13205 = vst [vmem:[#allocation4_spill] sm:$0xff] %v8007_v44  ;;  %v13212_v57 = vld [vmem:[#allocation6_spill] sm:$0xff]  ;;  %v8052_v44 = vmul.f32 0.020408163, %v13221_v10  ;;  %v5214_v34 = vpop.eup %5213  ;;  %v13233_v10 = vld [vmem:[#allocation11_spill] sm:$0xff]  ;;  %v2462_v47 = vmul.f32 %v8062_v58, %v13243_v39 }
 0x24a   :  { %v8022_v20 = vmul.f32 0.020408163, %v13212_v57  ;;  %v8039_v57 = vmul.f32 0.020408163, %v13215_v15  ;;  %v13225_v15 = vsub.f32 %v13223_v56, %v13224_v38  ;;  %13228 = vst [vmem:[#allocation125_spill] sm:$0xff] %v8062_v58  ;;  %13229 = vst [vmem:[#allocation123_spill] sm:$0xff] %v8075_v30  ;;  %v5216_v37 = vpop.eup %5215 }
 0x24b   :  { %13222 = vst [vmem:[#allocation9_spill] sm:$0xff] %v8052_v44  ;;  %v2040_v38 = vadd.f32 1e-05, %v1752_v25  ;;  %v8101_v32 = vmul.f32 %v8052_v44, %v8052_v44  ;;  %v1889_v44 = vld [vmem:[%s12701_s1 + $0x28] sm:$0xff] }
 0x24c   :  { %13213 = vst [vmem:[#allocation5_spill] sm:$0xff] %v8022_v20  ;;  %13216 = vst [vmem:[#allocation6_spill] sm:$0xff] %v8039_v57  ;;  %v8044_v60 = vpop.xlane.xlu1 %976  ;;  %v8046_v2 = vpop.xlane.xlu0 %973  ;;  %v1753_v40 = vmax.f32 %v13225_v15, 0.0  ;;  %v8073_v56 = vmul.f32 %v8022_v20, %v8022_v20  ;;  %v8079_v18 = vmul.f32 %v8039_v57, %v8039_v57  ;;  %v8089_v15 = vmul.f32 0.020408163, %v13233_v10  ;;  %v13240_v20 = vld [vmem:[#allocation128_spill] sm:$0xff] }
 0x24d   :  { %13219 = vst [vmem:[#allocation8_spill] sm:$0xff] %v8044_v60  ;;  %13220 = vst [vmem:[#allocation215_spill] sm:$0xff] %v8046_v2  ;;  %v1754_v60 = vmax.f32 %v13226_v59, 0.0  ;;  %v13227_v2 = vld [vmem:[#allocation101_spill] sm:$0xff]  ;;  %v5218_v10 = vpop.eup %5217  ;;  %5231 = vrsqrt.f32 %v2040_v38 }
 0x24e   :  { %v2461_v3 = vmul.f32 %v8016_v51, %v13227_v2  ;;  %13230 = vst [vmem:[#allocation101_spill] sm:$0xff] %v8083_v36  ;;  %v8086_v2 = vmul.f32 0.020408163, %v13231_v16  ;;  %13234 = vst [vmem:[#allocation11_spill] sm:$0xff] %v8089_v15  ;;  %v2041_v16 = vadd.f32 1e-05, %v1753_v40  ;;  %v8103_v51 = vmul.f32 %v5214_v34, %v1887_v29  ;;  %v5220_v7 = vpop.eup %5219 }
 0x24f   :  { %v2042_v26 = vadd.f32 1e-05, %v1754_v60  ;;  %v13244_v40 = vsub.f32 %v7370_v1, %v7368_v13  ;;  %v8121_v36 = vmul.f32 %v5216_v37, %v1888_v11  ;;  %v13248_v60 = vld [vmem:[#allocation13_spill] sm:$0xff]  ;;  %v13250_v1 = vld [vmem:[#allocation14_spill] sm:$0xff] }
 0x250   :  { %13232 = vst [vmem:[#allocation10_spill] sm:$0xff] %v8086_v2  ;;  %v8091_v59 = vpop.xlane.xlu1 %982  ;;  %2750 = vrot.lane.b32.xlu1 %v2461_v3, %s5922_s23  ;;  %v8094_v25 = vpop.xlane.xlu0 %979  ;;  %13237 = vst [vmem:[#allocation218_spill] sm:$0xff] %v8103_v51  ;;  %v13241_v3 = vld [vmem:[#allocation126_spill] sm:$0xff]  ;;  %v8128_v39 = vmul.f32 %v8086_v2, %v8086_v2  ;;  %v8135_v13 = vmul.f32 0.020408163, %v13248_v60  ;;  %5233 = vrsqrt.f32 %v2041_v16  ;;  %v8151_v60 = vmul.f32 %v5218_v10, %v1889_v44  ;;  %v13258_v2 = vld [vmem:[#allocation133_spill] sm:$0xff] }
 0x251   :  { %13235 = vst [vmem:[#allocation216_spill] sm:$0xff] %v8091_v59  ;;  %13236 = vst [vmem:[#allocation217_spill] sm:$0xff] %v8094_v25  ;;  %v8106_v59 = vmul.f32 0.020408163, %v13238_v12  ;;  %v13242_v57 = vsub.f32 %v13240_v20, %v13241_v3  ;;  %v1756_v34 = vmax.f32 %v13244_v40, 0.0  ;;  %v13245_v12 = vld [vmem:[#allocation98_spill] sm:$0xff]  ;;  %5235 = vrsqrt.f32 %v2042_v26 }
 0x252   :  { %v2460_v29 = vmul.f32 %v8075_v30, %v13245_v12  ;;  %13246 = vst [vmem:[#allocation128_spill] sm:$0xff] %v8121_v36  ;;  %v1890_v20 = vld [vmem:[%s12701_s1 + $0x30] sm:$0xff]  ;;  %13247 = vst [vmem:[#allocation126_spill] sm:$0xff] %v8128_v39  ;;  %v8138_v38 = vmul.f32 0.020408163, %v13250_v1  ;;  %v13254_v3 = vld [vmem:[#allocation15_spill] sm:$0xff]  ;;  %v5222_v30 = vpop.eup %5221  ;;  %v13262_v44 = vsub.f32 %v7397_v49, %v7390_v9 }
 0x253   :  { %13239 = vst [vmem:[#allocation12_spill] sm:$0xff] %v8106_v59  ;;  %v1755_v25 = vmax.f32 %v13242_v57, 0.0  ;;  %v8132_v57 = vmul.f32 %v8089_v15, %v8089_v15  ;;  %13249 = vst [vmem:[#allocation102_spill] sm:$0xff] %v8135_v13  ;;  %v8146_v40 = vmul.f32 0.020408163, %v13254_v3  ;;  %v13256_v12 = vld [vmem:[#allocation103_spill] sm:$0xff]  ;;  %v8156_v39 = vmul.f32 %v5220_v7, %v1890_v20 }
 0x254   :  { %13251 = vst [vmem:[#allocation98_spill] sm:$0xff] %v8138_v38  ;;  %v8140_v37 = vpop.xlane.xlu1 %988  ;;  %2752 = vrot.lane.b32.xlu1 %v2462_v47, %s5922_s23  ;;  %v8143_v11 = vpop.xlane.xlu0 %985  ;;  %v2463_v58 = vmul.f32 %v8103_v51, %v13256_v12  ;;  %13257 = vst [vmem:[#allocation103_spill] sm:$0xff] %v8151_v60  ;;  %v1891_v16 = vld [vmem:[%s12701_s1 + $0x38] sm:$0xff]  ;;  %v2044_v3 = vadd.f32 1e-05, %v1756_v34  ;;  %v8176_v7 = vmul.f32 %v8138_v38, %v8138_v38  ;;  %v13265_v20 = vld [vmem:[#allocation16_spill] sm:$0xff] }
 0x255   :  { %13252 = vst [vmem:[#allocation13_spill] sm:$0xff] %v8140_v37  ;;  %13253 = vst [vmem:[#allocation14_spill] sm:$0xff] %v8143_v11  ;;  %2748 = vrot.lane.b32.xlu0 %v2460_v29, %s5922_s23  ;;  %v2043_v1 = vadd.f32 1e-05, %v1755_v25  ;;  %v13259_v37 = vld [vmem:[#allocation131_spill] sm:$0xff]  ;;  %v8163_v29 = vmul.f32 %v8106_v59, %v8106_v59  ;;  %v1758_v25 = vmax.f32 %v13262_v44, 0.0 }
 0x256   :  { %13255 = vst [vmem:[#allocation15_spill] sm:$0xff] %v8146_v40  ;;  %v13260_v15 = vsub.f32 %v13258_v2, %v13259_v37  ;;  %13261 = vst [vmem:[#allocation133_spill] sm:$0xff] %v8156_v39  ;;  %v13263_v26 = vld [vmem:[#allocation105_spill] sm:$0xff]  ;;  %v5224_v2 = vpop.eup %5223  ;;  %v8179_v37 = vmul.f32 0.020408163, %v13265_v20  ;;  %v1892_v44 = vld [vmem:[%s12701_s1 + $0x40] sm:$0xff] }
 0x257   :  { %v2464_v10 = vmul.f32 %v8121_v36, %v13263_v26  ;;  %13264 = vst [vmem:[#allocation131_spill] sm:$0xff] %v8176_v7  ;;  %v13267_v34 = vld [vmem:[#allocation17_spill] sm:$0xff]  ;;  %v8194_v26 = vmul.f32 %v8146_v40, %v8146_v40  ;;  %v13272_v36 = vld [vmem:[#allocation18_spill] sm:$0xff]  ;;  %v13274_v51 = vld [vmem:[#allocation136_spill] sm:$0xff]  ;;  %5237 = vrsqrt.f32 %v2043_v1 }
 0x258   :  { %v1757_v47 = vmax.f32 %v13260_v15, 0.0  ;;  %v8172_v15 = vmul.f32 %v8135_v13, %v8135_v13  ;;  %13266 = vst [vmem:[#allocation105_spill] sm:$0xff] %v8179_v37  ;;  %v8182_v12 = vmul.f32 0.020408163, %v13267_v34  ;;  %v8184_v9 = vpop.xlane.xlu1 %994  ;;  %2754 = vrot.lane.b32.xlu1 %v2463_v58, %s5922_s23  ;;  %v8187_v49 = vpop.xlane.xlu0 %991  ;;  %v8197_v20 = vmul.f32 0.020408163, %v13272_v36 }
 0x259   :  { %13269 = vst [vmem:[#allocation17_spill] sm:$0xff] %v8184_v9  ;;  %13270 = vst [vmem:[#allocation219_spill] sm:$0xff] %v8187_v49  ;;  %v13275_v34 = vld [vmem:[#allocation134_spill] sm:$0xff]  ;;  %2756 = vrot.lane.b32.xlu0 %v2464_v10, %s5922_s23  ;;  %v8203_v58 = vmul.f32 %v5222_v30, %v1891_v16  ;;  %v5226_v9 = vpop.eup %5225  ;;  %v13278_v59 = vld [vmem:[#allocation104_spill] sm:$0xff]  ;;  %5239 = vrsqrt.f32 %v2044_v3  ;;  %v2046_v36 = vadd.f32 1e-05, %v1758_v25  ;;  %v8222_v1 = vmul.f32 %v8179_v37, %v8179_v37 }
 0x25a   :  { %13268 = vst [vmem:[#allocation16_spill] sm:$0xff] %v8182_v12  ;;  %13271 = vst [vmem:[#allocation220_spill] sm:$0xff] %v8194_v26  ;;  %v13276_v11 = vsub.f32 %v13274_v51, %v13275_v34  ;;  %v2045_v49 = vadd.f32 1e-05, %v1757_v47  ;;  %v2465_v13 = vmul.f32 %v8151_v60, %v13278_v59  ;;  %v13279_v7 = vld [vmem:[#allocation108_spill] sm:$0xff]  ;;  %v5228_v26 = vpop.eup %5227  ;;  %v13280_v51 = vsub.f32 %v7430_v41, %v7428_v27  ;;  %v1893_v30 = vld [vmem:[%s12701_s1 + $0x48] sm:$0xff] }
 0x25b   :  { %13273 = vst [vmem:[#allocation18_spill] sm:$0xff] %v8197_v20  ;;  %13277 = vst [vmem:[#allocation136_spill] sm:$0xff] %v8203_v58  ;;  %v2466_v40 = vmul.f32 %v8156_v39, %v13279_v7  ;;  %v8212_v34 = vmul.f32 %v5224_v2, %v1892_v44  ;;  %v1894_v59 = vld [vmem:[%s12701_s1 + $0x50] sm:$0xff]  ;;  %v8226_v47 = vmul.f32 %v8182_v12, %v8182_v12  ;;  %v13282_v27 = vld [vmem:[#allocation19_spill] sm:$0xff]  ;;  %v5230_v39 = vpop.eup %5229 }
 0x25c   :  { %v1759_v38 = vmax.f32 %v13276_v11, 0.0  ;;  %v1760_v11 = vmax.f32 %v13280_v51, 0.0  ;;  %v8229_v41 = vmul.f32 0.020408163, %v13282_v27  ;;  %v13284_v16 = vld [vmem:[#allocation20_spill] sm:$0xff]  ;;  %v8234_v25 = vpop.xlane.xlu1 %1000  ;;  %2758 = vrot.lane.b32.xlu1 %v2465_v13, %s5922_s23  ;;  %v8237_v10 = vpop.xlane.xlu0 %997  ;;  %v8241_v2 = vmul.f32 %v8197_v20, %v8197_v20  ;;  %v13288_v7 = vld [vmem:[#allocation21_spill] sm:$0xff] }
 0x25d   :  { %13281 = vst [vmem:[#allocation134_spill] sm:$0xff] %v8212_v34  ;;  %v8232_v3 = vmul.f32 0.020408163, %v13284_v16  ;;  %13286 = vst [vmem:[#allocation19_spill] sm:$0xff] %v8234_v25  ;;  %v8244_v44 = vmul.f32 0.020408163, %v13288_v7  ;;  %2760 = vrot.lane.b32.xlu0 %v2466_v40, %s5922_s23  ;;  %5241 = vrsqrt.f32 %v2045_v49  ;;  %v8254_v12 = vmul.f32 %v5228_v26, %v1894_v59  ;;  %v5232_v20 = vpop.eup %5231 }
 0x25e   :  { %13283 = vst [vmem:[#allocation104_spill] sm:$0xff] %v8229_v41  ;;  %13287 = vst [vmem:[#allocation20_spill] sm:$0xff] %v8237_v10  ;;  %v2047_v51 = vadd.f32 1e-05, %v1759_v38  ;;  %v13290_v27 = vld [vmem:[#allocation106_spill] sm:$0xff]  ;;  %v13291_v60 = vld [vmem:[#allocation141_spill] sm:$0xff]  ;;  %v8252_v10 = vmul.f32 %v5226_v9, %v1893_v30  ;;  %5243 = vrsqrt.f32 %v2046_v36  ;;  %v13296_v40 = vsub.f32 %v7457_v61, %v7450_v42 }
 0x25f   :  { %13285 = vst [vmem:[#allocation108_spill] sm:$0xff] %v8232_v3  ;;  %13289 = vst [vmem:[#allocation21_spill] sm:$0xff] %v8244_v44  ;;  %v2467_v16 = vmul.f32 %v8203_v58, %v13290_v27  ;;  %v13292_v25 = vld [vmem:[#allocation139_spill] sm:$0xff]  ;;  %v1895_v7 = vld [vmem:[%s12701_s1 + $0x58] sm:$0xff]  ;;  %v2048_v38 = vadd.f32 1e-05, %v1760_v11  ;;  %v8270_v9 = vmul.f32 %v8232_v3, %v8232_v3 }
 0x260   :  { %v13293_v13 = vsub.f32 %v13291_v60, %v13292_v25  ;;  %13294 = vst [vmem:[#allocation106_spill] sm:$0xff] %v8252_v10  ;;  %13295 = vst [vmem:[#allocation141_spill] sm:$0xff] %v8254_v12  ;;  %v1762_v27 = vmax.f32 %v13296_v40, 0.0  ;;  %v13297_v58 = vld [vmem:[#allocation113_spill] sm:$0xff]  ;;  %v8266_v60 = vmul.f32 %v8229_v41, %v8229_v41  ;;  %v13299_v26 = vld [vmem:[#allocation22_spill] sm:$0xff]  ;;  %v8278_v42 = vpop.xlane.xlu1 %1006  ;;  %v8281_v61 = vpop.xlane.xlu0 %1003  ;;  %5245 = vrsqrt.f32 %v2047_v51 }
 0x261   :  { %v2468_v49 = vmul.f32 %v8212_v34, %v13297_v58  ;;  %13298 = vst [vmem:[#allocation139_spill] sm:$0xff] %v8270_v9  ;;  %v8273_v30 = vmul.f32 0.020408163, %v13299_v26  ;;  %v13301_v36 = vld [vmem:[#allocation23_spill] sm:$0xff]  ;;  %2762 = vrot.lane.b32.xlu1 %v2467_v16, %s5922_s23  ;;  %13304 = vst [vmem:[#allocation221_spill] sm:$0xff] %v8281_v61  ;;  %v1896_v58 = vld [vmem:[%s12701_s1 + $0x60] sm:$0xff]  ;;  %v8297_v16 = vmul.f32 %v8244_v44, %v8244_v44  ;;  %5247 = vrsqrt.f32 %v2048_v38 }
 0x262   :  { %v1761_v37 = vmax.f32 %v13293_v13, 0.0  ;;  %v8276_v11 = vmul.f32 0.020408163, %v13301_v36  ;;  %13303 = vst [vmem:[#allocation23_spill] sm:$0xff] %v8278_v42  ;;  %v13305_v59 = vld [vmem:[#allocation24_spill] sm:$0xff]  ;;  %v13308_v40 = vld [vmem:[#allocation142_spill] sm:$0xff]  ;;  %v8293_v36 = vmul.f32 %v5230_v39, %v1895_v7  ;;  %v5234_v42 = vpop.eup %5233  ;;  %v8306_v7 = vmul.f32 %v5232_v20, %v1896_v58 }
 0x263   :  { %13300 = vst [vmem:[#allocation113_spill] sm:$0xff] %v8273_v30  ;;  %v8287_v25 = vmul.f32 0.020408163, %v13305_v59  ;;  %v13307_v13 = vld [vmem:[#allocation144_spill] sm:$0xff]  ;;  %2764 = vrot.lane.b32.xlu0 %v2468_v49, %s5922_s23  ;;  %v13311_v3 = vld [vmem:[#allocation111_spill] sm:$0xff]  ;;  %v5236_v9 = vpop.eup %5235  ;;  %v13313_v49 = vsub.f32 %v7490_v24, %v7488_v45  ;;  %v13316_v45 = vld [vmem:[#allocation25_spill] sm:$0xff] }
 0x264   :  { %13302 = vst [vmem:[#allocation22_spill] sm:$0xff] %v8276_v11  ;;  %v13309_v26 = vsub.f32 %v13307_v13, %v13308_v40  ;;  %13310 = vst [vmem:[#allocation144_spill] sm:$0xff] %v8293_v36  ;;  %v2049_v61 = vadd.f32 1e-05, %v1761_v37  ;;  %v2469_v41 = vmul.f32 %v8252_v10, %v13311_v3  ;;  %v13312_v59 = vld [vmem:[#allocation116_spill] sm:$0xff]  ;;  %v1897_v40 = vld [vmem:[%s12701_s1 + $0x68] sm:$0xff]  ;;  %v8316_v3 = vmul.f32 %v8273_v30, %v8273_v30  ;;  %v8328_v58 = vpop.xlane.xlu1 %1012 }
 0x265   :  { %13306 = vst [vmem:[#allocation24_spill] sm:$0xff] %v8287_v25  ;;  %v2470_v51 = vmul.f32 %v8254_v12, %v13312_v59  ;;  %v2050_v13 = vadd.f32 1e-05, %v1762_v27  ;;  %v1764_v39 = vmax.f32 %v13313_v49, 0.0  ;;  %13314 = vst [vmem:[#allocation142_spill] sm:$0xff] %v8306_v7  ;;  %v1898_v37 = vld [vmem:[%s12701_s1 + $0x70] sm:$0xff]  ;;  %v8320_v38 = vmul.f32 %v8276_v11, %v8276_v11 }
 0x266   :  { %v1763_v34 = vmax.f32 %v13309_v26, 0.0  ;;  %13315 = vst [vmem:[#allocation111_spill] sm:$0xff] %v8316_v3  ;;  %v8323_v24 = vmul.f32 0.020408163, %v13316_v45  ;;  %v13318_v20 = vld [vmem:[#allocation26_spill] sm:$0xff]  ;;  %2766 = vrot.lane.b32.xlu1 %v2469_v41, %s5922_s23  ;;  %v8331_v26 = vpop.xlane.xlu0 %1009  ;;  %v8335_v59 = vmul.f32 %v8287_v25, %v8287_v25  ;;  %v13323_v49 = vld [vmem:[#allocation27_spill] sm:$0xff]  ;;  %5249 = vrsqrt.f32 %v2049_v61  ;;  %v5238_v25 = vpop.eup %5237 }
 0x267   :  { %v8326_v27 = vmul.f32 0.020408163, %v13318_v20  ;;  %13320 = vst [vmem:[#allocation26_spill] sm:$0xff] %v8328_v58  ;;  %13321 = vst [vmem:[#allocation222_spill] sm:$0xff] %v8331_v26  ;;  %v8338_v12 = vmul.f32 0.020408163, %v13323_v49  ;;  %2768 = vrot.lane.b32.xlu0 %v2470_v51, %s5922_s23  ;;  %v8346_v44 = vmul.f32 %v5234_v42, %v1897_v40  ;;  %v8348_v26 = vmul.f32 %v5236_v9, %v1898_v37 }
 0x268   :  { %13317 = vst [vmem:[#allocation116_spill] sm:$0xff] %v8323_v24  ;;  %13322 = vst [vmem:[#allocation223_spill] sm:$0xff] %v8335_v59  ;;  %v2051_v10 = vadd.f32 1e-05, %v1763_v34  ;;  %v13325_v45 = vld [vmem:[#allocation114_spill] sm:$0xff]  ;;  %v13326_v30 = vld [vmem:[#allocation149_spill] sm:$0xff]  ;;  %5251 = vrsqrt.f32 %v2050_v13  ;;  %v13331_v34 = vsub.f32 %v7517_v14, %v7510_v54 }
 0x269   :  { %13319 = vst [vmem:[#allocation25_spill] sm:$0xff] %v8326_v27  ;;  %13324 = vst [vmem:[#allocation27_spill] sm:$0xff] %v8338_v12  ;;  %v2471_v20 = vmul.f32 %v8293_v36, %v13325_v45  ;;  %v13327_v58 = vld [vmem:[#allocation147_spill] sm:$0xff]  ;;  %v2052_v59 = vadd.f32 1e-05, %v1764_v39  ;;  %v13332_v51 = vld [vmem:[#allocation121_spill] sm:$0xff]  ;;  %v8364_v9 = vmul.f32 %v8326_v27, %v8326_v27  ;;  %v8372_v39 = vpop.xlane.xlu1 %1018 }
 0x26a   :  { %v13328_v11 = vsub.f32 %v13326_v30, %v13327_v58  ;;  %13329 = vst [vmem:[#allocation114_spill] sm:$0xff] %v8346_v44  ;;  %13330 = vst [vmem:[#allocation149_spill] sm:$0xff] %v8348_v26  ;;  %v1766_v49 = vmax.f32 %v13331_v34, 0.0  ;;  %v2472_v3 = vmul.f32 %v8306_v7, %v13332_v51  ;;  %v1899_v61 = vld [vmem:[%s12701_s1 + $0x78] sm:$0xff]  ;;  %v5240_v30 = vpop.eup %5239  ;;  %v13334_v42 = vld [vmem:[#allocation28_spill] sm:$0xff]  ;;  %v8375_v40 = vpop.xlane.xlu0 %1015  ;;  %v8382_v58 = vmul.f32 %v8338_v12, %v8338_v12 }
 0x26b   :  { %13333 = vst [vmem:[#allocation147_spill] sm:$0xff] %v8364_v9  ;;  %v8367_v13 = vmul.f32 0.020408163, %v13334_v42  ;;  %v13336_v54 = vld [vmem:[#allocation29_spill] sm:$0xff]  ;;  %2770 = vrot.lane.b32.xlu1 %v2471_v20, %s5922_s23  ;;  %13339 = vst [vmem:[#allocation224_spill] sm:$0xff] %v8375_v40  ;;  %v1900_v37 = vld [vmem:[%s12701_s1 + $0x80] sm:$0xff]  ;;  %5253 = vrsqrt.f32 %v2051_v10  ;;  %v5242_v12 = vpop.eup %5241  ;;  %v13348_v10 = vsub.f32 %v7550_v52, %v7548_v63 }
 0x26c   :  { %v1765_v41 = vmax.f32 %v13328_v11, 0.0  ;;  %v8360_v11 = vmul.f32 %v8323_v24, %v8323_v24  ;;  %v8370_v14 = vmul.f32 0.020408163, %v13336_v54  ;;  %13338 = vst [vmem:[#allocation29_spill] sm:$0xff] %v8372_v39  ;;  %v13340_v45 = vld [vmem:[#allocation30_spill] sm:$0xff]  ;;  %v13342_v51 = vld [vmem:[#allocation152_spill] sm:$0xff]  ;;  %2772 = vrot.lane.b32.xlu0 %v2472_v3, %s5922_s23  ;;  %v8395_v24 = vmul.f32 %v5238_v25, %v1899_v61 }
 0x26d   :  { %13335 = vst [vmem:[#allocation121_spill] sm:$0xff] %v8367_v13  ;;  %v8385_v34 = vmul.f32 0.020408163, %v13340_v45  ;;  %v13343_v42 = vld [vmem:[#allocation150_spill] sm:$0xff]  ;;  %v13345_v36 = vld [vmem:[#allocation119_spill] sm:$0xff]  ;;  %v13346_v40 = vld [vmem:[#allocation124_spill] sm:$0xff]  ;;  %5255 = vrsqrt.f32 %v2052_v59  ;;  %v8419_v61 = vpop.xlane.xlu1 %1024 }
 0x26e   :  { %13337 = vst [vmem:[#allocation28_spill] sm:$0xff] %v8370_v14  ;;  %v13344_v54 = vsub.f32 %v13342_v51, %v13343_v42  ;;  %v2053_v20 = vadd.f32 1e-05, %v1765_v41  ;;  %v2473_v39 = vmul.f32 %v8346_v44, %v13345_v36  ;;  %v2474_v27 = vmul.f32 %v8348_v26, %v13346_v40  ;;  %13347 = vst [vmem:[#allocation152_spill] sm:$0xff] %v8395_v24  ;;  %v1901_v3 = vld [vmem:[%s12701_s1 + $0x88] sm:$0xff]  ;;  %v5244_v41 = vpop.eup %5243  ;;  %v13352_v63 = vld [vmem:[#allocation32_spill] sm:$0xff] }
 0x26f   :  { %13341 = vst [vmem:[#allocation30_spill] sm:$0xff] %v8385_v34  ;;  %v2054_v45 = vadd.f32 1e-05, %v1766_v49  ;;  %v1768_v9 = vmax.f32 %v13348_v10, 0.0  ;;  %v8400_v51 = vmul.f32 %v5240_v30, %v1900_v37  ;;  %v8407_v36 = vmul.f32 %v8367_v13, %v8367_v13  ;;  %v13350_v59 = vld [vmem:[#allocation31_spill] sm:$0xff]  ;;  %v8422_v30 = vpop.xlane.xlu0 %1021  ;;  %v1902_v40 = vld [vmem:[%s12701_s1 + $0x90] sm:$0xff] }
 0x270   :  { %v1767_v7 = vmax.f32 %v13344_v54, 0.0  ;;  %v8411_v25 = vmul.f32 %v8370_v14, %v8370_v14  ;;  %v8414_v49 = vmul.f32 0.020408163, %v13350_v59  ;;  %v8417_v52 = vmul.f32 0.020408163, %v13352_v63  ;;  %13354 = vst [vmem:[#allocation31_spill] sm:$0xff] %v8419_v61  ;;  %2774 = vrot.lane.b32.xlu1 %v2473_v39, %s5922_s23  ;;  %2776 = vrot.lane.b32.xlu0 %v2474_v27, %s5922_s23  ;;  %v5246_v39 = vpop.eup %5245 }
 0x271   :  { %13349 = vst [vmem:[#allocation150_spill] sm:$0xff] %v8400_v51  ;;  %13355 = vst [vmem:[#allocation32_spill] sm:$0xff] %v8422_v30  ;;  %v8429_v37 = vmul.f32 %v8385_v34, %v8385_v34  ;;  %v13356_v42 = vld [vmem:[#allocation33_spill] sm:$0xff]  ;;  %v13359_v63 = vld [vmem:[#allocation155_spill] sm:$0xff]  ;;  %5257 = vrsqrt.f32 %v2053_v20  ;;  %v13361_v61 = vsub.f32 %v7577_v28, %v7570_v4  ;;  %v8443_v14 = vmul.f32 %v5242_v12, %v1901_v3  ;;  %v5248_v20 = vpop.eup %5247 }
 0x272   :  { %13351 = vst [vmem:[#allocation119_spill] sm:$0xff] %v8414_v49  ;;  %13353 = vst [vmem:[#allocation124_spill] sm:$0xff] %v8417_v52  ;;  %v8432_v54 = vmul.f32 0.020408163, %v13356_v42  ;;  %v2055_v10 = vadd.f32 1e-05, %v1767_v7  ;;  %5259 = vrsqrt.f32 %v2054_v45  ;;  %v8454_v4 = vmul.f32 %v8414_v49, %v8414_v49 }
 0x273   :  { %v13358_v59 = vld [vmem:[#allocation157_spill] sm:$0xff]  ;;  %v1770_v30 = vmax.f32 %v13361_v61, 0.0  ;;  %v13362_v13 = vld [vmem:[#allocation122_spill] sm:$0xff]  ;;  %v2056_v42 = vadd.f32 1e-05, %v1768_v9  ;;  %v8458_v28 = vmul.f32 %v8417_v52, %v8417_v52  ;;  %v13368_v3 = vld [vmem:[#allocation35_spill] sm:$0xff]  ;;  %v8466_v9 = vpop.xlane.xlu1 %1030 }
 0x274   :  { %13357 = vst [vmem:[#allocation33_spill] sm:$0xff] %v8432_v54  ;;  %v13360_v26 = vsub.f32 %v13358_v59, %v13359_v63  ;;  %v2475_v34 = vmul.f32 %v8395_v24, %v13362_v13  ;;  %13363 = vst [vmem:[#allocation157_spill] sm:$0xff] %v8443_v14  ;;  %v1903_v7 = vld [vmem:[%s12701_s1 + $0x98] sm:$0xff]  ;;  %v8450_v59 = vmul.f32 %v5244_v41, %v1902_v40  ;;  %v13366_v12 = vld [vmem:[#allocation34_spill] sm:$0xff]  ;;  %v8464_v45 = vmul.f32 0.020408163, %v13368_v3  ;;  %v8469_v41 = vpop.xlane.xlu0 %1027 }
 0x275   :  { %v8461_v13 = vmul.f32 0.020408163, %v13366_v12  ;;  %13370 = vst [vmem:[#allocation34_spill] sm:$0xff] %v8466_v9  ;;  %13371 = vst [vmem:[#allocation35_spill] sm:$0xff] %v8469_v41  ;;  %v1904_v61 = vld [vmem:[%s12701_s1 + $0xa0] sm:$0xff]  ;;  %5261 = vrsqrt.f32 %v2055_v10  ;;  %v13372_v63 = vld [vmem:[#allocation160_spill] sm:$0xff]  ;;  %v8478_v3 = vmul.f32 %v5246_v39, %v1903_v7  ;;  %v8482_v24 = vmul.f32 %v8432_v54, %v8432_v54  ;;  %v5250_v10 = vpop.eup %5249 }
 0x276   :  { %v1769_v44 = vmax.f32 %v13360_v26, 0.0  ;;  %v13364_v26 = vld [vmem:[#allocation129_spill] sm:$0xff]  ;;  %13365 = vst [vmem:[#allocation155_spill] sm:$0xff] %v8450_v59  ;;  %2778 = vrot.lane.b32.xlu1 %v2475_v34, %s5922_s23  ;;  %v2058_v34 = vadd.f32 1e-05, %v1770_v30  ;;  %v13376_v9 = vsub.f32 %v7610_v43, %v7608_v22  ;;  %v13377_v52 = vld [vmem:[#allocation127_spill] sm:$0xff]  ;;  %5263 = vrsqrt.f32 %v2056_v42 }
 0x277   :  { %v2476_v27 = vmul.f32 %v8400_v51, %v13364_v26  ;;  %13367 = vst [vmem:[#allocation122_spill] sm:$0xff] %v8461_v13  ;;  %13369 = vst [vmem:[#allocation129_spill] sm:$0xff] %v8464_v45  ;;  %v13373_v26 = vld [vmem:[#allocation158_spill] sm:$0xff]  ;;  %v13378_v49 = vld [vmem:[#allocation36_spill] sm:$0xff]  ;;  %v8494_v7 = vmul.f32 %v5248_v20, %v1904_v61  ;;  %v8501_v22 = vmul.f32 %v8461_v13, %v8461_v13  ;;  %v8513_v20 = vpop.xlane.xlu1 %1036 }
 0x278   :  { %v2057_v40 = vadd.f32 1e-05, %v1769_v44  ;;  %v13374_v51 = vsub.f32 %v13372_v63, %v13373_v26  ;;  %13375 = vst [vmem:[#allocation160_spill] sm:$0xff] %v8478_v3  ;;  %v1772_v41 = vmax.f32 %v13376_v9, 0.0  ;;  %v2477_v44 = vmul.f32 %v8443_v14, %v13377_v52  ;;  %v1905_v30 = vld [vmem:[%s12701_s1 + $0xa8] sm:$0xff]  ;;  %v13385_v42 = vld [vmem:[#allocation38_spill] sm:$0xff]  ;;  %v8516_v61 = vpop.xlane.xlu0 %1033 }
 0x279   :  { %2780 = vrot.lane.b32.xlu0 %v2476_v27, %s5922_s23  ;;  %v8490_v63 = vmul.f32 0.020408163, %v13378_v49  ;;  %13381 = vst [vmem:[#allocation127_spill] sm:$0xff] %v8494_v7  ;;  %v5252_v27 = vpop.eup %5251  ;;  %13382 = vst [vmem:[#allocation36_spill] sm:$0xff] %v8501_v22  ;;  %v8505_v43 = vmul.f32 %v8464_v45, %v8464_v45  ;;  %v13383_v49 = vld [vmem:[#allocation37_spill] sm:$0xff]  ;;  %v1906_v26 = vld [vmem:[%s12701_s1 + $0xb0] sm:$0xff]  ;;  %v8530_v22 = vmul.f32 %v5250_v10, %v1905_v30 }
 0x27a   :  { %v1771_v12 = vmax.f32 %v13374_v51, 0.0  ;;  %v13380_v51 = vld [vmem:[#allocation132_spill] sm:$0xff]  ;;  %v8508_v52 = vmul.f32 0.020408163, %v13383_v49  ;;  %v8511_v9 = vmul.f32 0.020408163, %v13385_v42  ;;  %2782 = vrot.lane.b32.xlu1 %v2477_v44, %s5922_s23  ;;  %5265 = vrsqrt.f32 %v2057_v40 }
 0x27b   :  { %13379 = vst [vmem:[#allocation158_spill] sm:$0xff] %v8490_v63  ;;  %v2478_v39 = vmul.f32 %v8450_v59, %v13380_v51  ;;  %13387 = vst [vmem:[#allocation38_spill] sm:$0xff] %v8513_v20  ;;  %v13389_v59 = vld [vmem:[#allocation165_spill] sm:$0xff]  ;;  %v13390_v14 = vld [vmem:[#allocation163_spill] sm:$0xff]  ;;  %v5254_v20 = vpop.eup %5253  ;;  %5267 = vrsqrt.f32 %v2058_v34  ;;  %v2060_v44 = vadd.f32 1e-05, %v1772_v41  ;;  %v8544_v34 = vmul.f32 %v5252_v27, %v1906_v26 }
 0x27c   :  { %13384 = vst [vmem:[#allocation132_spill] sm:$0xff] %v8508_v52  ;;  %13386 = vst [vmem:[#allocation37_spill] sm:$0xff] %v8511_v9  ;;  %v2059_v51 = vadd.f32 1e-05, %v1771_v12  ;;  %v13391_v13 = vsub.f32 %v13389_v59, %v13390_v14  ;;  %v13392_v42 = vld [vmem:[#allocation130_spill] sm:$0xff]  ;;  %v1907_v40 = vld [vmem:[%s12701_s1 + $0xb8] sm:$0xff]  ;;  %v8537_v14 = vmul.f32 %v8490_v63, %v8490_v63  ;;  %v8552_v10 = vmul.f32 %v8511_v9, %v8511_v9  ;;  %v8563_v27 = vpop.xlane.xlu0 %1039 }
 0x27d   :  { %13388 = vst [vmem:[#allocation225_spill] sm:$0xff] %v8516_v61  ;;  %2784 = vrot.lane.b32.xlu0 %v2478_v39, %s5922_s23  ;;  %v2479_v45 = vmul.f32 %v8478_v3, %v13392_v42  ;;  %v13393_v61 = vsub.f32 %v7637_v46, %v7630_v19  ;;  %13394 = vst [vmem:[#allocation165_spill] sm:$0xff] %v8530_v22  ;;  %v13395_v59 = vld [vmem:[#allocation39_spill] sm:$0xff]  ;;  %v13397_v12 = vld [vmem:[#allocation137_spill] sm:$0xff]  ;;  %v5256_v19 = vpop.eup %5255  ;;  %v8548_v46 = vmul.f32 %v8508_v52, %v8508_v52 }
 0x27e   :  { %v1773_v49 = vmax.f32 %v13391_v13, 0.0  ;;  %v8540_v13 = vmul.f32 0.020408163, %v13395_v59  ;;  %v2480_v41 = vmul.f32 %v8494_v7, %v13397_v12  ;;  %13398 = vst [vmem:[#allocation130_spill] sm:$0xff] %v8544_v34  ;;  %13399 = vst [vmem:[#allocation39_spill] sm:$0xff] %v8552_v10  ;;  %v13400_v39 = vld [vmem:[#allocation40_spill] sm:$0xff]  ;;  %v8560_v59 = vpop.xlane.xlu1 %1042  ;;  %5269 = vrsqrt.f32 %v2059_v51  ;;  %v5258_v10 = vpop.eup %5257 }
 0x27f   :  { %v1774_v54 = vmax.f32 %v13393_v61, 0.0  ;;  %v8555_v30 = vmul.f32 0.020408163, %v13400_v39  ;;  %v13402_v61 = vld [vmem:[#allocation41_spill] sm:$0xff]  ;;  %2786 = vrot.lane.b32.xlu1 %v2479_v45, %s5922_s23  ;;  %13405 = vst [vmem:[#allocation226_spill] sm:$0xff] %v8563_v27  ;;  %v1908_v26 = vld [vmem:[%s12701_s1 + $0xc0] sm:$0xff]  ;;  %v8572_v39 = vmul.f32 %v5254_v20, %v1907_v40  ;;  %5271 = vrsqrt.f32 %v2060_v44 }
 0x280   :  { %13396 = vst [vmem:[#allocation163_spill] sm:$0xff] %v8540_v13  ;;  %v8558_v42 = vmul.f32 0.020408163, %v13402_v61  ;;  %13404 = vst [vmem:[#allocation41_spill] sm:$0xff] %v8560_v59  ;;  %v13406_v12 = vld [vmem:[#allocation42_spill] sm:$0xff]  ;;  %v13409_v61 = vld [vmem:[#allocation168_spill] sm:$0xff]  ;;  %v13413_v51 = vsub.f32 %v7670_v55, %v7668_v50  ;;  %v8588_v40 = vmul.f32 %v5256_v19, %v1908_v26  ;;  %v8610_v26 = vpop.xlane.xlu0 %1045 }
 0x281   :  { %13401 = vst [vmem:[#allocation137_spill] sm:$0xff] %v8555_v30  ;;  %v8569_v7 = vmul.f32 0.020408163, %v13406_v12  ;;  %v2061_v3 = vadd.f32 1e-05, %v1773_v49  ;;  %2788 = vrot.lane.b32.xlu0 %v2480_v41, %s5922_s23  ;;  %13408 = vst [vmem:[#allocation227_spill] sm:$0xff] %v8572_v39  ;;  %v8581_v12 = vmul.f32 %v8540_v13, %v8540_v13  ;;  %v8595_v41 = vmul.f32 %v8555_v30, %v8555_v30 }
 0x282   :  { %13403 = vst [vmem:[#allocation40_spill] sm:$0xff] %v8558_v42  ;;  %v13410_v59 = vld [vmem:[#allocation166_spill] sm:$0xff]  ;;  %v2062_v63 = vadd.f32 1e-05, %v1774_v54  ;;  %v13412_v27 = vld [vmem:[#allocation135_spill] sm:$0xff]  ;;  %v1776_v49 = vmax.f32 %v13413_v51, 0.0  ;;  %v8607_v19 = vpop.xlane.xlu1 %1048 }
 0x283   :  { %13407 = vst [vmem:[#allocation42_spill] sm:$0xff] %v8569_v7  ;;  %v13411_v9 = vsub.f32 %v13409_v61, %v13410_v59  ;;  %v2481_v52 = vmul.f32 %v8530_v22, %v13412_v27  ;;  %v13414_v20 = vld [vmem:[#allocation140_spill] sm:$0xff]  ;;  %13415 = vst [vmem:[#allocation168_spill] sm:$0xff] %v8588_v40  ;;  %v1909_v54 = vld [vmem:[%s12701_s1 + $0xc8] sm:$0xff]  ;;  %v8599_v59 = vmul.f32 %v8558_v42, %v8558_v42  ;;  %5273 = vrsqrt.f32 %v2061_v3 }
 0x284   :  { %v2482_v44 = vmul.f32 %v8544_v34, %v13414_v20  ;;  %13416 = vst [vmem:[#allocation166_spill] sm:$0xff] %v8595_v41  ;;  %v13417_v50 = vld [vmem:[#allocation43_spill] sm:$0xff]  ;;  %v13419_v27 = vld [vmem:[#allocation44_spill] sm:$0xff]  ;;  %v8617_v20 = vmul.f32 %v8569_v7, %v8569_v7  ;;  %v13424_v34 = vld [vmem:[#allocation45_spill] sm:$0xff]  ;;  %5275 = vrsqrt.f32 %v2062_v63  ;;  %v8628_v41 = vmul.f32 %v5258_v10, %v1909_v54 }
 0x285   :  { %v1775_v45 = vmax.f32 %v13411_v9, 0.0  ;;  %v5260_v9 = vpop.eup %5259  ;;  %v8602_v55 = vmul.f32 0.020408163, %v13417_v50  ;;  %v8605_v61 = vmul.f32 0.020408163, %v13419_v27  ;;  %13421 = vst [vmem:[#allocation43_spill] sm:$0xff] %v8607_v19  ;;  %2790 = vrot.lane.b32.xlu1 %v2481_v52, %s5922_s23  ;;  %v13431_v3 = vsub.f32 %v7697_v0, %v7690_v35 }
 0x286   :  { %13422 = vst [vmem:[#allocation44_spill] sm:$0xff] %v8610_v26  ;;  %v1910_v51 = vld [vmem:[%s12701_s1 + $0xd0] sm:$0xff]  ;;  %13423 = vst [vmem:[#allocation228_spill] sm:$0xff] %v8617_v20  ;;  %v8620_v50 = vmul.f32 0.020408163, %v13424_v34  ;;  %2792 = vrot.lane.b32.xlu0 %v2482_v44, %s5922_s23  ;;  %v13426_v27 = vld [vmem:[#allocation138_spill] sm:$0xff]  ;;  %v5262_v52 = vpop.eup %5261 }
 0x287   :  { %13418 = vst [vmem:[#allocation135_spill] sm:$0xff] %v8602_v55  ;;  %13420 = vst [vmem:[#allocation140_spill] sm:$0xff] %v8605_v61  ;;  %v2483_v22 = vmul.f32 %v8572_v39, %v13426_v27  ;;  %v2063_v19 = vadd.f32 1e-05, %v1775_v45  ;;  %v13427_v30 = vld [vmem:[#allocation173_spill] sm:$0xff]  ;;  %v13428_v26 = vld [vmem:[#allocation171_spill] sm:$0xff]  ;;  %v8638_v45 = vmul.f32 %v5260_v9, %v1910_v51  ;;  %v5264_v63 = vpop.eup %5263  ;;  %v8646_v10 = vmul.f32 %v8605_v61, %v8605_v61  ;;  %v8657_v9 = vpop.xlane.xlu0 %1051 }
 0x288   :  { %13425 = vst [vmem:[#allocation45_spill] sm:$0xff] %v8620_v50  ;;  %v13429_v42 = vsub.f32 %v13427_v30, %v13428_v26  ;;  %13430 = vst [vmem:[#allocation138_spill] sm:$0xff] %v8628_v41  ;;  %v1911_v34 = vld [vmem:[%s12701_s1 + $0xd8] sm:$0xff]  ;;  %v2064_v7 = vadd.f32 1e-05, %v1776_v49  ;;  %v1778_v44 = vmax.f32 %v13431_v3, 0.0  ;;  %v8642_v30 = vmul.f32 %v8602_v55, %v8602_v55  ;;  %v8654_v3 = vpop.xlane.xlu1 %1054 }
 0x289   :  { %v13432_v20 = vld [vmem:[#allocation145_spill] sm:$0xff]  ;;  %13433 = vst [vmem:[#allocation173_spill] sm:$0xff] %v8638_v45  ;;  %13434 = vst [vmem:[#allocation171_spill] sm:$0xff] %v8646_v10  ;;  %v13437_v54 = vld [vmem:[#allocation176_spill] sm:$0xff]  ;;  %2794 = vrot.lane.b32.xlu1 %v2483_v22, %s5922_s23  ;;  %v5266_v22 = vpop.eup %5265  ;;  %5277 = vrsqrt.f32 %v2063_v19 }
 0x28a   :  { %v1777_v13 = vmax.f32 %v13429_v42, 0.0  ;;  %v2484_v27 = vmul.f32 %v8588_v40, %v13432_v20  ;;  %v13435_v42 = vld [vmem:[#allocation46_spill] sm:$0xff]  ;;  %13441 = vst [vmem:[#allocation176_spill] sm:$0xff] %v8657_v9  ;;  %v8664_v20 = vmul.f32 %v8620_v50, %v8620_v50  ;;  %v13445_v39 = vld [vmem:[#allocation48_spill] sm:$0xff]  ;;  %v13449_v9 = vld [vmem:[#allocation143_spill] sm:$0xff]  ;;  %v5268_v55 = vpop.eup %5267  ;;  %5279 = vrsqrt.f32 %v2064_v7 }
 0x28b   :  { %v8649_v49 = vmul.f32 0.020408163, %v13435_v42  ;;  %v13438_v35 = vld [vmem:[#allocation174_spill] sm:$0xff]  ;;  %13440 = vst [vmem:[#allocation46_spill] sm:$0xff] %v8654_v3  ;;  %v13443_v42 = vld [vmem:[#allocation47_spill] sm:$0xff]  ;;  %v13448_v3 = vsub.f32 %v7730_v6, %v7728_v17  ;;  %v2485_v50 = vmul.f32 %v8628_v41, %v13449_v9  ;;  %v13450_v10 = vld [vmem:[#allocation148_spill] sm:$0xff] }
 0x28c   :  { %v13439_v0 = vsub.f32 %v13437_v54, %v13438_v35  ;;  %v1912_v51 = vld [vmem:[%s12701_s1 + $0xe0] sm:$0xff]  ;;  %13442 = vst [vmem:[#allocation174_spill] sm:$0xff] %v8664_v20  ;;  %v8667_v40 = vmul.f32 0.020408163, %v13443_v42  ;;  %v8670_v54 = vmul.f32 0.020408163, %v13445_v39  ;;  %2796 = vrot.lane.b32.xlu0 %v2484_v27, %s5922_s23  ;;  %v8673_v35 = vmul.f32 %v5262_v52, %v1911_v34 }
 0x28d   :  { %13436 = vst [vmem:[#allocation145_spill] sm:$0xff] %v8649_v49  ;;  %v1780_v61 = vmax.f32 %v13448_v3, 0.0  ;;  %v2066_v42 = vadd.f32 1e-05, %v1778_v44  ;;  %v2486_v39 = vmul.f32 %v8638_v45, %v13450_v10  ;;  %v8682_v20 = vmul.f32 %v5264_v63, %v1912_v51  ;;  %v1913_v19 = vld [vmem:[%s12701_s1 + $0xe8] sm:$0xff]  ;;  %v1914_v17 = vld [vmem:[%s12701_s1 + $0xf0] sm:$0xff]  ;;  %v8700_v10 = vpop.xlane.xlu1 %1060  ;;  %2798 = vrot.lane.b32.xlu1 %v2485_v50, %s5922_s23  ;;  %v8703_v3 = vpop.xlane.xlu0 %1057 }
 0x28e   :  { %v1779_v26 = vmax.f32 %v13439_v0, 0.0  ;;  %13444 = vst [vmem:[#allocation47_spill] sm:$0xff] %v8667_v40  ;;  %13446 = vst [vmem:[#allocation48_spill] sm:$0xff] %v8670_v54  ;;  %v2065_v0 = vadd.f32 1e-05, %v1777_v13  ;;  %v8692_v6 = vmul.f32 %v8649_v49, %v8649_v49  ;;  %v13452_v13 = vld [vmem:[#allocation49_spill] sm:$0xff]  ;;  %v8707_v9 = vmul.f32 %v8667_v40, %v8667_v40 }
 0x28f   :  { %13447 = vst [vmem:[#allocation229_spill] sm:$0xff] %v8673_v35  ;;  %13451 = vst [vmem:[#allocation143_spill] sm:$0xff] %v8682_v20  ;;  %v8695_v7 = vmul.f32 0.020408163, %v13452_v13  ;;  %v13454_v34 = vld [vmem:[#allocation181_spill] sm:$0xff]  ;;  %v13455_v44 = vld [vmem:[#allocation179_spill] sm:$0xff]  ;;  %v8711_v51 = vmul.f32 %v8670_v54, %v8670_v54  ;;  %v8719_v45 = vmul.f32 %v5266_v22, %v1913_v19  ;;  %v8721_v41 = vmul.f32 %v5268_v55, %v1914_v17 }
 0x290   :  { %v2067_v52 = vadd.f32 1e-05, %v1779_v26  ;;  %v13456_v27 = vsub.f32 %v13454_v34, %v13455_v44  ;;  %13457 = vst [vmem:[#allocation49_spill] sm:$0xff] %v8700_v10  ;;  %13458 = vst [vmem:[#allocation181_spill] sm:$0xff] %v8703_v3  ;;  %v13459_v13 = vld [vmem:[#allocation50_spill] sm:$0xff]  ;;  %2800 = vrot.lane.b32.xlu0 %v2486_v39, %s5922_s23  ;;  %5281 = vrsqrt.f32 %v2065_v0  ;;  %v1915_v54 = vld [vmem:[%s12701_s1 + $0xf8] sm:$0xff] }
 0x291   :  { %13453 = vst [vmem:[#allocation148_spill] sm:$0xff] %v8695_v7  ;;  %v8714_v26 = vmul.f32 0.020408163, %v13459_v13  ;;  %v13461_v34 = vld [vmem:[#allocation146_spill] sm:$0xff]  ;;  %v2068_v50 = vadd.f32 1e-05, %v1780_v61  ;;  %5283 = vrsqrt.f32 %v2066_v42  ;;  %v13464_v13 = vsub.f32 %v7757_v23, %v7750_v53  ;;  %v8742_v23 = vpop.xlane.xlu1 %1066 }
 0x292   :  { %v1781_v63 = vmax.f32 %v13456_v27, 0.0  ;;  %v2487_v44 = vmul.f32 %v8673_v35, %v13461_v34  ;;  %v5270_v27 = vpop.eup %5269  ;;  %13462 = vst [vmem:[#allocation50_spill] sm:$0xff] %v8719_v45  ;;  %13463 = vst [vmem:[#allocation146_spill] sm:$0xff] %v8721_v41  ;;  %v1354_v40 = vmul.f32 0.020408163, %v7793_v62  ;;  %v13465_v34 = vld [vmem:[#allocation153_spill] sm:$0xff]  ;;  %v8737_v61 = vmul.f32 %v8695_v7, %v8695_v7  ;;  %v8745_v62 = vpop.xlane.xlu0 %1063 }
 0x293   :  { %13460 = vst [vmem:[#allocation179_spill] sm:$0xff] %v8714_v26  ;;  %v5272_v49 = vpop.eup %5271  ;;  %v1782_v39 = vmax.f32 %v13464_v13, 0.0  ;;  %v2488_v0 = vmul.f32 %v8682_v20, %v13465_v34  ;;  %v1916_v55 = vld [vmem:[%s12701_s1 + $0x100] sm:$0xff]  ;;  %5285 = vrsqrt.f32 %v2067_v52  ;;  %v13466_v42 = vld [vmem:[#allocation184_spill] sm:$0xff]  ;;  %13469 = vst [vmem:[#allocation153_spill] sm:$0xff] %v8742_v23  ;;  %v8749_v13 = vmul.f32 %v8714_v26, %v8714_v26 }
 0x294   :  { %v2069_v22 = vadd.f32 1e-05, %v1781_v63  ;;  %v13467_v19 = vld [vmem:[#allocation182_spill] sm:$0xff]  ;;  %2802 = vrot.lane.b32.xlu1 %v2487_v44, %s5922_s23  ;;  %13470 = vst [vmem:[#allocation184_spill] sm:$0xff] %v8745_v62  ;;  %v13471_v34 = vld [vmem:[#allocation51_spill] sm:$0xff]  ;;  %v8756_v63 = vmul.f32 %v5270_v27, %v1915_v54  ;;  %5287 = vrsqrt.f32 %v2068_v50  ;;  %v8762_v23 = vmul.f32 %v5272_v49, %v1916_v55  ;;  %v13483_v3 = vld [vmem:[#allocation189_spill] sm:$0xff] }
 0x295   :  { %v13468_v17 = vsub.f32 %v13466_v42, %v13467_v19  ;;  %v8752_v20 = vmul.f32 0.020408163, %v13471_v34  ;;  %v1355_v52 = vmul.f32 0.020408163, %v7791_v33  ;;  %2804 = vrot.lane.b32.xlu0 %v2488_v0, %s5922_s23  ;;  %v5274_v42 = vpop.eup %5273  ;;  %v13474_v19 = vld [vmem:[#allocation151_spill] sm:$0xff]  ;;  %v13477_v0 = vld [vmem:[#allocation188_spill] sm:$0xff]  ;;  %v1642_v50 = vsub.f32 %v1354_v40, %v8032_v5  ;;  %v8779_v10 = vpop.xlane.xlu1 %1072 }
 0x296   :  { %13473 = vst [vmem:[#allocation51_spill] sm:$0xff] %v8756_v63  ;;  %v2489_v44 = vmul.f32 %v8719_v45, %v13474_v19  ;;  %13476 = vst [vmem:[#allocation151_spill] sm:$0xff] %v8762_v23  ;;  %v1917_v34 = vld [vmem:[%s12701_s1 + $0x108] sm:$0xff]  ;;  %v5276_v26 = vpop.eup %5275  ;;  %v2070_v33 = vadd.f32 1e-05, %v1782_v39  ;;  %v13478_v54 = vsub.f32 %v7784_v31, %v13477_v0  ;;  %v13479_v7 = vld [vmem:[#allocation190_spill] sm:$0xff]  ;;  %5289 = vrsqrt.f32 %v2069_v22  ;;  %v8782_v31 = vpop.xlane.xlu0 %1069 }
 0x297   :  { %v1783_v53 = vmax.f32 %v13468_v17, 0.0  ;;  %13472 = vst [vmem:[#allocation182_spill] sm:$0xff] %v8752_v20  ;;  %v13475_v17 = vld [vmem:[#allocation156_spill] sm:$0xff]  ;;  %v1356_v62 = vmul.f32 0.020408163, %v13479_v7  ;;  %v13480_v55 = vld [vmem:[#allocation187_spill] sm:$0xff]  ;;  %v8786_v5 = vmul.f32 %v8752_v20, %v8752_v20  ;;  %v1643_v22 = vsub.f32 %v1355_v52, %v8014_v8 }
 0x298   :  { %v2490_v35 = vmul.f32 %v8721_v41, %v13475_v17  ;;  %v1784_v27 = vmax.f32 %v13478_v54, 0.0  ;;  %v1918_v19 = vld [vmem:[%s12701_s1 + $0x110] sm:$0xff]  ;;  %v13481_v17 = vld [vmem:[#allocation186_spill] sm:$0xff]  ;;  %v1357_v39 = vmul.f32 0.020408163, %v13483_v3  ;;  %13484 = vst [vmem:[#allocation156_spill] sm:$0xff] %v8779_v10  ;;  %2806 = vrot.lane.b32.xlu1 %v2489_v44, %s5922_s23  ;;  %v5278_v10 = vpop.eup %5277  ;;  %5291 = vrsqrt.f32 %v2070_v33 }
 0x299   :  { %v2071_v49 = vadd.f32 1e-05, %v1783_v53  ;;  %v13482_v41 = vsub.f32 %v13480_v55, %v13481_v17  ;;  %v13485_v40 = vld [vmem:[#allocation52_spill] sm:$0xff]  ;;  %v13489_v54 = vld [vmem:[#allocation161_spill] sm:$0xff]  ;;  %v8798_v55 = vmul.f32 %v5274_v42, %v1917_v34  ;;  %v8800_v17 = vmul.f32 %v5276_v26, %v1918_v19  ;;  %v5280_v52 = vpop.eup %5279  ;;  %v8808_v34 = vpop.xlane.xlu1 %1078 }
 0x29a   :  { %v8789_v7 = vmul.f32 0.020408163, %v13485_v40  ;;  %2808 = vrot.lane.b32.xlu0 %v2490_v35, %s5922_s23  ;;  %v13488_v53 = vld [vmem:[#allocation192_spill] sm:$0xff]  ;;  %v2492_v44 = vmul.f32 %v8762_v23, %v13489_v54  ;;  %v2072_v40 = vadd.f32 1e-05, %v1784_v27  ;;  %v1786_v20 = vmax.f32 %v1642_v50, 0.0  ;;  %v8811_v26 = vpop.xlane.xlu0 %1075 }
 0x29b   :  { %v1785_v45 = vmax.f32 %v13482_v41, 0.0  ;;  %v13487_v41 = vld [vmem:[#allocation154_spill] sm:$0xff]  ;;  %v1358_v0 = vmul.f32 0.020408163, %v13488_v53  ;;  %13490 = vst [vmem:[#allocation190_spill] sm:$0xff] %v8798_v55  ;;  %13491 = vst [vmem:[#allocation187_spill] sm:$0xff] %v8800_v17  ;;  %v1644_v8 = vsub.f32 %v1356_v62, %v8069_v21  ;;  %5293 = vrsqrt.f32 %v2071_v49 }
 0x29c   :  { %13486 = vst [vmem:[#allocation188_spill] sm:$0xff] %v8789_v7  ;;  %v2491_v3 = vmul.f32 %v8756_v63, %v13487_v41  ;;  %v1919_v35 = vld [vmem:[%s12701_s1 + $0x118] sm:$0xff]  ;;  %v1645_v53 = vsub.f32 %v1357_v39, %v8036_v48  ;;  %v13492_v54 = vld [vmem:[#allocation191_spill] sm:$0xff]  ;;  %13493 = vst [vmem:[#allocation186_spill] sm:$0xff] %v8808_v34  ;;  %v8818_v62 = vmul.f32 %v8789_v7, %v8789_v7  ;;  %v1787_v48 = vmax.f32 %v1643_v22, 0.0 }
 0x29d   :  { %v2073_v41 = vadd.f32 1e-05, %v1785_v45  ;;  %v1359_v42 = vmul.f32 0.020408163, %v13492_v54  ;;  %13494 = vst [vmem:[#allocation189_spill] sm:$0xff] %v8811_v26  ;;  %v1920_v21 = vld [vmem:[%s12701_s1 + $0x120] sm:$0xff]  ;;  %v1646_v19 = vsub.f32 %v1358_v0, %v8079_v18  ;;  %v8830_v23 = vmul.f32 %v5278_v10, %v1919_v35  ;;  %v5282_v63 = vpop.eup %5281  ;;  %v8841_v10 = vpop.xlane.xlu1 %1084 }
 0x29e   :  { %2810 = vrot.lane.b32.xlu1 %v2491_v3, %s5922_s23  ;;  %v13495_v33 = vld [vmem:[#allocation53_spill] sm:$0xff]  ;;  %v13497_v27 = vld [vmem:[#allocation194_spill] sm:$0xff]  ;;  %2812 = vrot.lane.b32.xlu0 %v2492_v44, %s5922_s23  ;;  %v13498_v49 = vld [vmem:[#allocation159_spill] sm:$0xff]  ;;  %5295 = vrsqrt.f32 %v2072_v40  ;;  %v2074_v34 = vadd.f32 1e-05, %v1786_v20  ;;  %v8832_v7 = vmul.f32 %v5280_v52, %v1920_v21  ;;  %v5284_v44 = vpop.eup %5283  ;;  %13503 = vst [vmem:[#allocation161_spill] sm:$0xff] %v8841_v10  ;;  %v8844_v20 = vpop.xlane.xlu0 %1081 }
 0x29f   :  { %v8821_v45 = vmul.f32 0.020408163, %v13495_v33  ;;  %v1360_v50 = vmul.f32 0.020408163, %v13497_v27  ;;  %v2493_v39 = vmul.f32 %v8798_v55, %v13498_v49  ;;  %v13499_v3 = vld [vmem:[#allocation164_spill] sm:$0xff]  ;;  %13500 = vst [vmem:[#allocation154_spill] sm:$0xff] %v8830_v23  ;;  %5297 = vrsqrt.f32 %v2073_v41 }
 0x2a0   :  { %v2494_v54 = vmul.f32 %v8800_v17, %v13499_v3  ;;  %v1788_v33 = vmax.f32 %v1644_v8, 0.0  ;;  %13501 = vst [vmem:[#allocation192_spill] sm:$0xff] %v8832_v7  ;;  %v1921_v22 = vld [vmem:[%s12701_s1 + $0x128] sm:$0xff]  ;;  %v13502_v18 = vld [vmem:[#allocation54_spill] sm:$0xff]  ;;  %v1789_v27 = vmax.f32 %v1645_v53, 0.0  ;;  %v1647_v49 = vsub.f32 %v1359_v42, %v8073_v56  ;;  %13504 = vst [vmem:[#allocation191_spill] sm:$0xff] %v8844_v20  ;;  %v5286_v8 = vpop.eup %5285 }
 0x2a1   :  { %13496 = vst [vmem:[#allocation52_spill] sm:$0xff] %v8821_v45  ;;  %v8838_v0 = vmul.f32 0.020408163, %v13502_v18  ;;  %v1922_v40 = vld [vmem:[%s12701_s1 + $0x130] sm:$0xff]  ;;  %v8851_v35 = vmul.f32 %v8821_v45, %v8821_v45  ;;  %v2075_v52 = vadd.f32 1e-05, %v1787_v48  ;;  %v1648_v56 = vsub.f32 %v1360_v50, %v8101_v32  ;;  %v5288_v10 = vpop.eup %5287  ;;  %v8871_v26 = vpop.xlane.xlu1 %1090 }
 0x2a2   :  { %2814 = vrot.lane.b32.xlu1 %v2493_v39, %s5922_s23  ;;  %v13505_v41 = vld [vmem:[#allocation193_spill] sm:$0xff]  ;;  %2816 = vrot.lane.b32.xlu0 %v2494_v54, %s5922_s23  ;;  %v1790_v21 = vmax.f32 %v1646_v19, 0.0  ;;  %v13506_v39 = vld [vmem:[#allocation196_spill] sm:$0xff]  ;;  %v13507_v18 = vld [vmem:[#allocation162_spill] sm:$0xff]  ;;  %v8862_v55 = vmul.f32 %v5282_v63, %v1921_v22  ;;  %5299 = vrsqrt.f32 %v2074_v34  ;;  %v2076_v48 = vadd.f32 1e-05, %v1788_v33 }
 0x2a3   :  { %v1361_v53 = vmul.f32 0.020408163, %v13505_v41  ;;  %v1923_v42 = vld [vmem:[%s12701_s1 + $0x138] sm:$0xff]  ;;  %v1362_v3 = vmul.f32 0.020408163, %v13506_v39  ;;  %v2495_v17 = vmul.f32 %v8830_v23, %v13507_v18  ;;  %v8866_v50 = vmul.f32 %v5284_v44, %v1922_v40  ;;  %v13511_v54 = vld [vmem:[#allocation55_spill] sm:$0xff]  ;;  %v8874_v39 = vpop.xlane.xlu0 %1087  ;;  %v5290_v33 = vpop.eup %5289 }
 0x2a4   :  { %13508 = vst [vmem:[#allocation53_spill] sm:$0xff] %v8862_v55  ;;  %v13509_v41 = vld [vmem:[#allocation169_spill] sm:$0xff]  ;;  %v8869_v20 = vmul.f32 0.020408163, %v13511_v54  ;;  %v2077_v45 = vadd.f32 1e-05, %v1789_v27  ;;  %v8876_v63 = vmul.f32 %v5286_v8, %v1923_v42  ;;  %5301 = vrsqrt.f32 %v2075_v52 }
 0x2a5   :  { %v2496_v32 = vmul.f32 %v8832_v7, %v13509_v41  ;;  %13510 = vst [vmem:[#allocation194_spill] sm:$0xff] %v8866_v50  ;;  %v1791_v19 = vmax.f32 %v1647_v49, 0.0  ;;  %13512 = vst [vmem:[#allocation159_spill] sm:$0xff] %v8871_v26  ;;  %v1924_v34 = vld [vmem:[%s12701_s1 + $0x140] sm:$0xff]  ;;  %v13515_v22 = vld [vmem:[#allocation101_spill] sm:$0xff]  ;;  %v1792_v40 = vmax.f32 %v1648_v56, 0.0  ;;  %v1650_v8 = vsub.f32 %v1362_v3, %v8132_v57 }
 0x2a6   :  { %2818 = vrot.lane.b32.xlu1 %v2495_v17, %s5922_s23  ;;  %13513 = vst [vmem:[#allocation164_spill] sm:$0xff] %v8874_v39  ;;  %13514 = vst [vmem:[#allocation54_spill] sm:$0xff] %v8876_v63  ;;  %v1649_v44 = vsub.f32 %v1361_v53, %v13515_v22  ;;  %v13516_v18 = vld [vmem:[#allocation195_spill] sm:$0xff]  ;;  %v2078_v49 = vadd.f32 1e-05, %v1790_v21  ;;  %v13517_v42 = vld [vmem:[#allocation198_spill] sm:$0xff]  ;;  %v8893_v52 = vmul.f32 %v8838_v0, %v8838_v0  ;;  %5303 = vrsqrt.f32 %v2076_v48  ;;  %v5292_v22 = vpop.eup %5291 }
 0x2a7   :  { %v1363_v27 = vmul.f32 0.020408163, %v13516_v18  ;;  %2820 = vrot.lane.b32.xlu0 %v2496_v32, %s5922_s23  ;;  %v1925_v17 = vld [vmem:[%s12701_s1 + $0x148] sm:$0xff]  ;;  %v1364_v41 = vmul.f32 0.020408163, %v13517_v42  ;;  %v13519_v53 = vld [vmem:[#allocation172_spill] sm:$0xff]  ;;  %v8897_v32 = vmul.f32 %v5288_v10, %v1924_v34  ;;  %5305 = vrsqrt.f32 %v2077_v45  ;;  %v8899_v18 = vpop.xlane.xlu1 %1096  ;;  %v8902_v57 = vpop.xlane.xlu0 %1093 }
 0x2a8   :  { %v13518_v54 = vld [vmem:[#allocation167_spill] sm:$0xff]  ;;  %v2498_v56 = vmul.f32 %v8866_v50, %v13519_v53  ;;  %v2079_v21 = vadd.f32 1e-05, %v1791_v19  ;;  %13521 = vst [vmem:[#allocation196_spill] sm:$0xff] %v8899_v18  ;;  %13522 = vst [vmem:[#allocation162_spill] sm:$0xff] %v8902_v57  ;;  %v13523_v3 = vld [vmem:[#allocation170_spill] sm:$0xff]  ;;  %v5294_v10 = vpop.eup %5293  ;;  %5307 = vrsqrt.f32 %v2078_v49 }
 0x2a9   :  { %v2497_v7 = vmul.f32 %v8862_v55, %v13518_v54  ;;  %13520 = vst [vmem:[#allocation193_spill] sm:$0xff] %v8897_v32  ;;  %v2499_v42 = vmul.f32 %v8876_v63, %v13523_v3  ;;  %v8906_v54 = vmul.f32 %v5290_v33, %v1925_v17  ;;  %v1926_v48 = vld [vmem:[%s12701_s1 + $0x150] sm:$0xff]  ;;  %v1793_v34 = vmax.f32 %v1649_v44, 0.0  ;;  %v13525_v45 = vld [vmem:[#allocation126_spill] sm:$0xff]  ;;  %v13526_v50 = vld [vmem:[#allocation197_spill] sm:$0xff] }
 0x2aa   :  { %v2080_v53 = vadd.f32 1e-05, %v1792_v40  ;;  %v1651_v19 = vsub.f32 %v1363_v27, %v13525_v45  ;;  %v1365_v55 = vmul.f32 0.020408163, %v13526_v50  ;;  %v1794_v33 = vmax.f32 %v1650_v8, 0.0  ;;  %v13527_v3 = vld [vmem:[#allocation200_spill] sm:$0xff] }
 0x2ab   :  { %2822 = vrot.lane.b32.xlu1 %v2497_v7, %s5922_s23  ;;  %13524 = vst [vmem:[#allocation169_spill] sm:$0xff] %v8906_v54  ;;  %2824 = vrot.lane.b32.xlu0 %v2498_v56, %s5922_s23  ;;  %v1927_v7 = vld [vmem:[%s12701_s1 + $0x158] sm:$0xff]  ;;  %v1652_v17 = vsub.f32 %v1364_v41, %v8172_v15  ;;  %v1366_v63 = vmul.f32 0.020408163, %v13527_v3  ;;  %v8921_v44 = vmul.f32 %v8869_v20, %v8869_v20  ;;  %v13528_v40 = vld [vmem:[#allocation56_spill] sm:$0xff]  ;;  %v5296_v23 = vpop.eup %5295  ;;  %5309 = vrsqrt.f32 %v2079_v21  ;;  %v8933_v15 = vpop.xlane.xlu1 %1102  ;;  %v13535_v41 = vld [vmem:[#allocation175_spill] sm:$0xff] }
 0x2ac   :  { %v8924_v27 = vmul.f32 0.020408163, %v13528_v40  ;;  %v13530_v50 = vld [vmem:[#allocation177_spill] sm:$0xff]  ;;  %v8928_v45 = vmul.f32 %v5292_v22, %v1926_v48  ;;  %13533 = vst [vmem:[#allocation195_spill] sm:$0xff] %v8933_v15  ;;  %v8936_v8 = vpop.xlane.xlu0 %1099  ;;  %v2501_v3 = vmul.f32 %v8906_v54, %v13535_v41  ;;  %v8940_v40 = vmul.f32 %v5294_v10, %v1927_v7  ;;  %v1928_v22 = vld [vmem:[%s12701_s1 + $0x160] sm:$0xff]  ;;  %v5298_v48 = vpop.eup %5297  ;;  %v13537_v10 = vld [vmem:[#allocation199_spill] sm:$0xff] }
 0x2ad   :  { %v2500_v56 = vmul.f32 %v8897_v32, %v13530_v50  ;;  %v13532_v18 = vld [vmem:[#allocation57_spill] sm:$0xff]  ;;  %13534 = vst [vmem:[#allocation198_spill] sm:$0xff] %v8936_v8  ;;  %v2081_v50 = vadd.f32 1e-05, %v1793_v34  ;;  %5311 = vrsqrt.f32 %v2080_v53  ;;  %v1653_v21 = vsub.f32 %v1365_v55, %v8163_v29  ;;  %v13538_v54 = vld [vmem:[#allocation220_spill] sm:$0xff]  ;;  %v13539_v34 = vld [vmem:[#allocation202_spill] sm:$0xff] }
 0x2ae   :  { %13529 = vst [vmem:[#allocation55_spill] sm:$0xff] %v8924_v27  ;;  %13531 = vst [vmem:[#allocation101_spill] sm:$0xff] %v8928_v45  ;;  %v8931_v49 = vmul.f32 0.020408163, %v13532_v18  ;;  %v1795_v18 = vmax.f32 %v1651_v19, 0.0  ;;  %v1796_v41 = vmax.f32 %v1652_v17, 0.0  ;;  %v1654_v15 = vsub.f32 %v1366_v63, %v13538_v54 }
 0x2af   :  { %2826 = vrot.lane.b32.xlu1 %v2499_v42, %s5922_s23  ;;  %13536 = vst [vmem:[#allocation167_spill] sm:$0xff] %v8940_v40  ;;  %2828 = vrot.lane.b32.xlu0 %v2500_v56, %s5922_s23  ;;  %v1929_v42 = vld [vmem:[%s12701_s1 + $0x168] sm:$0xff]  ;;  %v2082_v32 = vadd.f32 1e-05, %v1794_v33  ;;  %v1367_v7 = vmul.f32 0.020408163, %v13537_v10  ;;  %v8954_v8 = vmul.f32 %v8924_v27, %v8924_v27  ;;  %v8959_v55 = vmul.f32 %v5296_v23, %v1928_v22  ;;  %v5300_v56 = vpop.eup %5299  ;;  %v8968_v63 = vpop.xlane.xlu1 %1108 }
 0x2b0   :  { %v1368_v53 = vmul.f32 0.020408163, %v13539_v34  ;;  %v13540_v19 = vld [vmem:[#allocation180_spill] sm:$0xff]  ;;  %v8963_v33 = vmul.f32 %v8931_v49, %v8931_v49  ;;  %v13542_v17 = vld [vmem:[#allocation58_spill] sm:$0xff]  ;;  %13544 = vst [vmem:[#allocation126_spill] sm:$0xff] %v8968_v63  ;;  %v8971_v54 = vpop.xlane.xlu0 %1105  ;;  %5313 = vrsqrt.f32 %v2081_v50  ;;  %v1798_v39 = vmax.f32 %v1654_v15, 0.0 }
 0x2b1   :  { %v2502_v29 = vmul.f32 %v8928_v45, %v13540_v19  ;;  %13541 = vst [vmem:[#allocation172_spill] sm:$0xff] %v8959_v55  ;;  %v8966_v10 = vmul.f32 0.020408163, %v13542_v17  ;;  %13545 = vst [vmem:[#allocation197_spill] sm:$0xff] %v8971_v54  ;;  %v13546_v34 = vld [vmem:[#allocation178_spill] sm:$0xff]  ;;  %v8975_v19 = vmul.f32 %v5298_v48, %v1929_v42  ;;  %v1930_v23 = vld [vmem:[%s12701_s1 + $0x170] sm:$0xff]  ;;  %v5302_v63 = vpop.eup %5301  ;;  %5315 = vrsqrt.f32 %v2082_v32 }
 0x2b2   :  { %v2503_v57 = vmul.f32 %v8940_v40, %v13546_v34  ;;  %v2083_v22 = vadd.f32 1e-05, %v1795_v18  ;;  %v1797_v45 = vmax.f32 %v1653_v21, 0.0  ;;  %v13548_v17 = vld [vmem:[#allocation201_spill] sm:$0xff]  ;;  %v13549_v54 = vld [vmem:[#allocation131_spill] sm:$0xff]  ;;  %v1656_v42 = vsub.f32 %v1368_v53, %v8226_v47  ;;  %v13550_v34 = vld [vmem:[#allocation204_spill] sm:$0xff] }
 0x2b3   :  { %13543 = vst [vmem:[#allocation170_spill] sm:$0xff] %v8966_v10  ;;  %2830 = vrot.lane.b32.xlu1 %v2501_v3, %s5922_s23  ;;  %13547 = vst [vmem:[#allocation200_spill] sm:$0xff] %v8975_v19  ;;  %v1369_v26 = vmul.f32 0.020408163, %v13548_v17  ;;  %2832 = vrot.lane.b32.xlu0 %v2502_v29, %s5922_s23  ;;  %v2084_v3 = vadd.f32 1e-05, %v1796_v41  ;;  %v1655_v27 = vsub.f32 %v1367_v7, %v13549_v54  ;;  %v5304_v29 = vpop.eup %5303  ;;  %v9000_v40 = vpop.xlane.xlu1 %1114 }
 0x2b4   :  { %v1931_v48 = vld [vmem:[%s12701_s1 + $0x178] sm:$0xff]  ;;  %v1370_v50 = vmul.f32 0.020408163, %v13550_v34  ;;  %v8990_v17 = vmul.f32 %v5300_v56, %v1930_v23  ;;  %v8994_v32 = vmul.f32 %v8966_v10, %v8966_v10  ;;  %v13553_v41 = vld [vmem:[#allocation59_spill] sm:$0xff]  ;;  %13555 = vst [vmem:[#allocation177_spill] sm:$0xff] %v9000_v40  ;;  %v9003_v47 = vpop.xlane.xlu0 %1111  ;;  %v1932_v23 = vld [vmem:[%s12701_s1 + $0x180] sm:$0xff]  ;;  %v5306_v34 = vpop.eup %5305  ;;  %5317 = vrsqrt.f32 %v2083_v22 }
 0x2b5   :  { %v13551_v18 = vld [vmem:[#allocation185_spill] sm:$0xff]  ;;  %v8997_v15 = vmul.f32 0.020408163, %v13553_v41  ;;  %v13554_v7 = vld [vmem:[#allocation203_spill] sm:$0xff]  ;;  %13556 = vst [vmem:[#allocation57_spill] sm:$0xff] %v9003_v47  ;;  %v1657_v41 = vsub.f32 %v1369_v26, %v8222_v1  ;;  %5319 = vrsqrt.f32 %v2084_v3  ;;  %v13559_v40 = vld [vmem:[#allocation206_spill] sm:$0xff]  ;;  %v9021_v26 = vmul.f32 %v5304_v29, %v1932_v23 }
 0x2b6   :  { %v2504_v21 = vmul.f32 %v8959_v55, %v13551_v18  ;;  %13552 = vst [vmem:[#allocation56_spill] sm:$0xff] %v8990_v17  ;;  %v1371_v54 = vmul.f32 0.020408163, %v13554_v7  ;;  %v13557_v53 = vld [vmem:[#allocation183_spill] sm:$0xff]  ;;  %v2085_v18 = vadd.f32 1e-05, %v1797_v45  ;;  %v9012_v7 = vmul.f32 %v5302_v63, %v1931_v48 }
 0x2b7   :  { %2834 = vrot.lane.b32.xlu1 %v2503_v57, %s5922_s23  ;;  %v2505_v56 = vmul.f32 %v8975_v19, %v13557_v53  ;;  %v1799_v57 = vmax.f32 %v1655_v27, 0.0  ;;  %v2086_v55 = vadd.f32 1e-05, %v1798_v39  ;;  %v1372_v47 = vmul.f32 0.020408163, %v13559_v40  ;;  %v1933_v53 = vld [vmem:[%s12701_s1 + $0x188] sm:$0xff]  ;;  %v5308_v19 = vpop.eup %5307 }
 0x2b8   :  { %2836 = vrot.lane.b32.xlu0 %v2504_v21, %s5922_s23  ;;  %13558 = vst [vmem:[#allocation175_spill] sm:$0xff] %v9012_v7  ;;  %v1800_v10 = vmax.f32 %v1656_v42, 0.0  ;;  %v1658_v22 = vsub.f32 %v1370_v50, %v8266_v60  ;;  %v13560_v45 = vld [vmem:[#allocation115_spill] sm:$0xff]  ;;  %13561 = vst [vmem:[#allocation199_spill] sm:$0xff] %v9021_v26  ;;  %v1934_v27 = vld [vmem:[%s12701_s1 + $0x190] sm:$0xff]  ;;  %v9028_v39 = vmul.f32 %v8997_v15, %v8997_v15  ;;  %v9035_v42 = vpop.xlane.xlu1 %1120  ;;  %v9038_v50 = vpop.xlane.xlu0 %1117  ;;  %5321 = vrsqrt.f32 %v2085_v18 }
 0x2b9   :  { %v2506_v1 = vmul.f32 %v8990_v17, %v13560_v45  ;;  %v13562_v40 = vld [vmem:[#allocation60_spill] sm:$0xff]  ;;  %v1659_v3 = vsub.f32 %v1371_v54, %v8241_v2  ;;  %v13564_v48 = vld [vmem:[#allocation205_spill] sm:$0xff]  ;;  %13565 = vst [vmem:[#allocation202_spill] sm:$0xff] %v9035_v42  ;;  %13566 = vst [vmem:[#allocation180_spill] sm:$0xff] %v9038_v50  ;;  %v5310_v21 = vpop.eup %5309  ;;  %v1801_v29 = vmax.f32 %v1657_v41, 0.0  ;;  %5323 = vrsqrt.f32 %v2086_v55 }
 0x2ba   :  { %v9031_v63 = vmul.f32 0.020408163, %v13562_v40  ;;  %v1373_v60 = vmul.f32 0.020408163, %v13564_v48  ;;  %v13567_v23 = vld [vmem:[#allocation117_spill] sm:$0xff]  ;;  %v9043_v40 = vmul.f32 %v5306_v34, %v1933_v53  ;;  %v5312_v17 = vpop.eup %5311  ;;  %v1660_v54 = vsub.f32 %v1372_v47, %v8297_v16  ;;  %v13570_v42 = vld [vmem:[#allocation208_spill] sm:$0xff] }
 0x2bb   :  { %2838 = vrot.lane.b32.xlu1 %v2505_v56, %s5922_s23  ;;  %v2507_v45 = vmul.f32 %v9012_v7, %v13567_v23  ;;  %v2087_v2 = vadd.f32 1e-05, %v1799_v57  ;;  %v9046_v48 = vmul.f32 %v5308_v19, %v1934_v27  ;;  %v1935_v56 = vld [vmem:[%s12701_s1 + $0x198] sm:$0xff]  ;;  %v2088_v18 = vadd.f32 1e-05, %v1800_v10  ;;  %v13571_v50 = vld [vmem:[#allocation118_spill] sm:$0xff] }
 0x2bc   :  { %13563 = vst [vmem:[#allocation220_spill] sm:$0xff] %v9031_v63  ;;  %2840 = vrot.lane.b32.xlu0 %v2506_v1, %s5922_s23  ;;  %13568 = vst [vmem:[#allocation58_spill] sm:$0xff] %v9043_v40  ;;  %v1802_v41 = vmax.f32 %v1658_v22, 0.0  ;;  %v1374_v1 = vmul.f32 0.020408163, %v13570_v42  ;;  %v2508_v23 = vmul.f32 %v9021_v26, %v13571_v50  ;;  %v1936_v34 = vld [vmem:[%s12701_s1 + $0x1a0] sm:$0xff]  ;;  %v9062_v7 = vpop.xlane.xlu1 %1126  ;;  %v9065_v10 = vpop.xlane.xlu0 %1123  ;;  %v9069_v22 = vmul.f32 %v9031_v63, %v9031_v63 }
 0x2bd   :  { %13569 = vst [vmem:[#allocation178_spill] sm:$0xff] %v9046_v48  ;;  %v13572_v55 = vld [vmem:[#allocation61_spill] sm:$0xff]  ;;  %v1803_v16 = vmax.f32 %v1659_v3, 0.0  ;;  %v13574_v19 = vld [vmem:[#allocation139_spill] sm:$0xff]  ;;  %13576 = vst [vmem:[#allocation131_spill] sm:$0xff] %v9062_v7  ;;  %5325 = vrsqrt.f32 %v2087_v2  ;;  %v9078_v26 = vmul.f32 %v5312_v17, %v1936_v34 }
 0x2be   :  { %v9058_v57 = vmul.f32 0.020408163, %v13572_v55  ;;  %v1661_v47 = vsub.f32 %v1373_v60, %v13574_v19  ;;  %v13575_v53 = vld [vmem:[#allocation207_spill] sm:$0xff]  ;;  %13577 = vst [vmem:[#allocation204_spill] sm:$0xff] %v9065_v10  ;;  %v2089_v42 = vadd.f32 1e-05, %v1801_v29  ;;  %v9074_v55 = vmul.f32 %v5310_v21, %v1935_v56  ;;  %v5314_v60 = vpop.eup %5313 }
 0x2bf   :  { %v1375_v27 = vmul.f32 0.020408163, %v13575_v53  ;;  %2842 = vrot.lane.b32.xlu1 %v2507_v45, %s5922_s23  ;;  %v13578_v50 = vld [vmem:[#allocation2_spill] sm:$0xff]  ;;  %v1804_v19 = vmax.f32 %v1660_v54, 0.0  ;;  %13581 = vst [vmem:[#allocation59_spill] sm:$0xff] %v9078_v26  ;;  %v1937_v7 = vld [vmem:[%s12701_s1 + $0x1a8] sm:$0xff]  ;;  %v5316_v29 = vpop.eup %5315  ;;  %5327 = vrsqrt.f32 %v2088_v18  ;;  %v1662_v10 = vsub.f32 %v1374_v1, %v8320_v38 }
 0x2c0   :  { %13573 = vst [vmem:[#allocation201_spill] sm:$0xff] %v9058_v57  ;;  %2844 = vrot.lane.b32.xlu0 %v2508_v23, %s5922_s23  ;;  %v2509_v3 = vmul.f32 %v9043_v40, %v13578_v50  ;;  %13579 = vst [vmem:[#allocation185_spill] sm:$0xff] %v9074_v55  ;;  %v13580_v53 = vld [vmem:[#allocation6_spill] sm:$0xff]  ;;  %v2090_v23 = vadd.f32 1e-05, %v1802_v41  ;;  %v1938_v2 = vld [vmem:[%s12701_s1 + $0x1b0] sm:$0xff]  ;;  %v9090_v40 = vpop.xlane.xlu1 %1132  ;;  %v9093_v18 = vpop.xlane.xlu0 %1129  ;;  %v9097_v38 = vmul.f32 %v9058_v57, %v9058_v57  ;;  %5329 = vrsqrt.f32 %v2089_v42 }
 0x2c1   :  { %v2510_v45 = vmul.f32 %v9046_v48, %v13580_v53  ;;  %v13582_v50 = vld [vmem:[#allocation210_spill] sm:$0xff]  ;;  %v2091_v54 = vadd.f32 1e-05, %v1803_v16  ;;  %v1805_v56 = vmax.f32 %v1661_v47, 0.0  ;;  %v13583_v53 = vld [vmem:[#allocation111_spill] sm:$0xff]  ;;  %v13584_v34 = vld [vmem:[#allocation209_spill] sm:$0xff]  ;;  %v9103_v16 = vmul.f32 %v5314_v60, %v1937_v7  ;;  %v5318_v47 = vpop.eup %5317 }
 0x2c2   :  { %v1376_v21 = vmul.f32 0.020408163, %v13582_v50  ;;  %v1663_v17 = vsub.f32 %v1375_v27, %v13583_v53  ;;  %v1377_v48 = vmul.f32 0.020408163, %v13584_v34  ;;  %13585 = vst [vmem:[#allocation203_spill] sm:$0xff] %v9090_v40  ;;  %13586 = vst [vmem:[#allocation183_spill] sm:$0xff] %v9093_v18  ;;  %v9109_v40 = vmul.f32 %v5316_v29, %v1938_v2  ;;  %v5320_v18 = vpop.eup %5319 }
 0x2c3   :  { %2846 = vrot.lane.b32.xlu1 %v2509_v3, %s5922_s23  ;;  %v13587_v41 = vld [vmem:[#allocation62_spill] sm:$0xff]  ;;  %13589 = vst [vmem:[#allocation115_spill] sm:$0xff] %v9103_v16  ;;  %v2092_v27 = vadd.f32 1e-05, %v1804_v19  ;;  %v13590_v50 = vld [vmem:[#allocation5_spill] sm:$0xff]  ;;  %5331 = vrsqrt.f32 %v2090_v23  ;;  %v1806_v42 = vmax.f32 %v1662_v10, 0.0 }
 0x2c4   :  { %v9100_v1 = vmul.f32 0.020408163, %v13587_v41  ;;  %2848 = vrot.lane.b32.xlu0 %v2510_v45, %s5922_s23  ;;  %v2511_v53 = vmul.f32 %v9074_v55, %v13590_v50  ;;  %v13591_v3 = vld [vmem:[#allocation9_spill] sm:$0xff]  ;;  %13592 = vst [vmem:[#allocation60_spill] sm:$0xff] %v9109_v40  ;;  %v1664_v7 = vsub.f32 %v1376_v21, %v8360_v11  ;;  %v13593_v60 = vld [vmem:[#allocation212_spill] sm:$0xff]  ;;  %v1940_v19 = vld [vmem:[%s12701_s1 + $0x1c0] sm:$0xff]  ;;  %5333 = vrsqrt.f32 %v2091_v54  ;;  %v9123_v55 = vpop.xlane.xlu0 %1135 }
 0x2c5   :  { %v2512_v34 = vmul.f32 %v9078_v26, %v13591_v3  ;;  %v1939_v41 = vld [vmem:[%s12701_s1 + $0x1b8] sm:$0xff]  ;;  %v1378_v45 = vmul.f32 0.020408163, %v13593_v60  ;;  %v2093_v50 = vadd.f32 1e-05, %v1805_v56  ;;  %v1807_v3 = vmax.f32 %v1663_v17, 0.0  ;;  %v9120_v26 = vpop.xlane.xlu1 %1138 }
 0x2c6   :  { %13588 = vst [vmem:[#allocation206_spill] sm:$0xff] %v9100_v1  ;;  %v13594_v29 = vld [vmem:[#allocation223_spill] sm:$0xff]  ;;  %13595 = vst [vmem:[#allocation205_spill] sm:$0xff] %v9120_v26  ;;  %v9127_v11 = vmul.f32 %v9100_v1, %v9100_v1  ;;  %v9135_v56 = vmul.f32 %v5318_v47, %v1939_v41  ;;  %5335 = vrsqrt.f32 %v2092_v27  ;;  %v9140_v26 = vmul.f32 %v5320_v18, %v1940_v19  ;;  %v13604_v47 = vld [vmem:[#allocation214_spill] sm:$0xff] }
 0x2c7   :  { %v1665_v2 = vsub.f32 %v1377_v48, %v13594_v29  ;;  %2850 = vrot.lane.b32.xlu1 %v2511_v53, %s5922_s23  ;;  %13596 = vst [vmem:[#allocation117_spill] sm:$0xff] %v9123_v55  ;;  %v13597_v10 = vld [vmem:[#allocation63_spill] sm:$0xff]  ;;  %v5322_v48 = vpop.eup %5321  ;;  %v1808_v1 = vmax.f32 %v1664_v7, 0.0  ;;  %v1380_v41 = vmul.f32 0.020408163, %v13604_v47  ;;  %v1942_v27 = vld [vmem:[%s12701_s1 + $0x1d0] sm:$0xff]  ;;  %5337 = vrsqrt.f32 %v2093_v50 }
 0x2c8   :  { %v9130_v23 = vmul.f32 0.020408163, %v13597_v10  ;;  %2852 = vrot.lane.b32.xlu0 %v2512_v34, %s5922_s23  ;;  %v13599_v21 = vld [vmem:[#allocation7_spill] sm:$0xff]  ;;  %13600 = vst [vmem:[#allocation118_spill] sm:$0xff] %v9135_v56  ;;  %13603 = vst [vmem:[#allocation61_spill] sm:$0xff] %v9140_v26  ;;  %v5324_v55 = vpop.eup %5323  ;;  %v13605_v18 = vld [vmem:[#allocation213_spill] sm:$0xff] }
 0x2c9   :  { %v2513_v54 = vmul.f32 %v9103_v16, %v13599_v21  ;;  %v13601_v17 = vld [vmem:[#allocation211_spill] sm:$0xff]  ;;  %v2094_v34 = vadd.f32 1e-05, %v1806_v42  ;;  %v1666_v21 = vsub.f32 %v1378_v45, %v8382_v58  ;;  %v1381_v19 = vmul.f32 0.020408163, %v13605_v18  ;;  %v9154_v16 = vpop.xlane.xlu0 %1141  ;;  %v13608_v42 = vld [vmem:[#allocation64_spill] sm:$0xff] }
 0x2ca   :  { %13598 = vst [vmem:[#allocation208_spill] sm:$0xff] %v9130_v23  ;;  %v1379_v53 = vmul.f32 0.020408163, %v13601_v17  ;;  %v13602_v60 = vld [vmem:[#allocation11_spill] sm:$0xff]  ;;  %v2095_v17 = vadd.f32 1e-05, %v1807_v3  ;;  %v9158_v58 = vmul.f32 %v9130_v23, %v9130_v23  ;;  %v9172_v63 = vmul.f32 %v5324_v55, %v1942_v27  ;;  %v5326_v23 = vpop.eup %5325 }
 0x2cb   :  { %v2514_v29 = vmul.f32 %v9109_v40, %v13602_v60  ;;  %v1941_v10 = vld [vmem:[%s12701_s1 + $0x1c8] sm:$0xff]  ;;  %v1809_v60 = vmax.f32 %v1665_v2, 0.0  ;;  %v9151_v40 = vpop.xlane.xlu1 %1144  ;;  %2854 = vrot.lane.b32.xlu1 %v2513_v54, %s5922_s23  ;;  %13607 = vst [vmem:[#allocation207_spill] sm:$0xff] %v9154_v16  ;;  %v9161_v7 = vmul.f32 0.020408163, %v13608_v42  ;;  %v13612_v18 = vld [vmem:[#allocation10_spill] sm:$0xff]  ;;  %5339 = vrsqrt.f32 %v2094_v34 }
 0x2cc   :  { %13606 = vst [vmem:[#allocation139_spill] sm:$0xff] %v9151_v40  ;;  %v13609_v45 = vld [vmem:[#allocation107_spill] sm:$0xff]  ;;  %v9165_v50 = vmul.f32 %v5322_v48, %v1941_v10  ;;  %v2515_v54 = vmul.f32 %v9135_v56, %v13612_v18  ;;  %v13613_v40 = vld [vmem:[#allocation102_spill] sm:$0xff]  ;;  %13614 = vst [vmem:[#allocation6_spill] sm:$0xff] %v9172_v63  ;;  %v2096_v42 = vadd.f32 1e-05, %v1808_v1  ;;  %5341 = vrsqrt.f32 %v2095_v17 }
 0x2cd   :  { %v1382_v47 = vmul.f32 0.020408163, %v13609_v45  ;;  %2856 = vrot.lane.b32.xlu0 %v2514_v29, %s5922_s23  ;;  %v13611_v3 = vld [vmem:[#allocation147_spill] sm:$0xff]  ;;  %v2516_v16 = vmul.f32 %v9140_v26, %v13613_v40  ;;  %v1810_v57 = vmax.f32 %v1666_v21, 0.0  ;;  %v1668_v45 = vsub.f32 %v1380_v41, %v8411_v25  ;;  %v1943_v48 = vld [vmem:[%s12701_s1 + $0x1d8] sm:$0xff]  ;;  %v5328_v29 = vpop.eup %5327  ;;  %v9185_v1 = vpop.xlane.xlu0 %1147  ;;  %v1944_v25 = vld [vmem:[%s12701_s1 + $0x1e0] sm:$0xff] }
 0x2ce   :  { %13610 = vst [vmem:[#allocation2_spill] sm:$0xff] %v9165_v50  ;;  %v1667_v2 = vsub.f32 %v1379_v53, %v13611_v3  ;;  %v13615_v53 = vld [vmem:[#allocation65_spill] sm:$0xff]  ;;  %v2097_v3 = vadd.f32 1e-05, %v1809_v60  ;;  %v1669_v40 = vsub.f32 %v1381_v19, %v8407_v36  ;;  %13617 = vst [vmem:[#allocation111_spill] sm:$0xff] %v9185_v1  ;;  %v9192_v34 = vmul.f32 %v9161_v7, %v9161_v7  ;;  %v13619_v36 = vld [vmem:[#allocation12_spill] sm:$0xff]  ;;  %v5330_v60 = vpop.eup %5329 }
 0x2cf   :  { %v9179_v10 = vmul.f32 0.020408163, %v13615_v53  ;;  %v9182_v55 = vpop.xlane.xlu1 %1150  ;;  %2858 = vrot.lane.b32.xlu1 %v2515_v54, %s5922_s23  ;;  %v13618_v21 = vld [vmem:[#allocation109_spill] sm:$0xff]  ;;  %v1670_v27 = vsub.f32 %v1382_v47, %v8454_v4  ;;  %v2517_v17 = vmul.f32 %v9165_v50, %v13619_v36  ;;  %v13620_v18 = vld [vmem:[#allocation110_spill] sm:$0xff]  ;;  %v13621_v53 = vld [vmem:[#allocation15_spill] sm:$0xff]  ;;  %v9202_v56 = vmul.f32 %v5326_v23, %v1943_v48 }
 0x2d0   :  { %13616 = vst [vmem:[#allocation210_spill] sm:$0xff] %v9182_v55  ;;  %v1383_v41 = vmul.f32 0.020408163, %v13618_v21  ;;  %v1811_v19 = vmax.f32 %v1667_v2, 0.0  ;;  %v1384_v54 = vmul.f32 0.020408163, %v13620_v18  ;;  %v2518_v26 = vmul.f32 %v9172_v63, %v13621_v53  ;;  %v5332_v55 = vpop.eup %5331 }
 0x2d1   :  { %2860 = vrot.lane.b32.xlu0 %v2516_v16, %s5922_s23  ;;  %13622 = vst [vmem:[#allocation209_spill] sm:$0xff] %v9202_v56  ;;  %v1945_v21 = vld [vmem:[%s12701_s1 + $0x1e8] sm:$0xff]  ;;  %5343 = vrsqrt.f32 %v2096_v42  ;;  %v2098_v4 = vadd.f32 1e-05, %v1810_v57  ;;  %v1812_v47 = vmax.f32 %v1668_v45, 0.0  ;;  %v9207_v16 = vmul.f32 %v5328_v29, %v1944_v25  ;;  %v13624_v36 = vld [vmem:[#allocation66_spill] sm:$0xff]  ;;  %v9218_v48 = vpop.xlane.xlu0 %1153  ;;  %v5334_v42 = vpop.eup %5333 }
 0x2d2   :  { %v9210_v50 = vmul.f32 0.020408163, %v13624_v36  ;;  %v13626_v2 = vld [vmem:[#allocation67_spill] sm:$0xff]  ;;  %5345 = vrsqrt.f32 %v2097_v3  ;;  %v1813_v53 = vmax.f32 %v1669_v40, 0.0  ;;  %13629 = vst [vmem:[#allocation223_spill] sm:$0xff] %v9218_v48  ;;  %v1946_v57 = vld [vmem:[%s12701_s1 + $0x1f0] sm:$0xff]  ;;  %v1671_v45 = vsub.f32 %v1383_v41, %v8429_v37 }
 0x2d3   :  { %13623 = vst [vmem:[#allocation62_spill] sm:$0xff] %v9207_v16  ;;  %v9213_v18 = vmul.f32 0.020408163, %v13626_v2  ;;  %v9215_v23 = vpop.xlane.xlu1 %1156  ;;  %2862 = vrot.lane.b32.xlu1 %v2517_v17, %s5922_s23  ;;  %v1814_v29 = vmax.f32 %v1670_v27, 0.0  ;;  %v13630_v25 = vld [vmem:[#allocation112_spill] sm:$0xff]  ;;  %v9226_v3 = vmul.f32 %v5330_v60, %v1945_v21  ;;  %v1947_v40 = vld [vmem:[%s12701_s1 + $0x1f8] sm:$0xff]  ;;  %v1672_v2 = vsub.f32 %v1384_v54, %v8482_v24  ;;  %v5336_v37 = vpop.eup %5335 }
 0x2d4   :  { %13625 = vst [vmem:[#allocation5_spill] sm:$0xff] %v9210_v50  ;;  %13628 = vst [vmem:[#allocation212_spill] sm:$0xff] %v9215_v23  ;;  %v1385_v36 = vmul.f32 0.020408163, %v13630_v25  ;;  %v2099_v17 = vadd.f32 1e-05, %v1811_v19  ;;  %5347 = vrsqrt.f32 %v2098_v4  ;;  %v9237_v60 = vmul.f32 %v5332_v55, %v1946_v57 }
 0x2d5   :  { %13627 = vst [vmem:[#allocation9_spill] sm:$0xff] %v9213_v18  ;;  %2864 = vrot.lane.b32.xlu0 %v2518_v26, %s5922_s23  ;;  %13631 = vst [vmem:[#allocation63_spill] sm:$0xff] %v9226_v3  ;;  %v13632_v63 = vld [vmem:[#allocation4_spill] sm:$0xff]  ;;  %v13633_v48 = vld [vmem:[#allocation98_spill] sm:$0xff]  ;;  %v2100_v41 = vadd.f32 1e-05, %v1812_v47  ;;  %v9241_v21 = vmul.f32 %v9179_v10, %v9179_v10  ;;  %v9249_v4 = vmul.f32 %v5334_v42, %v1947_v40  ;;  %v5338_v47 = vpop.eup %5337 }
 0x2d6   :  { %v1386_v23 = vmul.f32 0.020408163, %v13632_v63  ;;  %v2519_v1 = vmul.f32 %v9202_v56, %v13633_v48  ;;  %v13634_v27 = vld [vmem:[#allocation16_spill] sm:$0xff]  ;;  %13635 = vst [vmem:[#allocation7_spill] sm:$0xff] %v9237_v60  ;;  %v2101_v19 = vadd.f32 1e-05, %v1813_v53  ;;  %v9247_v63 = vpop.xlane.xlu0 %1159  ;;  %5349 = vrsqrt.f32 %v2099_v17 }
 0x2d7   :  { %v2520_v26 = vmul.f32 %v9207_v16, %v13634_v27  ;;  %v13636_v25 = vld [vmem:[#allocation3_spill] sm:$0xff]  ;;  %v9244_v54 = vpop.xlane.xlu1 %1162  ;;  %13638 = vst [vmem:[#allocation11_spill] sm:$0xff] %v9247_v63  ;;  %13639 = vst [vmem:[#allocation214_spill] sm:$0xff] %v9249_v4  ;;  %v1948_v55 = vld [vmem:[%s12701_s1 + $0x200] sm:$0xff]  ;;  %v1815_v48 = vmax.f32 %v1671_v45, 0.0  ;;  %v1673_v27 = vsub.f32 %v1385_v36, %v8458_v28  ;;  %v1816_v42 = vmax.f32 %v1672_v2, 0.0 }
 0x2d8   :  { %v1387_v24 = vmul.f32 0.020408163, %v13636_v25  ;;  %13637 = vst [vmem:[#allocation211_spill] sm:$0xff] %v9244_v54  ;;  %2866 = vrot.lane.b32.xlu1 %v2519_v1, %s5922_s23  ;;  %v2102_v57 = vadd.f32 1e-05, %v1814_v29  ;;  %v13640_v53 = vld [vmem:[#allocation105_spill] sm:$0xff]  ;;  %v1674_v40 = vsub.f32 %v1386_v23, %v8505_v43  ;;  %v9265_v45 = vmul.f32 %v9210_v50, %v9210_v50 }
 0x2d9   :  { %2868 = vrot.lane.b32.xlu0 %v2520_v26, %s5922_s23  ;;  %v2521_v25 = vmul.f32 %v9226_v3, %v13640_v53  ;;  %v1949_v1 = vld [vmem:[%s12701_s1 + $0x208] sm:$0xff]  ;;  %5351 = vrsqrt.f32 %v2100_v41  ;;  %v13642_v28 = vld [vmem:[#allocation104_spill] sm:$0xff]  ;;  %v9269_v36 = vmul.f32 %v5336_v37, %v1948_v55  ;;  %v5340_v26 = vpop.eup %5339  ;;  %v2103_v55 = vadd.f32 1e-05, %v1815_v48 }
 0x2da   :  { %v13641_v16 = vld [vmem:[#allocation215_spill] sm:$0xff]  ;;  %v2522_v29 = vmul.f32 %v9237_v60, %v13642_v28  ;;  %5353 = vrsqrt.f32 %v2101_v19  ;;  %v13644_v53 = vld [vmem:[#allocation36_spill] sm:$0xff]  ;;  %v9275_v43 = vpop.permute.xlu0 %2748  ;;  %v9279_v2 = vmul.f32 %v5338_v47, %v1949_v1  ;;  %v5342_v41 = vpop.eup %5341  ;;  %v1817_v19 = vmax.f32 %v1673_v27, 0.0  ;;  %v13650_v1 = vld [vmem:[#allocation217_spill] sm:$0xff] }
 0x2db   :  { %v1388_v56 = vmul.f32 0.020408163, %v13641_v16  ;;  %13643 = vst [vmem:[#allocation213_spill] sm:$0xff] %v9269_v36  ;;  %v1675_v3 = vsub.f32 %v1387_v24, %v13644_v53  ;;  %v9272_v17 = vpop.permute.xlu1 %2750  ;;  %13646 = vst [vmem:[#allocation107_spill] sm:$0xff] %v9275_v43  ;;  %v13647_v16 = vld [vmem:[#allocation18_spill] sm:$0xff]  ;;  %v1950_v37 = vld [vmem:[%s12701_s1 + $0x210] sm:$0xff]  ;;  %5355 = vrsqrt.f32 %v2102_v57 }
 0x2dc   :  { %13645 = vst [vmem:[#allocation64_spill] sm:$0xff] %v9272_v17  ;;  %2870 = vrot.lane.b32.xlu1 %v2521_v25, %s5922_s23  ;;  %v2523_v23 = vmul.f32 %v9249_v4, %v13647_v16  ;;  %13648 = vst [vmem:[#allocation147_spill] sm:$0xff] %v9279_v2  ;;  %v13649_v24 = vld [vmem:[#allocation8_spill] sm:$0xff]  ;;  %v1951_v25 = vld [vmem:[%s12701_s1 + $0x218] sm:$0xff]  ;;  %v2104_v53 = vadd.f32 1e-05, %v1816_v42  ;;  %v9293_v17 = vmul.f32 %v9213_v18, %v9213_v18  ;;  %5357 = vrsqrt.f32 %v2103_v55 }
 0x2dd   :  { %v1389_v28 = vmul.f32 0.020408163, %v13649_v24  ;;  %2872 = vrot.lane.b32.xlu0 %v2522_v29, %s5922_s23  ;;  %v1818_v16 = vmax.f32 %v1674_v40, 0.0  ;;  %v1676_v47 = vsub.f32 %v1388_v56, %v8548_v46  ;;  %v1390_v43 = vmul.f32 0.020408163, %v13650_v1  ;;  %v13651_v48 = vld [vmem:[#allocation68_spill] sm:$0xff] }
 0x2de   :  { %v9296_v57 = vmul.f32 0.020408163, %v13651_v48  ;;  %v13653_v27 = vld [vmem:[#allocation21_spill] sm:$0xff]  ;;  %v9300_v24 = vmul.f32 %v5340_v26, %v1950_v37  ;;  %v5344_v60 = vpop.eup %5343  ;;  %v1819_v40 = vmax.f32 %v1675_v3, 0.0  ;;  %v9308_v56 = vpop.permute.xlu0 %2756  ;;  %v13659_v1 = vld [vmem:[#allocation108_spill] sm:$0xff]  ;;  %v9312_v54 = vmul.f32 %v5342_v41, %v1951_v25  ;;  %v1952_v26 = vld [vmem:[%s12701_s1 + $0x220] sm:$0xff] }
 0x2df   :  { %v2524_v29 = vmul.f32 %v9269_v36, %v13653_v27  ;;  %v13655_v4 = vld [vmem:[#allocation69_spill] sm:$0xff]  ;;  %v9306_v46 = vpop.permute.xlu1 %2752  ;;  %13658 = vst [vmem:[#allocation12_spill] sm:$0xff] %v9308_v56  ;;  %v2525_v48 = vmul.f32 %v9279_v2, %v13659_v1  ;;  %v5346_v37 = vpop.eup %5345  ;;  %v1677_v3 = vsub.f32 %v1389_v28, %v8537_v14  ;;  %v13661_v27 = vld [vmem:[#allocation216_spill] sm:$0xff]  ;;  %5359 = vrsqrt.f32 %v2104_v53  ;;  %v13662_v55 = vld [vmem:[#allocation14_spill] sm:$0xff] }
 0x2e0   :  { %13652 = vst [vmem:[#allocation10_spill] sm:$0xff] %v9296_v57  ;;  %13654 = vst [vmem:[#allocation102_spill] sm:$0xff] %v9300_v24  ;;  %v9303_v42 = vmul.f32 0.020408163, %v13655_v4  ;;  %2874 = vrot.lane.b32.xlu1 %v2523_v23, %s5922_s23  ;;  %v2105_v4 = vadd.f32 1e-05, %v1817_v19  ;;  %v1678_v1 = vsub.f32 %v1390_v43, %v8581_v12  ;;  %v9326_v56 = vmul.f32 %v9296_v57, %v9296_v57 }
 0x2e1   :  { %13657 = vst [vmem:[#allocation109_spill] sm:$0xff] %v9306_v46  ;;  %13660 = vst [vmem:[#allocation110_spill] sm:$0xff] %v9312_v54  ;;  %v1391_v23 = vmul.f32 0.020408163, %v13661_v27  ;;  %2876 = vrot.lane.b32.xlu0 %v2524_v29, %s5922_s23  ;;  %v1953_v46 = vld [vmem:[%s12701_s1 + $0x228] sm:$0xff]  ;;  %v1820_v25 = vmax.f32 %v1676_v47, 0.0  ;;  %v9331_v27 = vmul.f32 %v5344_v60, %v1952_v26  ;;  %v5348_v29 = vpop.eup %5347 }
 0x2e2   :  { %13656 = vst [vmem:[#allocation65_spill] sm:$0xff] %v9303_v42  ;;  %v2106_v41 = vadd.f32 1e-05, %v1818_v16  ;;  %v1392_v19 = vmul.f32 0.020408163, %v13662_v55  ;;  %v13663_v14 = vld [vmem:[#allocation22_spill] sm:$0xff]  ;;  %v9335_v36 = vmul.f32 %v9303_v42, %v9303_v42  ;;  %v9343_v47 = vpop.permute.xlu0 %2760  ;;  %v9345_v55 = vmul.f32 %v5346_v37, %v1953_v46 }
 0x2e3   :  { %v2526_v28 = vmul.f32 %v9300_v24, %v13663_v14  ;;  %13664 = vst [vmem:[#allocation15_spill] sm:$0xff] %v9331_v27  ;;  %v13665_v53 = vld [vmem:[#allocation70_spill] sm:$0xff]  ;;  %v2107_v12 = vadd.f32 1e-05, %v1819_v40  ;;  %v9341_v43 = vpop.permute.xlu1 %2754  ;;  %13668 = vst [vmem:[#allocation112_spill] sm:$0xff] %v9343_v47  ;;  %v1954_v60 = vld [vmem:[%s12701_s1 + $0x230] sm:$0xff]  ;;  %5361 = vrsqrt.f32 %v2105_v4  ;;  %v5350_v46 = vpop.eup %5349 }
 0x2e4   :  { %v9338_v16 = vmul.f32 0.020408163, %v13665_v53  ;;  %2878 = vrot.lane.b32.xlu1 %v2525_v48, %s5922_s23  ;;  %13667 = vst [vmem:[#allocation67_spill] sm:$0xff] %v9341_v43  ;;  %13669 = vst [vmem:[#allocation4_spill] sm:$0xff] %v9345_v55  ;;  %v1821_v26 = vmax.f32 %v1677_v3, 0.0  ;;  %v13670_v14 = vld [vmem:[#allocation39_spill] sm:$0xff]  ;;  %5363 = vrsqrt.f32 %v2106_v41  ;;  %v1680_v37 = vsub.f32 %v1392_v19, %v8599_v59 }
 0x2e5   :  { %v1679_v24 = vsub.f32 %v1391_v23, %v13670_v14  ;;  %v13671_v2 = vld [vmem:[#allocation13_spill] sm:$0xff]  ;;  %2880 = vrot.lane.b32.xlu0 %v2526_v28, %s5922_s23  ;;  %v2108_v40 = vadd.f32 1e-05, %v1820_v25  ;;  %v1822_v48 = vmax.f32 %v1678_v1, 0.0  ;;  %v13673_v63 = vld [vmem:[#allocation219_spill] sm:$0xff]  ;;  %v13674_v42 = vld [vmem:[#allocation116_spill] sm:$0xff]  ;;  %v9359_v3 = vmul.f32 %v5348_v29, %v1954_v60 }
 0x2e6   :  { %13666 = vst [vmem:[#allocation66_spill] sm:$0xff] %v9338_v16  ;;  %v1393_v53 = vmul.f32 0.020408163, %v13671_v2  ;;  %v13672_v43 = vld [vmem:[#allocation113_spill] sm:$0xff]  ;;  %v1394_v57 = vmul.f32 0.020408163, %v13673_v63  ;;  %v2528_v4 = vmul.f32 %v9331_v27, %v13674_v42  ;;  %v5352_v23 = vpop.eup %5351  ;;  %v9366_v41 = vmul.f32 %v9338_v16, %v9338_v16  ;;  %v9374_v63 = vpop.permute.xlu0 %2764 }
 0x2e7   :  { %v2527_v47 = vmul.f32 %v9312_v54, %v13672_v43  ;;  %13675 = vst [vmem:[#allocation98_spill] sm:$0xff] %v9359_v3  ;;  %v1955_v2 = vld [vmem:[%s12701_s1 + $0x238] sm:$0xff]  ;;  %v13676_v25 = vld [vmem:[#allocation71_spill] sm:$0xff]  ;;  %5365 = vrsqrt.f32 %v2107_v12  ;;  %v9372_v59 = vpop.permute.xlu1 %2758  ;;  %13679 = vst [vmem:[#allocation105_spill] sm:$0xff] %v9374_v63  ;;  %v5354_v29 = vpop.eup %5353  ;;  %v2109_v43 = vadd.f32 1e-05, %v1821_v26 }
 0x2e8   :  { %v9369_v1 = vmul.f32 0.020408163, %v13676_v25  ;;  %13678 = vst [vmem:[#allocation3_spill] sm:$0xff] %v9372_v59  ;;  %v13680_v42 = vld [vmem:[#allocation24_spill] sm:$0xff]  ;;  %v1956_v28 = vld [vmem:[%s12701_s1 + $0x240] sm:$0xff]  ;;  %v1823_v60 = vmax.f32 %v1679_v24, 0.0  ;;  %v5356_v59 = vpop.eup %5355  ;;  %5367 = vrsqrt.f32 %v2108_v40  ;;  %v9388_v54 = vmul.f32 %v5350_v46, %v1955_v2 }
 0x2e9   :  { %2882 = vrot.lane.b32.xlu1 %v2527_v47, %s5922_s23  ;;  %v2529_v19 = vmul.f32 %v9345_v55, %v13680_v42  ;;  %v13681_v14 = vld [vmem:[#allocation166_spill] sm:$0xff]  ;;  %v13682_v27 = vld [vmem:[#allocation17_spill] sm:$0xff]  ;;  %2884 = vrot.lane.b32.xlu0 %v2528_v4, %s5922_s23  ;;  %v1957_v47 = vld [vmem:[%s12701_s1 + $0x248] sm:$0xff]  ;;  %v2110_v42 = vadd.f32 1e-05, %v1822_v48  ;;  %v1824_v16 = vmax.f32 %v1680_v37, 0.0  ;;  %v1682_v24 = vsub.f32 %v1394_v57, %v8642_v30 }
 0x2ea   :  { %13677 = vst [vmem:[#allocation16_spill] sm:$0xff] %v9369_v1  ;;  %v1681_v25 = vsub.f32 %v1393_v53, %v13681_v14  ;;  %v1395_v12 = vmul.f32 0.020408163, %v13682_v27  ;;  %v13683_v63 = vld [vmem:[#allocation20_spill] sm:$0xff]  ;;  %13684 = vst [vmem:[#allocation215_spill] sm:$0xff] %v9388_v54  ;;  %v13685_v26 = vld [vmem:[#allocation27_spill] sm:$0xff]  ;;  %v9393_v27 = vmul.f32 %v5352_v23, %v1956_v28  ;;  %v9400_v40 = vmul.f32 %v9369_v1, %v9369_v1  ;;  %v9409_v57 = vpop.permute.xlu0 %2768 }
 0x2eb   :  { %v1396_v55 = vmul.f32 0.020408163, %v13683_v63  ;;  %v2530_v53 = vmul.f32 %v9359_v3, %v13685_v26  ;;  %v1958_v4 = vld [vmem:[%s12701_s1 + $0x250] sm:$0xff]  ;;  %v13688_v46 = vld [vmem:[#allocation19_spill] sm:$0xff]  ;;  %v9407_v30 = vpop.permute.xlu1 %2762  ;;  %13690 = vst [vmem:[#allocation18_spill] sm:$0xff] %v9409_v57  ;;  %v9411_v2 = vmul.f32 %v5354_v29, %v1957_v47  ;;  %5369 = vrsqrt.f32 %v2109_v43  ;;  %v5358_v3 = vpop.eup %5357  ;;  %v1959_v29 = vld [vmem:[%s12701_s1 + $0x258] sm:$0xff] }
 0x2ec   :  { %13686 = vst [vmem:[#allocation104_spill] sm:$0xff] %v9393_v27  ;;  %v13687_v48 = vld [vmem:[#allocation72_spill] sm:$0xff]  ;;  %v1397_v37 = vmul.f32 0.020408163, %v13688_v46  ;;  %13689 = vst [vmem:[#allocation36_spill] sm:$0xff] %v9407_v30  ;;  %v1825_v28 = vmax.f32 %v1681_v25, 0.0  ;;  %5371 = vrsqrt.f32 %v2110_v42  ;;  %v9418_v50 = vmul.f32 %v5356_v59, %v1958_v4  ;;  %v5360_v43 = vpop.eup %5359 }
 0x2ed   :  { %v9403_v63 = vmul.f32 0.020408163, %v13687_v48  ;;  %2886 = vrot.lane.b32.xlu1 %v2529_v19, %s5922_s23  ;;  %v2111_v23 = vadd.f32 1e-05, %v1823_v60  ;;  %v13691_v14 = vld [vmem:[#allocation228_spill] sm:$0xff]  ;;  %2888 = vrot.lane.b32.xlu0 %v2530_v53, %s5922_s23  ;;  %v13692_v48 = vld [vmem:[#allocation174_spill] sm:$0xff] }
 0x2ee   :  { %v1683_v26 = vsub.f32 %v1395_v12, %v13691_v14  ;;  %v1684_v1 = vsub.f32 %v1396_v55, %v13692_v48  ;;  %v13693_v46 = vld [vmem:[#allocation25_spill] sm:$0xff]  ;;  %13694 = vst [vmem:[#allocation8_spill] sm:$0xff] %v9418_v50  ;;  %v2112_v60 = vadd.f32 1e-05, %v1824_v16  ;;  %v1826_v25 = vmax.f32 %v1682_v24, 0.0  ;;  %v13696_v14 = vld [vmem:[#allocation28_spill] sm:$0xff]  ;;  %v9437_v24 = vpop.permute.xlu0 %2772 }
 0x2ef   :  { %v2531_v19 = vmul.f32 %v9388_v54, %v13693_v46  ;;  %v13695_v47 = vld [vmem:[#allocation221_spill] sm:$0xff]  ;;  %v2532_v53 = vmul.f32 %v9393_v27, %v13696_v14  ;;  %v1960_v55 = vld [vmem:[%s12701_s1 + $0x260] sm:$0xff]  ;;  %v13698_v59 = vld [vmem:[#allocation171_spill] sm:$0xff]  ;;  %v9435_v16 = vpop.permute.xlu1 %2766  ;;  %13701 = vst [vmem:[#allocation68_spill] sm:$0xff] %v9437_v24  ;;  %5373 = vrsqrt.f32 %v2111_v23  ;;  %v2113_v57 = vadd.f32 1e-05, %v1825_v28 }
 0x2f0   :  { %v1398_v12 = vmul.f32 0.020408163, %v13695_v47  ;;  %v13697_v42 = vld [vmem:[#allocation73_spill] sm:$0xff]  ;;  %v1685_v4 = vsub.f32 %v1397_v37, %v13698_v59  ;;  %v13699_v46 = vld [vmem:[#allocation23_spill] sm:$0xff]  ;;  %13700 = vst [vmem:[#allocation217_spill] sm:$0xff] %v9435_v16  ;;  %v1827_v27 = vmax.f32 %v1683_v26, 0.0  ;;  %v5362_v54 = vpop.eup %5361  ;;  %v9447_v16 = vmul.f32 %v5360_v43, %v1960_v55 }
 0x2f1   :  { %v9430_v48 = vmul.f32 0.020408163, %v13697_v42  ;;  %v1399_v30 = vmul.f32 0.020408163, %v13699_v46  ;;  %2890 = vrot.lane.b32.xlu1 %v2531_v19, %s5922_s23  ;;  %v13702_v47 = vld [vmem:[#allocation121_spill] sm:$0xff]  ;;  %2892 = vrot.lane.b32.xlu0 %v2532_v53, %s5922_s23  ;;  %v9442_v42 = vmul.f32 %v5358_v3, %v1959_v29  ;;  %v1828_v37 = vmax.f32 %v1684_v1, 0.0  ;;  %v5364_v23 = vpop.eup %5363 }
 0x2f2   :  { %v2533_v14 = vmul.f32 %v9411_v2, %v13702_v47  ;;  %v13703_v59 = vld [vmem:[#allocation26_spill] sm:$0xff]  ;;  %v13704_v18 = vld [vmem:[#allocation119_spill] sm:$0xff]  ;;  %13705 = vst [vmem:[#allocation21_spill] sm:$0xff] %v9447_v16  ;;  %5375 = vrsqrt.f32 %v2112_v60  ;;  %v2114_v28 = vadd.f32 1e-05, %v1826_v25  ;;  %v1686_v26 = vsub.f32 %v1398_v12, %v8707_v9  ;;  %v1962_v1 = vld [vmem:[%s12701_s1 + $0x270] sm:$0xff]  ;;  %v9468_v9 = vpop.permute.xlu0 %2776 }
 0x2f3   :  { %v1401_v46 = vmul.f32 0.020408163, %v13703_v59  ;;  %v2534_v19 = vmul.f32 %v9418_v50, %v13704_v18  ;;  %v1961_v47 = vld [vmem:[%s12701_s1 + $0x268] sm:$0xff]  ;;  %v13706_v3 = vld [vmem:[#allocation222_spill] sm:$0xff]  ;;  %v9459_v18 = vmul.f32 %v9403_v63, %v9403_v63  ;;  %v1829_v55 = vmax.f32 %v1685_v4, 0.0  ;;  %v9466_v60 = vpop.permute.xlu1 %2770  ;;  %13709 = vst [vmem:[#allocation108_spill] sm:$0xff] %v9468_v9 }
 0x2f4   :  { %v1400_v29 = vmul.f32 0.020408163, %v13706_v3  ;;  %v13707_v43 = vld [vmem:[#allocation74_spill] sm:$0xff]  ;;  %v1687_v59 = vsub.f32 %v1399_v30, %v8692_v6  ;;  %13708 = vst [vmem:[#allocation69_spill] sm:$0xff] %v9466_v60  ;;  %v5366_v25 = vpop.eup %5365  ;;  %5377 = vrsqrt.f32 %v2113_v57  ;;  %v2115_v12 = vadd.f32 1e-05, %v1827_v27 }
 0x2f5   :  { %v9462_v53 = vmul.f32 0.020408163, %v13707_v43  ;;  %2894 = vrot.lane.b32.xlu1 %v2533_v14, %s5922_s23  ;;  %2896 = vrot.lane.b32.xlu0 %v2534_v19, %s5922_s23  ;;  %v13710_v3 = vld [vmem:[#allocation30_spill] sm:$0xff]  ;;  %v9473_v50 = vmul.f32 %v5362_v54, %v1961_v47  ;;  %v2116_v43 = vadd.f32 1e-05, %v1828_v37  ;;  %v1689_v4 = vsub.f32 %v1401_v46, %v8711_v51  ;;  %v13712_v6 = vld [vmem:[#allocation33_spill] sm:$0xff]  ;;  %v5368_v27 = vpop.eup %5367 }
 0x2f6   :  { %v2535_v24 = vmul.f32 %v9442_v42, %v13710_v3  ;;  %v2536_v30 = vmul.f32 %v9447_v16, %v13712_v6  ;;  %v9478_v14 = vmul.f32 %v5364_v23, %v1962_v1  ;;  %v1963_v57 = vld [vmem:[%s12701_s1 + $0x278] sm:$0xff]  ;;  %5379 = vrsqrt.f32 %v2114_v28  ;;  %v13714_v3 = vld [vmem:[#allocation224_spill] sm:$0xff]  ;;  %v1964_v51 = vld [vmem:[%s12701_s1 + $0x280] sm:$0xff] }
 0x2f7   :  { %13711 = vst [vmem:[#allocation216_spill] sm:$0xff] %v9473_v50  ;;  %v1830_v19 = vmax.f32 %v1686_v26, 0.0  ;;  %v1688_v60 = vsub.f32 %v1400_v29, %v8737_v61  ;;  %v1402_v54 = vmul.f32 0.020408163, %v13714_v3  ;;  %v9490_v37 = vmul.f32 %v9430_v48, %v9430_v48  ;;  %v13715_v23 = vld [vmem:[#allocation29_spill] sm:$0xff]  ;;  %v9494_v28 = vpop.permute.xlu1 %2774  ;;  %v9496_v26 = vpop.permute.xlu0 %2780  ;;  %v13718_v61 = vld [vmem:[#allocation75_spill] sm:$0xff] }
 0x2f8   :  { %13713 = vst [vmem:[#allocation14_spill] sm:$0xff] %v9478_v14  ;;  %v2117_v46 = vadd.f32 1e-05, %v1829_v55  ;;  %v1831_v47 = vmax.f32 %v1687_v59, 0.0  ;;  %v1403_v1 = vmul.f32 0.020408163, %v13715_v23  ;;  %5381 = vrsqrt.f32 %v2115_v12  ;;  %v5370_v55 = vpop.eup %5369 }
 0x2f9   :  { %2898 = vrot.lane.b32.xlu1 %v2535_v24, %s5922_s23  ;;  %13716 = vst [vmem:[#allocation22_spill] sm:$0xff] %v9494_v28  ;;  %13717 = vst [vmem:[#allocation70_spill] sm:$0xff] %v9496_v26  ;;  %v9499_v29 = vmul.f32 0.020408163, %v13718_v61  ;;  %2900 = vrot.lane.b32.xlu0 %v2536_v30, %s5922_s23  ;;  %v13719_v6 = vld [vmem:[#allocation124_spill] sm:$0xff]  ;;  %v9504_v9 = vmul.f32 %v5366_v25, %v1963_v57  ;;  %5383 = vrsqrt.f32 %v2116_v43  ;;  %v1833_v59 = vmax.f32 %v1689_v4, 0.0  ;;  %v5372_v12 = vpop.eup %5371 }
 0x2fa   :  { %v2537_v3 = vmul.f32 %v9473_v50, %v13719_v6  ;;  %v13721_v23 = vld [vmem:[#allocation129_spill] sm:$0xff]  ;;  %v9508_v28 = vmul.f32 %v5368_v27, %v1964_v51  ;;  %v1965_v61 = vld [vmem:[%s12701_s1 + $0x288] sm:$0xff]  ;;  %v2118_v26 = vadd.f32 1e-05, %v1830_v19  ;;  %v1832_v30 = vmax.f32 %v1688_v60, 0.0  ;;  %v13723_v6 = vld [vmem:[#allocation32_spill] sm:$0xff] }
 0x2fb   :  { %13720 = vst [vmem:[#allocation39_spill] sm:$0xff] %v9504_v9  ;;  %v2538_v24 = vmul.f32 %v9478_v14, %v13721_v23  ;;  %v1690_v16 = vsub.f32 %v1402_v54, %v8786_v5  ;;  %v1404_v25 = vmul.f32 0.020408163, %v13723_v6  ;;  %v1966_v43 = vld [vmem:[%s12701_s1 + $0x290] sm:$0xff]  ;;  %5385 = vrsqrt.f32 %v2117_v46  ;;  %v13724_v27 = vld [vmem:[#allocation31_spill] sm:$0xff]  ;;  %v9521_v23 = vpop.permute.xlu1 %2778  ;;  %v9523_v19 = vpop.permute.xlu0 %2784 }
 0x2fc   :  { %13722 = vst [vmem:[#allocation13_spill] sm:$0xff] %v9508_v28  ;;  %v2119_v4 = vadd.f32 1e-05, %v1831_v47  ;;  %v1691_v57 = vsub.f32 %v1403_v1, %v8749_v13  ;;  %v1405_v51 = vmul.f32 0.020408163, %v13724_v27  ;;  %13725 = vst [vmem:[#allocation113_spill] sm:$0xff] %v9521_v23  ;;  %v9527_v5 = vmul.f32 %v9462_v53, %v9462_v53  ;;  %v5374_v47 = vpop.eup %5373 }
 0x2fd   :  { %2902 = vrot.lane.b32.xlu1 %v2537_v3, %s5922_s23  ;;  %13726 = vst [vmem:[#allocation219_spill] sm:$0xff] %v9523_v19  ;;  %v13727_v60 = vld [vmem:[#allocation35_spill] sm:$0xff]  ;;  %2904 = vrot.lane.b32.xlu0 %v2538_v24, %s5922_s23  ;;  %v9531_v46 = vmul.f32 %v5370_v55, %v1965_v61  ;;  %v2121_v13 = vadd.f32 1e-05, %v1833_v59  ;;  %v13729_v1 = vld [vmem:[#allocation122_spill] sm:$0xff]  ;;  %v13730_v3 = vld [vmem:[#allocation132_spill] sm:$0xff]  ;;  %v9537_v23 = vmul.f32 %v5372_v12, %v1966_v43  ;;  %5387 = vrsqrt.f32 %v2118_v26 }
 0x2fe   :  { %v1406_v54 = vmul.f32 0.020408163, %v13727_v60  ;;  %v2539_v6 = vmul.f32 %v9504_v9, %v13729_v1  ;;  %v2540_v27 = vmul.f32 %v9508_v28, %v13730_v3  ;;  %v5923_v19 = vmov 0   ;;  %v1967_v55 = vld [vmem:[%s12701_s1 + $0x298] sm:$0xff]  ;;  %v13732_v3 = vld [vmem:[#allocation34_spill] sm:$0xff]  ;;  %v13749_v50 = vld [vmem:[#allocation40_spill] sm:$0xff] }
 0x2ff   :  { %13728 = vst [vmem:[#allocation116_spill] sm:$0xff] %v9531_v46  ;;  %13731 = vst [vmem:[#allocation71_spill] sm:$0xff] %v9537_v23  ;;  %5203 = vset.pattern.permute.xlu0 %v5923_v19  ;;  %5204 = vset.pattern.permute.xlu1 %v5923_v19  ;;  %v2120_v14 = vadd.f32 1e-05, %v1832_v30  ;;  %v1834_v60 = vmax.f32 %v1690_v16, 0.0  ;;  %v1692_v24 = vsub.f32 %v1404_v25, %v8851_v35  ;;  %v5376_v59 = vpop.eup %5375  ;;  %5389 = vrsqrt.f32 %v2119_v4  ;;  %v9546_v43 = vpop.permute.xlu1 %2782  ;;  %v1968_v35 = vld [vmem:[%s12701_s1 + $0x2a0] sm:$0xff] }
 0x300   :  { %v1835_v61 = vmax.f32 %v1691_v57, 0.0  ;;  %v1693_v1 = vsub.f32 %v1405_v51, %v8818_v62  ;;  %v1407_v12 = vmul.f32 0.020408163, %v13732_v3  ;;  %13733 = vst [vmem:[#allocation24_spill] sm:$0xff] %v9546_v43  ;;  %v9548_v26 = vpop.permute.xlu0 %2788  ;;  %v9555_v16 = vmul.f32 %v9499_v29, %v9499_v29  ;;  %v13735_v30 = vld [vmem:[#allocation76_spill] sm:$0xff]  ;;  %v13736_v4 = vld [vmem:[#allocation158_spill] sm:$0xff] }
 0x301   :  { %2906 = vrot.lane.b32.xlu1 %v2539_v6, %s5922_s23  ;;  %13734 = vst [vmem:[#allocation166_spill] sm:$0xff] %v9548_v26  ;;  %v9558_v25 = vmul.f32 0.020408163, %v13735_v30  ;;  %v1694_v62 = vsub.f32 %v1406_v54, %v8921_v44  ;;  %2908 = vrot.lane.b32.xlu0 %v2540_v27, %s5922_s23  ;;  %v2541_v57 = vmul.f32 %v9531_v46, %v13736_v4  ;;  %v5378_v51 = vpop.eup %5377  ;;  %5391 = vrsqrt.f32 %v2121_v13  ;;  %v13737_v19 = vld [vmem:[#allocation225_spill] sm:$0xff]  ;;  %v13738_v3 = vld [vmem:[#allocation163_spill] sm:$0xff] }
 0x302   :  { %v1408_v6 = vmul.f32 0.020408163, %v13737_v19  ;;  %v2542_v43 = vmul.f32 %v9537_v23, %v13738_v3  ;;  %v9567_v26 = vmul.f32 %v5374_v47, %v1967_v55  ;;  %5393 = vrsqrt.f32 %v2120_v14  ;;  %v1969_v44 = vld [vmem:[%s12701_s1 + $0x2a8] sm:$0xff]  ;;  %v13741_v19 = vld [vmem:[#allocation38_spill] sm:$0xff]  ;;  %v13744_v55 = vld [vmem:[#allocation77_spill] sm:$0xff] }
 0x303   :  { %v2122_v28 = vadd.f32 1e-05, %v1834_v60  ;;  %v1836_v30 = vmax.f32 %v1692_v24, 0.0  ;;  %v9569_v9 = vmul.f32 %v5376_v59, %v1968_v35  ;;  %v5380_v54 = vpop.eup %5379  ;;  %v2123_v27 = vadd.f32 1e-05, %v1835_v61  ;;  %v9577_v47 = vpop.permute.xlu1 %2786  ;;  %v1970_v60 = vld [vmem:[%s12701_s1 + $0x2b0] sm:$0xff] }
 0x304   :  { %13739 = vst [vmem:[#allocation17_spill] sm:$0xff] %v9567_v26  ;;  %v1837_v4 = vmax.f32 %v1693_v1, 0.0  ;;  %v1695_v13 = vsub.f32 %v1407_v12, %v8893_v52  ;;  %v1409_v46 = vmul.f32 0.020408163, %v13741_v19  ;;  %13742 = vst [vmem:[#allocation27_spill] sm:$0xff] %v9577_v47  ;;  %v9579_v14 = vpop.permute.xlu0 %2792  ;;  %v9586_v24 = vmul.f32 %v9558_v25, %v9558_v25  ;;  %v13745_v61 = vld [vmem:[#allocation226_spill] sm:$0xff] }
 0x305   :  { %13740 = vst [vmem:[#allocation20_spill] sm:$0xff] %v9569_v9  ;;  %2910 = vrot.lane.b32.xlu1 %v2541_v57, %s5922_s23  ;;  %13743 = vst [vmem:[#allocation72_spill] sm:$0xff] %v9579_v14  ;;  %v9589_v59 = vmul.f32 0.020408163, %v13744_v55  ;;  %v1838_v52 = vmax.f32 %v1694_v62, 0.0  ;;  %2912 = vrot.lane.b32.xlu0 %v2542_v43, %s5922_s23  ;;  %v5382_v12 = vpop.eup %5381  ;;  %v13746_v35 = vld [vmem:[#allocation78_spill] sm:$0xff]  ;;  %v1696_v3 = vsub.f32 %v1408_v6, %v8963_v33  ;;  %5395 = vrsqrt.f32 %v2122_v28 }
 0x306   :  { %v1410_v1 = vmul.f32 0.020408163, %v13745_v61  ;;  %v9594_v57 = vmul.f32 0.020408163, %v13746_v35  ;;  %v13747_v19 = vld [vmem:[#allocation37_spill] sm:$0xff]  ;;  %v9599_v14 = vmul.f32 %v5378_v51, %v1969_v44  ;;  %v5384_v23 = vpop.eup %5383  ;;  %v2544_v62 = vmul.f32 %v9569_v9, %v13749_v50  ;;  %v1972_v50 = vld [vmem:[%s12701_s1 + $0x2c0] sm:$0xff] }
 0x307   :  { %v2543_v47 = vmul.f32 %v9567_v26, %v13747_v19  ;;  %v2124_v55 = vadd.f32 1e-05, %v1836_v30  ;;  %v9603_v61 = vmul.f32 %v5380_v54, %v1970_v60  ;;  %v1971_v43 = vld [vmem:[%s12701_s1 + $0x2b8] sm:$0xff]  ;;  %5397 = vrsqrt.f32 %v2123_v27  ;;  %v9610_v51 = vpop.permute.xlu1 %2790  ;;  %v13757_v9 = vld [vmem:[#allocation79_spill] sm:$0xff] }
 0x308   :  { %13748 = vst [vmem:[#allocation19_spill] sm:$0xff] %v9599_v14  ;;  %v2125_v35 = vadd.f32 1e-05, %v1837_v4  ;;  %v1839_v33 = vmax.f32 %v1695_v13, 0.0  ;;  %v1697_v6 = vsub.f32 %v1409_v46, %v8954_v8  ;;  %13751 = vst [vmem:[#allocation174_spill] sm:$0xff] %v9610_v51  ;;  %v9612_v28 = vpop.permute.xlu0 %2796  ;;  %v5386_v30 = vpop.eup %5385  ;;  %v9619_v44 = vmul.f32 %v9589_v59, %v9589_v59  ;;  %v13753_v27 = vld [vmem:[#allocation41_spill] sm:$0xff] }
 0x309   :  { %13750 = vst [vmem:[#allocation228_spill] sm:$0xff] %v9603_v61  ;;  %2914 = vrot.lane.b32.xlu1 %v2543_v47, %s5922_s23  ;;  %13752 = vst [vmem:[#allocation25_spill] sm:$0xff] %v9612_v28  ;;  %v2126_v54 = vadd.f32 1e-05, %v1838_v52  ;;  %v1411_v4 = vmul.f32 0.020408163, %v13753_v27  ;;  %v1698_v8 = vsub.f32 %v1410_v1, %v9028_v39  ;;  %2916 = vrot.lane.b32.xlu0 %v2544_v62, %s5922_s23  ;;  %5399 = vrsqrt.f32 %v2124_v55 }
 0x30a   :  { %v1973_v46 = vld [vmem:[%s12701_s1 + $0x2c8] sm:$0xff]  ;;  %v1840_v13 = vmax.f32 %v1696_v3, 0.0  ;;  %v13754_v47 = vld [vmem:[#allocation44_spill] sm:$0xff]  ;;  %v13755_v19 = vld [vmem:[#allocation137_spill] sm:$0xff]  ;;  %v9630_v28 = vmul.f32 %v5382_v12, %v1971_v43  ;;  %v9633_v52 = vmul.f32 0.020408163, %v13757_v9  ;;  %v9637_v1 = vmul.f32 %v5384_v23, %v1972_v50  ;;  %v5388_v62 = vpop.eup %5387 }
 0x30b   :  { %v1412_v60 = vmul.f32 0.020408163, %v13754_v47  ;;  %v2545_v51 = vmul.f32 %v9599_v14, %v13755_v19  ;;  %v13758_v27 = vld [vmem:[#allocation135_spill] sm:$0xff]  ;;  %5401 = vrsqrt.f32 %v2125_v35  ;;  %v2127_v26 = vadd.f32 1e-05, %v1839_v33  ;;  %v9640_v47 = vpop.permute.xlu1 %2794  ;;  %v1974_v9 = vld [vmem:[%s12701_s1 + $0x2d0] sm:$0xff] }
 0x30c   :  { %13756 = vst [vmem:[#allocation221_spill] sm:$0xff] %v9630_v28  ;;  %v2546_v39 = vmul.f32 %v9603_v61, %v13758_v27  ;;  %13759 = vst [vmem:[#allocation28_spill] sm:$0xff] %v9637_v1  ;;  %v1841_v3 = vmax.f32 %v1697_v6, 0.0  ;;  %v9642_v19 = vpop.permute.xlu0 %2800  ;;  %v9644_v12 = vmul.f32 %v5386_v30, %v1973_v46  ;;  %v5390_v55 = vpop.eup %5389  ;;  %5403 = vrsqrt.f32 %v2126_v54  ;;  %v13763_v35 = vld [vmem:[#allocation43_spill] sm:$0xff]  ;;  %v1975_v6 = vld [vmem:[%s12701_s1 + $0x2d8] sm:$0xff] }
 0x30d   :  { %2918 = vrot.lane.b32.xlu1 %v2545_v51, %s5922_s23  ;;  %13760 = vst [vmem:[#allocation73_spill] sm:$0xff] %v9640_v47  ;;  %13761 = vst [vmem:[#allocation171_spill] sm:$0xff] %v9642_v19  ;;  %v1699_v23 = vsub.f32 %v1411_v4, %v8994_v32  ;;  %v1842_v43 = vmax.f32 %v1698_v8, 0.0  ;;  %v1413_v33 = vmul.f32 0.020408163, %v13763_v35  ;;  %v1700_v50 = vsub.f32 %v1412_v60, %v9097_v38  ;;  %v13764_v30 = vld [vmem:[#allocation176_spill] sm:$0xff] }
 0x30e   :  { %13762 = vst [vmem:[#allocation23_spill] sm:$0xff] %v9644_v12  ;;  %2920 = vrot.lane.b32.xlu0 %v2546_v39, %s5922_s23  ;;  %v2128_v51 = vadd.f32 1e-05, %v1840_v13  ;;  %v1414_v46 = vmul.f32 0.020408163, %v13764_v30  ;;  %v13765_v27 = vld [vmem:[#allocation42_spill] sm:$0xff]  ;;  %v5392_v54 = vpop.eup %5391  ;;  %v9661_v32 = vmul.f32 %v9594_v57, %v9594_v57  ;;  %v9665_v4 = vmul.f32 %v9633_v52, %v9633_v52 }
 0x30f   :  { %v2547_v47 = vmul.f32 %v9630_v28, %v13765_v27  ;;  %v13766_v8 = vld [vmem:[#allocation45_spill] sm:$0xff]  ;;  %v9669_v13 = vmul.f32 %v5388_v62, %v1974_v9  ;;  %v5394_v38 = vpop.eup %5393  ;;  %5405 = vrsqrt.f32 %v2127_v26  ;;  %v2129_v60 = vadd.f32 1e-05, %v1841_v3  ;;  %v9672_v35 = vpop.permute.xlu1 %2798  ;;  %v13769_v27 = vld [vmem:[#allocation140_spill] sm:$0xff]  ;;  %v13770_v3 = vld [vmem:[#allocation46_spill] sm:$0xff] }
 0x310   :  { %v2548_v39 = vmul.f32 %v9637_v1, %v13766_v8  ;;  %13767 = vst [vmem:[#allocation121_spill] sm:$0xff] %v9672_v35  ;;  %v9674_v30 = vpop.permute.xlu0 %2804  ;;  %v2549_v19 = vmul.f32 %v9644_v12, %v13769_v27  ;;  %v9678_v61 = vmul.f32 %v5390_v55, %v1975_v6  ;;  %v1976_v8 = vld [vmem:[%s12701_s1 + $0x2e0] sm:$0xff]  ;;  %v1843_v62 = vmax.f32 %v1699_v23, 0.0  ;;  %v13771_v6 = vld [vmem:[#allocation49_spill] sm:$0xff] }
 0x311   :  { %2922 = vrot.lane.b32.xlu1 %v2547_v47, %s5922_s23  ;;  %13768 = vst [vmem:[#allocation26_spill] sm:$0xff] %v9674_v30  ;;  %v2130_v9 = vadd.f32 1e-05, %v1842_v43  ;;  %v1701_v26 = vsub.f32 %v1413_v33, %v9069_v22  ;;  %v1415_v1 = vmul.f32 0.020408163, %v13770_v3  ;;  %v1977_v47 = vld [vmem:[%s12701_s1 + $0x2e8] sm:$0xff]  ;;  %5407 = vrsqrt.f32 %v2128_v51 }
 0x312   :  { %2924 = vrot.lane.b32.xlu0 %v2548_v39, %s5922_s23  ;;  %v1844_v27 = vmax.f32 %v1700_v50, 0.0  ;;  %v1702_v55 = vsub.f32 %v1414_v46, %v9158_v58  ;;  %v1417_v35 = vmul.f32 0.020408163, %v13771_v6  ;;  %v13772_v30 = vld [vmem:[#allocation80_spill] sm:$0xff]  ;;  %v13773_v23 = vld [vmem:[#allocation181_spill] sm:$0xff]  ;;  %v13774_v22 = vld [vmem:[#allocation47_spill] sm:$0xff]  ;;  %v9697_v3 = vmul.f32 %v5394_v38, %v1976_v8  ;;  %v5396_v39 = vpop.eup %5395 }
 0x313   :  { %v9692_v12 = vmul.f32 0.020408163, %v13772_v30  ;;  %v1416_v43 = vmul.f32 0.020408163, %v13773_v23  ;;  %v2550_v33 = vmul.f32 %v9669_v13, %v13774_v22  ;;  %v13776_v28 = vld [vmem:[#allocation81_spill] sm:$0xff]  ;;  %5409 = vrsqrt.f32 %v2129_v60  ;;  %v9703_v58 = vpop.permute.xlu1 %2802  ;;  %v1978_v38 = vld [vmem:[%s12701_s1 + $0x2f0] sm:$0xff] }
 0x314   :  { %13775 = vst [vmem:[#allocation119_spill] sm:$0xff] %v9697_v3  ;;  %v9700_v14 = vmul.f32 0.020408163, %v13776_v28  ;;  %13777 = vst [vmem:[#allocation222_spill] sm:$0xff] %v9703_v58  ;;  %v9705_v51 = vpop.permute.xlu0 %2808  ;;  %v13779_v50 = vld [vmem:[#allocation145_spill] sm:$0xff]  ;;  %v9709_v30 = vmul.f32 %v5392_v54, %v1977_v47  ;;  %v5398_v8 = vpop.eup %5397  ;;  %5411 = vrsqrt.f32 %v2130_v9  ;;  %v1845_v28 = vmax.f32 %v1701_v26, 0.0 }
 0x315   :  { %2926 = vrot.lane.b32.xlu1 %v2549_v19, %s5922_s23  ;;  %13778 = vst [vmem:[#allocation74_spill] sm:$0xff] %v9705_v51  ;;  %v2551_v46 = vmul.f32 %v9678_v61, %v13779_v50  ;;  %v2131_v6 = vadd.f32 1e-05, %v1843_v62  ;;  %v1703_v60 = vsub.f32 %v1415_v1, %v9127_v11  ;;  %v1979_v19 = vld [vmem:[%s12701_s1 + $0x2f8] sm:$0xff]  ;;  %v2132_v23 = vadd.f32 1e-05, %v1844_v27 }
 0x316   :  { %13780 = vst [vmem:[#allocation30_spill] sm:$0xff] %v9709_v30  ;;  %2928 = vrot.lane.b32.xlu0 %v2550_v33, %s5922_s23  ;;  %v1846_v22 = vmax.f32 %v1702_v55, 0.0  ;;  %v1705_v54 = vsub.f32 %v1417_v35, %v9192_v34  ;;  %v13781_v47 = vld [vmem:[#allocation184_spill] sm:$0xff]  ;;  %v9723_v58 = vmul.f32 %v9692_v12, %v9692_v12  ;;  %v1704_v62 = vsub.f32 %v1416_v43, %v9241_v21  ;;  %v5400_v26 = vpop.eup %5399  ;;  %v13784_v55 = vld [vmem:[#allocation82_spill] sm:$0xff]  ;;  %v13789_v51 = vld [vmem:[#allocation153_spill] sm:$0xff] }
 0x317   :  { %v1418_v50 = vmul.f32 0.020408163, %v13781_v47  ;;  %v13782_v9 = vld [vmem:[#allocation148_spill] sm:$0xff]  ;;  %v9728_v1 = vmul.f32 %v5396_v39, %v1978_v38  ;;  %v9732_v27 = vmul.f32 %v9700_v14, %v9700_v14  ;;  %v9735_v34 = vmul.f32 0.020408163, %v13784_v55  ;;  %v9738_v35 = vpop.permute.xlu1 %2806  ;;  %v1980_v39 = vld [vmem:[%s12701_s1 + $0x300] sm:$0xff] }
 0x318   :  { %v2552_v11 = vmul.f32 %v9697_v3, %v13782_v9  ;;  %13785 = vst [vmem:[#allocation224_spill] sm:$0xff] %v9738_v35  ;;  %v9740_v33 = vpop.permute.xlu0 %2812  ;;  %v13787_v21 = vld [vmem:[#allocation48_spill] sm:$0xff]  ;;  %v9744_v47 = vmul.f32 %v5398_v8, %v1979_v19  ;;  %v5402_v38 = vpop.eup %5401  ;;  %5413 = vrsqrt.f32 %v2131_v6  ;;  %v2133_v9 = vadd.f32 1e-05, %v1845_v28 }
 0x319   :  { %13783 = vst [vmem:[#allocation33_spill] sm:$0xff] %v9728_v1  ;;  %2930 = vrot.lane.b32.xlu1 %v2551_v46, %s5922_s23  ;;  %13786 = vst [vmem:[#allocation29_spill] sm:$0xff] %v9740_v33  ;;  %v2553_v43 = vmul.f32 %v9709_v30, %v13787_v21  ;;  %v1847_v55 = vmax.f32 %v1703_v60, 0.0  ;;  %v1419_v3 = vmul.f32 0.020408163, %v13789_v51  ;;  %v1981_v46 = vld [vmem:[%s12701_s1 + $0x308] sm:$0xff]  ;;  %v5404_v35 = vpop.eup %5403  ;;  %5415 = vrsqrt.f32 %v2132_v23 }
 0x31a   :  { %13788 = vst [vmem:[#allocation75_spill] sm:$0xff] %v9744_v47  ;;  %2932 = vrot.lane.b32.xlu0 %v2552_v11, %s5922_s23  ;;  %v2134_v8 = vadd.f32 1e-05, %v1846_v22  ;;  %v1849_v19 = vmax.f32 %v1705_v54, 0.0  ;;  %v1706_v21 = vsub.f32 %v1418_v50, %v9293_v17  ;;  %v1982_v6 = vld [vmem:[%s12701_s1 + $0x310] sm:$0xff]  ;;  %v1848_v28 = vmax.f32 %v1704_v62, 0.0 }
 0x31b   :  { %v1420_v60 = vmul.f32 0.020408163, %v8782_v31  ;;  %v13790_v51 = vld [vmem:[#allocation182_spill] sm:$0xff]  ;;  %v9761_v33 = vmul.f32 %v5400_v26, %v1980_v39  ;;  %v9765_v30 = vmul.f32 %v9735_v34, %v9735_v34  ;;  %v13792_v23 = vld [vmem:[#allocation83_spill] sm:$0xff]  ;;  %v9771_v17 = vpop.permute.xlu1 %2810  ;;  %v9777_v62 = vmul.f32 %v5402_v38, %v1981_v46 }
 0x31c   :  { %v2554_v11 = vmul.f32 %v9728_v1, %v13790_v51  ;;  %v9768_v22 = vmul.f32 0.020408163, %v13792_v23  ;;  %13793 = vst [vmem:[#allocation129_spill] sm:$0xff] %v9771_v17  ;;  %v9773_v54 = vpop.permute.xlu0 %2816  ;;  %v13795_v50 = vld [vmem:[#allocation179_spill] sm:$0xff]  ;;  %v5406_v26 = vpop.eup %5405  ;;  %5417 = vrsqrt.f32 %v2133_v9  ;;  %v2135_v39 = vadd.f32 1e-05, %v1847_v55 }
 0x31d   :  { %13791 = vst [vmem:[#allocation124_spill] sm:$0xff] %v9761_v33  ;;  %2934 = vrot.lane.b32.xlu1 %v2553_v43, %s5922_s23  ;;  %13794 = vst [vmem:[#allocation32_spill] sm:$0xff] %v9773_v54  ;;  %v2555_v31 = vmul.f32 %v9744_v47, %v13795_v50  ;;  %v1707_v51 = vsub.f32 %v1419_v3, %v9265_v45  ;;  %v9781_v23 = vmul.f32 %v5404_v35, %v1982_v6  ;;  %v1983_v43 = vld [vmem:[%s12701_s1 + $0x318] sm:$0xff]  ;;  %v13797_v1 = vld [vmem:[#allocation156_spill] sm:$0xff] }
 0x31e   :  { %2936 = vrot.lane.b32.xlu0 %v2554_v11, %s5922_s23  ;;  %5419 = vrsqrt.f32 %v2134_v8  ;;  %v2137_v17 = vadd.f32 1e-05, %v1849_v19  ;;  %v1850_v54 = vmax.f32 %v1706_v21, 0.0  ;;  %v1421_v50 = vmul.f32 0.020408163, %v13797_v1  ;;  %v5408_v38 = vpop.eup %5407  ;;  %v13798_v55 = vld [vmem:[#allocation189_spill] sm:$0xff] }
 0x31f   :  { %13796 = vst [vmem:[#allocation31_spill] sm:$0xff] %v9781_v23  ;;  %v2136_v46 = vadd.f32 1e-05, %v1848_v28  ;;  %v1708_v9 = vsub.f32 %v1420_v60, %v9335_v36  ;;  %v1422_v47 = vmul.f32 0.020408163, %v13798_v55  ;;  %v13799_v45 = vld [vmem:[#allocation52_spill] sm:$0xff]  ;;  %v9801_v1 = vpop.permute.xlu1 %2814  ;;  %v9807_v60 = vmul.f32 %v5406_v26, %v1983_v43 }
 0x320   :  { %v2556_v3 = vmul.f32 %v9761_v33, %v13799_v45  ;;  %v1984_v35 = vld [vmem:[%s12701_s1 + $0x320] sm:$0xff]  ;;  %v13800_v6 = vld [vmem:[#allocation84_spill] sm:$0xff]  ;;  %v13801_v8 = vld [vmem:[#allocation85_spill] sm:$0xff]  ;;  %13802 = vst [vmem:[#allocation35_spill] sm:$0xff] %v9801_v1  ;;  %v9803_v36 = vpop.permute.xlu0 %2820  ;;  %v5410_v55 = vpop.eup %5409  ;;  %5421 = vrsqrt.f32 %v2135_v39  ;;  %v1851_v45 = vmax.f32 %v1707_v51, 0.0  ;;  %v1709_v26 = vsub.f32 %v1421_v50, %v9326_v56 }
 0x321   :  { %v9795_v11 = vmul.f32 0.020408163, %v13800_v6  ;;  %v9798_v19 = vmul.f32 0.020408163, %v13801_v8  ;;  %2938 = vrot.lane.b32.xlu1 %v2555_v31, %s5922_s23  ;;  %13803 = vst [vmem:[#allocation122_spill] sm:$0xff] %v9803_v36  ;;  %v13804_v21 = vld [vmem:[#allocation188_spill] sm:$0xff]  ;;  %v2558_v8 = vmul.f32 %v9781_v23, %v8869_v20  ;;  %v5412_v1 = vpop.eup %5411  ;;  %5423 = vrsqrt.f32 %v2137_v17 }
 0x322   :  { %v2557_v28 = vmul.f32 %v9777_v62, %v13804_v21  ;;  %13805 = vst [vmem:[#allocation132_spill] sm:$0xff] %v9807_v60  ;;  %v13806_v33 = vld [vmem:[#allocation186_spill] sm:$0xff]  ;;  %2940 = vrot.lane.b32.xlu0 %v2556_v3, %s5922_s23  ;;  %v1985_v31 = vld [vmem:[%s12701_s1 + $0x328] sm:$0xff]  ;;  %v2138_v36 = vadd.f32 1e-05, %v1850_v54  ;;  %v9817_v43 = vmul.f32 %v5408_v38, %v1984_v35  ;;  %5425 = vrsqrt.f32 %v2136_v46  ;;  %v1986_v20 = vld [vmem:[%s12701_s1 + $0x330] sm:$0xff] }
 0x323   :  { %v1423_v6 = vmul.f32 0.020408163, %v13806_v33  ;;  %v1852_v39 = vmax.f32 %v1708_v9, 0.0  ;;  %v1710_v33 = vsub.f32 %v1422_v47, %v9400_v40  ;;  %v13808_v51 = vld [vmem:[#allocation191_spill] sm:$0xff]  ;;  %v9826_v21 = vmul.f32 %v9768_v22, %v9768_v22  ;;  %v13809_v56 = vld [vmem:[#allocation161_spill] sm:$0xff]  ;;  %v9834_v50 = vpop.permute.xlu1 %2818 }
 0x324   :  { %13807 = vst [vmem:[#allocation34_spill] sm:$0xff] %v9817_v43  ;;  %v1424_v3 = vmul.f32 0.020408163, %v13808_v51  ;;  %v9830_v17 = vmul.f32 %v9795_v11, %v9795_v11  ;;  %v1425_v54 = vmul.f32 0.020408163, %v13809_v56  ;;  %13810 = vst [vmem:[#allocation76_spill] sm:$0xff] %v9834_v50  ;;  %v9836_v40 = vpop.permute.xlu0 %2824  ;;  %v9838_v47 = vmul.f32 %v5410_v55, %v1985_v31 }
 0x325   :  { %2942 = vrot.lane.b32.xlu1 %v2557_v28, %s5922_s23  ;;  %13811 = vst [vmem:[#allocation158_spill] sm:$0xff] %v9836_v40  ;;  %v9842_v38 = vmul.f32 %v9798_v19, %v9798_v19  ;;  %v2139_v46 = vadd.f32 1e-05, %v1851_v45  ;;  %v1711_v9 = vsub.f32 %v1423_v6, %v9366_v41  ;;  %v2559_v35 = vmul.f32 %v9807_v60, %v8838_v0  ;;  %v5414_v51 = vpop.eup %5413  ;;  %v1987_v31 = vld [vmem:[%s12701_s1 + $0x338] sm:$0xff]  ;;  %v1988_v0 = vld [vmem:[%s12701_s1 + $0x340] sm:$0xff] }
 0x326   :  { %13812 = vst [vmem:[#allocation225_spill] sm:$0xff] %v9838_v47  ;;  %2944 = vrot.lane.b32.xlu0 %v2558_v8, %s5922_s23  ;;  %5427 = vrsqrt.f32 %v2138_v36  ;;  %v1853_v28 = vmax.f32 %v1709_v26, 0.0  ;;  %v2560_v56 = vmul.f32 %v9817_v43, %v8931_v49  ;;  %v9850_v55 = vmul.f32 %v5412_v1, %v1986_v20  ;;  %v5416_v45 = vpop.eup %5415  ;;  %v13814_v8 = vld [vmem:[#allocation164_spill] sm:$0xff]  ;;  %v13815_v36 = vld [vmem:[#allocation86_spill] sm:$0xff]  ;;  %v13816_v49 = vld [vmem:[#allocation87_spill] sm:$0xff] }
 0x327   :  { %v2140_v50 = vadd.f32 1e-05, %v1852_v39  ;;  %v1854_v41 = vmax.f32 %v1710_v33, 0.0  ;;  %v1712_v6 = vsub.f32 %v1424_v3, %v9490_v37  ;;  %v1426_v40 = vmul.f32 0.020408163, %v13814_v8  ;;  %v9868_v39 = vpop.permute.xlu1 %2822  ;;  %v13819_v37 = vld [vmem:[#allocation55_spill] sm:$0xff] }
 0x328   :  { %13813 = vst [vmem:[#allocation163_spill] sm:$0xff] %v9850_v55  ;;  %v9861_v26 = vmul.f32 0.020408163, %v13815_v36  ;;  %v9864_v1 = vmul.f32 0.020408163, %v13816_v49  ;;  %v1713_v20 = vsub.f32 %v1425_v54, %v9459_v18  ;;  %13817 = vst [vmem:[#allocation38_spill] sm:$0xff] %v9868_v39  ;;  %v9870_v33 = vpop.permute.xlu0 %2828  ;;  %v2561_v3 = vmul.f32 %v9838_v47, %v13819_v37 }
 0x329   :  { %2946 = vrot.lane.b32.xlu1 %v2559_v35, %s5922_s23  ;;  %13818 = vst [vmem:[#allocation77_spill] sm:$0xff] %v9870_v33  ;;  %5429 = vrsqrt.f32 %v2139_v46  ;;  %v1855_v8 = vmax.f32 %v1711_v9, 0.0  ;;  %v13820_v43 = vld [vmem:[#allocation159_spill] sm:$0xff]  ;;  %v9876_v36 = vmul.f32 %v5414_v51, %v1987_v31  ;;  %v5418_v49 = vpop.eup %5417  ;;  %v2141_v60 = vadd.f32 1e-05, %v1853_v28  ;;  %v13822_v18 = vld [vmem:[#allocation162_spill] sm:$0xff] }
 0x32a   :  { %v1427_v23 = vmul.f32 0.020408163, %v13820_v43  ;;  %2948 = vrot.lane.b32.xlu0 %v2560_v56, %s5922_s23  ;;  %v1428_v54 = vmul.f32 0.020408163, %v13822_v18  ;;  %v2562_v35 = vmul.f32 %v9850_v55, %v8997_v15  ;;  %v9881_v39 = vmul.f32 %v5416_v45, %v1988_v0  ;;  %v1989_v46 = vld [vmem:[%s12701_s1 + $0x348] sm:$0xff]  ;;  %v1990_v28 = vld [vmem:[%s12701_s1 + $0x350] sm:$0xff] }
 0x32b   :  { %13821 = vst [vmem:[#allocation226_spill] sm:$0xff] %v9876_v36  ;;  %v5420_v9 = vpop.eup %5419  ;;  %5431 = vrsqrt.f32 %v2140_v50  ;;  %v2142_v43 = vadd.f32 1e-05, %v1854_v41  ;;  %v1856_v37 = vmax.f32 %v1712_v6, 0.0  ;;  %v1714_v51 = vsub.f32 %v1426_v40, %v9555_v16  ;;  %v13824_v15 = vld [vmem:[#allocation88_spill] sm:$0xff]  ;;  %v9899_v50 = vpop.permute.xlu1 %2826  ;;  %v13828_v6 = vld [vmem:[#allocation170_spill] sm:$0xff] }
 0x32c   :  { %13823 = vst [vmem:[#allocation78_spill] sm:$0xff] %v9881_v39  ;;  %v9892_v56 = vmul.f32 %v9861_v26, %v9861_v26  ;;  %v9895_v31 = vmul.f32 0.020408163, %v13824_v15  ;;  %v1857_v45 = vmax.f32 %v1713_v20, 0.0  ;;  %v13825_v0 = vld [vmem:[#allocation196_spill] sm:$0xff]  ;;  %13826 = vst [vmem:[#allocation37_spill] sm:$0xff] %v9899_v50  ;;  %v9901_v41 = vpop.permute.xlu0 %2832  ;;  %v1715_v40 = vsub.f32 %v1427_v23, %v9527_v5 }
 0x32d   :  { %v1429_v18 = vmul.f32 0.020408163, %v13825_v0  ;;  %2950 = vrot.lane.b32.xlu1 %v2561_v3, %s5922_s23  ;;  %13827 = vst [vmem:[#allocation40_spill] sm:$0xff] %v9901_v41  ;;  %v2143_v16 = vadd.f32 1e-05, %v1855_v8  ;;  %v2563_v33 = vmul.f32 %v9876_v36, %v13828_v6  ;;  %v9907_v55 = vmul.f32 %v5418_v49, %v1989_v46  ;;  %v5422_v15 = vpop.eup %5421  ;;  %v13829_v0 = vld [vmem:[#allocation198_spill] sm:$0xff] }
 0x32e   :  { %2952 = vrot.lane.b32.xlu0 %v2562_v35, %s5922_s23  ;;  %5433 = vrsqrt.f32 %v2141_v60  ;;  %v1716_v20 = vsub.f32 %v1428_v54, %v9619_v44  ;;  %v1430_v3 = vmul.f32 0.020408163, %v13829_v0  ;;  %v9911_v47 = vmul.f32 %v5420_v9, %v1990_v28  ;;  %v1991_v8 = vld [vmem:[%s12701_s1 + $0x358] sm:$0xff]  ;;  %v5424_v5 = vpop.eup %5423  ;;  %v13831_v9 = vld [vmem:[#allocation195_spill] sm:$0xff] }
 0x32f   :  { %5435 = vrsqrt.f32 %v2142_v43  ;;  %v2144_v23 = vadd.f32 1e-05, %v1856_v37  ;;  %v1858_v35 = vmax.f32 %v1714_v51, 0.0  ;;  %v13830_v50 = vld [vmem:[#allocation201_spill] sm:$0xff]  ;;  %v5426_v46 = vpop.eup %5425  ;;  %v9920_v60 = vmul.f32 %v9864_v1, %v9864_v1  ;;  %v9925_v6 = vpop.permute.xlu1 %2830  ;;  %v1992_v37 = vld [vmem:[%s12701_s1 + $0x360] sm:$0xff]  ;;  %v1993_v51 = vld [vmem:[%s12701_s1 + $0x368] sm:$0xff] }
 0x330   :  { %v2564_v49 = vmul.f32 %v9881_v39, %v13830_v50  ;;  %v2145_v44 = vadd.f32 1e-05, %v1857_v45  ;;  %v1717_v54 = vsub.f32 %v1429_v18, %v9586_v24  ;;  %v1431_v28 = vmul.f32 0.020408163, %v13831_v9  ;;  %13832 = vst [vmem:[#allocation41_spill] sm:$0xff] %v9925_v6  ;;  %v9927_v43 = vpop.permute.xlu0 %2836  ;;  %v13834_v24 = vld [vmem:[#allocation220_spill] sm:$0xff] }
 0x331   :  { %2954 = vrot.lane.b32.xlu1 %v2563_v33, %s5922_s23  ;;  %13833 = vst [vmem:[#allocation44_spill] sm:$0xff] %v9927_v43  ;;  %5437 = vrsqrt.f32 %v2143_v16  ;;  %v1859_v45 = vmax.f32 %v1715_v40, 0.0  ;;  %v2565_v18 = vmul.f32 %v9907_v55, %v13834_v24  ;;  %v9938_v33 = vmul.f32 %v5422_v15, %v1991_v8  ;;  %v13835_v9 = vld [vmem:[#allocation197_spill] sm:$0xff]  ;;  %v13836_v43 = vld [vmem:[#allocation208_spill] sm:$0xff]  ;;  %v13839_v8 = vld [vmem:[#allocation126_spill] sm:$0xff] }
 0x332   :  { %2956 = vrot.lane.b32.xlu0 %v2564_v49, %s5922_s23  ;;  %v1860_v50 = vmax.f32 %v1716_v20, 0.0  ;;  %v1718_v0 = vsub.f32 %v1430_v3, %v9665_v4  ;;  %v1432_v6 = vmul.f32 0.020408163, %v13835_v9  ;;  %v2566_v41 = vmul.f32 %v9911_v47, %v13836_v43  ;;  %v13844_v24 = vld [vmem:[#allocation206_spill] sm:$0xff]  ;;  %v1995_v9 = vld [vmem:[%s12701_s1 + $0x378] sm:$0xff] }
 0x333   :  { %v5428_v39 = vpop.eup %5427  ;;  %5439 = vrsqrt.f32 %v2144_v23  ;;  %v2146_v36 = vadd.f32 1e-05, %v1858_v35  ;;  %v9944_v16 = vmul.f32 %v5426_v46, %v1992_v37  ;;  %v9946_v40 = vmul.f32 %v5424_v5, %v1993_v51  ;;  %v9951_v4 = vpop.permute.xlu1 %2834  ;;  %v1994_v23 = vld [vmem:[%s12701_s1 + $0x370] sm:$0xff]  ;;  %v13842_v35 = vld [vmem:[#allocation89_spill] sm:$0xff] }
 0x334   :  { %5441 = vrsqrt.f32 %v2145_v44  ;;  %v1861_v49 = vmax.f32 %v1717_v54, 0.0  ;;  %v1719_v15 = vsub.f32 %v1431_v28, %v9661_v32  ;;  %v1433_v20 = vmul.f32 0.020408163, %v13839_v8  ;;  %13840 = vst [vmem:[#allocation135_spill] sm:$0xff] %v9951_v4  ;;  %v9953_v3 = vpop.permute.xlu0 %2840  ;;  %v13843_v44 = vld [vmem:[#allocation57_spill] sm:$0xff]  ;;  %v13845_v8 = vld [vmem:[#allocation90_spill] sm:$0xff] }
 0x335   :  { %13837 = vst [vmem:[#allocation137_spill] sm:$0xff] %v9944_v16  ;;  %13838 = vst [vmem:[#allocation79_spill] sm:$0xff] %v9946_v40  ;;  %2958 = vrot.lane.b32.xlu1 %v2565_v18, %s5922_s23  ;;  %v9960_v5 = vmul.f32 %v9895_v31, %v9895_v31  ;;  %v9963_v46 = vmul.f32 0.020408163, %v13842_v35  ;;  %v2147_v32 = vadd.f32 1e-05, %v1859_v45  ;;  %v1720_v51 = vsub.f32 %v1432_v6, %v9732_v27 }
 0x336   :  { %13841 = vst [vmem:[#allocation43_spill] sm:$0xff] %v9953_v3  ;;  %v1434_v54 = vmul.f32 0.020408163, %v13843_v44  ;;  %2960 = vrot.lane.b32.xlu0 %v2566_v41, %s5922_s23  ;;  %v5430_v28 = vpop.eup %5429  ;;  %v2148_v43 = vadd.f32 1e-05, %v1860_v50  ;;  %v1862_v37 = vmax.f32 %v1718_v0, 0.0  ;;  %v2567_v18 = vmul.f32 %v9938_v33, %v13844_v24 }
 0x337   :  { %v9974_v35 = vmul.f32 0.020408163, %v13845_v8  ;;  %5443 = vrsqrt.f32 %v2146_v36  ;;  %v2568_v45 = vmul.f32 %v9944_v16, %v9179_v10  ;;  %v9978_v41 = vmul.f32 %v5428_v39, %v1994_v23  ;;  %v9982_v6 = vpop.permute.xlu1 %2838  ;;  %v1996_v10 = vld [vmem:[%s12701_s1 + $0x380] sm:$0xff]  ;;  %v13849_v39 = vld [vmem:[#allocation177_spill] sm:$0xff]  ;;  %v13851_v23 = vld [vmem:[#allocation180_spill] sm:$0xff] }
 0x338   :  { %v5432_v50 = vpop.eup %5431  ;;  %v2149_v0 = vadd.f32 1e-05, %v1861_v49  ;;  %v1863_v44 = vmax.f32 %v1719_v15, 0.0  ;;  %v1721_v27 = vsub.f32 %v1433_v20, %v9723_v58  ;;  %13847 = vst [vmem:[#allocation42_spill] sm:$0xff] %v9982_v6  ;;  %v9984_v24 = vpop.permute.xlu0 %2844  ;;  %v2569_v8 = vmul.f32 %v9946_v40, %v9161_v7  ;;  %v13859_v4 = vld [vmem:[#allocation92_spill] sm:$0xff]  ;;  %v13861_v40 = vld [vmem:[#allocation65_spill] sm:$0xff] }
 0x339   :  { %13846 = vst [vmem:[#allocation176_spill] sm:$0xff] %v9978_v41  ;;  %2962 = vrot.lane.b32.xlu1 %v2567_v18, %s5922_s23  ;;  %13848 = vst [vmem:[#allocation45_spill] sm:$0xff] %v9984_v24  ;;  %5445 = vrsqrt.f32 %v2147_v32  ;;  %v1435_v36 = vmul.f32 0.020408163, %v13849_v39  ;;  %v1722_v49 = vsub.f32 %v1434_v54, %v9826_v21  ;;  %v9994_v58 = vmul.f32 %v5430_v28, %v1995_v9  ;;  %v13852_v24 = vld [vmem:[#allocation91_spill] sm:$0xff]  ;;  %v13853_v39 = vld [vmem:[#allocation9_spill] sm:$0xff] }
 0x33a   :  { %2964 = vrot.lane.b32.xlu0 %v2568_v45, %s5922_s23  ;;  %5447 = vrsqrt.f32 %v2148_v43  ;;  %v2150_v15 = vadd.f32 1e-05, %v1862_v37  ;;  %v1864_v20 = vmax.f32 %v1720_v51, 0.0  ;;  %v1436_v18 = vmul.f32 0.020408163, %v13851_v23  ;;  %v1997_v28 = vld [vmem:[%s12701_s1 + $0x388] sm:$0xff] }
 0x33b   :  { %13850 = vst [vmem:[#allocation140_spill] sm:$0xff] %v9994_v58  ;;  %v5434_v6 = vpop.eup %5433  ;;  %v9999_v7 = vmul.f32 %v9963_v46, %v9963_v46  ;;  %v10002_v32 = vmul.f32 0.020408163, %v13852_v24  ;;  %v2570_v21 = vmul.f32 %v9978_v41, %v13853_v39  ;;  %v10006_v54 = vmul.f32 %v5432_v50, %v1996_v10  ;;  %v13855_v9 = vld [vmem:[#allocation202_spill] sm:$0xff]  ;;  %v10013_v23 = vpop.permute.xlu1 %2842  ;;  %v1998_v50 = vld [vmem:[%s12701_s1 + $0x390] sm:$0xff] }
 0x33c   :  { %v5436_v43 = vpop.eup %5435  ;;  %5449 = vrsqrt.f32 %v2149_v0  ;;  %v2151_v37 = vadd.f32 1e-05, %v1863_v44  ;;  %v1865_v51 = vmax.f32 %v1721_v27, 0.0  ;;  %v1437_v45 = vmul.f32 0.020408163, %v13855_v9  ;;  %13856 = vst [vmem:[#allocation49_spill] sm:$0xff] %v10013_v23  ;;  %v10015_v24 = vpop.permute.xlu0 %2848 }
 0x33d   :  { %13854 = vst [vmem:[#allocation46_spill] sm:$0xff] %v10006_v54  ;;  %2966 = vrot.lane.b32.xlu1 %v2569_v8, %s5922_s23  ;;  %13857 = vst [vmem:[#allocation80_spill] sm:$0xff] %v10015_v24  ;;  %v10022_v10 = vmul.f32 %v9974_v35, %v9974_v35  ;;  %v1723_v0 = vsub.f32 %v1435_v36, %v9765_v30  ;;  %v1866_v44 = vmax.f32 %v1722_v49, 0.0  ;;  %v13858_v27 = vld [vmem:[#allocation5_spill] sm:$0xff]  ;;  %5451 = vrsqrt.f32 %v2150_v15  ;;  %v13860_v41 = vld [vmem:[#allocation204_spill] sm:$0xff] }
 0x33e   :  { %2968 = vrot.lane.b32.xlu0 %v2570_v21, %s5922_s23  ;;  %v2571_v8 = vmul.f32 %v9994_v58, %v13858_v27  ;;  %v5438_v39 = vpop.eup %5437  ;;  %v2152_v9 = vadd.f32 1e-05, %v1864_v20  ;;  %v1724_v23 = vsub.f32 %v1436_v18, %v9842_v38  ;;  %v10029_v24 = vmul.f32 %v5434_v6, %v1997_v28  ;;  %v1999_v49 = vld [vmem:[%s12701_s1 + $0x398] sm:$0xff]  ;;  %v13867_v27 = vld [vmem:[#allocation10_spill] sm:$0xff] }
 0x33f   :  { %v10032_v3 = vmul.f32 0.020408163, %v13859_v4  ;;  %v1438_v16 = vmul.f32 0.020408163, %v13860_v41  ;;  %v2572_v30 = vmul.f32 %v10006_v54, %v13861_v40  ;;  %v10037_v36 = vmul.f32 %v5436_v43, %v1998_v50  ;;  %v13863_v20 = vld [vmem:[#allocation93_spill] sm:$0xff]  ;;  %v10047_v41 = vpop.permute.xlu1 %2846  ;;  %v2000_v40 = vld [vmem:[%s12701_s1 + $0x3a0] sm:$0xff] }
 0x340   :  { %v5440_v15 = vpop.eup %5439  ;;  %v10043_v21 = vmul.f32 0.020408163, %v13863_v20  ;;  %5453 = vrsqrt.f32 %v2151_v37  ;;  %v2153_v38 = vadd.f32 1e-05, %v1865_v51  ;;  %v1725_v4 = vsub.f32 %v1437_v45, %v9830_v17  ;;  %13864 = vst [vmem:[#allocation47_spill] sm:$0xff] %v10047_v41  ;;  %v10049_v6 = vpop.permute.xlu0 %2852  ;;  %v13866_v51 = vld [vmem:[#allocation131_spill] sm:$0xff] }
 0x341   :  { %13862 = vst [vmem:[#allocation181_spill] sm:$0xff] %v10037_v36  ;;  %2970 = vrot.lane.b32.xlu1 %v2571_v8, %s5922_s23  ;;  %13865 = vst [vmem:[#allocation81_spill] sm:$0xff] %v10049_v6  ;;  %v5442_v18 = vpop.eup %5441  ;;  %v10056_v28 = vmul.f32 %v10002_v32, %v10002_v32  ;;  %v1867_v43 = vmax.f32 %v1723_v0, 0.0  ;;  %v2154_v37 = vadd.f32 1e-05, %v1866_v44  ;;  %v2001_v17 = vld [vmem:[%s12701_s1 + $0x3a8] sm:$0xff]  ;;  %5455 = vrsqrt.f32 %v2152_v9 }
 0x342   :  { %v1439_v50 = vmul.f32 0.020408163, %v13866_v51  ;;  %2972 = vrot.lane.b32.xlu0 %v2572_v30, %s5922_s23  ;;  %v1868_v45 = vmax.f32 %v1724_v23, 0.0  ;;  %v2573_v8 = vmul.f32 %v10029_v24, %v13867_v27  ;;  %v10065_v20 = vmul.f32 %v5438_v39, %v1999_v49  ;;  %v13868_v6 = vld [vmem:[#allocation183_spill] sm:$0xff]  ;;  %v13869_v44 = vld [vmem:[#allocation16_spill] sm:$0xff] }
 0x343   :  { %v1726_v41 = vsub.f32 %v1438_v16, %v9920_v60  ;;  %v1440_v0 = vmul.f32 0.020408163, %v13868_v6  ;;  %v2574_v51 = vmul.f32 %v10037_v36, %v13869_v44  ;;  %v10071_v54 = vmul.f32 %v5440_v15, %v2000_v40  ;;  %v10078_v39 = vpop.permute.xlu1 %2850  ;;  %v2002_v16 = vld [vmem:[%s12701_s1 + $0x3b0] sm:$0xff]  ;;  %v13873_v6 = vld [vmem:[#allocation203_spill] sm:$0xff] }
 0x344   :  { %v5444_v30 = vpop.eup %5443  ;;  %v10075_v58 = vmul.f32 %v10032_v3, %v10032_v3  ;;  %5457 = vrsqrt.f32 %v2153_v38  ;;  %v1869_v23 = vmax.f32 %v1725_v4, 0.0  ;;  %13871 = vst [vmem:[#allocation184_spill] sm:$0xff] %v10078_v39  ;;  %v10080_v9 = vpop.permute.xlu0 %2856  ;;  %v10082_v60 = vmul.f32 %v5442_v18, %v2001_v17  ;;  %v13874_v18 = vld [vmem:[#allocation117_spill] sm:$0xff] }
 0x345   :  { %13870 = vst [vmem:[#allocation145_spill] sm:$0xff] %v10071_v54  ;;  %2974 = vrot.lane.b32.xlu1 %v2573_v8, %s5922_s23  ;;  %13872 = vst [vmem:[#allocation148_spill] sm:$0xff] %v10080_v9  ;;  %v2155_v49 = vadd.f32 1e-05, %v1867_v43  ;;  %5459 = vrsqrt.f32 %v2154_v37  ;;  %v1727_v15 = vsub.f32 %v1439_v50, %v9892_v56  ;;  %v1441_v40 = vmul.f32 0.020408163, %v13873_v6 }
 0x346   :  { %2976 = vrot.lane.b32.xlu0 %v2574_v51, %s5922_s23  ;;  %v5446_v38 = vpop.eup %5445  ;;  %v10092_v4 = vmul.f32 %v10043_v21, %v10043_v21  ;;  %v2156_v27 = vadd.f32 1e-05, %v1868_v45  ;;  %v1442_v17 = vmul.f32 0.020408163, %v13874_v18  ;;  %v13875_v8 = vld [vmem:[#allocation66_spill] sm:$0xff]  ;;  %v1870_v43 = vmax.f32 %v1726_v41, 0.0 }
 0x347   :  { %v2575_v44 = vmul.f32 %v10065_v20, %v13875_v8  ;;  %v5448_v39 = vpop.eup %5447  ;;  %v1728_v37 = vsub.f32 %v1440_v0, %v9999_v7  ;;  %v2576_v56 = vmul.f32 %v10071_v54, %v9430_v48  ;;  %v10100_v50 = vmul.f32 %v5444_v30, %v2002_v16  ;;  %v2003_v51 = vld [vmem:[%s12701_s1 + $0x3b8] sm:$0xff]  ;;  %v2004_v45 = vld [vmem:[%s12701_s1 + $0x3c0] sm:$0xff]  ;;  %v13877_v8 = vld [vmem:[#allocation95_spill] sm:$0xff]  ;;  %v10115_v48 = vpop.permute.xlu1 %2854 }
 0x348   :  { %v13876_v6 = vld [vmem:[#allocation94_spill] sm:$0xff]  ;;  %v10112_v41 = vmul.f32 0.020408163, %v13877_v8  ;;  %v2157_v7 = vadd.f32 1e-05, %v1869_v23  ;;  %13878 = vst [vmem:[#allocation82_spill] sm:$0xff] %v10115_v48  ;;  %v10117_v0 = vpop.permute.xlu0 %2860  ;;  %v2577_v30 = vmul.f32 %v10082_v60, %v9403_v63  ;;  %5461 = vrsqrt.f32 %v2155_v49 }
 0x349   :  { %v10109_v18 = vmul.f32 0.020408163, %v13876_v6  ;;  %2978 = vrot.lane.b32.xlu1 %v2575_v44, %s5922_s23  ;;  %13879 = vst [vmem:[#allocation48_spill] sm:$0xff] %v10117_v0  ;;  %v5450_v16 = vpop.eup %5449  ;;  %v1871_v9 = vmax.f32 %v1727_v15, 0.0  ;;  %v1729_v54 = vsub.f32 %v1441_v40, %v9960_v5  ;;  %v13880_v6 = vld [vmem:[#allocation205_spill] sm:$0xff]  ;;  %v2005_v23 = vld [vmem:[%s12701_s1 + $0x3c8] sm:$0xff]  ;;  %5463 = vrsqrt.f32 %v2156_v27 }
 0x34a   :  { %v1443_v36 = vmul.f32 0.020408163, %v13880_v6  ;;  %2980 = vrot.lane.b32.xlu0 %v2576_v56, %s5922_s23  ;;  %v1730_v44 = vsub.f32 %v1442_v17, %v10056_v28  ;;  %v10128_v8 = vmul.f32 %v5446_v38, %v2003_v51  ;;  %v10130_v48 = vmul.f32 %v5448_v39, %v2004_v45  ;;  %v5452_v63 = vpop.eup %5451  ;;  %v13881_v0 = vld [vmem:[#allocation207_spill] sm:$0xff]  ;;  %v2006_v56 = vld [vmem:[%s12701_s1 + $0x3d0] sm:$0xff] }
 0x34b   :  { %v2158_v49 = vadd.f32 1e-05, %v1870_v43  ;;  %v1872_v15 = vmax.f32 %v1728_v37, 0.0  ;;  %v1444_v5 = vmul.f32 0.020408163, %v13881_v0  ;;  %v2578_v40 = vmul.f32 %v10100_v50, %v9499_v29  ;;  %v10147_v39 = vpop.permute.xlu1 %2858  ;;  %v13884_v45 = vld [vmem:[#allocation139_spill] sm:$0xff] }
 0x34c   :  { %v10140_v27 = vmul.f32 %v10109_v18, %v10109_v18  ;;  %v10144_v28 = vmul.f32 %v10112_v41, %v10112_v41  ;;  %5465 = vrsqrt.f32 %v2157_v7  ;;  %13882 = vst [vmem:[#allocation153_spill] sm:$0xff] %v10147_v39  ;;  %v10149_v38 = vpop.permute.xlu0 %2864  ;;  %v10151_v29 = vmul.f32 %v5450_v16, %v2005_v23  ;;  %v2007_v7 = vld [vmem:[%s12701_s1 + $0x3d8] sm:$0xff] }
 0x34d   :  { %2982 = vrot.lane.b32.xlu1 %v2577_v30, %s5922_s23  ;;  %13883 = vst [vmem:[#allocation182_spill] sm:$0xff] %v10149_v38  ;;  %v5454_v17 = vpop.eup %5453  ;;  %v2159_v43 = vadd.f32 1e-05, %v1871_v9  ;;  %v1873_v37 = vmax.f32 %v1729_v54, 0.0  ;;  %v1731_v51 = vsub.f32 %v1443_v36, %v10022_v10  ;;  %v1445_v0 = vmul.f32 0.020408163, %v13884_v45 }
 0x34e   :  { %2984 = vrot.lane.b32.xlu0 %v2578_v40, %s5922_s23  ;;  %v1874_v30 = vmax.f32 %v1730_v44, 0.0  ;;  %v2579_v6 = vmul.f32 %v10128_v8, %v9462_v53  ;;  %v2580_v16 = vmul.f32 %v10130_v48, %v9589_v59  ;;  %v10163_v23 = vmul.f32 %v5452_v63, %v2006_v56  ;;  %v5456_v54 = vpop.eup %5455  ;;  %v13885_v9 = vld [vmem:[#allocation111_spill] sm:$0xff]  ;;  %v2008_v45 = vld [vmem:[%s12701_s1 + $0x3e0] sm:$0xff]  ;;  %v13886_v44 = vld [vmem:[#allocation96_spill] sm:$0xff] }
 0x34f   :  { %5467 = vrsqrt.f32 %v2158_v49  ;;  %v2160_v10 = vadd.f32 1e-05, %v1872_v15  ;;  %v1732_v36 = vsub.f32 %v1444_v5, %v10092_v4  ;;  %v1446_v40 = vmul.f32 0.020408163, %v13885_v9  ;;  %v13887_v53 = vld [vmem:[#allocation97_spill] sm:$0xff]  ;;  %v10177_v59 = vpop.permute.xlu1 %2862 }
 0x350   :  { %v10171_v39 = vmul.f32 0.020408163, %v13886_v44  ;;  %v10174_v38 = vmul.f32 0.020408163, %v13887_v53  ;;  %13888 = vst [vmem:[#allocation83_spill] sm:$0xff] %v10177_v59  ;;  %v10179_v63 = vpop.permute.xlu0 %2868  ;;  %v2581_v4 = vmul.f32 %v10151_v29, %v9558_v25  ;;  %v10183_v49 = vmul.f32 %v5454_v17, %v2007_v7  ;;  %v13890_v59 = vld [vmem:[#allocation210_spill] sm:$0xff] }
 0x351   :  { %2986 = vrot.lane.b32.xlu1 %v2579_v6, %s5922_s23  ;;  %13889 = vst [vmem:[#allocation179_spill] sm:$0xff] %v10179_v63  ;;  %v5458_v15 = vpop.eup %5457  ;;  %5469 = vrsqrt.f32 %v2159_v43  ;;  %v2161_v5 = vadd.f32 1e-05, %v1873_v37  ;;  %v1875_v56 = vmax.f32 %v1731_v51, 0.0  ;;  %v1733_v9 = vsub.f32 %v1445_v0, %v10075_v58  ;;  %v2009_v6 = vld [vmem:[%s12701_s1 + $0x3e8] sm:$0xff]  ;;  %v2010_v43 = vld [vmem:[%s12701_s1 + $0x3f0] sm:$0xff] }
 0x352   :  { %2988 = vrot.lane.b32.xlu0 %v2580_v16, %s5922_s23  ;;  %v5460_v44 = vpop.eup %5459  ;;  %v2162_v53 = vadd.f32 1e-05, %v1874_v30  ;;  %v1447_v63 = vmul.f32 0.020408163, %v13890_v59  ;;  %v2582_v25 = vmul.f32 %v10163_v23, %v9633_v52  ;;  %v10193_v17 = vmul.f32 %v5456_v54, %v2008_v45  ;;  %v13892_v51 = vld [vmem:[#allocation223_spill] sm:$0xff]  ;;  %v13893_v30 = vld [vmem:[#allocation100_spill] sm:$0xff] }
 0x353   :  { %5471 = vrsqrt.f32 %v2160_v10  ;;  %v1876_v58 = vmax.f32 %v1732_v36, 0.0  ;;  %v1734_v37 = vsub.f32 %v1446_v40, %v10144_v28  ;;  %v1448_v0 = vmul.f32 0.020408163, %v13892_v51  ;;  %v10206_v52 = vpop.permute.xlu1 %2866  ;;  %v13896_v51 = vld [vmem:[#allocation212_spill] sm:$0xff] }
 0x354   :  { %13891 = vst [vmem:[#allocation156_spill] sm:$0xff] %v10193_v17  ;;  %v1592_v7 = vmul.f32 %v10174_v38, %v10174_v38  ;;  %v10203_v16 = vmul.f32 0.020408163, %v13893_v30  ;;  %13894 = vst [vmem:[#allocation189_spill] sm:$0xff] %v10206_v52  ;;  %v10208_v54 = vpop.permute.xlu0 %2872  ;;  %v2583_v10 = vmul.f32 %v10183_v49, %v9594_v57  ;;  %v10212_v36 = vmul.f32 %v5458_v15, %v2009_v6  ;;  %v2011_v57 = vld [vmem:[%s12701_s1 + $0x3f8] sm:$0xff]  ;;  %v13897_v6 = vld [vmem:[#allocation11_spill] sm:$0xff] }
 0x355   :  { %2990 = vrot.lane.b32.xlu1 %v2581_v4, %s5922_s23  ;;  %13895 = vst [vmem:[#allocation52_spill] sm:$0xff] %v10208_v54  ;;  %5473 = vrsqrt.f32 %v2161_v5  ;;  %v2163_v28 = vadd.f32 1e-05, %v1875_v56  ;;  %v1877_v40 = vmax.f32 %v1733_v9, 0.0  ;;  %v10215_v45 = vmul.f32 %v5460_v44, %v2010_v43  ;;  %v5462_v59 = vpop.eup %5461 }
 0x356   :  { %2992 = vrot.lane.b32.xlu0 %v2582_v25, %s5922_s23  ;;  %5475 = vrsqrt.f32 %v2162_v53  ;;  %v1735_v4 = vsub.f32 %v1447_v63, %v10140_v27  ;;  %v1449_v30 = vmul.f32 0.020408163, %v13896_v51  ;;  %v2584_v52 = vmul.f32 %v10193_v17, %v9700_v14  ;;  %v5464_v15 = vpop.eup %5463  ;;  %v2012_v53 = vld [vmem:[%s12701_s1 + $0x400] sm:$0xff]  ;;  %v13898_v63 = vld [vmem:[#allocation99_spill] sm:$0xff] }
 0x357   :  { %v2164_v5 = vadd.f32 1e-05, %v1876_v58  ;;  %v1878_v56 = vmax.f32 %v1734_v37, 0.0  ;;  %v1736_v9 = vsub.f32 %v1448_v0, %v1592_v7  ;;  %v1450_v44 = vmul.f32 0.020408163, %v13897_v6  ;;  %v10236_v43 = vpop.permute.xlu1 %2870 }
 0x358   :  { %v1593_v27 = vmul.f32 %v10171_v39, %v10171_v39  ;;  %v10231_v25 = vmul.f32 0.020408163, %v13898_v63  ;;  %v1594_v14 = vmul.f32 %v10203_v16, %v10203_v16  ;;  %13899 = vst [vmem:[#allocation84_spill] sm:$0xff] %v10236_v43  ;;  %v10238_v58 = vpop.permute.xlu0 %2876  ;;  %v2585_v37 = vmul.f32 %v10212_v36, %v9692_v12  ;;  %v2013_v12 = vld [vmem:[%s12701_s1 + $0x408] sm:$0xff] }
 0x359   :  { %2994 = vrot.lane.b32.xlu1 %v2583_v10, %s5922_s23  ;;  %13900 = vst [vmem:[#allocation85_spill] sm:$0xff] %v10238_v58  ;;  %v5466_v0 = vpop.eup %5465  ;;  %5477 = vrsqrt.f32 %v2163_v28  ;;  %v2165_v7 = vadd.f32 1e-05, %v1877_v40  ;;  %v2586_v51 = vmul.f32 %v10215_v45, %v9768_v22  ;;  %v10245_v6 = vmul.f32 %v5462_v59, %v2011_v57  ;;  %v13901_v10 = vld [vmem:[#allocation211_spill] sm:$0xff] }
 0x35a   :  { %2996 = vrot.lane.b32.xlu0 %v2584_v52, %s5922_s23  ;;  %v1879_v63 = vmax.f32 %v1735_v4, 0.0  ;;  %v1737_v54 = vsub.f32 %v1449_v30, %v1593_v27  ;;  %v1451_v17 = vmul.f32 0.020408163, %v13901_v10  ;;  %v10248_v43 = vmul.f32 %v5464_v15, %v2012_v53  ;;  %v2014_v30 = vld [vmem:[%s12701_s1 + $0x410] sm:$0xff] }
 0x35b   :  { %5479 = vrsqrt.f32 %v2164_v5  ;;  %v2166_v28 = vadd.f32 1e-05, %v1878_v56  ;;  %v1880_v40 = vmax.f32 %v1736_v9, 0.0  ;;  %v1738_v58 = vsub.f32 %v1450_v44, %v1594_v14  ;;  %v10256_v59 = vpop.permute.xlu1 %2874 }
 0x35c   :  { %v5468_v52 = vpop.eup %5467  ;;  %v1595_v22 = vmul.f32 %v10231_v25, %v10231_v25  ;;  %v10258_v4 = vpop.permute.xlu0 %2880  ;;  %5481 = vrsqrt.f32 %v2165_v7  ;;  %v2587_v57 = vmul.f32 %v10245_v6, %v9735_v34  ;;  %v10266_v15 = vmul.f32 %v5466_v0, %v2013_v12  ;;  %v2015_v7 = vld [vmem:[%s12701_s1 + $0x418] sm:$0xff] }
 0x35d   :  { %2998 = vrot.lane.b32.xlu1 %v2585_v37, %s5922_s23  ;;  %v2167_v56 = vadd.f32 1e-05, %v1879_v63  ;;  %v1881_v9 = vmax.f32 %v1737_v54, 0.0  ;;  %v2588_v53 = vmul.f32 %v10248_v43, %v9798_v19  ;;  %5483 = vrsqrt.f32 %v2166_v28  ;;  %v2016_v19 = vld [vmem:[%s12701_s1 + $0x420] sm:$0xff] }
 0x35e   :  { %3000 = vrot.lane.b32.xlu0 %v2586_v51, %s5922_s23  ;;  %v5470_v5 = vpop.eup %5469  ;;  %v1739_v44 = vsub.f32 %v1451_v17, %v1595_v22  ;;  %v2168_v27 = vadd.f32 1e-05, %v1880_v40  ;;  %v1882_v14 = vmax.f32 %v1738_v58, 0.0  ;;  %v10270_v37 = vmul.f32 %v5468_v52, %v2014_v30  ;;  %v2017_v22 = vld [vmem:[%s12701_s1 + $0x428] sm:$0xff] }
 0x35f   :  { %v10276_v34 = vpop.permute.xlu1 %2878  ;;  %v2589_v17 = vmul.f32 %v10266_v15, %v9795_v11  ;;  %5485 = vrsqrt.f32 %v2167_v56  ;;  %v2169_v58 = vadd.f32 1e-05, %v1881_v9  ;;  %v10286_v10 = vmul.f32 %v5470_v5, %v2015_v7 }
 0x360   :  { %v5472_v51 = vpop.eup %5471  ;;  %v10278_v0 = vpop.permute.xlu0 %2884  ;;  %v1883_v63 = vmax.f32 %v1739_v44, 0.0  ;;  %5487 = vrsqrt.f32 %v2168_v27  ;;  %v2170_v28 = vadd.f32 1e-05, %v1882_v14  ;;  %v2590_v40 = vmul.f32 %v10270_v37, %v9864_v1  ;;  %v2019_v27 = vld [vmem:[%s12701_s1 + $0x438] sm:$0xff] }
 0x361   :  { %3002 = vrot.lane.b32.xlu1 %v2587_v57, %s5922_s23  ;;  %v10290_v52 = vmul.f32 %v5472_v51, %v2016_v19  ;;  %v2018_v57 = vld [vmem:[%s12701_s1 + $0x430] sm:$0xff]  ;;  %5489 = vrsqrt.f32 %v2169_v58  ;;  %v2591_v56 = vmul.f32 %v10286_v10, %v9861_v26  ;;  %v2020_v26 = vld [vmem:[%s12701_s1 + $0x440] sm:$0xff] }
 0x362   :  { %3004 = vrot.lane.b32.xlu0 %v2588_v53, %s5922_s23  ;;  %v5474_v54 = vpop.eup %5473  ;;  %v2171_v1 = vadd.f32 1e-05, %v1883_v63  ;;  %5491 = vrsqrt.f32 %v2170_v28  ;;  %v2021_v63 = vld [vmem:[%s12701_s1 + $0x448] sm:$0xff] }
 0x363   :  { %v5476_v12 = vpop.eup %5475  ;;  %v10296_v11 = vpop.permute.xlu1 %2882  ;;  %v10306_v9 = vmul.f32 %v5474_v54, %v2017_v22  ;;  %v2592_v44 = vmul.f32 %v10290_v52, %v9963_v46 }
 0x364   :  { %v10298_v30 = vpop.permute.xlu0 %2888  ;;  %v10310_v53 = vmul.f32 %v5476_v12, %v2018_v57  ;;  %5493 = vrsqrt.f32 %v2171_v1 }
 0x365   :  { %3006 = vrot.lane.b32.xlu1 %v2589_v17, %s5922_s23  ;;  %v2593_v19 = vmul.f32 %v10306_v9, %v9895_v31  ;;  %v2022_v31 = vld [vmem:[%s12701_s1 + $0x450] sm:$0xff] }
 0x366   :  { %3008 = vrot.lane.b32.xlu0 %v2590_v40, %s5922_s23  ;;  %v5478_v5 = vpop.eup %5477  ;;  %v2594_v54 = vmul.f32 %v10310_v53, %v10002_v32 }
 0x367   :  { %v10316_v7 = vpop.permute.xlu1 %2886  ;;  %v10326_v17 = vmul.f32 %v5478_v5, %v2019_v27 }
 0x368   :  { %v5480_v14 = vpop.eup %5479  ;;  %v10318_v51 = vpop.permute.xlu0 %2892 }
 0x369   :  { %3010 = vrot.lane.b32.xlu1 %v2591_v56, %s5922_s23  ;;  %v5482_v46 = vpop.eup %5481  ;;  %v10330_v58 = vmul.f32 %v5480_v14, %v2020_v26  ;;  %v2595_v32 = vmul.f32 %v10326_v17, %v9974_v35  ;;  %v2023_v56 = vld [vmem:[%s12701_s1 + $0x458] sm:$0xff]  ;;  %v2024_v35 = vld [vmem:[%s12701_s1 + $0x460] sm:$0xff] }
 0x36a   :  { %3012 = vrot.lane.b32.xlu0 %v2592_v44, %s5922_s23  ;;  %v5484_v12 = vpop.eup %5483  ;;  %v10346_v22 = vmul.f32 %v5482_v46, %v2021_v63  ;;  %v2025_v63 = vld [vmem:[%s12701_s1 + $0x468] sm:$0xff] }
 0x36b   :  { %v10336_v28 = vpop.permute.xlu1 %2890  ;;  %v2596_v5 = vmul.f32 %v10330_v58, %v10043_v21  ;;  %v10350_v1 = vmul.f32 %v5484_v12, %v2022_v31 }
 0x36c   :  { %13902 = vst [vmem:[#allocation188_spill] sm:$0xff] %v10336_v28  ;;  %v10338_v40 = vpop.permute.xlu0 %2896  ;;  %v5486_v57 = vpop.eup %5485  ;;  %v2597_v21 = vmul.f32 %v10346_v22, %v10032_v3  ;;  %v2026_v3 = vld [vmem:[%s12701_s1 + $0x470] sm:$0xff]  ;;  %v14056_v28 = vld [vmem:[#allocation39_spill] sm:$0xff] }
 0x36d   :  { %3014 = vrot.lane.b32.xlu1 %v2593_v19, %s5922_s23  ;;  %v5488_v44 = vpop.eup %5487  ;;  %v10366_v26 = vmul.f32 %v5486_v57, %v2023_v56  ;;  %v2598_v19 = vmul.f32 %v10350_v1, %v10112_v41 }
 0x36e   :  { %3016 = vrot.lane.b32.xlu0 %v2594_v54, %s5922_s23  ;;  %v5490_v46 = vpop.eup %5489  ;;  %v10370_v54 = vmul.f32 %v5488_v44, %v2024_v35  ;;  %v2027_v35 = vld [vmem:[%s12701_s1 + $0x478] sm:$0xff] }
 0x36f   :  { %v10356_v27 = vpop.permute.xlu1 %2894  ;;  %v5492_v12 = vpop.eup %5491  ;;  %v2599_v41 = vmul.f32 %v10366_v26, %v10109_v18  ;;  %v10386_v57 = vmul.f32 %v5490_v46, %v2025_v63 }
 0x370   :  { %13903 = vst [vmem:[#allocation186_spill] sm:$0xff] %v10356_v27  ;;  %v10358_v14 = vpop.permute.xlu0 %2900  ;;  %v2600_v56 = vmul.f32 %v10370_v54, %v10174_v38  ;;  %v10390_v44 = vmul.f32 %v5492_v12, %v2026_v3  ;;  %v14047_v27 = vld [vmem:[#allocation104_spill] sm:$0xff] }
 0x371   :  { %3018 = vrot.lane.b32.xlu1 %v2595_v32, %s5922_s23  ;;  %13904 = vst [vmem:[#allocation191_spill] sm:$0xff] %v10358_v14  ;;  %v2601_v18 = vmul.f32 %v10386_v57, %v10171_v39  ;;  %v14050_v14 = vld [vmem:[#allocation8_spill] sm:$0xff] }
 0x372   :  { %3020 = vrot.lane.b32.xlu0 %v2596_v5, %s5922_s23  ;;  %v5494_v5 = vpop.eup %5493  ;;  %v2602_v38 = vmul.f32 %v10390_v44, %v10203_v16  ;;  %v13914_v16 = vld [vmem:[#allocation120_spill] sm:$0xff] }
 0x373   :  { %v10376_v31 = vpop.permute.xlu1 %2898  ;;  %v10403_v46 = vmul.f32 %v5494_v5, %v2027_v35  ;;  %v13913_v5 = vld [vmem:[#allocation123_spill] sm:$0xff] }
 0x374   :  { %13905 = vst [vmem:[#allocation161_spill] sm:$0xff] %v10376_v31  ;;  %v10378_v32 = vpop.permute.xlu0 %2904  ;;  %v14044_v31 = vld [vmem:[#allocation215_spill] sm:$0xff] }
 0x375   :  { %3022 = vrot.lane.b32.xlu1 %v2597_v21, %s5922_s23  ;;  %13906 = vst [vmem:[#allocation164_spill] sm:$0xff] %v10378_v32  ;;  %v2603_v3 = vmul.f32 %v10403_v46, %v10231_v25  ;;  %v14045_v32 = vld [vmem:[#allocation98_spill] sm:$0xff] }
 0x376   :  { %3024 = vrot.lane.b32.xlu0 %v2598_v19, %s5922_s23 }
 0x377   :  { %v10396_v21 = vpop.permute.xlu1 %2902 }
 0x378   :  { %13907 = vst [vmem:[#allocation86_spill] sm:$0xff] %v10396_v21  ;;  %v10398_v19 = vpop.permute.xlu0 %2908  ;;  %v14041_v21 = vld [vmem:[#allocation4_spill] sm:$0xff] }
 0x379   :  { %3026 = vrot.lane.b32.xlu1 %v2599_v41, %s5922_s23  ;;  %13908 = vst [vmem:[#allocation87_spill] sm:$0xff] %v10398_v19  ;;  %v14042_v19 = vld [vmem:[#allocation15_spill] sm:$0xff] }
 0x37a   :  { %3028 = vrot.lane.b32.xlu0 %v2600_v56, %s5922_s23 }
 0x37b   :  { %v10408_v63 = vpop.permute.xlu1 %2906 }
 0x37c   :  { %13909 = vst [vmem:[#allocation55_spill] sm:$0xff] %v10408_v63  ;;  %v10410_v12 = vpop.permute.xlu0 %2912 }
 0x37d   :  { %3030 = vrot.lane.b32.xlu1 %v2601_v18, %s5922_s23  ;;  %13910 = vst [vmem:[#allocation159_spill] sm:$0xff] %v10410_v12  ;;  %v13917_v18 = vld [vmem:[#allocation218_spill] sm:$0xff] }
 0x37e   :  { %3032 = vrot.lane.b32.xlu0 %v2602_v38, %s5922_s23  ;;  %v13918_v38 = vld [vmem:[#allocation125_spill] sm:$0xff]  ;;  %v14040_v12 = vld [vmem:[#allocation102_spill] sm:$0xff] }
 0x37f   :  { %v10416_v41 = vpop.permute.xlu1 %2910 }
 0x380   :  { %13911 = vst [vmem:[#allocation162_spill] sm:$0xff] %v10416_v41  ;;  %v10418_v39 = vpop.permute.xlu0 %2916 }
 0x381   :  { %3034 = vrot.lane.b32.xlu1 %v2603_v3, %s5922_s23  ;;  %13912 = vst [vmem:[#allocation88_spill] sm:$0xff] %v10418_v39  ;;  %v13921_v3 = vld [vmem:[#allocation103_spill] sm:$0xff]  ;;  %v13923_v39 = vld [vmem:[#allocation128_spill] sm:$0xff] }
 0x382   :  { %3326 = vperm.xlu0 %5203, %v13913_v5  }
 0x383   :  { %v10422_v56 = vpop.permute.xlu1 %2914 }
 0x384   :  { %13915 = vst [vmem:[#allocation196_spill] sm:$0xff] %v10422_v56  ;;  %v10424_v35 = vpop.permute.xlu0 %2920 }
 0x385   :  { %3331 = vperm.xlu1 %5204, %v13914_v16   ;;  %13916 = vst [vmem:[#allocation170_spill] sm:$0xff] %v10424_v35  ;;  %v13925_v16 = vld [vmem:[#allocation136_spill] sm:$0xff]  ;;  %v13927_v35 = vld [vmem:[#allocation133_spill] sm:$0xff] }
 0x386   :  { %3341 = vperm.xlu0 %5203, %v13917_v18  }
 0x387   :  { %v10428_v63 = vpop.permute.xlu1 %2918 }
 0x388   :  { %13919 = vst [vmem:[#allocation198_spill] sm:$0xff] %v10428_v63  ;;  %v10430_v25 = vpop.permute.xlu0 %2924 }
 0x389   :  { %3336 = vperm.xlu1 %5204, %v13918_v38   ;;  %13920 = vst [vmem:[#allocation201_spill] sm:$0xff] %v10430_v25  ;;  %v13929_v38 = vld [vmem:[#allocation106_spill] sm:$0xff] }
 0x38a   :  { %3351 = vperm.xlu0 %5203, %v13921_v3   ;;  %v13931_v25 = vld [vmem:[#allocation134_spill] sm:$0xff] }
 0x38b   :  { %v10433_v41 = vpop.permute.xlu1 %2922 }
 0x38c   :  { %13922 = vst [vmem:[#allocation195_spill] sm:$0xff] %v10433_v41  ;;  %v10436_v5 = vpop.permute.xlu0 %2928  ;;  %v13933_v41 = vld [vmem:[#allocation144_spill] sm:$0xff] }
 0x38d   :  { %3346 = vperm.xlu1 %5204, %v13923_v39   ;;  %13924 = vst [vmem:[#allocation220_spill] sm:$0xff] %v10436_v5  ;;  %v13935_v5 = vld [vmem:[#allocation141_spill] sm:$0xff] }
 0x38e   :  { %3361 = vperm.xlu0 %5203, %v13925_v16  }
 0x38f   :  { %v10439_v56 = vpop.permute.xlu1 %2926 }
 0x390   :  { %13926 = vst [vmem:[#allocation197_spill] sm:$0xff] %v10439_v56  ;;  %v10442_v18 = vpop.permute.xlu0 %2932  ;;  %v13937_v56 = vld [vmem:[#allocation114_spill] sm:$0xff] }
 0x391   :  { %3356 = vperm.xlu1 %5204, %v13927_v35   ;;  %13928 = vst [vmem:[#allocation208_spill] sm:$0xff] %v10442_v18  ;;  %v13939_v18 = vld [vmem:[#allocation142_spill] sm:$0xff] }
 0x392   :  { %3371 = vperm.xlu0 %5203, %v13929_v38  }
 0x393   :  { %v10445_v63 = vpop.permute.xlu1 %2930 }
 0x394   :  { %13930 = vst [vmem:[#allocation126_spill] sm:$0xff] %v10445_v63  ;;  %v10448_v3 = vpop.permute.xlu0 %2936  ;;  %v13941_v63 = vld [vmem:[#allocation152_spill] sm:$0xff] }
 0x395   :  { %3366 = vperm.xlu1 %5204, %v13931_v25   ;;  %13932 = vst [vmem:[#allocation89_spill] sm:$0xff] %v10448_v3  ;;  %v13943_v3 = vld [vmem:[#allocation149_spill] sm:$0xff] }
 0x396   :  { %3381 = vperm.xlu0 %5203, %v13933_v41  }
 0x397   :  { %v10451_v39 = vpop.permute.xlu1 %2934 }
 0x398   :  { %13934 = vst [vmem:[#allocation57_spill] sm:$0xff] %v10451_v39  ;;  %v10454_v16 = vpop.permute.xlu0 %2940  ;;  %v13945_v39 = vld [vmem:[#allocation157_spill] sm:$0xff] }
 0x399   :  { %3376 = vperm.xlu1 %5204, %v13935_v5   ;;  %13936 = vst [vmem:[#allocation206_spill] sm:$0xff] %v10454_v16  ;;  %v13947_v16 = vld [vmem:[#allocation150_spill] sm:$0xff] }
 0x39a   :  { %3391 = vperm.xlu0 %5203, %v13937_v56  }
 0x39b   :  { %v10457_v35 = vpop.permute.xlu1 %2938 }
 0x39c   :  { %13938 = vst [vmem:[#allocation90_spill] sm:$0xff] %v10457_v35  ;;  %v10460_v38 = vpop.permute.xlu0 %2944  ;;  %v13949_v35 = vld [vmem:[#allocation160_spill] sm:$0xff] }
 0x39d   :  { %3386 = vperm.xlu1 %5204, %v13939_v18   ;;  %13940 = vst [vmem:[#allocation177_spill] sm:$0xff] %v10460_v38  ;;  %v13951_v38 = vld [vmem:[#allocation155_spill] sm:$0xff] }
 0x39e   :  { %3401 = vperm.xlu0 %5203, %v13941_v63  }
 0x39f   :  { %v10463_v25 = vpop.permute.xlu1 %2942 }
 0x3a0   :  { %13942 = vst [vmem:[#allocation180_spill] sm:$0xff] %v10463_v25  ;;  %v10466_v41 = vpop.permute.xlu0 %2948  ;;  %v13953_v25 = vld [vmem:[#allocation165_spill] sm:$0xff] }
 0x3a1   :  { %3396 = vperm.xlu1 %5204, %v13943_v3   ;;  %13944 = vst [vmem:[#allocation91_spill] sm:$0xff] %v10466_v41  ;;  %v13955_v41 = vld [vmem:[#allocation127_spill] sm:$0xff] }
 0x3a2   :  { %3411 = vperm.xlu0 %5203, %v13945_v39  }
 0x3a3   :  { %v10469_v5 = vpop.permute.xlu1 %2946 }
 0x3a4   :  { %13946 = vst [vmem:[#allocation9_spill] sm:$0xff] %v10469_v5  ;;  %v10472_v56 = vpop.permute.xlu0 %2952  ;;  %v13957_v5 = vld [vmem:[#allocation227_spill] sm:$0xff] }
 0x3a5   :  { %3406 = vperm.xlu1 %5204, %v13947_v16   ;;  %13948 = vst [vmem:[#allocation202_spill] sm:$0xff] %v10472_v56  ;;  %v13959_v56 = vld [vmem:[#allocation130_spill] sm:$0xff] }
 0x3a6   :  { %3421 = vperm.xlu0 %5203, %v13949_v35  }
 0x3a7   :  { %v10475_v18 = vpop.permute.xlu1 %2950 }
 0x3a8   :  { %13950 = vst [vmem:[#allocation5_spill] sm:$0xff] %v10475_v18  ;;  %v10478_v63 = vpop.permute.xlu0 %2956  ;;  %v13961_v18 = vld [vmem:[#allocation138_spill] sm:$0xff] }
 0x3a9   :  { %3416 = vperm.xlu1 %5204, %v13951_v38   ;;  %13952 = vst [vmem:[#allocation92_spill] sm:$0xff] %v10478_v63  ;;  %v13963_v63 = vld [vmem:[#allocation168_spill] sm:$0xff] }
 0x3aa   :  { %3431 = vperm.xlu0 %5203, %v13953_v25  }
 0x3ab   :  { %v10481_v3 = vpop.permute.xlu1 %2954 }
 0x3ac   :  { %13954 = vst [vmem:[#allocation204_spill] sm:$0xff] %v10481_v3  ;;  %v10484_v39 = vpop.permute.xlu0 %2960  ;;  %v13965_v3 = vld [vmem:[#allocation229_spill] sm:$0xff] }
 0x3ad   :  { %3426 = vperm.xlu1 %5204, %v13955_v41   ;;  %13956 = vst [vmem:[#allocation65_spill] sm:$0xff] %v10484_v39  ;;  %v13967_v39 = vld [vmem:[#allocation173_spill] sm:$0xff] }
 0x3ae   :  { %3441 = vperm.xlu0 %5203, %v13957_v5  }
 0x3af   :  { %v10487_v16 = vpop.permute.xlu1 %2958 }
 0x3b0   :  { %13958 = vst [vmem:[#allocation93_spill] sm:$0xff] %v10487_v16  ;;  %v10490_v35 = vpop.permute.xlu0 %2964  ;;  %v13969_v16 = vld [vmem:[#allocation50_spill] sm:$0xff] }
 0x3b1   :  { %3436 = vperm.xlu1 %5204, %v13959_v56   ;;  %13960 = vst [vmem:[#allocation131_spill] sm:$0xff] %v10490_v35  ;;  %v13971_v35 = vld [vmem:[#allocation143_spill] sm:$0xff] }
 0x3b2   :  { %3451 = vperm.xlu0 %5203, %v13961_v18  }
 0x3b3   :  { %v10493_v38 = vpop.permute.xlu1 %2962 }
 0x3b4   :  { %13962 = vst [vmem:[#allocation10_spill] sm:$0xff] %v10493_v38  ;;  %v10496_v25 = vpop.permute.xlu0 %2968  ;;  %v13973_v38 = vld [vmem:[#allocation51_spill] sm:$0xff] }
 0x3b5   :  { %3446 = vperm.xlu1 %5204, %v13963_v63   ;;  %13964 = vst [vmem:[#allocation183_spill] sm:$0xff] %v10496_v25  ;;  %v13975_v25 = vld [vmem:[#allocation146_spill] sm:$0xff] }
 0x3b6   :  { %3461 = vperm.xlu0 %5203, %v13965_v3  }
 0x3b7   :  { %v10499_v41 = vpop.permute.xlu1 %2966 }
 0x3b8   :  { %13966 = vst [vmem:[#allocation16_spill] sm:$0xff] %v10499_v41  ;;  %v10502_v5 = vpop.permute.xlu0 %2972  ;;  %v13977_v41 = vld [vmem:[#allocation190_spill] sm:$0xff] }
 0x3b9   :  { %3456 = vperm.xlu1 %5204, %v13967_v39   ;;  %13968 = vst [vmem:[#allocation203_spill] sm:$0xff] %v10502_v5  ;;  %v13979_v5 = vld [vmem:[#allocation151_spill] sm:$0xff] }
 0x3ba   :  { %3471 = vperm.xlu0 %5203, %v13969_v16  }
 0x3bb   :  { %v10505_v56 = vpop.permute.xlu1 %2970 }
 0x3bc   :  { %13970 = vst [vmem:[#allocation117_spill] sm:$0xff] %v10505_v56  ;;  %v10508_v18 = vpop.permute.xlu0 %2976  ;;  %v13981_v56 = vld [vmem:[#allocation154_spill] sm:$0xff] }
 0x3bd   :  { %3466 = vperm.xlu1 %5204, %v13971_v35   ;;  %13972 = vst [vmem:[#allocation66_spill] sm:$0xff] %v10508_v18  ;;  %v13983_v18 = vld [vmem:[#allocation187_spill] sm:$0xff] }
 0x3be   :  { %3481 = vperm.xlu0 %5203, %v13973_v38  }
 0x3bf   :  { %v10511_v63 = vpop.permute.xlu1 %2974 }
 0x3c0   :  { %13974 = vst [vmem:[#allocation94_spill] sm:$0xff] %v10511_v63  ;;  %v10514_v3 = vpop.permute.xlu0 %2980  ;;  %v13985_v63 = vld [vmem:[#allocation53_spill] sm:$0xff] }
 0x3c1   :  { %3476 = vperm.xlu1 %5204, %v13975_v25   ;;  %13976 = vst [vmem:[#allocation95_spill] sm:$0xff] %v10514_v3  ;;  %v13987_v3 = vld [vmem:[#allocation192_spill] sm:$0xff] }
 0x3c2   :  { %3491 = vperm.xlu0 %5203, %v13977_v41  }
 0x3c3   :  { %v10517_v39 = vpop.permute.xlu1 %2978 }
 0x3c4   :  { %13978 = vst [vmem:[#allocation205_spill] sm:$0xff] %v10517_v39  ;;  %v10520_v16 = vpop.permute.xlu0 %2984  ;;  %v13989_v39 = vld [vmem:[#allocation54_spill] sm:$0xff] }
 0x3c5   :  { %3486 = vperm.xlu1 %5204, %v13979_v5   ;;  %13980 = vst [vmem:[#allocation207_spill] sm:$0xff] %v10520_v16  ;;  %v13991_v16 = vld [vmem:[#allocation194_spill] sm:$0xff] }
 0x3c6   :  { %3501 = vperm.xlu0 %5203, %v13981_v56  }
 0x3c7   :  { %v10523_v35 = vpop.permute.xlu1 %2982 }
 0x3c8   :  { %13982 = vst [vmem:[#allocation139_spill] sm:$0xff] %v10523_v35  ;;  %v10526_v38 = vpop.permute.xlu0 %2988  ;;  %v13993_v35 = vld [vmem:[#allocation169_spill] sm:$0xff] }
 0x3c9   :  { %3496 = vperm.xlu1 %5204, %v13983_v18   ;;  %13984 = vst [vmem:[#allocation111_spill] sm:$0xff] %v10526_v38  ;;  %v13995_v38 = vld [vmem:[#allocation193_spill] sm:$0xff] }
 0x3ca   :  { %3511 = vperm.xlu0 %5203, %v13985_v63  }
 0x3cb   :  { %v10529_v25 = vpop.permute.xlu1 %2986 }
 0x3cc   :  { %13986 = vst [vmem:[#allocation96_spill] sm:$0xff] %v10529_v25  ;;  %v10532_v41 = vpop.permute.xlu0 %2992  ;;  %v13997_v25 = vld [vmem:[#allocation167_spill] sm:$0xff] }
 0x3cd   :  { %3506 = vperm.xlu1 %5204, %v13987_v3   ;;  %13988 = vst [vmem:[#allocation97_spill] sm:$0xff] %v10532_v41  ;;  %v13999_v41 = vld [vmem:[#allocation101_spill] sm:$0xff] }
 0x3ce   :  { %3521 = vperm.xlu0 %5203, %v13989_v39  }
 0x3cf   :  { %v10535_v5 = vpop.permute.xlu1 %2990 }
 0x3d0   :  { %13990 = vst [vmem:[#allocation210_spill] sm:$0xff] %v10535_v5  ;;  %v10538_v56 = vpop.permute.xlu0 %2996  ;;  %v14001_v5 = vld [vmem:[#allocation200_spill] sm:$0xff] }
 0x3d1   :  { %3516 = vperm.xlu1 %5204, %v13991_v16   ;;  %13992 = vst [vmem:[#allocation223_spill] sm:$0xff] %v10538_v56  ;;  %v14003_v56 = vld [vmem:[#allocation172_spill] sm:$0xff] }
 0x3d2   :  { %3531 = vperm.xlu0 %5203, %v13993_v35  }
 0x3d3   :  { %v10541_v18 = vpop.permute.xlu1 %2994 }
 0x3d4   :  { %13994 = vst [vmem:[#allocation100_spill] sm:$0xff] %v10541_v18  ;;  %v10544_v63 = vpop.permute.xlu0 %3000  ;;  %v14005_v18 = vld [vmem:[#allocation175_spill] sm:$0xff] }
 0x3d5   :  { %3526 = vperm.xlu1 %5204, %v13995_v38   ;;  %13996 = vst [vmem:[#allocation212_spill] sm:$0xff] %v10544_v63  ;;  %v14007_v63 = vld [vmem:[#allocation56_spill] sm:$0xff] }
 0x3d6   :  { %3541 = vperm.xlu0 %5203, %v13997_v25  }
 0x3d7   :  { %v10547_v3 = vpop.permute.xlu1 %2998 }
 0x3d8   :  { %13998 = vst [vmem:[#allocation11_spill] sm:$0xff] %v10547_v3  ;;  %v10550_v39 = vpop.permute.xlu0 %3004  ;;  %v14009_v3 = vld [vmem:[#allocation58_spill] sm:$0xff] }
 0x3d9   :  { %3536 = vperm.xlu1 %5204, %v13999_v41   ;;  %14000 = vst [vmem:[#allocation99_spill] sm:$0xff] %v10550_v39  ;;  %v14011_v39 = vld [vmem:[#allocation199_spill] sm:$0xff] }
 0x3da   :  { %3551 = vperm.xlu0 %5203, %v14001_v5  }
 0x3db   :  { %v10553_v16 = vpop.permute.xlu1 %3002 }
 0x3dc   :  { %14002 = vst [vmem:[#allocation211_spill] sm:$0xff] %v10553_v16  ;;  %v10556_v35 = vpop.permute.xlu0 %3008  ;;  %v14013_v16 = vld [vmem:[#allocation185_spill] sm:$0xff] }
 0x3dd   :  { %3546 = vperm.xlu1 %5204, %v14003_v56   ;;  %14004 = vst [vmem:[#allocation123_spill] sm:$0xff] %v10556_v35  ;;  %v14015_v35 = vld [vmem:[#allocation178_spill] sm:$0xff] }
 0x3de   :  { %3561 = vperm.xlu0 %5203, %v14005_v18  }
 0x3df   :  { %v10559_v38 = vpop.permute.xlu1 %3006 }
 0x3e0   :  { %14006 = vst [vmem:[#allocation120_spill] sm:$0xff] %v10559_v38  ;;  %v10562_v25 = vpop.permute.xlu0 %3012  ;;  %v14017_v38 = vld [vmem:[#allocation115_spill] sm:$0xff] }
 0x3e1   :  { %3556 = vperm.xlu1 %5204, %v14007_v63   ;;  %14008 = vst [vmem:[#allocation218_spill] sm:$0xff] %v10562_v25  ;;  %v14019_v25 = vld [vmem:[#allocation59_spill] sm:$0xff] }
 0x3e2   :  { %3571 = vperm.xlu0 %5203, %v14009_v3  }
 0x3e3   :  { %v10565_v41 = vpop.permute.xlu1 %3010 }
 0x3e4   :  { %14010 = vst [vmem:[#allocation125_spill] sm:$0xff] %v10565_v41  ;;  %v10568_v5 = vpop.permute.xlu0 %3016  ;;  %v14021_v41 = vld [vmem:[#allocation118_spill] sm:$0xff] }
 0x3e5   :  { %3566 = vperm.xlu1 %5204, %v14011_v39   ;;  %14012 = vst [vmem:[#allocation103_spill] sm:$0xff] %v10568_v5  ;;  %v14023_v5 = vld [vmem:[#allocation60_spill] sm:$0xff] }
 0x3e6   :  { %3581 = vperm.xlu0 %5203, %v14013_v16   ;;  %v14024_v16 = vld [vmem:[#allocation2_spill] sm:$0xff] }
 0x3e7   :  { %v10571_v56 = vpop.permute.xlu1 %3014 }
 0x3e8   :  { %14014 = vst [vmem:[#allocation128_spill] sm:$0xff] %v10571_v56  ;;  %v10574_v18 = vpop.permute.xlu0 %3020 }
 0x3e9   :  { %3576 = vperm.xlu1 %5204, %v14015_v35   ;;  %14016 = vst [vmem:[#allocation136_spill] sm:$0xff] %v10574_v18  ;;  %v14027_v18 = vld [vmem:[#allocation61_spill] sm:$0xff] }
 0x3ea   :  { %3591 = vperm.xlu0 %5203, %v14017_v38   ;;  %v14028_v38 = vld [vmem:[#allocation209_spill] sm:$0xff] }
 0x3eb   :  { %v10577_v63 = vpop.permute.xlu1 %3018 }
 0x3ec   :  { %14018 = vst [vmem:[#allocation133_spill] sm:$0xff] %v10577_v63  ;;  %v10580_v3 = vpop.permute.xlu0 %3024 }
 0x3ed   :  { %3586 = vperm.xlu1 %5204, %v14019_v25   ;;  %14020 = vst [vmem:[#allocation106_spill] sm:$0xff] %v10580_v3  ;;  %v14031_v3 = vld [vmem:[#allocation6_spill] sm:$0xff] }
 0x3ee   :  { %3601 = vperm.xlu0 %5203, %v14021_v41   ;;  %v14032_v41 = vld [vmem:[#allocation63_spill] sm:$0xff] }
 0x3ef   :  { %v10583_v39 = vpop.permute.xlu1 %3022 }
 0x3f0   :  { %14022 = vst [vmem:[#allocation134_spill] sm:$0xff] %v10583_v39  ;;  %v10587_v56 = vpop.permute.xlu0 %3028 }
 0x3f1   :  { %3596 = vperm.xlu1 %5204, %v14023_v5   ;;  %14025 = vst [vmem:[#allocation144_spill] sm:$0xff] %v10587_v56  ;;  %v14034_v5 = vld [vmem:[#allocation62_spill] sm:$0xff] }
 0x3f2   :  { %3611 = vperm.xlu0 %5203, %v14024_v16   ;;  %v14035_v56 = vld [vmem:[#allocation214_spill] sm:$0xff] }
 0x3f3   :  { %v10589_v35 = vpop.permute.xlu1 %3026 }
 0x3f4   :  { %14026 = vst [vmem:[#allocation141_spill] sm:$0xff] %v10589_v35  ;;  %v10593_v63 = vpop.permute.xlu0 %3032 }
 0x3f5   :  { %3606 = vperm.xlu1 %5204, %v14027_v18   ;;  %14029 = vst [vmem:[#allocation114_spill] sm:$0xff] %v10593_v63  ;;  %v14036_v18 = vld [vmem:[#allocation7_spill] sm:$0xff] }
 0x3f6   :  { %3621 = vperm.xlu0 %5203, %v14028_v38   ;;  %v14037_v63 = vld [vmem:[#allocation147_spill] sm:$0xff] }
 0x3f7   :  { %v10595_v25 = vpop.permute.xlu1 %3030 }
 0x3f8   :  { %14030 = vst [vmem:[#allocation142_spill] sm:$0xff] %v10595_v25 }
 0x3f9   :  { %3616 = vperm.xlu1 %5204, %v14031_v3   ;;  %v14038_v3 = vld [vmem:[#allocation213_spill] sm:$0xff] }
 0x3fa   :  { %3631 = vperm.xlu0 %5203, %v14032_v41  }
 0x3fb   :  { %v10599_v39 = vpop.permute.xlu1 %3034 }
 0x3fc   :  { %14033 = vst [vmem:[#allocation152_spill] sm:$0xff] %v10599_v39  ;;  %v14039_v39 = vld [vmem:[#allocation110_spill] sm:$0xff] }
 0x3fd   :  { %3626 = vperm.xlu1 %5204, %v14034_v5   ;;  %v10602_v16 = vpop.permute.xlu0 %3326 }
 0x3fe   :  { %3641 = vperm.xlu0 %5203, %v14035_v56  }
 0x400   :  { %v10605_v35 = vpop.permute.xlu1 %3331 }
 0x401   :  { %3636 = vperm.xlu1 %5204, %v14036_v18   ;;  %v10608_v38 = vpop.permute.xlu0 %3341 }
 0x402   :  { %3651 = vperm.xlu0 %5203, %v14037_v63  }
 0x404   :  { %v10611_v25 = vpop.permute.xlu1 %3336 }
 0x405   :  { %3646 = vperm.xlu1 %5204, %v14038_v3   ;;  %v10614_v41 = vpop.permute.xlu0 %3351 }
 0x406   :  { %3661 = vperm.xlu0 %5203, %v14039_v39  }
 0x408   :  { %v10617_v5 = vpop.permute.xlu1 %3346 }
 0x409   :  { %3656 = vperm.xlu1 %5204, %v14040_v12   ;;  %v10620_v56 = vpop.permute.xlu0 %3361 }
 0x40a   :  { %3671 = vperm.xlu0 %5203, %v14041_v21  }
 0x40c   :  { %v10623_v18 = vpop.permute.xlu1 %3356 }
 0x40d   :  { %3666 = vperm.xlu1 %5204, %v14042_v19   ;;  %v10626_v63 = vpop.permute.xlu0 %3371 }
 0x40e   :  { %14043 = vst [vmem:[#allocation149_spill] sm:$0xff] %v10626_v63  ;;  %3681 = vperm.xlu0 %5203, %v14044_v31   ;;  %v14052_v63 = vld [vmem:[#allocation216_spill] sm:$0xff] }
 0x410   :  { %v10629_v3 = vpop.permute.xlu1 %3366 }
 0x411   :  { %3676 = vperm.xlu1 %5204, %v14045_v32   ;;  %v10632_v39 = vpop.permute.xlu0 %3381 }
 0x412   :  { %14046 = vst [vmem:[#allocation157_spill] sm:$0xff] %v10632_v39  ;;  %3691 = vperm.xlu0 %5203, %v9411_v2   ;;  %v14054_v39 = vld [vmem:[#allocation21_spill] sm:$0xff] }
 0x414   :  { %v10635_v12 = vpop.permute.xlu1 %3376 }
 0x415   :  { %3686 = vperm.xlu1 %5204, %v14047_v27   ;;  %v10638_v21 = vpop.permute.xlu0 %3391 }
 0x416   :  { %14048 = vst [vmem:[#allocation150_spill] sm:$0xff] %v10638_v21  ;;  %3701 = vperm.xlu0 %5203, %v9442_v42   ;;  %v14058_v21 = vld [vmem:[#allocation14_spill] sm:$0xff] }
 0x418   :  { %v10641_v19 = vpop.permute.xlu1 %3386 }
 0x419   :  { %14049 = vst [vmem:[#allocation160_spill] sm:$0xff] %v10641_v19  ;;  %3696 = vperm.xlu1 %5204, %v14050_v14   ;;  %v10644_v31 = vpop.permute.xlu0 %3401  ;;  %v14060_v19 = vld [vmem:[#allocation116_spill] sm:$0xff] }
 0x41a   :  { %14051 = vst [vmem:[#allocation155_spill] sm:$0xff] %v10644_v31  ;;  %3711 = vperm.xlu0 %5203, %v14052_v63   ;;  %v14062_v31 = vld [vmem:[#allocation13_spill] sm:$0xff] }
 0x41c   :  { %v10647_v32 = vpop.permute.xlu1 %3396 }
 0x41d   :  { %14053 = vst [vmem:[#allocation165_spill] sm:$0xff] %v10647_v32  ;;  %3706 = vperm.xlu1 %5204, %v14054_v39   ;;  %v10650_v2 = vpop.permute.xlu0 %3411  ;;  %v14064_v32 = vld [vmem:[#allocation17_spill] sm:$0xff] }
 0x41e   :  { %14055 = vst [vmem:[#allocation127_spill] sm:$0xff] %v10650_v2  ;;  %3721 = vperm.xlu0 %5203, %v14056_v28   ;;  %v14066_v2 = vld [vmem:[#allocation71_spill] sm:$0xff] }
 0x420   :  { %v10653_v27 = vpop.permute.xlu1 %3406 }
 0x421   :  { %14057 = vst [vmem:[#allocation227_spill] sm:$0xff] %v10653_v27  ;;  %3716 = vperm.xlu1 %5204, %v14058_v21   ;;  %v10656_v42 = vpop.permute.xlu0 %3421  ;;  %v14068_v27 = vld [vmem:[#allocation19_spill] sm:$0xff] }
 0x422   :  { %14059 = vst [vmem:[#allocation130_spill] sm:$0xff] %v10656_v42  ;;  %3731 = vperm.xlu0 %5203, %v14060_v19   ;;  %v14069_v42 = vld [vmem:[#allocation20_spill] sm:$0xff] }
 0x424   :  { %v10659_v14 = vpop.permute.xlu1 %3416 }
 0x425   :  { %14061 = vst [vmem:[#allocation138_spill] sm:$0xff] %v10659_v14  ;;  %3726 = vperm.xlu1 %5204, %v14062_v31   ;;  %v10662_v63 = vpop.permute.xlu0 %3431  ;;  %v14071_v14 = vld [vmem:[#allocation221_spill] sm:$0xff] }
 0x426   :  { %14063 = vst [vmem:[#allocation168_spill] sm:$0xff] %v10662_v63  ;;  %3741 = vperm.xlu0 %5203, %v14064_v32   ;;  %v14072_v63 = vld [vmem:[#allocation228_spill] sm:$0xff] }
 0x428   :  { %v10665_v39 = vpop.permute.xlu1 %3426 }
 0x429   :  { %14065 = vst [vmem:[#allocation229_spill] sm:$0xff] %v10665_v39  ;;  %3736 = vperm.xlu1 %5204, %v14066_v2   ;;  %v10668_v28 = vpop.permute.xlu0 %3441  ;;  %v14074_v39 = vld [vmem:[#allocation23_spill] sm:$0xff] }
 0x42a   :  { %14067 = vst [vmem:[#allocation173_spill] sm:$0xff] %v10668_v28  ;;  %3751 = vperm.xlu0 %5203, %v14068_v27   ;;  %v14076_v28 = vld [vmem:[#allocation28_spill] sm:$0xff] }
 0x42c   :  { %v10671_v21 = vpop.permute.xlu1 %3436 }
 0x42d   :  { %3746 = vperm.xlu1 %5204, %v14069_v42   ;;  %v10674_v19 = vpop.permute.xlu0 %3451 }
 0x42e   :  { %14070 = vst [vmem:[#allocation50_spill] sm:$0xff] %v10674_v19  ;;  %3761 = vperm.xlu0 %5203, %v14071_v14   ;;  %v14079_v19 = vld [vmem:[#allocation30_spill] sm:$0xff] }
 0x430   :  { %v10677_v31 = vpop.permute.xlu1 %3446 }
 0x431   :  { %3756 = vperm.xlu1 %5204, %v14072_v63   ;;  %v10680_v32 = vpop.permute.xlu0 %3461 }
 0x432   :  { %14073 = vst [vmem:[#allocation143_spill] sm:$0xff] %v10680_v32  ;;  %3771 = vperm.xlu0 %5203, %v14074_v39   ;;  %v14081_v32 = vld [vmem:[#allocation119_spill] sm:$0xff] }
 0x434   :  { %v10683_v2 = vpop.permute.xlu1 %3456 }
 0x435   :  { %14075 = vst [vmem:[#allocation51_spill] sm:$0xff] %v10683_v2  ;;  %3766 = vperm.xlu1 %5204, %v14076_v28   ;;  %v10686_v27 = vpop.permute.xlu0 %3471  ;;  %v14083_v2 = vld [vmem:[#allocation75_spill] sm:$0xff] }
 0x436   :  { %14077 = vst [vmem:[#allocation146_spill] sm:$0xff] %v10686_v27  ;;  %3781 = vperm.xlu0 %5203, %v9678_v61   ;;  %v14085_v27 = vld [vmem:[#allocation33_spill] sm:$0xff] }
 0x438   :  { %v10689_v42 = vpop.permute.xlu1 %3466 }
 0x439   :  { %3776 = vperm.xlu1 %5204, %v9669_v13   ;;  %v10692_v14 = vpop.permute.xlu0 %3481 }
 0x43a   :  { %14078 = vst [vmem:[#allocation190_spill] sm:$0xff] %v10692_v14  ;;  %3791 = vperm.xlu0 %5203, %v14079_v19   ;;  %v14088_v14 = vld [vmem:[#allocation124_spill] sm:$0xff] }
 0x43c   :  { %v10695_v63 = vpop.permute.xlu1 %3476 }
 0x43d   :  { %14080 = vst [vmem:[#allocation151_spill] sm:$0xff] %v10695_v63  ;;  %3786 = vperm.xlu1 %5204, %v14081_v32   ;;  %v10698_v39 = vpop.permute.xlu0 %3491  ;;  %v14090_v63 = vld [vmem:[#allocation132_spill] sm:$0xff] }
 0x43e   :  { %14082 = vst [vmem:[#allocation154_spill] sm:$0xff] %v10698_v39  ;;  %3801 = vperm.xlu0 %5203, %v14083_v2   ;;  %v14091_v39 = vld [vmem:[#allocation31_spill] sm:$0xff] }
 0x440   :  { %v10701_v28 = vpop.permute.xlu1 %3486 }
 0x441   :  { %14084 = vst [vmem:[#allocation187_spill] sm:$0xff] %v10701_v28  ;;  %3796 = vperm.xlu1 %5204, %v14085_v27   ;;  %v10704_v61 = vpop.permute.xlu0 %3501  ;;  %v14093_v28 = vld [vmem:[#allocation225_spill] sm:$0xff] }
 0x442   :  { %14086 = vst [vmem:[#allocation53_spill] sm:$0xff] %v10704_v61  ;;  %3811 = vperm.xlu0 %5203, %v9777_v62   ;;  %v14094_v61 = vld [vmem:[#allocation34_spill] sm:$0xff] }
 0x444   :  { %v10707_v13 = vpop.permute.xlu1 %3496 }
 0x445   :  { %14087 = vst [vmem:[#allocation192_spill] sm:$0xff] %v10707_v13  ;;  %3806 = vperm.xlu1 %5204, %v14088_v14   ;;  %v10710_v19 = vpop.permute.xlu0 %3511  ;;  %v14096_v13 = vld [vmem:[#allocation226_spill] sm:$0xff] }
 0x446   :  { %14089 = vst [vmem:[#allocation54_spill] sm:$0xff] %v10710_v19  ;;  %3821 = vperm.xlu0 %5203, %v14090_v63   ;;  %v14097_v19 = vld [vmem:[#allocation163_spill] sm:$0xff] }
 0x448   :  { %v10713_v32 = vpop.permute.xlu1 %3506 }
 0x449   :  { %3816 = vperm.xlu1 %5204, %v14091_v39   ;;  %v10716_v2 = vpop.permute.xlu0 %3521 }
 0x44a   :  { %14092 = vst [vmem:[#allocation194_spill] sm:$0xff] %v10716_v2  ;;  %3831 = vperm.xlu0 %5203, %v14093_v28   ;;  %v14100_v2 = vld [vmem:[#allocation78_spill] sm:$0xff] }
 0x44c   :  { %v10719_v27 = vpop.permute.xlu1 %3516 }
 0x44d   :  { %3826 = vperm.xlu1 %5204, %v14094_v61   ;;  %v10722_v62 = vpop.permute.xlu0 %3531 }
 0x44e   :  { %14095 = vst [vmem:[#allocation169_spill] sm:$0xff] %v10722_v62  ;;  %3841 = vperm.xlu0 %5203, %v14096_v13   ;;  %v14103_v62 = vld [vmem:[#allocation79_spill] sm:$0xff] }
 0x450   :  { %v10725_v14 = vpop.permute.xlu1 %3526 }
 0x451   :  { %3836 = vperm.xlu1 %5204, %v14097_v19   ;;  %v10728_v63 = vpop.permute.xlu0 %3541 }
 0x452   :  { %14098 = vst [vmem:[#allocation193_spill] sm:$0xff] %v10728_v63  ;;  %3851 = vperm.xlu0 %5203, %v9907_v55   ;;  %v14104_v63 = vld [vmem:[#allocation137_spill] sm:$0xff] }
 0x454   :  { %v10731_v39 = vpop.permute.xlu1 %3536 }
 0x455   :  { %14099 = vst [vmem:[#allocation167_spill] sm:$0xff] %v10731_v39  ;;  %3846 = vperm.xlu1 %5204, %v14100_v2   ;;  %v10734_v28 = vpop.permute.xlu0 %3551  ;;  %v14106_v39 = vld [vmem:[#allocation140_spill] sm:$0xff] }
 0x456   :  { %14101 = vst [vmem:[#allocation101_spill] sm:$0xff] %v10734_v28  ;;  %3861 = vperm.xlu0 %5203, %v9938_v33   ;;  %v14107_v28 = vld [vmem:[#allocation176_spill] sm:$0xff] }
 0x458   :  { %v10737_v61 = vpop.permute.xlu1 %3546 }
 0x459   :  { %3856 = vperm.xlu1 %5204, %v9911_v47   ;;  %v10740_v13 = vpop.permute.xlu0 %3561 }
 0x45a   :  { %14102 = vst [vmem:[#allocation200_spill] sm:$0xff] %v10740_v13  ;;  %3871 = vperm.xlu0 %5203, %v14103_v62   ;;  %v14109_v13 = vld [vmem:[#allocation46_spill] sm:$0xff] }
 0x45c   :  { %v10743_v19 = vpop.permute.xlu1 %3556 }
 0x45d   :  { %3866 = vperm.xlu1 %5204, %v14104_v63   ;;  %v10746_v55 = vpop.permute.xlu0 %3571 }
 0x45e   :  { %14105 = vst [vmem:[#allocation172_spill] sm:$0xff] %v10746_v55  ;;  %3881 = vperm.xlu0 %5203, %v14106_v39   ;;  %v14110_v55 = vld [vmem:[#allocation181_spill] sm:$0xff] }
 0x460   :  { %v10749_v2 = vpop.permute.xlu1 %3566 }
 0x461   :  { %3876 = vperm.xlu1 %5204, %v14107_v28   ;;  %v10752_v33 = vpop.permute.xlu0 %3581 }
 0x462   :  { %14108 = vst [vmem:[#allocation175_spill] sm:$0xff] %v10752_v33  ;;  %3891 = vperm.xlu0 %5203, %v10029_v24   ;;  %v14111_v33 = vld [vmem:[#allocation145_spill] sm:$0xff] }
 0x464   :  { %v10755_v47 = vpop.permute.xlu1 %3576 }
 0x465   :  { %3886 = vperm.xlu1 %5204, %v14109_v13   ;;  %v10758_v62 = vpop.permute.xlu0 %3591 }
 0x466   :  { %3901 = vperm.xlu0 %5203, %v10065_v20  }
 0x468   :  { %v10761_v63 = vpop.permute.xlu1 %3586 }
 0x469   :  { %3896 = vperm.xlu1 %5204, %v14110_v55   ;;  %v10764_v39 = vpop.permute.xlu0 %3601 }
 0x46a   :  { %3911 = vperm.xlu0 %5203, %v10082_v60  }
 0x46c   :  { %v10767_v28 = vpop.permute.xlu1 %3596 }
 0x46d   :  { %3906 = vperm.xlu1 %5204, %v14111_v33   ;;  %v10770_v24 = vpop.permute.xlu0 %3611 }
 0x46e   :  { %3921 = vperm.xlu0 %5203, %v10128_v8  }
 0x470   :  { %v10773_v13 = vpop.permute.xlu1 %3606 }
 0x471   :  { %3916 = vperm.xlu1 %5204, %v10100_v50   ;;  %v10776_v20 = vpop.permute.xlu0 %3621 }
 0x472   :  { %14112 = vst [vmem:[#allocation56_spill] sm:$0xff] %v10776_v20  ;;  %3931 = vperm.xlu0 %5203, %v10151_v29   ;;  %v14113_v20 = vld [vmem:[#allocation156_spill] sm:$0xff] }
 0x474   :  { %v10779_v55 = vpop.permute.xlu1 %3616 }
 0x475   :  { %3926 = vperm.xlu1 %5204, %v10130_v48   ;;  %v10782_v60 = vpop.permute.xlu0 %3631 }
 0x476   :  { %3941 = vperm.xlu0 %5203, %v10183_v49  }
 0x478   :  { %v10785_v33 = vpop.permute.xlu1 %3626 }
 0x479   :  { %3936 = vperm.xlu1 %5204, %v10163_v23   ;;  %v10788_v8 = vpop.permute.xlu0 %3641 }
 0x47a   :  { %3951 = vperm.xlu0 %5203, %v10212_v36  }
 0x47c   :  { %v10791_v50 = vpop.permute.xlu1 %3636 }
 0x47d   :  { %3946 = vperm.xlu1 %5204, %v14113_v20   ;;  %v10794_v29 = vpop.permute.xlu0 %3651 }
 0x47e   :  { %3961 = vperm.xlu0 %5203, %v10245_v6  }
 0x480   :  { %v10797_v48 = vpop.permute.xlu1 %3646 }
 0x481   :  { %3956 = vperm.xlu1 %5204, %v10215_v45   ;;  %v10800_v49 = vpop.permute.xlu0 %3661 }
 0x482   :  { %3971 = vperm.xlu0 %5203, %v10266_v15  }
 0x484   :  { %v10803_v23 = vpop.permute.xlu1 %3656 }
 0x485   :  { %3966 = vperm.xlu1 %5204, %v10248_v43   ;;  %v10806_v36 = vpop.permute.xlu0 %3671 }
 0x486   :  { %3981 = vperm.xlu0 %5203, %v10286_v10  }
 0x488   :  { %v10809_v20 = vpop.permute.xlu1 %3666 }
 0x489   :  { %3976 = vperm.xlu1 %5204, %v10270_v37   ;;  %v10812_v6 = vpop.permute.xlu0 %3681 }
 0x48a   :  { %3991 = vperm.xlu0 %5203, %v10306_v9  }
 0x48c   :  { %v10815_v45 = vpop.permute.xlu1 %3676 }
 0x48d   :  { %3986 = vperm.xlu1 %5204, %v10290_v52   ;;  %v10818_v15 = vpop.permute.xlu0 %3691 }
 0x48e   :  { %14114 = vst [vmem:[#allocation58_spill] sm:$0xff] %v10818_v15  ;;  %4001 = vperm.xlu0 %5203, %v10326_v17  }
 0x490   :  { %v10821_v43 = vpop.permute.xlu1 %3686 }
 0x491   :  { %3996 = vperm.xlu1 %5204, %v10310_v53   ;;  %v10824_v10 = vpop.permute.xlu0 %3701 }
 0x492   :  { %14115 = vst [vmem:[#allocation199_spill] sm:$0xff] %v10824_v10  ;;  %4011 = vperm.xlu0 %5203, %v10346_v22  }
 0x494   :  { %v10827_v37 = vpop.permute.xlu1 %3696 }
 0x495   :  { %4006 = vperm.xlu1 %5204, %v10330_v58   ;;  %v10830_v9 = vpop.permute.xlu0 %3711  ;;  %v5634_v58 = vld [vmem:[%s12701_s1 + $0x8] sm:$0xff] }
 0x496   :  { %14116 = vst [vmem:[#allocation185_spill] sm:$0xff] %v10830_v9  ;;  %4021 = vperm.xlu0 %5203, %v10366_v26   ;;  %v14120_v26 = vld [vmem:[#allocation64_spill] sm:$0xff] }
 0x497   :  { %v3181_v9 = vsub.f32 %v5634_v58, %v14120_v26  ;;  %v14124_v58 = vld [vmem:[#allocation12_spill] sm:$0xff] }
 0x498   :  { %v10833_v52 = vpop.permute.xlu1 %3706 }
 0x499   :  { %4016 = vperm.xlu1 %5204, %v10350_v1   ;;  %v10836_v17 = vpop.permute.xlu0 %3721 }
 0x49a   :  { %14117 = vst [vmem:[#allocation178_spill] sm:$0xff] %v10836_v17  ;;  %4031 = vperm.xlu0 %5203, %v10386_v57   ;;  %v5924_v57 = vmov 1   ;;  %v5636_v17 = vld [vmem:[%s12701_s1 + $0x20] sm:$0xff] }
 0x49b   :  { %v3184_v26 = vsub.f32 %v5636_v17, %v14124_v58 }
 0x49c   :  { %v10839_v53 = vpop.permute.xlu1 %3716 }
 0x49d   :  { %14118 = vst [vmem:[#allocation115_spill] sm:$0xff] %v10839_v53  ;;  %4026 = vperm.xlu1 %5204, %v10370_v54   ;;  %v10842_v22 = vpop.permute.xlu0 %3731  ;;  %v5635_v54 = vld [vmem:[%s12701_s1] sm:$0xff] }
 0x49e   :  { %14119 = vst [vmem:[#allocation59_spill] sm:$0xff] %v10842_v22  ;;  %4041 = vperm.xlu0 %5203, %v10403_v46   ;;  %v14123_v46 = vld [vmem:[#allocation107_spill] sm:$0xff] }
 0x49f   :  { %v3180_v22 = vsub.f32 %v5635_v54, %v14123_v46  ;;  %v5638_v54 = vld [vmem:[%s12701_s1 + $0x30] sm:$0xff] }
 0x4a0   :  { %v10849_v10 = vpop.permute.xlu1 %3726  ;;  %v14128_v46 = vld [vmem:[#allocation112_spill] sm:$0xff] }
 0x4a1   :  { %14121 = vst [vmem:[#allocation118_spill] sm:$0xff] %v10849_v10  ;;  %4036 = vperm.xlu1 %5204, %v10390_v44   ;;  %v10852_v1 = vpop.permute.xlu0 %3741  ;;  %v3186_v15 = vsub.f32 %v5638_v54, %v14128_v46 }
 0x4a2   :  { %14122 = vst [vmem:[#allocation60_spill] sm:$0xff] %v10852_v1  ;;  %5206 = vset.pattern.permute.xlu0 %v5924_v57  ;;  %v14127_v1 = vld [vmem:[#allocation109_spill] sm:$0xff] }
 0x4a3   :  { %4195 = vperm.xlu0 %5206, %v3181_v9   ;;  %v5637_v9 = vld [vmem:[%s12701_s1 + $0x10] sm:$0xff] }
 0x4a4   :  { %v10862_v10 = vpop.permute.xlu1 %3736  ;;  %v3182_v53 = vsub.f32 %v5637_v9, %v14127_v1  ;;  %v5640_v1 = vld [vmem:[%s12701_s1 + $0x40] sm:$0xff]  ;;  %v14132_v9 = vld [vmem:[#allocation105_spill] sm:$0xff] }
 0x4a5   :  { %14125 = vst [vmem:[#allocation2_spill] sm:$0xff] %v10862_v10  ;;  %5205 = vset.pattern.permute.xlu1 %v5924_v57  ;;  %v10864_v44 = vpop.permute.xlu0 %3751  ;;  %v14131_v57 = vld [vmem:[#allocation67_spill] sm:$0xff] }
 0x4a6   :  { %14126 = vst [vmem:[#allocation61_spill] sm:$0xff] %v10864_v44  ;;  %4190 = vperm.xlu1 %5205, %v3180_v22   ;;  %v5639_v22 = vld [vmem:[%s12701_s1 + $0x18] sm:$0xff]  ;;  %v3188_v44 = vsub.f32 %v5640_v1, %v14132_v9 }
 0x4a7   :  { %4210 = vperm.xlu0 %5206, %v3184_v26   ;;  %v3183_v26 = vsub.f32 %v5639_v22, %v14131_v57  ;;  %v5642_v22 = vld [vmem:[%s12701_s1 + $0x50] sm:$0xff]  ;;  %v14136_v57 = vld [vmem:[#allocation18_spill] sm:$0xff] }
 0x4a8   :  { %v10874_v17 = vpop.permute.xlu1 %3746 }
 0x4a9   :  { %14129 = vst [vmem:[#allocation209_spill] sm:$0xff] %v10874_v17  ;;  %v10876_v58 = vpop.permute.xlu0 %3761 }
 0x4aa   :  { %14130 = vst [vmem:[#allocation6_spill] sm:$0xff] %v10876_v58  ;;  %4200 = vperm.xlu1 %5205, %v3182_v53   ;;  %v14135_v53 = vld [vmem:[#allocation3_spill] sm:$0xff]  ;;  %v3190_v58 = vsub.f32 %v5642_v22, %v14136_v57 }
 0x4ab   :  { %4220 = vperm.xlu0 %5206, %v3186_v15   ;;  %v5641_v15 = vld [vmem:[%s12701_s1 + $0x28] sm:$0xff] }
 0x4ac   :  { %v10886_v10 = vpop.permute.xlu1 %3756  ;;  %v3185_v46 = vsub.f32 %v5641_v15, %v14135_v53  ;;  %v5644_v15 = vld [vmem:[%s12701_s1 + $0x60] sm:$0xff]  ;;  %v14140_v53 = vld [vmem:[#allocation68_spill] sm:$0xff] }
 0x4ad   :  { %14133 = vst [vmem:[#allocation63_spill] sm:$0xff] %v10886_v10  ;;  %v10888_v54 = vpop.permute.xlu0 %3771 }
 0x4ae   :  { %14134 = vst [vmem:[#allocation62_spill] sm:$0xff] %v10888_v54  ;;  %4205 = vperm.xlu1 %5205, %v3183_v26   ;;  %v14139_v26 = vld [vmem:[#allocation36_spill] sm:$0xff]  ;;  %v3192_v54 = vsub.f32 %v5644_v15, %v14140_v53 }
 0x4af   :  { %4230 = vperm.xlu0 %5206, %v3188_v44   ;;  %v5643_v44 = vld [vmem:[%s12701_s1 + $0x38] sm:$0xff] }
 0x4b0   :  { %v10898_v17 = vpop.permute.xlu1 %3766  ;;  %v3187_v9 = vsub.f32 %v5643_v44, %v14139_v26  ;;  %v5646_v44 = vld [vmem:[%s12701_s1 + $0x70] sm:$0xff] }
 0x4b1   :  { %14137 = vst [vmem:[#allocation214_spill] sm:$0xff] %v10898_v17  ;;  %v10900_v1 = vpop.permute.xlu0 %3781  ;;  %v14144_v26 = vld [vmem:[#allocation108_spill] sm:$0xff] }
 0x4b2   :  { %14138 = vst [vmem:[#allocation7_spill] sm:$0xff] %v10900_v1  ;;  %4215 = vperm.xlu1 %5205, %v3185_v46   ;;  %v14143_v46 = vld [vmem:[#allocation217_spill] sm:$0xff]  ;;  %v3194_v1 = vsub.f32 %v5646_v44, %v14144_v26 }
 0x4b3   :  { %4240 = vperm.xlu0 %5206, %v3190_v58   ;;  %v5645_v58 = vld [vmem:[%s12701_s1 + $0x48] sm:$0xff] }
 0x4b4   :  { %v10910_v10 = vpop.permute.xlu1 %3776  ;;  %v3189_v57 = vsub.f32 %v5645_v58, %v14143_v46  ;;  %v5648_v58 = vld [vmem:[%s12701_s1 + $0x80] sm:$0xff] }
 0x4b5   :  { %14141 = vst [vmem:[#allocation147_spill] sm:$0xff] %v10910_v10  ;;  %v10912_v22 = vpop.permute.xlu0 %3791  ;;  %v14148_v46 = vld [vmem:[#allocation70_spill] sm:$0xff] }
 0x4b6   :  { %14142 = vst [vmem:[#allocation213_spill] sm:$0xff] %v10912_v22  ;;  %4225 = vperm.xlu1 %5205, %v3187_v9   ;;  %v14147_v9 = vld [vmem:[#allocation69_spill] sm:$0xff]  ;;  %v3196_v22 = vsub.f32 %v5648_v58, %v14148_v46 }
 0x4b7   :  { %4250 = vperm.xlu0 %5206, %v3192_v54   ;;  %v5647_v54 = vld [vmem:[%s12701_s1 + $0x58] sm:$0xff] }
 0x4b8   :  { %v10922_v17 = vpop.permute.xlu1 %3786  ;;  %v3191_v53 = vsub.f32 %v5647_v54, %v14147_v9  ;;  %v5650_v54 = vld [vmem:[%s12701_s1 + $0x90] sm:$0xff]  ;;  %v14152_v9 = vld [vmem:[#allocation219_spill] sm:$0xff] }
 0x4b9   :  { %14145 = vst [vmem:[#allocation110_spill] sm:$0xff] %v10922_v17  ;;  %v10924_v15 = vpop.permute.xlu0 %3801 }
 0x4ba   :  { %14146 = vst [vmem:[#allocation102_spill] sm:$0xff] %v10924_v15  ;;  %4235 = vperm.xlu1 %5205, %v3189_v57   ;;  %v14151_v57 = vld [vmem:[#allocation22_spill] sm:$0xff]  ;;  %v3198_v15 = vsub.f32 %v5650_v54, %v14152_v9 }
 0x4bb   :  { %4260 = vperm.xlu0 %5206, %v3194_v1   ;;  %v5649_v1 = vld [vmem:[%s12701_s1 + $0x68] sm:$0xff] }
 0x4bc   :  { %v10934_v10 = vpop.permute.xlu1 %3796  ;;  %v3193_v26 = vsub.f32 %v5649_v1, %v14151_v57  ;;  %v5652_v1 = vld [vmem:[%s12701_s1 + $0xa0] sm:$0xff] }
 0x4bd   :  { %14149 = vst [vmem:[#allocation4_spill] sm:$0xff] %v10934_v10  ;;  %v10936_v44 = vpop.permute.xlu0 %3811  ;;  %v14156_v57 = vld [vmem:[#allocation166_spill] sm:$0xff] }
 0x4be   :  { %14150 = vst [vmem:[#allocation15_spill] sm:$0xff] %v10936_v44  ;;  %4245 = vperm.xlu1 %5205, %v3191_v53   ;;  %v14155_v53 = vld [vmem:[#allocation113_spill] sm:$0xff]  ;;  %v3200_v44 = vsub.f32 %v5652_v1, %v14156_v57 }
 0x4bf   :  { %4270 = vperm.xlu0 %5206, %v3196_v22   ;;  %v5651_v22 = vld [vmem:[%s12701_s1 + $0x78] sm:$0xff] }
 0x4c0   :  { %v10946_v17 = vpop.permute.xlu1 %3806  ;;  %v3195_v46 = vsub.f32 %v5651_v22, %v14155_v53  ;;  %v5654_v22 = vld [vmem:[%s12701_s1 + $0xb0] sm:$0xff] }
 0x4c1   :  { %14153 = vst [vmem:[#allocation215_spill] sm:$0xff] %v10946_v17  ;;  %v10948_v58 = vpop.permute.xlu0 %3821  ;;  %v14160_v53 = vld [vmem:[#allocation72_spill] sm:$0xff] }
 0x4c2   :  { %14154 = vst [vmem:[#allocation98_spill] sm:$0xff] %v10948_v58  ;;  %4255 = vperm.xlu1 %5205, %v3193_v26   ;;  %v14159_v26 = vld [vmem:[#allocation24_spill] sm:$0xff]  ;;  %v3202_v58 = vsub.f32 %v5654_v22, %v14160_v53 }
 0x4c3   :  { %4280 = vperm.xlu0 %5206, %v3198_v15   ;;  %v5653_v15 = vld [vmem:[%s12701_s1 + $0x88] sm:$0xff] }
 0x4c4   :  { %v10958_v10 = vpop.permute.xlu1 %3816  ;;  %v3197_v9 = vsub.f32 %v5653_v15, %v14159_v26  ;;  %v5656_v15 = vld [vmem:[%s12701_s1 + $0xc0] sm:$0xff]  ;;  %v14164_v26 = vld [vmem:[#allocation25_spill] sm:$0xff] }
 0x4c5   :  { %14157 = vst [vmem:[#allocation104_spill] sm:$0xff] %v10958_v10  ;;  %v10960_v54 = vpop.permute.xlu0 %3831 }
 0x4c6   :  { %14158 = vst [vmem:[#allocation8_spill] sm:$0xff] %v10960_v54  ;;  %4265 = vperm.xlu1 %5205, %v3195_v46   ;;  %v14163_v46 = vld [vmem:[#allocation27_spill] sm:$0xff]  ;;  %v3204_v54 = vsub.f32 %v5656_v15, %v14164_v26 }
 0x4c7   :  { %4290 = vperm.xlu0 %5206, %v3200_v44   ;;  %v5655_v44 = vld [vmem:[%s12701_s1 + $0x98] sm:$0xff] }
 0x4c8   :  { %v10970_v17 = vpop.permute.xlu1 %3826  ;;  %v3199_v57 = vsub.f32 %v5655_v44, %v14163_v46  ;;  %v5658_v44 = vld [vmem:[%s12701_s1 + $0xd0] sm:$0xff]  ;;  %v14168_v46 = vld [vmem:[#allocation171_spill] sm:$0xff] }
 0x4c9   :  { %14161 = vst [vmem:[#allocation216_spill] sm:$0xff] %v10970_v17  ;;  %v10972_v1 = vpop.permute.xlu0 %3841 }
 0x4ca   :  { %14162 = vst [vmem:[#allocation21_spill] sm:$0xff] %v10972_v1  ;;  %4275 = vperm.xlu1 %5205, %v3197_v9   ;;  %v14167_v9 = vld [vmem:[#allocation174_spill] sm:$0xff]  ;;  %v3206_v1 = vsub.f32 %v5658_v44, %v14168_v46 }
 0x4cb   :  { %4300 = vperm.xlu0 %5206, %v3202_v58   ;;  %v5657_v58 = vld [vmem:[%s12701_s1 + $0xa8] sm:$0xff] }
 0x4cc   :  { %v10982_v10 = vpop.permute.xlu1 %3836  ;;  %v3201_v53 = vsub.f32 %v5657_v58, %v14167_v9  ;;  %v5660_v58 = vld [vmem:[%s12701_s1 + $0xe0] sm:$0xff] }
 0x4cd   :  { %14165 = vst [vmem:[#allocation39_spill] sm:$0xff] %v10982_v10  ;;  %v10984_v22 = vpop.permute.xlu0 %3851  ;;  %v14172_v9 = vld [vmem:[#allocation26_spill] sm:$0xff] }
 0x4ce   :  { %14166 = vst [vmem:[#allocation14_spill] sm:$0xff] %v10984_v22  ;;  %4285 = vperm.xlu1 %5205, %v3199_v57   ;;  %v14171_v57 = vld [vmem:[#allocation73_spill] sm:$0xff]  ;;  %v3208_v22 = vsub.f32 %v5660_v58, %v14172_v9 }
 0x4cf   :  { %4310 = vperm.xlu0 %5206, %v3204_v54   ;;  %v5659_v54 = vld [vmem:[%s12701_s1 + $0xb8] sm:$0xff] }
 0x4d0   :  { %v10994_v17 = vpop.permute.xlu1 %3846  ;;  %v3203_v26 = vsub.f32 %v5659_v54, %v14171_v57  ;;  %v5662_v54 = vld [vmem:[%s12701_s1 + $0xf0] sm:$0xff]  ;;  %v14176_v57 = vld [vmem:[#allocation74_spill] sm:$0xff] }
 0x4d1   :  { %14169 = vst [vmem:[#allocation116_spill] sm:$0xff] %v10994_v17  ;;  %v10996_v15 = vpop.permute.xlu0 %3861 }
 0x4d2   :  { %14170 = vst [vmem:[#allocation13_spill] sm:$0xff] %v10996_v15  ;;  %4295 = vperm.xlu1 %5205, %v3201_v53   ;;  %v14175_v53 = vld [vmem:[#allocation121_spill] sm:$0xff]  ;;  %v3210_v15 = vsub.f32 %v5662_v54, %v14176_v57 }
 0x4d3   :  { %4320 = vperm.xlu0 %5206, %v3206_v1   ;;  %v5661_v1 = vld [vmem:[%s12701_s1 + $0xc8] sm:$0xff] }
 0x4d4   :  { %v11006_v10 = vpop.permute.xlu1 %3856  ;;  %v3205_v46 = vsub.f32 %v5661_v1, %v14175_v53  ;;  %v5664_v1 = vld [vmem:[%s12701_s1 + $0x100] sm:$0xff]  ;;  %v14180_v53 = vld [vmem:[#allocation29_spill] sm:$0xff] }
 0x4d5   :  { %14173 = vst [vmem:[#allocation17_spill] sm:$0xff] %v11006_v10  ;;  %v11008_v44 = vpop.permute.xlu0 %3871 }
 0x4d6   :  { %14174 = vst [vmem:[#allocation71_spill] sm:$0xff] %v11008_v44  ;;  %4305 = vperm.xlu1 %5205, %v3203_v26   ;;  %v14179_v26 = vld [vmem:[#allocation222_spill] sm:$0xff]  ;;  %v3212_v44 = vsub.f32 %v5664_v1, %v14180_v53 }
 0x4d7   :  { %4330 = vperm.xlu0 %5206, %v3208_v22   ;;  %v5663_v22 = vld [vmem:[%s12701_s1 + $0xd8] sm:$0xff] }
 0x4d8   :  { %v11018_v17 = vpop.permute.xlu1 %3866  ;;  %v3207_v9 = vsub.f32 %v5663_v22, %v14179_v26  ;;  %v5666_v22 = vld [vmem:[%s12701_s1 + $0x110] sm:$0xff] }
 0x4d9   :  { %14177 = vst [vmem:[#allocation19_spill] sm:$0xff] %v11018_v17  ;;  %v11020_v58 = vpop.permute.xlu0 %3881  ;;  %v14184_v26 = vld [vmem:[#allocation32_spill] sm:$0xff] }
 0x4da   :  { %14178 = vst [vmem:[#allocation20_spill] sm:$0xff] %v11020_v58  ;;  %4315 = vperm.xlu1 %5205, %v3205_v46   ;;  %v14183_v46 = vld [vmem:[#allocation224_spill] sm:$0xff]  ;;  %v3214_v58 = vsub.f32 %v5666_v22, %v14184_v26 }
 0x4db   :  { %4340 = vperm.xlu0 %5206, %v3210_v15   ;;  %v5665_v15 = vld [vmem:[%s12701_s1 + $0xe8] sm:$0xff] }
 0x4dc   :  { %v11030_v10 = vpop.permute.xlu1 %3876  ;;  %v3209_v57 = vsub.f32 %v5665_v15, %v14183_v46  ;;  %v5668_v15 = vld [vmem:[%s12701_s1 + $0x120] sm:$0xff] }
 0x4dd   :  { %14181 = vst [vmem:[#allocation221_spill] sm:$0xff] %v11030_v10  ;;  %v11032_v54 = vpop.permute.xlu0 %3891  ;;  %v14188_v46 = vld [vmem:[#allocation122_spill] sm:$0xff] }
 0x4de   :  { %14182 = vst [vmem:[#allocation228_spill] sm:$0xff] %v11032_v54  ;;  %4325 = vperm.xlu1 %5205, %v3207_v9   ;;  %v14187_v9 = vld [vmem:[#allocation129_spill] sm:$0xff]  ;;  %v3216_v54 = vsub.f32 %v5668_v15, %v14188_v46 }
 0x4df   :  { %4350 = vperm.xlu0 %5206, %v3212_v44   ;;  %v5667_v44 = vld [vmem:[%s12701_s1 + $0xf8] sm:$0xff] }
 0x4e0   :  { %v11042_v17 = vpop.permute.xlu1 %3886  ;;  %v3211_v53 = vsub.f32 %v5667_v44, %v14187_v9  ;;  %v5670_v44 = vld [vmem:[%s12701_s1 + $0x130] sm:$0xff]  ;;  %v14192_v9 = vld [vmem:[#allocation158_spill] sm:$0xff] }
 0x4e1   :  { %14185 = vst [vmem:[#allocation23_spill] sm:$0xff] %v11042_v17  ;;  %v11044_v1 = vpop.permute.xlu0 %3901 }
 0x4e2   :  { %14186 = vst [vmem:[#allocation28_spill] sm:$0xff] %v11044_v1  ;;  %4335 = vperm.xlu1 %5205, %v3209_v57   ;;  %v14191_v57 = vld [vmem:[#allocation35_spill] sm:$0xff]  ;;  %v3218_v1 = vsub.f32 %v5670_v44, %v14192_v9 }
 0x4e3   :  { %4360 = vperm.xlu0 %5206, %v3214_v58   ;;  %v5669_v58 = vld [vmem:[%s12701_s1 + $0x108] sm:$0xff] }
 0x4e4   :  { %v11054_v10 = vpop.permute.xlu1 %3896  ;;  %v3213_v26 = vsub.f32 %v5669_v58, %v14191_v57  ;;  %v5672_v58 = vld [vmem:[%s12701_s1 + $0x140] sm:$0xff]  ;;  %v14196_v57 = vld [vmem:[#allocation77_spill] sm:$0xff] }
 0x4e5   :  { %14189 = vst [vmem:[#allocation30_spill] sm:$0xff] %v11054_v10  ;;  %v11056_v22 = vpop.permute.xlu0 %3911 }
 0x4e6   :  { %14190 = vst [vmem:[#allocation119_spill] sm:$0xff] %v11056_v22  ;;  %4345 = vperm.xlu1 %5205, %v3211_v53   ;;  %v14195_v53 = vld [vmem:[#allocation76_spill] sm:$0xff]  ;;  %v3220_v22 = vsub.f32 %v5672_v58, %v14196_v57 }
 0x4e7   :  { %4370 = vperm.xlu0 %5206, %v3216_v54   ;;  %v5671_v54 = vld [vmem:[%s12701_s1 + $0x118] sm:$0xff] }
 0x4e8   :  { %v11066_v17 = vpop.permute.xlu1 %3906  ;;  %v3215_v46 = vsub.f32 %v5671_v54, %v14195_v53  ;;  %v5674_v54 = vld [vmem:[%s12701_s1 + $0x150] sm:$0xff] }
 0x4e9   :  { %14193 = vst [vmem:[#allocation75_spill] sm:$0xff] %v11066_v17  ;;  %v11068_v15 = vpop.permute.xlu0 %3921  ;;  %v14200_v53 = vld [vmem:[#allocation40_spill] sm:$0xff] }
 0x4ea   :  { %14194 = vst [vmem:[#allocation33_spill] sm:$0xff] %v11068_v15  ;;  %4355 = vperm.xlu1 %5205, %v3213_v26   ;;  %v14199_v26 = vld [vmem:[#allocation38_spill] sm:$0xff]  ;;  %v3222_v15 = vsub.f32 %v5674_v54, %v14200_v53 }
 0x4eb   :  { %4380 = vperm.xlu0 %5206, %v3218_v1   ;;  %v5673_v1 = vld [vmem:[%s12701_s1 + $0x128] sm:$0xff] }
 0x4ec   :  { %v11078_v10 = vpop.permute.xlu1 %3916  ;;  %v3217_v9 = vsub.f32 %v5673_v1, %v14199_v26  ;;  %v5676_v1 = vld [vmem:[%s12701_s1 + $0x160] sm:$0xff]  ;;  %v14204_v26 = vld [vmem:[#allocation44_spill] sm:$0xff] }
 0x4ed   :  { %14197 = vst [vmem:[#allocation124_spill] sm:$0xff] %v11078_v10  ;;  %v11080_v44 = vpop.permute.xlu0 %3931 }
 0x4ee   :  { %14198 = vst [vmem:[#allocation132_spill] sm:$0xff] %v11080_v44  ;;  %4365 = vperm.xlu1 %5205, %v3215_v46   ;;  %v14203_v46 = vld [vmem:[#allocation37_spill] sm:$0xff]  ;;  %v3224_v44 = vsub.f32 %v5676_v1, %v14204_v26 }
 0x4ef   :  { %4390 = vperm.xlu0 %5206, %v3220_v22   ;;  %v5675_v22 = vld [vmem:[%s12701_s1 + $0x138] sm:$0xff] }
 0x4f0   :  { %v11090_v17 = vpop.permute.xlu1 %3926  ;;  %v3219_v57 = vsub.f32 %v5675_v22, %v14203_v46  ;;  %v5678_v22 = vld [vmem:[%s12701_s1 + $0x170] sm:$0xff]  ;;  %v14208_v46 = vld [vmem:[#allocation43_spill] sm:$0xff] }
 0x4f1   :  { %14201 = vst [vmem:[#allocation31_spill] sm:$0xff] %v11090_v17  ;;  %v11092_v58 = vpop.permute.xlu0 %3941 }
 0x4f2   :  { %14202 = vst [vmem:[#allocation225_spill] sm:$0xff] %v11092_v58  ;;  %4375 = vperm.xlu1 %5205, %v3217_v9   ;;  %v14207_v9 = vld [vmem:[#allocation41_spill] sm:$0xff]  ;;  %v3226_v58 = vsub.f32 %v5678_v22, %v14208_v46 }
 0x4f3   :  { %4400 = vperm.xlu0 %5206, %v3222_v15   ;;  %v5677_v15 = vld [vmem:[%s12701_s1 + $0x148] sm:$0xff] }
 0x4f4   :  { %v11102_v10 = vpop.permute.xlu1 %3936  ;;  %v3221_v53 = vsub.f32 %v5677_v15, %v14207_v9  ;;  %v5680_v15 = vld [vmem:[%s12701_s1 + $0x180] sm:$0xff]  ;;  %v14212_v9 = vld [vmem:[#allocation45_spill] sm:$0xff] }
 0x4f5   :  { %14205 = vst [vmem:[#allocation34_spill] sm:$0xff] %v11102_v10  ;;  %v11104_v54 = vpop.permute.xlu0 %3951 }
 0x4f6   :  { %14206 = vst [vmem:[#allocation226_spill] sm:$0xff] %v11104_v54  ;;  %4385 = vperm.xlu1 %5205, %v3219_v57   ;;  %v14211_v57 = vld [vmem:[#allocation135_spill] sm:$0xff]  ;;  %v3228_v54 = vsub.f32 %v5680_v15, %v14212_v9 }
 0x4f7   :  { %4410 = vperm.xlu0 %5206, %v3224_v44   ;;  %v5679_v44 = vld [vmem:[%s12701_s1 + $0x158] sm:$0xff] }
 0x4f8   :  { %v11114_v17 = vpop.permute.xlu1 %3946  ;;  %v3223_v26 = vsub.f32 %v5679_v44, %v14211_v57  ;;  %v5682_v44 = vld [vmem:[%s12701_s1 + $0x190] sm:$0xff] }
 0x4f9   :  { %14209 = vst [vmem:[#allocation163_spill] sm:$0xff] %v11114_v17  ;;  %v11116_v1 = vpop.permute.xlu0 %3961  ;;  %v14216_v57 = vld [vmem:[#allocation80_spill] sm:$0xff] }
 0x4fa   :  { %14210 = vst [vmem:[#allocation78_spill] sm:$0xff] %v11116_v1  ;;  %4395 = vperm.xlu1 %5205, %v3221_v53   ;;  %v14215_v53 = vld [vmem:[#allocation42_spill] sm:$0xff]  ;;  %v3230_v1 = vsub.f32 %v5682_v44, %v14216_v57 }
 0x4fb   :  { %4420 = vperm.xlu0 %5206, %v3226_v58   ;;  %v5681_v58 = vld [vmem:[%s12701_s1 + $0x168] sm:$0xff] }
 0x4fc   :  { %v11126_v10 = vpop.permute.xlu1 %3956  ;;  %v3225_v46 = vsub.f32 %v5681_v58, %v14215_v53  ;;  %v5684_v58 = vld [vmem:[%s12701_s1 + $0x1a0] sm:$0xff]  ;;  %v14220_v53 = vld [vmem:[#allocation81_spill] sm:$0xff] }
 0x4fd   :  { %14213 = vst [vmem:[#allocation79_spill] sm:$0xff] %v11126_v10  ;;  %v11128_v22 = vpop.permute.xlu0 %3971 }
 0x4fe   :  { %14214 = vst [vmem:[#allocation137_spill] sm:$0xff] %v11128_v22  ;;  %4405 = vperm.xlu1 %5205, %v3223_v26   ;;  %v14219_v26 = vld [vmem:[#allocation49_spill] sm:$0xff]  ;;  %v3232_v22 = vsub.f32 %v5684_v58, %v14220_v53 }
 0x4ff   :  { %4430 = vperm.xlu0 %5206, %v3228_v54   ;;  %v5683_v54 = vld [vmem:[%s12701_s1 + $0x178] sm:$0xff] }
 0x500   :  { %v11138_v17 = vpop.permute.xlu1 %3966  ;;  %v3227_v9 = vsub.f32 %v5683_v54, %v14219_v26  ;;  %v5686_v54 = vld [vmem:[%s12701_s1 + $0x1b0] sm:$0xff] }
 0x501   :  { %14217 = vst [vmem:[#allocation140_spill] sm:$0xff] %v11138_v17  ;;  %v11140_v15 = vpop.permute.xlu0 %3981  ;;  %v14224_v26 = vld [vmem:[#allocation148_spill] sm:$0xff] }
 0x502   :  { %14218 = vst [vmem:[#allocation176_spill] sm:$0xff] %v11140_v15  ;;  %4415 = vperm.xlu1 %5205, %v3225_v46   ;;  %v14223_v46 = vld [vmem:[#allocation47_spill] sm:$0xff]  ;;  %v3234_v15 = vsub.f32 %v5686_v54, %v14224_v26 }
 0x503   :  { %4440 = vperm.xlu0 %5206, %v3230_v1   ;;  %v5685_v1 = vld [vmem:[%s12701_s1 + $0x188] sm:$0xff] }
 0x504   :  { %v11150_v10 = vpop.permute.xlu1 %3976  ;;  %v3229_v57 = vsub.f32 %v5685_v1, %v14223_v46  ;;  %v5688_v1 = vld [vmem:[%s12701_s1 + $0x1c0] sm:$0xff]  ;;  %v14228_v46 = vld [vmem:[#allocation48_spill] sm:$0xff] }
 0x505   :  { %14221 = vst [vmem:[#allocation46_spill] sm:$0xff] %v11150_v10  ;;  %v11152_v44 = vpop.permute.xlu0 %3991 }
 0x506   :  { %14222 = vst [vmem:[#allocation181_spill] sm:$0xff] %v11152_v44  ;;  %4425 = vperm.xlu1 %5205, %v3227_v9   ;;  %v14227_v9 = vld [vmem:[#allocation184_spill] sm:$0xff]  ;;  %v3236_v44 = vsub.f32 %v5688_v1, %v14228_v46 }
 0x507   :  { %4450 = vperm.xlu0 %5206, %v3232_v22   ;;  %v5687_v22 = vld [vmem:[%s12701_s1 + $0x198] sm:$0xff] }
 0x508   :  { %v11162_v17 = vpop.permute.xlu1 %3986  ;;  %v3231_v53 = vsub.f32 %v5687_v22, %v14227_v9  ;;  %v5690_v22 = vld [vmem:[%s12701_s1 + $0x1d0] sm:$0xff]  ;;  %v14232_v9 = vld [vmem:[#allocation182_spill] sm:$0xff] }
 0x509   :  { %14225 = vst [vmem:[#allocation145_spill] sm:$0xff] %v11162_v17  ;;  %v11164_v58 = vpop.permute.xlu0 %4001 }
 0x50a   :  { %14226 = vst [vmem:[#allocation156_spill] sm:$0xff] %v11164_v58  ;;  %4435 = vperm.xlu1 %5205, %v3229_v57   ;;  %v14231_v57 = vld [vmem:[#allocation82_spill] sm:$0xff]  ;;  %v3238_v58 = vsub.f32 %v5690_v22, %v14232_v9 }
 0x50b   :  { %4460 = vperm.xlu0 %5206, %v3234_v15   ;;  %v5689_v15 = vld [vmem:[%s12701_s1 + $0x1a8] sm:$0xff] }
 0x50c   :  { %v11174_v10 = vpop.permute.xlu1 %3996  ;;  %v3233_v26 = vsub.f32 %v5689_v15, %v14231_v57  ;;  %v5692_v15 = vld [vmem:[%s12701_s1 + $0x1e0] sm:$0xff]  ;;  %v14236_v57 = vld [vmem:[#allocation179_spill] sm:$0xff] }
 0x50d   :  { %14229 = vst [vmem:[#allocation64_spill] sm:$0xff] %v11174_v10  ;;  %v11176_v54 = vpop.permute.xlu0 %4011 }
 0x50e   :  { %14230 = vst [vmem:[#allocation107_spill] sm:$0xff] %v11176_v54  ;;  %4445 = vperm.xlu1 %5205, %v3231_v53   ;;  %v14235_v53 = vld [vmem:[#allocation153_spill] sm:$0xff]  ;;  %v3240_v54 = vsub.f32 %v5692_v15, %v14236_v57 }
 0x50f   :  { %4470 = vperm.xlu0 %5206, %v3236_v44   ;;  %v5691_v44 = vld [vmem:[%s12701_s1 + $0x1b8] sm:$0xff] }
 0x510   :  { %v11186_v17 = vpop.permute.xlu1 %4006  ;;  %v3235_v46 = vsub.f32 %v5691_v44, %v14235_v53  ;;  %v5694_v44 = vld [vmem:[%s12701_s1 + $0x1f0] sm:$0xff] }
 0x511   :  { %14233 = vst [vmem:[#allocation12_spill] sm:$0xff] %v11186_v17  ;;  %v11188_v1 = vpop.permute.xlu0 %4021  ;;  %v14239_v53 = vld [vmem:[#allocation52_spill] sm:$0xff] }
 0x512   :  { %14234 = vst [vmem:[#allocation109_spill] sm:$0xff] %v11188_v1  ;;  %4455 = vperm.xlu1 %5205, %v3233_v26   ;;  %v14238_v26 = vld [vmem:[#allocation83_spill] sm:$0xff]  ;;  %v3242_v1 = vsub.f32 %v5694_v44, %v14239_v53 }
 0x513   :  { %4480 = vperm.xlu0 %5206, %v3238_v58   ;;  %v5693_v58 = vld [vmem:[%s12701_s1 + $0x1c8] sm:$0xff] }
 0x514   :  { %v11198_v10 = vpop.permute.xlu1 %4016  ;;  %v3237_v9 = vsub.f32 %v5693_v58, %v14238_v26  ;;  %v5696_v58 = vld [vmem:[%s12701_s1 + $0x200] sm:$0xff]  ;;  %v14243_v26 = vld [vmem:[#allocation85_spill] sm:$0xff]  ;;  %v5697_v44 = vld [vmem:[%s12700_s0 + $0x8] sm:$0xff] }
 0x515   :  { %v11200_v22 = vpop.permute.xlu0 %4031  ;;  %v4045_v53 = vmul.f32 %v5697_v44, %v10605_v35  ;;  %v5700_v35 = vld [vmem:[%s12701_s1 + $0x210] sm:$0xff] }
 0x516   :  { %14237 = vst [vmem:[#allocation112_spill] sm:$0xff] %v11200_v22  ;;  %4465 = vperm.xlu1 %5205, %v3235_v46   ;;  %v14242_v46 = vld [vmem:[#allocation189_spill] sm:$0xff]  ;;  %v3244_v22 = vsub.f32 %v5696_v58, %v14243_v26  ;;  %v5699_v58 = vld [vmem:[%s12700_s0] sm:$0xff] }
 0x517   :  { %4490 = vperm.xlu0 %5206, %v3240_v54   ;;  %v5695_v54 = vld [vmem:[%s12701_s1 + $0x1d8] sm:$0xff]  ;;  %v4044_v26 = vmul.f32 %v5699_v58, %v10602_v16 }
 0x518   :  { %v11210_v17 = vpop.permute.xlu1 %4026  ;;  %v3239_v57 = vsub.f32 %v5695_v54, %v14242_v46  ;;  %v5698_v54 = vld [vmem:[%s12701_s1 + $0x1e8] sm:$0xff]  ;;  %v14244_v46 = vld [vmem:[#allocation84_spill] sm:$0xff] }
 0x519   :  { %14240 = vst [vmem:[#allocation67_spill] sm:$0xff] %v11210_v17  ;;  %v11212_v15 = vpop.permute.xlu0 %4041  ;;  %v3241_v17 = vsub.f32 %v5698_v54, %v14244_v46 }
 0x51a   :  { %14241 = vst [vmem:[#allocation105_spill] sm:$0xff] %v11212_v15  ;;  %4475 = vperm.xlu1 %5205, %v3237_v9  }
 0x51b   :  { %4500 = vperm.xlu0 %5206, %v3242_v1  }
 0x51c   :  { %v11226_v9 = vpop.permute.xlu1 %4036 }
 0x51e   :  { %4485 = vperm.xlu1 %5205, %v3239_v57   ;;  %v4196_v1 = vpop.permute.xlu0 %4195  ;;  %v3246_v57 = vsub.f32 %v5700_v35, %v10258_v4  ;;  %v5702_v4 = vld [vmem:[%s12701_s1 + $0x1f8] sm:$0xff] }
 0x51f   :  { %v4909_v15 = vadd.f32 %v4196_v1, %v4045_v53  ;;  %4510 = vperm.xlu0 %5206, %v3244_v22   ;;  %v5701_v22 = vld [vmem:[%s12700_s0 + $0x20] sm:$0xff]  ;;  %v3243_v46 = vsub.f32 %v5702_v4, %v10256_v59  ;;  %v5705_v59 = vld [vmem:[%s12700_s0 + $0x30] sm:$0xff] }
 0x520   :  { %v4048_v44 = vmul.f32 %v5701_v22, %v10617_v5  ;;  %v5703_v5 = vld [vmem:[%s12700_s0 + $0x10] sm:$0xff] }
 0x521   :  { %5053 = vst.msk [vmem:[%s12702_s2 + $0x8] sm:$0xff] %vm155_vm0, %v4909_v15  ;;  %v4191_v53 = vpop.permute.xlu1 %4190  ;;  %v4046_v58 = vmul.f32 %v5703_v5, %v10611_v25 }
 0x522   :  { %v4908_v1 = vadd.f32 %v4191_v53, %v4044_v26  ;;  %4495 = vperm.xlu1 %5205, %v3241_v17   ;;  %v4211_v16 = vpop.permute.xlu0 %4210  ;;  %v5704_v17 = vld [vmem:[%s12701_s1 + $0x220] sm:$0xff]  ;;  %v4050_v26 = vmul.f32 %v5705_v59, %v10623_v18  ;;  %v5707_v18 = vld [vmem:[%s12700_s0 + $0x18] sm:$0xff] }
 0x523   :  { %v4912_v54 = vadd.f32 %v4211_v16, %v4048_v44  ;;  %4520 = vperm.xlu0 %5206, %v3246_v57   ;;  %v3248_v15 = vsub.f32 %v5704_v17, %v10278_v0  ;;  %v5706_v0 = vld [vmem:[%s12701_s1 + $0x208] sm:$0xff]  ;;  %v4047_v53 = vmul.f32 %v5707_v18, %v10608_v38 }
 0x524   :  { %5052 = vst.msk [vmem:[%s12702_s2] sm:$0xff] %vm155_vm0, %v4908_v1  ;;  %v3245_v44 = vsub.f32 %v5706_v0, %v10276_v34  ;;  %v5708_v1 = vld [vmem:[%s12701_s1 + $0x230] sm:$0xff]  ;;  %v5709_v34 = vld [vmem:[%s12700_s0 + $0x40] sm:$0xff] }
 0x525   :  { %5056 = vst.msk [vmem:[%s12702_s2 + $0x20] sm:$0xff] %vm155_vm0, %v4912_v54  ;;  %v4201_v25 = vpop.permute.xlu1 %4200  ;;  %v3250_v16 = vsub.f32 %v5708_v1, %v10298_v30  ;;  %v4052_v54 = vmul.f32 %v5709_v34, %v10629_v3  ;;  %v5710_v30 = vld [vmem:[%s12701_s1 + $0x218] sm:$0xff]  ;;  %v5711_v3 = vld [vmem:[%s12700_s0 + $0x28] sm:$0xff] }
 0x526   :  { %v4910_v35 = vadd.f32 %v4201_v25, %v4046_v58  ;;  %4505 = vperm.xlu1 %5205, %v3243_v46   ;;  %v4221_v57 = vpop.permute.xlu0 %4220  ;;  %v3247_v58 = vsub.f32 %v5710_v30, %v10296_v11  ;;  %v4049_v17 = vmul.f32 %v5711_v3, %v10614_v41  ;;  %v5713_v11 = vld [vmem:[%s12700_s0 + $0x50] sm:$0xff]  ;;  %v14248_v3 = vld [vmem:[#allocation191_spill] sm:$0xff] }
 0x527   :  { %v4914_v22 = vadd.f32 %v4221_v57, %v4050_v26  ;;  %4530 = vperm.xlu0 %5206, %v3248_v15   ;;  %v5712_v15 = vld [vmem:[%s12701_s1 + $0x240] sm:$0xff]  ;;  %v4054_v26 = vmul.f32 %v5713_v11, %v10635_v12  ;;  %v5715_v12 = vld [vmem:[%s12700_s0 + $0x38] sm:$0xff] }
 0x528   :  { %5054 = vst.msk [vmem:[%s12702_s2 + $0x10] sm:$0xff] %vm155_vm0, %v4910_v35  ;;  %v3252_v59 = vsub.f32 %v5712_v15, %v10318_v51  ;;  %v5714_v51 = vld [vmem:[%s12701_s1 + $0x228] sm:$0xff]  ;;  %v4051_v0 = vmul.f32 %v5715_v12, %v10620_v56  ;;  %v5721_v15 = vld [vmem:[%s12700_s0 + $0x70] sm:$0xff]  ;;  %v5723_v12 = vld [vmem:[%s12700_s0 + $0x58] sm:$0xff] }
 0x529   :  { %5058 = vst.msk [vmem:[%s12702_s2 + $0x30] sm:$0xff] %vm155_vm0, %v4914_v22  ;;  %v4206_v38 = vpop.permute.xlu1 %4205  ;;  %v3249_v22 = vsub.f32 %v5714_v51, %v10316_v7  ;;  %v5717_v7 = vld [vmem:[%s12700_s0 + $0x60] sm:$0xff] }
 0x52a   :  { %v4911_v4 = vadd.f32 %v4206_v38, %v4047_v53  ;;  %4515 = vperm.xlu1 %5205, %v3245_v44   ;;  %v4231_v46 = vpop.permute.xlu0 %4230  ;;  %v5716_v44 = vld [vmem:[%s12701_s1 + $0x250] sm:$0xff]  ;;  %v14250_v51 = vld [vmem:[#allocation186_spill] sm:$0xff] }
 0x52b   :  { %v4916_v5 = vadd.f32 %v4231_v46, %v4052_v54  ;;  %4540 = vperm.xlu0 %5206, %v3250_v16   ;;  %v3254_v18 = vsub.f32 %v5716_v44, %v10338_v40  ;;  %v14245_v53 = vld [vmem:[#allocation160_spill] sm:$0xff]  ;;  %v5718_v40 = vld [vmem:[%s12701_s1 + $0x238] sm:$0xff]  ;;  %v5719_v46 = vld [vmem:[%s12700_s0 + $0x48] sm:$0xff] }
 0x52c   :  { %5055 = vst.msk [vmem:[%s12702_s2 + $0x18] sm:$0xff] %vm155_vm0, %v4911_v4  ;;  %v4056_v1 = vmul.f32 %v5717_v7, %v14245_v53  ;;  %v14246_v38 = vld [vmem:[#allocation188_spill] sm:$0xff] }
 0x52d   :  { %5060 = vst.msk [vmem:[%s12702_s2 + $0x40] sm:$0xff] %vm155_vm0, %v4916_v5  ;;  %v4216_v41 = vpop.permute.xlu1 %4215  ;;  %v3251_v4 = vsub.f32 %v5718_v40, %v14246_v38  ;;  %v14247_v5 = vld [vmem:[#allocation149_spill] sm:$0xff]  ;;  %v14252_v7 = vld [vmem:[#allocation164_spill] sm:$0xff] }
 0x52e   :  { %v4913_v25 = vadd.f32 %v4216_v41, %v4049_v17  ;;  %4525 = vperm.xlu1 %5205, %v3247_v58   ;;  %v4241_v35 = vpop.permute.xlu0 %4240  ;;  %v4053_v30 = vmul.f32 %v5719_v46, %v14247_v5  ;;  %v5720_v58 = vld [vmem:[%s12701_s1 + $0x260] sm:$0xff]  ;;  %v14254_v46 = vld [vmem:[#allocation161_spill] sm:$0xff] }
 0x52f   :  { %v4918_v57 = vadd.f32 %v4241_v35, %v4054_v26  ;;  %4550 = vperm.xlu0 %5206, %v3252_v59   ;;  %v3256_v17 = vsub.f32 %v5720_v58, %v14248_v3  ;;  %v14249_v59 = vld [vmem:[#allocation165_spill] sm:$0xff]  ;;  %v14255_v58 = vld [vmem:[#allocation150_spill] sm:$0xff] }
 0x530   :  { %5057 = vst.msk [vmem:[%s12702_s2 + $0x28] sm:$0xff] %vm155_vm0, %v4913_v25  ;;  %v4058_v11 = vmul.f32 %v5721_v15, %v14249_v59  ;;  %v14256_v15 = vld [vmem:[#allocation87_spill] sm:$0xff] }
 0x531   :  { %5062 = vst.msk [vmem:[%s12702_s2 + $0x50] sm:$0xff] %vm155_vm0, %v4918_v57  ;;  %v4226_v56 = vpop.permute.xlu1 %4225  ;;  %v5722_v57 = vld [vmem:[%s12701_s1 + $0x248] sm:$0xff] }
 0x532   :  { %v4915_v16 = vadd.f32 %v4226_v56, %v4051_v0  ;;  %4535 = vperm.xlu1 %5205, %v3249_v22   ;;  %v4251_v34 = vpop.permute.xlu0 %4250  ;;  %v3253_v22 = vsub.f32 %v5722_v57, %v14250_v51  ;;  %v14251_v0 = vld [vmem:[#allocation157_spill] sm:$0xff]  ;;  %v14253_v56 = vld [vmem:[#allocation227_spill] sm:$0xff] }
 0x533   :  { %v4920_v54 = vadd.f32 %v4251_v34, %v4056_v1  ;;  %4560 = vperm.xlu0 %5206, %v3254_v18   ;;  %v4055_v44 = vmul.f32 %v5723_v12, %v14251_v0  ;;  %v5724_v18 = vld [vmem:[%s12701_s1 + $0x270] sm:$0xff]  ;;  %v5725_v1 = vld [vmem:[%s12700_s0 + $0x80] sm:$0xff] }
 0x534   :  { %5059 = vst.msk [vmem:[%s12702_s2 + $0x38] sm:$0xff] %vm155_vm0, %v4915_v16  ;;  %v3258_v53 = vsub.f32 %v5724_v18, %v14252_v7  ;;  %v4060_v16 = vmul.f32 %v5725_v1, %v14253_v56  ;;  %v14258_v12 = vld [vmem:[#allocation86_spill] sm:$0xff]  ;;  %v14259_v18 = vld [vmem:[#allocation155_spill] sm:$0xff] }
 0x535   :  { %5064 = vst.msk [vmem:[%s12702_s2 + $0x60] sm:$0xff] %vm155_vm0, %v4920_v54  ;;  %v4236_v26 = vpop.permute.xlu1 %4235  ;;  %v14260_v1 = vld [vmem:[#allocation159_spill] sm:$0xff] }
 0x536   :  { %v4917_v41 = vadd.f32 %v4236_v26, %v4053_v30  ;;  %4545 = vperm.xlu1 %5205, %v3251_v4   ;;  %v4261_v25 = vpop.permute.xlu0 %4260  ;;  %v5726_v4 = vld [vmem:[%s12701_s1 + $0x258] sm:$0xff]  ;;  %v5727_v30 = vld [vmem:[%s12700_s0 + $0x68] sm:$0xff]  ;;  %v14257_v26 = vld [vmem:[#allocation138_spill] sm:$0xff] }
 0x537   :  { %v4922_v35 = vadd.f32 %v4261_v25, %v4058_v11  ;;  %4570 = vperm.xlu0 %5206, %v3256_v17   ;;  %v3255_v5 = vsub.f32 %v5726_v4, %v14254_v46  ;;  %v4057_v3 = vmul.f32 %v5727_v30, %v14255_v58  ;;  %v5728_v17 = vld [vmem:[%s12701_s1 + $0x280] sm:$0xff]  ;;  %v5729_v11 = vld [vmem:[%s12700_s0 + $0x90] sm:$0xff]  ;;  %v14262_v30 = vld [vmem:[#allocation55_spill] sm:$0xff] }
 0x538   :  { %5061 = vst.msk [vmem:[%s12702_s2 + $0x48] sm:$0xff] %vm155_vm0, %v4917_v41  ;;  %v3260_v59 = vsub.f32 %v5728_v17, %v14256_v15  ;;  %v4062_v41 = vmul.f32 %v5729_v11, %v14257_v26  ;;  %v14263_v17 = vld [vmem:[#allocation127_spill] sm:$0xff]  ;;  %v14264_v11 = vld [vmem:[#allocation88_spill] sm:$0xff] }
 0x539   :  { %5066 = vst.msk [vmem:[%s12702_s2 + $0x70] sm:$0xff] %vm155_vm0, %v4922_v35  ;;  %v4246_v34 = vpop.permute.xlu1 %4245 }
 0x53a   :  { %v4919_v54 = vadd.f32 %v4246_v34, %v4055_v44  ;;  %4555 = vperm.xlu1 %5205, %v3253_v22   ;;  %v4271_v40 = vpop.permute.xlu0 %4270  ;;  %v5730_v22 = vld [vmem:[%s12701_s1 + $0x268] sm:$0xff]  ;;  %v5731_v44 = vld [vmem:[%s12700_s0 + $0x78] sm:$0xff] }
 0x53b   :  { %v4924_v38 = vadd.f32 %v4271_v40, %v4060_v16  ;;  %4580 = vperm.xlu0 %5206, %v3258_v53   ;;  %v3257_v0 = vsub.f32 %v5730_v22, %v14258_v12  ;;  %v4059_v7 = vmul.f32 %v5731_v44, %v14259_v18  ;;  %v5732_v53 = vld [vmem:[%s12701_s1 + $0x290] sm:$0xff]  ;;  %v5733_v16 = vld [vmem:[%s12700_s0 + $0xa0] sm:$0xff]  ;;  %v14261_v34 = vld [vmem:[#allocation229_spill] sm:$0xff] }
 0x53c   :  { %5063 = vst.msk [vmem:[%s12702_s2 + $0x58] sm:$0xff] %vm155_vm0, %v4919_v54  ;;  %v3262_v56 = vsub.f32 %v5732_v53, %v14260_v1  ;;  %v4064_v54 = vmul.f32 %v5733_v16, %v14261_v34  ;;  %v5738_v12 = vld [vmem:[%s12701_s1 + $0x288] sm:$0xff]  ;;  %v14266_v18 = vld [vmem:[#allocation130_spill] sm:$0xff]  ;;  %v5740_v53 = vld [vmem:[%s12701_s1 + $0x2b0] sm:$0xff] }
 0x53d   :  { %5068 = vst.msk [vmem:[%s12702_s2 + $0x80] sm:$0xff] %vm155_vm0, %v4924_v38  ;;  %v4256_v25 = vpop.permute.xlu1 %4255  ;;  %v14267_v1 = vld [vmem:[#allocation170_spill] sm:$0xff] }
 0x53e   :  { %v4921_v35 = vadd.f32 %v4256_v25, %v4057_v3  ;;  %4565 = vperm.xlu1 %5205, %v3255_v5   ;;  %v4281_v57 = vpop.permute.xlu0 %4280  ;;  %v5734_v5 = vld [vmem:[%s12701_s1 + $0x278] sm:$0xff]  ;;  %v5735_v3 = vld [vmem:[%s12700_s0 + $0x88] sm:$0xff]  ;;  %v5741_v16 = vld [vmem:[%s12700_s0 + $0xc0] sm:$0xff] }
 0x53f   :  { %v4926_v51 = vadd.f32 %v4281_v57, %v4062_v41  ;;  %4590 = vperm.xlu0 %5206, %v3260_v59   ;;  %v3259_v58 = vsub.f32 %v5734_v5, %v14262_v30  ;;  %v4061_v15 = vmul.f32 %v5735_v3, %v14263_v17  ;;  %v5736_v59 = vld [vmem:[%s12701_s1 + $0x2a0] sm:$0xff]  ;;  %v5737_v41 = vld [vmem:[%s12700_s0 + $0xb0] sm:$0xff]  ;;  %v4068_v34 = vmul.f32 %v5741_v16, %v10677_v31  ;;  %v5743_v31 = vld [vmem:[%s12700_s0 + $0xa8] sm:$0xff] }
 0x540   :  { %5065 = vst.msk [vmem:[%s12702_s2 + $0x68] sm:$0xff] %vm155_vm0, %v4921_v35  ;;  %v3264_v26 = vsub.f32 %v5736_v59, %v14264_v11  ;;  %v4066_v25 = vmul.f32 %v5737_v41, %v10671_v21  ;;  %v5739_v21 = vld [vmem:[%s12700_s0 + $0x98] sm:$0xff]  ;;  %v14268_v5 = vld [vmem:[#allocation196_spill] sm:$0xff]  ;;  %v5744_v17 = vld [vmem:[%s12701_s1 + $0x2c0] sm:$0xff] }
 0x541   :  { %5070 = vst.msk [vmem:[%s12702_s2 + $0x90] sm:$0xff] %vm155_vm0, %v4926_v51  ;;  %v4266_v40 = vpop.permute.xlu1 %4265  ;;  %v5745_v11 = vld [vmem:[%s12700_s0 + $0xd0] sm:$0xff] }
 0x542   :  { %v4923_v38 = vadd.f32 %v4266_v40, %v4059_v7  ;;  %4575 = vperm.xlu1 %5205, %v3257_v0   ;;  %v4291_v4 = vpop.permute.xlu0 %4290  ;;  %v14265_v0 = vld [vmem:[#allocation162_spill] sm:$0xff]  ;;  %v4063_v7 = vmul.f32 %v5739_v21, %v14266_v18  ;;  %v14273_v21 = vld [vmem:[#allocation173_spill] sm:$0xff] }
 0x543   :  { %v4928_v46 = vadd.f32 %v4291_v4, %v4064_v54  ;;  %4600 = vperm.xlu0 %5206, %v3262_v56   ;;  %v3261_v44 = vsub.f32 %v5738_v12, %v14265_v0  ;;  %v3266_v56 = vsub.f32 %v5740_v53, %v14267_v1  ;;  %v14272_v12 = vld [vmem:[#allocation198_spill] sm:$0xff]  ;;  %v14274_v53 = vld [vmem:[#allocation220_spill] sm:$0xff] }
 0x544   :  { %5067 = vst.msk [vmem:[%s12702_s2 + $0x78] sm:$0xff] %vm155_vm0, %v4923_v38 }
 0x545   :  { %5072 = vst.msk [vmem:[%s12702_s2 + $0xa0] sm:$0xff] %vm155_vm0, %v4928_v46  ;;  %v4276_v35 = vpop.permute.xlu1 %4275  ;;  %v5742_v46 = vld [vmem:[%s12701_s1 + $0x298] sm:$0xff] }
 0x546   :  { %v4925_v57 = vadd.f32 %v4276_v35, %v4061_v15  ;;  %4585 = vperm.xlu1 %5205, %v3259_v58   ;;  %v4301_v51 = vpop.permute.xlu0 %4300  ;;  %v3263_v30 = vsub.f32 %v5742_v46, %v14268_v5  ;;  %v14269_v58 = vld [vmem:[#allocation168_spill] sm:$0xff]  ;;  %v14270_v15 = vld [vmem:[#allocation201_spill] sm:$0xff]  ;;  %v14275_v46 = vld [vmem:[#allocation195_spill] sm:$0xff] }
 0x547   :  { %v4930_v22 = vadd.f32 %v4301_v51, %v4066_v25  ;;  %4610 = vperm.xlu0 %5206, %v3264_v26   ;;  %v4065_v3 = vmul.f32 %v5743_v31, %v14269_v58  ;;  %v3268_v59 = vsub.f32 %v5744_v17, %v14270_v15  ;;  %v14271_v26 = vld [vmem:[#allocation51_spill] sm:$0xff]  ;;  %v5752_v58 = vld [vmem:[%s12701_s1 + $0x2e0] sm:$0xff]  ;;  %v5753_v15 = vld [vmem:[%s12700_s0 + $0xf0] sm:$0xff] }
 0x548   :  { %5069 = vst.msk [vmem:[%s12702_s2 + $0x88] sm:$0xff] %vm155_vm0, %v4925_v57  ;;  %v4070_v41 = vmul.f32 %v5745_v11, %v14271_v26 }
 0x549   :  { %5074 = vst.msk [vmem:[%s12702_s2 + $0xb0] sm:$0xff] %vm155_vm0, %v4930_v22  ;;  %v4286_v54 = vpop.permute.xlu1 %4285  ;;  %v5746_v22 = vld [vmem:[%s12701_s1 + $0x2a8] sm:$0xff] }
 0x54a   :  { %v4927_v40 = vadd.f32 %v4286_v54, %v4063_v7  ;;  %4595 = vperm.xlu1 %5205, %v3261_v44   ;;  %v4311_v38 = vpop.permute.xlu0 %4310  ;;  %v3265_v0 = vsub.f32 %v5746_v22, %v14272_v12  ;;  %v5747_v44 = vld [vmem:[%s12700_s0 + $0xb8] sm:$0xff]  ;;  %v5748_v7 = vld [vmem:[%s12701_s1 + $0x2d0] sm:$0xff] }
 0x54b   :  { %v4932_v4 = vadd.f32 %v4311_v38, %v4068_v34  ;;  %4620 = vperm.xlu0 %5206, %v3266_v56   ;;  %v4067_v18 = vmul.f32 %v5747_v44, %v14273_v21  ;;  %v3270_v1 = vsub.f32 %v5748_v7, %v14274_v53  ;;  %v5749_v56 = vld [vmem:[%s12700_s0 + $0xe0] sm:$0xff]  ;;  %v5755_v12 = vld [vmem:[%s12700_s0 + $0xd8] sm:$0xff]  ;;  %v5756_v21 = vld [vmem:[%s12701_s1 + $0x2f0] sm:$0xff] }
 0x54c   :  { %5071 = vst.msk [vmem:[%s12702_s2 + $0x98] sm:$0xff] %vm155_vm0, %v4927_v40  ;;  %v4072_v16 = vmul.f32 %v5749_v56, %v10689_v42  ;;  %v5751_v42 = vld [vmem:[%s12700_s0 + $0xc8] sm:$0xff]  ;;  %v5757_v53 = vld [vmem:[%s12700_s0 + $0x100] sm:$0xff] }
 0x54d   :  { %5076 = vst.msk [vmem:[%s12702_s2 + $0xc0] sm:$0xff] %vm155_vm0, %v4932_v4  ;;  %v4296_v25 = vpop.permute.xlu1 %4295  ;;  %v5750_v4 = vld [vmem:[%s12701_s1 + $0x2b8] sm:$0xff] }
 0x54e   :  { %v4929_v35 = vadd.f32 %v4296_v25, %v4065_v3  ;;  %4605 = vperm.xlu1 %5205, %v3263_v30   ;;  %v4321_v57 = vpop.permute.xlu0 %4320  ;;  %v3267_v5 = vsub.f32 %v5750_v4, %v14275_v46  ;;  %v14276_v30 = vld [vmem:[#allocation50_spill] sm:$0xff]  ;;  %v14277_v3 = vld [vmem:[#allocation208_spill] sm:$0xff] }
 0x54f   :  { %v4934_v51 = vadd.f32 %v4321_v57, %v4070_v41  ;;  %4630 = vperm.xlu0 %5206, %v3268_v59   ;;  %v4069_v31 = vmul.f32 %v5751_v42, %v14276_v30  ;;  %v3272_v17 = vsub.f32 %v5752_v58, %v14277_v3  ;;  %v14278_v59 = vld [vmem:[#allocation151_spill] sm:$0xff]  ;;  %v14283_v4 = vld [vmem:[#allocation126_spill] sm:$0xff] }
 0x550   :  { %5073 = vst.msk [vmem:[%s12702_s2 + $0xa8] sm:$0xff] %vm155_vm0, %v4929_v35  ;;  %v4074_v11 = vmul.f32 %v5753_v15, %v14278_v59  ;;  %v5754_v57 = vld [vmem:[%s12701_s1 + $0x2c8] sm:$0xff]  ;;  %v14284_v42 = vld [vmem:[#allocation146_spill] sm:$0xff]  ;;  %v14286_v15 = vld [vmem:[#allocation192_spill] sm:$0xff] }
 0x551   :  { %5078 = vst.msk [vmem:[%s12702_s2 + $0xd0] sm:$0xff] %vm155_vm0, %v4934_v51  ;;  %v4306_v34 = vpop.permute.xlu1 %4305  ;;  %v14279_v51 = vld [vmem:[#allocation197_spill] sm:$0xff]  ;;  %v14285_v58 = vld [vmem:[#allocation206_spill] sm:$0xff] }
 0x552   :  { %v4931_v54 = vadd.f32 %v4306_v34, %v4067_v18  ;;  %4615 = vperm.xlu1 %5205, %v3265_v0   ;;  %v4331_v40 = vpop.permute.xlu0 %4330  ;;  %v3269_v22 = vsub.f32 %v5754_v57, %v14279_v51  ;;  %v14280_v0 = vld [vmem:[#allocation143_spill] sm:$0xff]  ;;  %v14281_v18 = vld [vmem:[#allocation89_spill] sm:$0xff] }
 0x553   :  { %v4936_v38 = vadd.f32 %v4331_v40, %v4072_v16  ;;  %4640 = vperm.xlu0 %5206, %v3270_v1   ;;  %v4071_v44 = vmul.f32 %v5755_v12, %v14280_v0  ;;  %v3274_v7 = vsub.f32 %v5756_v21, %v14281_v18  ;;  %v14282_v1 = vld [vmem:[#allocation187_spill] sm:$0xff]  ;;  %v14287_v57 = vld [vmem:[#allocation57_spill] sm:$0xff]  ;;  %v14288_v12 = vld [vmem:[#allocation190_spill] sm:$0xff] }
 0x554   :  { %5075 = vst.msk [vmem:[%s12702_s2 + $0xb8] sm:$0xff] %vm155_vm0, %v4931_v54  ;;  %v4076_v56 = vmul.f32 %v5757_v53, %v14282_v1  ;;  %v14289_v21 = vld [vmem:[#allocation177_spill] sm:$0xff] }
 0x555   :  { %5080 = vst.msk [vmem:[%s12702_s2 + $0xe0] sm:$0xff] %vm155_vm0, %v4936_v38  ;;  %v4316_v26 = vpop.permute.xlu1 %4315  ;;  %v5758_v38 = vld [vmem:[%s12701_s1 + $0x2d8] sm:$0xff] }
 0x556   :  { %v4933_v41 = vadd.f32 %v4316_v26, %v4069_v31  ;;  %4625 = vperm.xlu1 %5205, %v3267_v5   ;;  %v4341_v25 = vpop.permute.xlu0 %4340  ;;  %v3271_v46 = vsub.f32 %v5758_v38, %v14283_v4  ;;  %v5759_v5 = vld [vmem:[%s12700_s0 + $0xe8] sm:$0xff]  ;;  %v5760_v31 = vld [vmem:[%s12701_s1 + $0x300] sm:$0xff] }
 0x557   :  { %v4938_v35 = vadd.f32 %v4341_v25, %v4074_v11  ;;  %4650 = vperm.xlu0 %5206, %v3272_v17   ;;  %v4073_v30 = vmul.f32 %v5759_v5, %v14284_v42  ;;  %v3276_v3 = vsub.f32 %v5760_v31, %v14285_v58  ;;  %v5761_v17 = vld [vmem:[%s12700_s0 + $0x110] sm:$0xff]  ;;  %v14291_v4 = vld [vmem:[#allocation154_spill] sm:$0xff]  ;;  %v14292_v42 = vld [vmem:[#allocation91_spill] sm:$0xff] }
 0x558   :  { %5077 = vst.msk [vmem:[%s12702_s2 + $0xc8] sm:$0xff] %vm155_vm0, %v4933_v41  ;;  %v4078_v59 = vmul.f32 %v5761_v17, %v14286_v15  ;;  %v5768_v5 = vld [vmem:[%s12701_s1 + $0x320] sm:$0xff]  ;;  %v5769_v31 = vld [vmem:[%s12700_s0 + $0x130] sm:$0xff] }
 0x559   :  { %5082 = vst.msk [vmem:[%s12702_s2 + $0xf0] sm:$0xff] %vm155_vm0, %v4938_v35  ;;  %v4326_v16 = vpop.permute.xlu1 %4325  ;;  %v5762_v35 = vld [vmem:[%s12701_s1 + $0x2e8] sm:$0xff]  ;;  %v4082_v58 = vmul.f32 %v5769_v31, %v10719_v27  ;;  %v5771_v27 = vld [vmem:[%s12700_s0 + $0x118] sm:$0xff] }
 0x55a   :  { %v4935_v34 = vadd.f32 %v4326_v16, %v4071_v44  ;;  %4635 = vperm.xlu1 %5205, %v3269_v22   ;;  %v4351_v54 = vpop.permute.xlu0 %4350  ;;  %v3273_v51 = vsub.f32 %v5762_v35, %v14287_v57  ;;  %v5763_v22 = vld [vmem:[%s12700_s0 + $0xf8] sm:$0xff]  ;;  %v5764_v44 = vld [vmem:[%s12701_s1 + $0x310] sm:$0xff] }
 0x55b   :  { %v4940_v40 = vadd.f32 %v4351_v54, %v4076_v56  ;;  %4660 = vperm.xlu0 %5206, %v3274_v7   ;;  %v4075_v0 = vmul.f32 %v5763_v22, %v14288_v12  ;;  %v3278_v18 = vsub.f32 %v5764_v44, %v14289_v21  ;;  %v5765_v7 = vld [vmem:[%s12700_s0 + $0x120] sm:$0xff]  ;;  %v5766_v54 = vld [vmem:[%s12701_s1 + $0x2f8] sm:$0xff]  ;;  %v5772_v57 = vld [vmem:[%s12701_s1 + $0x330] sm:$0xff] }
 0x55c   :  { %5079 = vst.msk [vmem:[%s12702_s2 + $0xd8] sm:$0xff] %vm155_vm0, %v4935_v34  ;;  %v4080_v53 = vmul.f32 %v5765_v7, %v10713_v32  ;;  %v5767_v32 = vld [vmem:[%s12700_s0 + $0x108] sm:$0xff]  ;;  %v5773_v12 = vld [vmem:[%s12700_s0 + $0x140] sm:$0xff] }
 0x55d   :  { %5084 = vst.msk [vmem:[%s12702_s2 + $0x100] sm:$0xff] %vm155_vm0, %v4940_v40  ;;  %v4336_v11 = vpop.permute.xlu1 %4335  ;;  %v14290_v40 = vld [vmem:[#allocation90_spill] sm:$0xff] }
 0x55e   :  { %v4937_v26 = vadd.f32 %v4336_v11, %v4073_v30  ;;  %4645 = vperm.xlu1 %5205, %v3271_v46   ;;  %v4361_v41 = vpop.permute.xlu0 %4360  ;;  %v3275_v38 = vsub.f32 %v5766_v54, %v14290_v40  ;;  %v4077_v46 = vmul.f32 %v5767_v32, %v14291_v4  ;;  %v3280_v30 = vsub.f32 %v5768_v5, %v14292_v42  ;;  %v5770_v11 = vld [vmem:[%s12701_s1 + $0x308] sm:$0xff]  ;;  %v5776_v54 = vld [vmem:[%s12701_s1 + $0x340] sm:$0xff]  ;;  %v14298_v40 = vld [vmem:[#allocation92_spill] sm:$0xff] }
 0x55f   :  { %v4942_v25 = vadd.f32 %v4361_v41, %v4078_v59  ;;  %4670 = vperm.xlu0 %5206, %v3276_v3   ;;  %v5777_v32 = vld [vmem:[%s12700_s0 + $0x150] sm:$0xff]  ;;  %v14299_v4 = vld [vmem:[#allocation167_spill] sm:$0xff] }
 0x560   :  { %5081 = vst.msk [vmem:[%s12702_s2 + $0xe8] sm:$0xff] %vm155_vm0, %v4937_v26  ;;  %v14293_v26 = vld [vmem:[#allocation180_spill] sm:$0xff] }
 0x561   :  { %5086 = vst.msk [vmem:[%s12702_s2 + $0x110] sm:$0xff] %vm155_vm0, %v4942_v25  ;;  %v4346_v1 = vpop.permute.xlu1 %4345  ;;  %v3277_v41 = vsub.f32 %v5770_v11, %v14293_v26  ;;  %v14294_v25 = vld [vmem:[#allocation53_spill] sm:$0xff]  ;;  %v5780_v26 = vld [vmem:[%s12701_s1 + $0x350] sm:$0xff] }
 0x562   :  { %v4939_v56 = vadd.f32 %v4346_v1, %v4075_v0  ;;  %4655 = vperm.xlu1 %5205, %v3273_v51   ;;  %v4371_v16 = vpop.permute.xlu0 %4370  ;;  %v4079_v35 = vmul.f32 %v5771_v27, %v14294_v25  ;;  %v14295_v51 = vld [vmem:[#allocation202_spill] sm:$0xff]  ;;  %v4084_v0 = vmul.f32 %v5773_v12, %v10725_v14  ;;  %v14296_v1 = vld [vmem:[#allocation9_spill] sm:$0xff]  ;;  %v5775_v14 = vld [vmem:[%s12700_s0 + $0x128] sm:$0xff] }
 0x563   :  { %v4944_v34 = vadd.f32 %v4371_v16, %v4080_v53  ;;  %4680 = vperm.xlu0 %5206, %v3278_v18   ;;  %v3282_v22 = vsub.f32 %v5772_v57, %v14295_v51  ;;  %v5774_v53 = vld [vmem:[%s12701_s1 + $0x318] sm:$0xff]  ;;  %v14297_v16 = vld [vmem:[#allocation54_spill] sm:$0xff] }
 0x564   :  { %5083 = vst.msk [vmem:[%s12702_s2 + $0xf8] sm:$0xff] %vm155_vm0, %v4939_v56  ;;  %v3279_v56 = vsub.f32 %v5774_v53, %v14296_v1  ;;  %v5781_v25 = vld [vmem:[%s12700_s0 + $0x160] sm:$0xff]  ;;  %v14305_v1 = vld [vmem:[#allocation131_spill] sm:$0xff] }
 0x565   :  { %5088 = vst.msk [vmem:[%s12702_s2 + $0x120] sm:$0xff] %vm155_vm0, %v4944_v34  ;;  %v4356_v3 = vpop.permute.xlu1 %4355  ;;  %v4081_v34 = vmul.f32 %v5775_v14, %v14297_v16  ;;  %v5784_v53 = vld [vmem:[%s12701_s1 + $0x360] sm:$0xff]  ;;  %v5785_v14 = vld [vmem:[%s12700_s0 + $0x170] sm:$0xff] }
 0x566   :  { %v4941_v17 = vadd.f32 %v4356_v3, %v4077_v46  ;;  %4665 = vperm.xlu1 %5205, %v3275_v38   ;;  %v4381_v15 = vpop.permute.xlu0 %4380  ;;  %v3284_v38 = vsub.f32 %v5776_v54, %v14298_v40  ;;  %v4086_v46 = vmul.f32 %v5777_v32, %v14299_v4  ;;  %v14300_v3 = vld [vmem:[#allocation5_spill] sm:$0xff]  ;;  %v4090_v16 = vmul.f32 %v5785_v14, %v10743_v19  ;;  %v5786_v32 = vld [vmem:[%s12701_s1 + $0x348] sm:$0xff]  ;;  %v14313_v14 = vld [vmem:[#allocation200_spill] sm:$0xff] }
 0x567   :  { %v4946_v59 = vadd.f32 %v4381_v15, %v4082_v58  ;;  %4690 = vperm.xlu0 %5206, %v3280_v30   ;;  %v5778_v58 = vld [vmem:[%s12701_s1 + $0x328] sm:$0xff]  ;;  %v5779_v15 = vld [vmem:[%s12700_s0 + $0x138] sm:$0xff] }
 0x568   :  { %5085 = vst.msk [vmem:[%s12702_s2 + $0x108] sm:$0xff] %vm155_vm0, %v4941_v17  ;;  %v3281_v17 = vsub.f32 %v5778_v58, %v14300_v3  ;;  %v14306_v4 = vld [vmem:[#allocation93_spill] sm:$0xff]  ;;  %v5789_v3 = vld [vmem:[%s12700_s0 + $0x180] sm:$0xff] }
 0x569   :  { %5090 = vst.msk [vmem:[%s12702_s2 + $0x130] sm:$0xff] %vm155_vm0, %v4946_v59  ;;  %v4366_v44 = vpop.permute.xlu1 %4365  ;;  %v14301_v59 = vld [vmem:[#allocation194_spill] sm:$0xff]  ;;  %v5787_v19 = vld [vmem:[%s12700_s0 + $0x158] sm:$0xff] }
 0x56a   :  { %v4943_v21 = vadd.f32 %v4366_v44, %v4079_v35  ;;  %4675 = vperm.xlu1 %5205, %v3277_v41   ;;  %v4391_v18 = vpop.permute.xlu0 %4390  ;;  %v4083_v11 = vmul.f32 %v5779_v15, %v14301_v59  ;;  %v14302_v41 = vld [vmem:[#allocation65_spill] sm:$0xff]  ;;  %v4088_v35 = vmul.f32 %v5781_v25, %v10737_v61  ;;  %v14303_v44 = vld [vmem:[#allocation204_spill] sm:$0xff]  ;;  %v5783_v61 = vld [vmem:[%s12700_s0 + $0x148] sm:$0xff] }
 0x56b   :  { %v4948_v7 = vadd.f32 %v4391_v18, %v4084_v0  ;;  %4700 = vperm.xlu0 %5206, %v3282_v22   ;;  %v3286_v27 = vsub.f32 %v5780_v26, %v14302_v41  ;;  %v5782_v0 = vld [vmem:[%s12701_s1 + $0x338] sm:$0xff] }
 0x56c   :  { %5087 = vst.msk [vmem:[%s12702_s2 + $0x118] sm:$0xff] %vm155_vm0, %v4943_v21  ;;  %v3283_v21 = vsub.f32 %v5782_v0, %v14303_v44  ;;  %v14304_v18 = vld [vmem:[#allocation169_spill] sm:$0xff]  ;;  %v5793_v0 = vld [vmem:[%s12700_s0 + $0x190] sm:$0xff] }
 0x56d   :  { %5092 = vst.msk [vmem:[%s12702_s2 + $0x140] sm:$0xff] %vm155_vm0, %v4948_v7  ;;  %v4376_v5 = vpop.permute.xlu1 %4375  ;;  %v4085_v7 = vmul.f32 %v5783_v61, %v14304_v18  ;;  %v5790_v41 = vld [vmem:[%s12701_s1 + $0x358] sm:$0xff]  ;;  %v4094_v44 = vmul.f32 %v5793_v0, %v10755_v47  ;;  %v5804_v0 = vld [vmem:[%s12701_s1 + $0x3b0] sm:$0xff] }
 0x56e   :  { %v4945_v42 = vadd.f32 %v4376_v5, %v4081_v34  ;;  %4685 = vperm.xlu1 %5205, %v3279_v56   ;;  %v4401_v30 = vpop.permute.xlu0 %4400  ;;  %v3288_v56 = vsub.f32 %v5784_v53, %v14305_v1  ;;  %v14307_v5 = vld [vmem:[#allocation193_spill] sm:$0xff]  ;;  %v5794_v53 = vld [vmem:[%s12701_s1 + $0x368] sm:$0xff]  ;;  %v14312_v1 = vld [vmem:[#allocation16_spill] sm:$0xff] }
 0x56f   :  { %v4950_v31 = vadd.f32 %v4401_v30, %v4086_v46  ;;  %4710 = vperm.xlu0 %5206, %v3284_v38   ;;  %v3285_v46 = vsub.f32 %v5786_v32, %v14306_v4  ;;  %v5788_v30 = vld [vmem:[%s12701_s1 + $0x370] sm:$0xff]  ;;  %v5795_v47 = vld [vmem:[%s12700_s0 + $0x178] sm:$0xff] }
 0x570   :  { %5089 = vst.msk [vmem:[%s12702_s2 + $0x128] sm:$0xff] %vm155_vm0, %v4945_v42  ;;  %v4087_v42 = vmul.f32 %v5787_v19, %v14307_v5 }
 0x571   :  { %5094 = vst.msk [vmem:[%s12702_s2 + $0x150] sm:$0xff] %vm155_vm0, %v4950_v31  ;;  %v4386_v57 = vpop.permute.xlu1 %4385  ;;  %v14308_v31 = vld [vmem:[#allocation183_spill] sm:$0xff] }
 0x572   :  { %v4947_v51 = vadd.f32 %v4386_v57, %v4083_v11  ;;  %4695 = vperm.xlu1 %5205, %v3281_v17   ;;  %v4411_v22 = vpop.permute.xlu0 %4410  ;;  %v3290_v58 = vsub.f32 %v5788_v30, %v14308_v31  ;;  %v4092_v17 = vmul.f32 %v5789_v3, %v10749_v2  ;;  %v5791_v2 = vld [vmem:[%s12700_s0 + $0x168] sm:$0xff]  ;;  %v14315_v30 = vld [vmem:[#allocation117_spill] sm:$0xff] }
 0x573   :  { %v4952_v12 = vadd.f32 %v4411_v22, %v4088_v35  ;;  %4720 = vperm.xlu0 %5206, %v3286_v27   ;;  %v14309_v27 = vld [vmem:[#allocation10_spill] sm:$0xff]  ;;  %v14310_v35 = vld [vmem:[#allocation101_spill] sm:$0xff]  ;;  %v14311_v22 = vld [vmem:[#allocation203_spill] sm:$0xff] }
 0x574   :  { %5091 = vst.msk [vmem:[%s12702_s2 + $0x138] sm:$0xff] %vm155_vm0, %v4947_v51  ;;  %v3287_v25 = vsub.f32 %v5790_v41, %v14309_v27  ;;  %v4089_v57 = vmul.f32 %v5791_v2, %v14310_v35  ;;  %v5792_v51 = vld [vmem:[%s12701_s1 + $0x380] sm:$0xff]  ;;  %v5802_v35 = vld [vmem:[%s12701_s1 + $0x388] sm:$0xff] }
 0x575   :  { %5096 = vst.msk [vmem:[%s12702_s2 + $0x160] sm:$0xff] %vm155_vm0, %v4952_v12  ;;  %v4396_v34 = vpop.permute.xlu1 %4395  ;;  %v3292_v12 = vsub.f32 %v5792_v51, %v14311_v22  ;;  %v14319_v22 = vld [vmem:[#allocation175_spill] sm:$0xff] }
 0x576   :  { %v4949_v54 = vadd.f32 %v4396_v34, %v4085_v7  ;;  %4705 = vperm.xlu1 %5205, %v3283_v21   ;;  %v4421_v40 = vpop.permute.xlu0 %4420  ;;  %v5796_v34 = vld [vmem:[%s12701_s1 + $0x390] sm:$0xff] }
 0x577   :  { %v4954_v38 = vadd.f32 %v4421_v40, %v4090_v16  ;;  %4730 = vperm.xlu0 %5206, %v3288_v56   ;;  %v3289_v56 = vsub.f32 %v5794_v53, %v14312_v1  ;;  %v4091_v16 = vmul.f32 %v5795_v47, %v14313_v14  ;;  %v5806_v47 = vld [vmem:[%s12701_s1 + $0x398] sm:$0xff] }
 0x578   :  { %5093 = vst.msk [vmem:[%s12702_s2 + $0x148] sm:$0xff] %vm155_vm0, %v4949_v54  ;;  %v14314_v54 = vld [vmem:[#allocation66_spill] sm:$0xff]  ;;  %v14321_v14 = vld [vmem:[#allocation205_spill] sm:$0xff] }
 0x579   :  { %5098 = vst.msk [vmem:[%s12702_s2 + $0x170] sm:$0xff] %vm155_vm0, %v4954_v38  ;;  %v4406_v15 = vpop.permute.xlu1 %4405  ;;  %v3294_v40 = vsub.f32 %v5796_v34, %v14314_v54  ;;  %v5797_v38 = vld [vmem:[%s12700_s0 + $0x1a0] sm:$0xff] }
 0x57a   :  { %v4951_v59 = vadd.f32 %v4406_v15, %v4087_v42  ;;  %4715 = vperm.xlu1 %5205, %v3285_v46   ;;  %v4431_v11 = vpop.permute.xlu0 %4430  ;;  %v4096_v32 = vmul.f32 %v5797_v38, %v10761_v63  ;;  %v5798_v42 = vld [vmem:[%s12701_s1 + $0x378] sm:$0xff]  ;;  %v5799_v63 = vld [vmem:[%s12700_s0 + $0x188] sm:$0xff]  ;;  %v5808_v54 = vld [vmem:[%s12701_s1 + $0x3c0] sm:$0xff] }
 0x57b   :  { %v4956_v26 = vadd.f32 %v4431_v11, %v4092_v17  ;;  %4740 = vperm.xlu0 %5206, %v3290_v58   ;;  %v3291_v31 = vsub.f32 %v5798_v42, %v14315_v30  ;;  %v14316_v58 = vld [vmem:[#allocation172_spill] sm:$0xff]  ;;  %v5800_v17 = vld [vmem:[%s12701_s1 + $0x3a0] sm:$0xff]  ;;  %v14317_v15 = vld [vmem:[#allocation95_spill] sm:$0xff] }
 0x57c   :  { %5095 = vst.msk [vmem:[%s12702_s2 + $0x158] sm:$0xff] %vm155_vm0, %v4951_v59  ;;  %v4093_v3 = vmul.f32 %v5799_v63, %v14316_v58  ;;  %v3296_v59 = vsub.f32 %v5800_v17, %v14317_v15  ;;  %v5801_v11 = vld [vmem:[%s12700_s0 + $0x1b0] sm:$0xff]  ;;  %v5810_v42 = vld [vmem:[%s12701_s1 + $0x3a8] sm:$0xff]  ;;  %v5813_v15 = vld [vmem:[%s12700_s0 + $0x1e0] sm:$0xff] }
 0x57d   :  { %5100 = vst.msk [vmem:[%s12702_s2 + $0x180] sm:$0xff] %vm155_vm0, %v4956_v26  ;;  %v4416_v21 = vpop.permute.xlu1 %4415  ;;  %v4098_v26 = vmul.f32 %v5801_v11, %v10767_v28  ;;  %v5803_v28 = vld [vmem:[%s12700_s0 + $0x198] sm:$0xff]  ;;  %v14323_v30 = vld [vmem:[#allocation139_spill] sm:$0xff]  ;;  %v5812_v58 = vld [vmem:[%s12701_s1 + $0x3d0] sm:$0xff] }
 0x57e   :  { %v4953_v61 = vadd.f32 %v4416_v21, %v4089_v57  ;;  %4725 = vperm.xlu1 %5205, %v3287_v25   ;;  %v4441_v18 = vpop.permute.xlu0 %4440  ;;  %v14318_v57 = vld [vmem:[#allocation94_spill] sm:$0xff] }
 0x57f   :  { %v4958_v7 = vadd.f32 %v4441_v18, %v4094_v44  ;;  %4750 = vperm.xlu0 %5206, %v3292_v12   ;;  %v3293_v51 = vsub.f32 %v5802_v35, %v14318_v57  ;;  %v4095_v12 = vmul.f32 %v5803_v28, %v14319_v22  ;;  %v14320_v44 = vld [vmem:[#allocation207_spill] sm:$0xff]  ;;  %v5816_v57 = vld [vmem:[%s12701_s1 + $0x3e0] sm:$0xff]  ;;  %v5817_v22 = vld [vmem:[%s12700_s0 + $0x1f0] sm:$0xff] }
 0x580   :  { %5097 = vst.msk [vmem:[%s12702_s2 + $0x168] sm:$0xff] %vm155_vm0, %v4953_v61  ;;  %v3298_v21 = vsub.f32 %v5804_v0, %v14320_v44  ;;  %v5805_v61 = vld [vmem:[%s12700_s0 + $0x1c0] sm:$0xff] }
 0x581   :  { %5102 = vst.msk [vmem:[%s12702_s2 + $0x190] sm:$0xff] %vm155_vm0, %v4958_v7  ;;  %v4426_v4 = vpop.permute.xlu1 %4425  ;;  %v4100_v18 = vmul.f32 %v5805_v61, %v10773_v13  ;;  %v5807_v13 = vld [vmem:[%s12700_s0 + $0x1a8] sm:$0xff] }
 0x582   :  { %v4955_v46 = vadd.f32 %v4426_v4, %v4091_v16  ;;  %4735 = vperm.xlu1 %5205, %v3289_v56   ;;  %v4451_v19 = vpop.permute.xlu0 %4450  ;;  %v3295_v16 = vsub.f32 %v5806_v47, %v14321_v14  ;;  %v4097_v34 = vmul.f32 %v5807_v13, %v10758_v62  ;;  %v5818_v61 = vld [vmem:[%s12701_s1 + $0x3c8] sm:$0xff]  ;;  %v14329_v47 = vld [vmem:[#allocation212_spill] sm:$0xff] }
 0x583   :  { %v4960_v5 = vadd.f32 %v4451_v19, %v4096_v32  ;;  %4760 = vperm.xlu0 %5206, %v3294_v40   ;;  %v14322_v40 = vld [vmem:[#allocation111_spill] sm:$0xff]  ;;  %v5809_v32 = vld [vmem:[%s12700_s0 + $0x1d0] sm:$0xff] }
 0x584   :  { %5099 = vst.msk [vmem:[%s12702_s2 + $0x178] sm:$0xff] %vm155_vm0, %v4955_v46  ;;  %v3300_v38 = vsub.f32 %v5808_v54, %v14322_v40  ;;  %v4102_v4 = vmul.f32 %v5809_v32, %v10779_v55  ;;  %v5811_v55 = vld [vmem:[%s12700_s0 + $0x1b8] sm:$0xff] }
 0x585   :  { %5104 = vst.msk [vmem:[%s12702_s2 + $0x1a0] sm:$0xff] %vm155_vm0, %v4960_v5  ;;  %v4436_v41 = vpop.permute.xlu1 %4435  ;;  %v4099_v63 = vmul.f32 %v5811_v55, %v10764_v39  ;;  %v5822_v32 = vld [vmem:[%s12701_s1 + $0x3d8] sm:$0xff] }
 0x586   :  { %v4957_v27 = vadd.f32 %v4436_v41, %v4093_v3  ;;  %4745 = vperm.xlu1 %5205, %v3291_v31   ;;  %v4461_v25 = vpop.permute.xlu0 %4460  ;;  %v3297_v31 = vsub.f32 %v5810_v42, %v14323_v30  ;;  %v14324_v3 = vld [vmem:[#allocation97_spill] sm:$0xff]  ;;  %v5825_v30 = vld [vmem:[%s12700_s0 + $0x210] sm:$0xff] }
 0x587   :  { %v4962_v2 = vadd.f32 %v4461_v25, %v4098_v26  ;;  %4770 = vperm.xlu0 %5206, %v3296_v59   ;;  %v3302_v17 = vsub.f32 %v5812_v58, %v14324_v3  ;;  %v4104_v59 = vmul.f32 %v5813_v15, %v10785_v33  ;;  %v14325_v25 = vld [vmem:[#allocation96_spill] sm:$0xff]  ;;  %v5815_v33 = vld [vmem:[%s12700_s0 + $0x1c8] sm:$0xff] }
 0x588   :  { %5101 = vst.msk [vmem:[%s12702_s2 + $0x188] sm:$0xff] %vm155_vm0, %v4957_v27  ;;  %v5814_v27 = vld [vmem:[%s12701_s1 + $0x3b8] sm:$0xff]  ;;  %v4101_v35 = vmul.f32 %v5815_v33, %v10770_v24  ;;  %v5826_v3 = vld [vmem:[%s12701_s1 + $0x3e8] sm:$0xff] }
 0x589   :  { %5106 = vst.msk [vmem:[%s12702_s2 + $0x1b0] sm:$0xff] %vm155_vm0, %v4962_v2  ;;  %v4446_v7 = vpop.permute.xlu1 %4445  ;;  %v3299_v2 = vsub.f32 %v5814_v27, %v14325_v25 }
 0x58a   :  { %v4959_v53 = vadd.f32 %v4446_v7, %v4095_v12  ;;  %4755 = vperm.xlu1 %5205, %v3293_v51   ;;  %v4471_v1 = vpop.permute.xlu0 %4470  ;;  %v14326_v51 = vld [vmem:[#allocation223_spill] sm:$0xff]  ;;  %v4106_v12 = vmul.f32 %v5817_v22, %v10791_v50  ;;  %v5819_v50 = vld [vmem:[%s12700_s0 + $0x1d8] sm:$0xff]  ;;  %v5832_v22 = vld [vmem:[%s12701_s1 + $0x420] sm:$0xff] }
 0x58b   :  { %v4964_v56 = vadd.f32 %v4471_v1, %v4100_v18  ;;  %4780 = vperm.xlu0 %5206, %v3298_v21   ;;  %v3304_v28 = vsub.f32 %v5816_v57, %v14326_v51  ;;  %v14327_v18 = vld [vmem:[#allocation210_spill] sm:$0xff]  ;;  %v14334_v57 = vld [vmem:[#allocation211_spill] sm:$0xff] }
 0x58c   :  { %5103 = vst.msk [vmem:[%s12702_s2 + $0x198] sm:$0xff] %vm155_vm0, %v4959_v53  ;;  %v3301_v7 = vsub.f32 %v5818_v61, %v14327_v18  ;;  %v14328_v53 = vld [vmem:[#allocation56_spill] sm:$0xff] }
 0x58d   :  { %5108 = vst.msk [vmem:[%s12702_s2 + $0x1c0] sm:$0xff] %vm155_vm0, %v4964_v56  ;;  %v4456_v62 = vpop.permute.xlu1 %4455  ;;  %v4103_v1 = vmul.f32 %v5819_v50, %v14328_v53  ;;  %v5820_v56 = vld [vmem:[%s12701_s1 + $0x3f0] sm:$0xff] }
 0x58e   :  { %v4961_v46 = vadd.f32 %v4456_v62, %v4097_v34  ;;  %4765 = vperm.xlu1 %5205, %v3295_v16   ;;  %v4481_v19 = vpop.permute.xlu0 %4480  ;;  %v3306_v14 = vsub.f32 %v5820_v56, %v14329_v47  ;;  %v5821_v16 = vld [vmem:[%s12700_s0 + $0x200] sm:$0xff]  ;;  %v14336_v50 = vld [vmem:[#allocation120_spill] sm:$0xff]  ;;  %v14337_v47 = vld [vmem:[#allocation103_spill] sm:$0xff] }
 0x58f   :  { %v4966_v5 = vadd.f32 %v4481_v19, %v4102_v4  ;;  %4790 = vperm.xlu0 %5206, %v3300_v38   ;;  %v4108_v13 = vmul.f32 %v5821_v16, %v10797_v48  ;;  %v14330_v4 = vld [vmem:[#allocation100_spill] sm:$0xff]  ;;  %v5823_v48 = vld [vmem:[%s12700_s0 + $0x1e8] sm:$0xff]  ;;  %v5824_v19 = vld [vmem:[%s12701_s1 + $0x400] sm:$0xff] }
 0x590   :  { %5105 = vst.msk [vmem:[%s12702_s2 + $0x1a8] sm:$0xff] %vm155_vm0, %v4961_v46  ;;  %v3303_v62 = vsub.f32 %v5822_v32, %v14330_v4  ;;  %v4105_v46 = vmul.f32 %v5823_v48, %v10782_v60  ;;  %v5836_v56 = vld [vmem:[%s12701_s1 + $0x430] sm:$0xff]  ;;  %v5837_v16 = vld [vmem:[%s12700_s0 + $0x240] sm:$0xff]  ;;  %v14338_v32 = vld [vmem:[#allocation125_spill] sm:$0xff] }
 0x591   :  { %5110 = vst.msk [vmem:[%s12702_s2 + $0x1d0] sm:$0xff] %vm155_vm0, %v4966_v5  ;;  %v4466_v39 = vpop.permute.xlu1 %4465  ;;  %v14331_v5 = vld [vmem:[#allocation99_spill] sm:$0xff]  ;;  %v5840_v48 = vld [vmem:[%s12701_s1 + $0x440] sm:$0xff] }
 0x592   :  { %v4963_v11 = vadd.f32 %v4466_v39, %v4099_v63  ;;  %4775 = vperm.xlu1 %5205, %v3297_v31   ;;  %v4491_v26 = vpop.permute.xlu0 %4490  ;;  %v3308_v42 = vsub.f32 %v5824_v19, %v14331_v5  ;;  %v4110_v31 = vmul.f32 %v5825_v30, %v10803_v23  ;;  %v5827_v23 = vld [vmem:[%s12700_s0 + $0x1f8] sm:$0xff]  ;;  %v5828_v39 = vld [vmem:[%s12701_s1 + $0x410] sm:$0xff] }
 0x593   :  { %v4968_v41 = vadd.f32 %v4491_v26, %v4104_v59  ;;  %4800 = vperm.xlu0 %5206, %v3302_v17   ;;  %v14332_v17 = vld [vmem:[#allocation11_spill] sm:$0xff]  ;;  %v4107_v59 = vmul.f32 %v5827_v23, %v10788_v8  ;;  %v5841_v5 = vld [vmem:[%s12700_s0 + $0x250] sm:$0xff] }
 0x594   :  { %5107 = vst.msk [vmem:[%s12702_s2 + $0x1b8] sm:$0xff] %vm155_vm0, %v4963_v11  ;;  %v3305_v15 = vsub.f32 %v5826_v3, %v14332_v17  ;;  %v14333_v11 = vld [vmem:[#allocation123_spill] sm:$0xff]  ;;  %v5844_v17 = vld [vmem:[%s12701_s1 + $0x450] sm:$0xff] }
 0x595   :  { %5112 = vst.msk [vmem:[%s12702_s2 + $0x1e0] sm:$0xff] %vm155_vm0, %v4968_v41  ;;  %v4476_v24 = vpop.permute.xlu1 %4475  ;;  %v3310_v26 = vsub.f32 %v5828_v39, %v14333_v11  ;;  %v5829_v41 = vld [vmem:[%s12700_s0 + $0x220] sm:$0xff] }
 0x596   :  { %v4965_v0 = vadd.f32 %v4476_v24, %v4101_v35  ;;  %4785 = vperm.xlu1 %5205, %v3299_v2   ;;  %v4501_v44 = vpop.permute.xlu0 %4500  ;;  %v4112_v27 = vmul.f32 %v5829_v41, %v10809_v20  ;;  %v5830_v35 = vld [vmem:[%s12701_s1 + $0x3f8] sm:$0xff]  ;;  %v5831_v20 = vld [vmem:[%s12700_s0 + $0x208] sm:$0xff] }
 0x597   :  { %v4970_v21 = vadd.f32 %v4501_v44, %v4106_v12  ;;  %4810 = vperm.xlu0 %5206, %v3304_v28   ;;  %v3307_v51 = vsub.f32 %v5830_v35, %v14334_v57  ;;  %v4109_v28 = vmul.f32 %v5831_v20, %v10794_v29  ;;  %v14335_v12 = vld [vmem:[#allocation218_spill] sm:$0xff]  ;;  %v14344_v57 = vld [vmem:[#allocation144_spill] sm:$0xff] }
 0x598   :  { %5109 = vst.msk [vmem:[%s12702_s2 + $0x1c8] sm:$0xff] %vm155_vm0, %v4965_v0  ;;  %v3312_v24 = vsub.f32 %v5832_v22, %v14335_v12  ;;  %v5833_v0 = vld [vmem:[%s12700_s0 + $0x230] sm:$0xff]  ;;  %v5848_v35 = vld [vmem:[%s12701_s1 + $0x460] sm:$0xff] }
 0x599   :  { %5114 = vst.msk [vmem:[%s12702_s2 + $0x1f0] sm:$0xff] %vm155_vm0, %v4970_v21  ;;  %v4486_v34 = vpop.permute.xlu1 %4485  ;;  %v4114_v44 = vmul.f32 %v5833_v0, %v10815_v45  ;;  %v5835_v45 = vld [vmem:[%s12700_s0 + $0x218] sm:$0xff]  ;;  %v5849_v20 = vld [vmem:[%s12700_s0 + $0x270] sm:$0xff] }
 0x59a   :  { %v4967_v54 = vadd.f32 %v4486_v34, %v4103_v1  ;;  %4795 = vperm.xlu1 %5205, %v3301_v7   ;;  %v4511_v40 = vpop.permute.xlu0 %4510  ;;  %v5834_v7 = vld [vmem:[%s12701_s1 + $0x408] sm:$0xff]  ;;  %v4111_v1 = vmul.f32 %v5835_v45, %v10800_v49  ;;  %v14348_v45 = vld [vmem:[#allocation114_spill] sm:$0xff] }
 0x59b   :  { %v4972_v38 = vadd.f32 %v4511_v40, %v4108_v13  ;;  %4820 = vperm.xlu0 %5206, %v3306_v14   ;;  %v3309_v53 = vsub.f32 %v5834_v7, %v14336_v50  ;;  %v3314_v14 = vsub.f32 %v5836_v56, %v14337_v47  ;;  %v4116_v13 = vmul.f32 %v5837_v16, %v10821_v43  ;;  %v5839_v43 = vld [vmem:[%s12700_s0 + $0x228] sm:$0xff]  ;;  %v5853_v56 = vld [vmem:[%s12700_s0 + $0x280] sm:$0xff] }
 0x59c   :  { %5111 = vst.msk [vmem:[%s12702_s2 + $0x1d8] sm:$0xff] %vm155_vm0, %v4967_v54  ;;  %v14347_v7 = vld [vmem:[#allocation199_spill] sm:$0xff]  ;;  %v14349_v47 = vld [vmem:[#allocation118_spill] sm:$0xff] }
 0x59d   :  { %5116 = vst.msk [vmem:[%s12702_s2 + $0x200] sm:$0xff] %vm155_vm0, %v4972_v38  ;;  %v4496_v60 = vpop.permute.xlu1 %4495  ;;  %v5838_v38 = vld [vmem:[%s12701_s1 + $0x418] sm:$0xff] }
 0x59e   :  { %v4969_v55 = vadd.f32 %v4496_v60, %v4105_v46  ;;  %4805 = vperm.xlu1 %5205, %v3303_v62   ;;  %v4521_v63 = vpop.permute.xlu0 %4520  ;;  %v3311_v4 = vsub.f32 %v5838_v38, %v14338_v32  ;;  %v4113_v62 = vmul.f32 %v5839_v43, %v10806_v36  ;;  %v14339_v46 = vld [vmem:[#allocation136_spill] sm:$0xff]  ;;  %v5855_v32 = vld [vmem:[%s12700_s0 + $0x268] sm:$0xff] }
 0x59f   :  { %v4974_v58 = vadd.f32 %v4521_v63, %v4110_v31  ;;  %4830 = vperm.xlu0 %5206, %v3308_v42   ;;  %v3316_v19 = vsub.f32 %v5840_v48, %v14339_v46  ;;  %v4118_v42 = vmul.f32 %v5841_v5, %v10827_v37  ;;  %v14340_v63 = vld [vmem:[#allocation128_spill] sm:$0xff]  ;;  %v5843_v37 = vld [vmem:[%s12700_s0 + $0x238] sm:$0xff]  ;;  %v14352_v48 = vld [vmem:[#allocation2_spill] sm:$0xff] }
 0x5a0   :  { %5113 = vst.msk [vmem:[%s12702_s2 + $0x1e8] sm:$0xff] %vm155_vm0, %v4969_v55  ;;  %v5842_v55 = vld [vmem:[%s12701_s1 + $0x428] sm:$0xff]  ;;  %v4115_v3 = vmul.f32 %v5843_v37, %v10812_v6  ;;  %v5859_v37 = vld [vmem:[%s12700_s0 + $0x2a0] sm:$0xff] }
 0x5a1   :  { %5118 = vst.msk [vmem:[%s12702_s2 + $0x210] sm:$0xff] %vm155_vm0, %v4974_v58  ;;  %v4506_v8 = vpop.permute.xlu1 %4505  ;;  %v3313_v58 = vsub.f32 %v5842_v55, %v14340_v63  ;;  %v5858_v55 = vld [vmem:[%s12700_s0 + $0x278] sm:$0xff]  ;;  %v14354_v63 = vld [vmem:[#allocation178_spill] sm:$0xff] }
 0x5a2   :  { %v4971_v25 = vadd.f32 %v4506_v8, %v4107_v59  ;;  %4815 = vperm.xlu1 %5205, %v3305_v15   ;;  %v4531_v2 = vpop.permute.xlu0 %4530  ;;  %v14341_v15 = vld [vmem:[#allocation106_spill] sm:$0xff]  ;;  %v14342_v8 = vld [vmem:[#allocation133_spill] sm:$0xff] }
 0x5a3   :  { %v4976_v33 = vadd.f32 %v4531_v2, %v4112_v27  ;;  %4840 = vperm.xlu0 %5206, %v3310_v26   ;;  %v3318_v23 = vsub.f32 %v5844_v17, %v14341_v15  ;;  %v5845_v59 = vld [vmem:[%s12700_s0 + $0x260] sm:$0xff]  ;;  %v5846_v27 = vld [vmem:[%s12701_s1 + $0x438] sm:$0xff] }
 0x5a4   :  { %5115 = vst.msk [vmem:[%s12702_s2 + $0x1f8] sm:$0xff] %vm155_vm0, %v4971_v25  ;;  %v4120_v39 = vmul.f32 %v5845_v59, %v10833_v52  ;;  %v3315_v25 = vsub.f32 %v5846_v27, %v14342_v8  ;;  %v5847_v52 = vld [vmem:[%s12700_s0 + $0x248] sm:$0xff]  ;;  %v14343_v2 = vld [vmem:[#allocation58_spill] sm:$0xff] }
 0x5a5   :  { %5120 = vst.msk [vmem:[%s12702_s2 + $0x220] sm:$0xff] %vm155_vm0, %v4976_v33  ;;  %v4516_v29 = vpop.permute.xlu1 %4515  ;;  %v4117_v33 = vmul.f32 %v5847_v52, %v14343_v2  ;;  %v14357_v27 = vld [vmem:[#allocation59_spill] sm:$0xff] }
 0x5a6   :  { %v4973_v21 = vadd.f32 %v4516_v29, %v4109_v28  ;;  %4825 = vperm.xlu1 %5205, %v3307_v51   ;;  %v4541_v61 = vpop.permute.xlu0 %4540  ;;  %v3320_v51 = vsub.f32 %v5848_v35, %v14344_v57  ;;  %v14345_v28 = vld [vmem:[#allocation115_spill] sm:$0xff] }
 0x5a7   :  { %v4978_v18 = vadd.f32 %v4541_v61, %v4114_v44  ;;  %4850 = vperm.xlu0 %5206, %v3312_v24   ;;  %v4122_v22 = vmul.f32 %v5849_v20, %v14345_v28  ;;  %v5850_v29 = vld [vmem:[%s12701_s1 + $0x448] sm:$0xff]  ;;  %v5863_v20 = vld [vmem:[%s12700_s0 + $0x298] sm:$0xff]  ;;  %v14359_v28 = vld [vmem:[#allocation60_spill] sm:$0xff] }
 0x5a8   :  { %5117 = vst.msk [vmem:[%s12702_s2 + $0x208] sm:$0xff] %vm155_vm0, %v4973_v21  ;;  %v14346_v21 = vld [vmem:[#allocation134_spill] sm:$0xff]  ;;  %v14358_v52 = vld [vmem:[#allocation63_spill] sm:$0xff] }
 0x5a9   :  { %5122 = vst.msk [vmem:[%s12702_s2 + $0x230] sm:$0xff] %vm155_vm0, %v4978_v18  ;;  %v4526_v49 = vpop.permute.xlu1 %4525  ;;  %v3317_v61 = vsub.f32 %v5850_v29, %v14346_v21  ;;  %v5851_v18 = vld [vmem:[%s12700_s0 + $0x258] sm:$0xff] }
 0x5aa   :  { %v4975_v34 = vadd.f32 %v4526_v49, %v4111_v1  ;;  %4835 = vperm.xlu1 %5205, %v3309_v53   ;;  %v4551_v54 = vpop.permute.xlu0 %4550  ;;  %v4119_v50 = vmul.f32 %v5851_v18, %v14347_v7  ;;  %v5852_v53 = vld [vmem:[%s12701_s1 + $0x470] sm:$0xff]  ;;  %v5865_v18 = vld [vmem:[%s12700_s0 + $0x2a8] sm:$0xff]  ;;  %v14361_v7 = vld [vmem:[#allocation61_spill] sm:$0xff] }
 0x5ab   :  { %v4980_v40 = vadd.f32 %v4551_v54, %v4116_v13  ;;  %4860 = vperm.xlu0 %5206, %v3314_v14   ;;  %v3322_v1 = vsub.f32 %v5852_v53, %v14348_v45  ;;  %v4124_v14 = vmul.f32 %v5853_v56, %v14349_v47  ;;  %v5854_v54 = vld [vmem:[%s12701_s1 + $0x458] sm:$0xff]  ;;  %v5866_v53 = vld [vmem:[%s12700_s0 + $0x2d0] sm:$0xff]  ;;  %v14362_v45 = vld [vmem:[#allocation147_spill] sm:$0xff] }
 0x5ac   :  { %5119 = vst.msk [vmem:[%s12702_s2 + $0x218] sm:$0xff] %vm155_vm0, %v4975_v34 }
 0x5ad   :  { %5124 = vst.msk [vmem:[%s12702_s2 + $0x240] sm:$0xff] %vm155_vm0, %v4980_v40  ;;  %v4536_v36 = vpop.permute.xlu1 %4535  ;;  %v14350_v40 = vld [vmem:[#allocation141_spill] sm:$0xff] }
 0x5ae   :  { %v4977_v30 = vadd.f32 %v4536_v36, %v4113_v62  ;;  %4845 = vperm.xlu1 %5205, %v3311_v4   ;;  %v4561_v31 = vpop.permute.xlu0 %4560  ;;  %v3319_v38 = vsub.f32 %v5854_v54, %v14350_v40  ;;  %v14351_v4 = vld [vmem:[#allocation185_spill] sm:$0xff]  ;;  %v5856_v62 = vld [vmem:[%s12700_s0 + $0x290] sm:$0xff]  ;;  %v5868_v54 = vld [vmem:[%s12700_s0 + $0x2e0] sm:$0xff] }
 0x5af   :  { %v4982_v60 = vadd.f32 %v4561_v31, %v4118_v42  ;;  %4870 = vperm.xlu0 %5206, %v3316_v19   ;;  %v4121_v43 = vmul.f32 %v5855_v32, %v14351_v4  ;;  %v4126_v46 = vmul.f32 %v5856_v62, %v14352_v48  ;;  %v14353_v31 = vld [vmem:[#allocation142_spill] sm:$0xff]  ;;  %v5869_v48 = vld [vmem:[%s12700_s0 + $0x2c8] sm:$0xff] }
 0x5b0   :  { %5121 = vst.msk [vmem:[%s12702_s2 + $0x228] sm:$0xff] %vm155_vm0, %v4977_v30  ;;  %v5857_v30 = vld [vmem:[%s12701_s1 + $0x468] sm:$0xff]  ;;  %v14364_v40 = vld [vmem:[#allocation110_spill] sm:$0xff] }
 0x5b1   :  { %5126 = vst.msk [vmem:[%s12702_s2 + $0x250] sm:$0xff] %vm155_vm0, %v4982_v60  ;;  %v4546_v6 = vpop.permute.xlu1 %4545  ;;  %v3321_v60 = vsub.f32 %v5857_v30, %v14353_v31 }
 0x5b2   :  { %v4979_v11 = vadd.f32 %v4546_v6, %v4115_v3  ;;  %4855 = vperm.xlu1 %5205, %v3313_v58   ;;  %v4571_v26 = vpop.permute.xlu0 %4570  ;;  %v4123_v58 = vmul.f32 %v5858_v55, %v14354_v63  ;;  %v14355_v3 = vld [vmem:[#allocation209_spill] sm:$0xff] }
 0x5b3   :  { %v4984_v41 = vadd.f32 %v4571_v26, %v4120_v39  ;;  %4880 = vperm.xlu0 %5206, %v3318_v23   ;;  %v4128_v17 = vmul.f32 %v5859_v37, %v14355_v3  ;;  %v5860_v6 = vld [vmem:[%s12701_s1 + $0x478] sm:$0xff]  ;;  %v5872_v3 = vld [vmem:[%s12700_s0 + $0x300] sm:$0xff] }
 0x5b4   :  { %5123 = vst.msk [vmem:[%s12702_s2 + $0x238] sm:$0xff] %vm155_vm0, %v4979_v11  ;;  %v14356_v11 = vld [vmem:[#allocation152_spill] sm:$0xff]  ;;  %v5871_v63 = vld [vmem:[%s12700_s0 + $0x2d8] sm:$0xff] }
 0x5b5   :  { %5128 = vst.msk [vmem:[%s12702_s2 + $0x260] sm:$0xff] %vm155_vm0, %v4984_v41  ;;  %v4556_v12 = vpop.permute.xlu1 %4555  ;;  %v3323_v26 = vsub.f32 %v5860_v6, %v14356_v11  ;;  %v5861_v41 = vld [vmem:[%s12700_s0 + $0x288] sm:$0xff] }
 0x5b6   :  { %v4981_v24 = vadd.f32 %v4556_v12, %v4117_v33  ;;  %4865 = vperm.xlu1 %5205, %v3315_v25   ;;  %v4581_v0 = vpop.permute.xlu0 %4580  ;;  %v4125_v8 = vmul.f32 %v5861_v41, %v14357_v27  ;;  %v5862_v25 = vld [vmem:[%s12700_s0 + $0x2b0] sm:$0xff]  ;;  %v5864_v12 = vld [vmem:[%s12700_s0 + $0x2c0] sm:$0xff]  ;;  %v5873_v11 = vld [vmem:[%s12700_s0 + $0x2e8] sm:$0xff] }
 0x5b7   :  { %v4986_v44 = vadd.f32 %v4581_v0, %v4122_v22  ;;  %4890 = vperm.xlu0 %5206, %v3320_v51   ;;  %v4130_v2 = vmul.f32 %v5862_v25, %v14358_v52  ;;  %v4127_v22 = vmul.f32 %v5863_v20, %v14359_v28  ;;  %v5874_v27 = vld [vmem:[%s12700_s0 + $0x310] sm:$0xff]  ;;  %v5876_v28 = vld [vmem:[%s12700_s0 + $0x320] sm:$0xff] }
 0x5b8   :  { %5125 = vst.msk [vmem:[%s12702_s2 + $0x248] sm:$0xff] %vm155_vm0, %v4981_v24  ;;  %v14360_v24 = vld [vmem:[#allocation214_spill] sm:$0xff] }
 0x5b9   :  { %5130 = vst.msk [vmem:[%s12702_s2 + $0x270] sm:$0xff] %vm155_vm0, %v4986_v44  ;;  %v4566_v16 = vpop.permute.xlu1 %4565  ;;  %v4132_v0 = vmul.f32 %v5864_v12, %v14360_v24 }
 0x5ba   :  { %v4983_v13 = vadd.f32 %v4566_v16, %v4119_v50  ;;  %4875 = vperm.xlu1 %5205, %v3317_v61   ;;  %v4591_v49 = vpop.permute.xlu0 %4590  ;;  %v4129_v50 = vmul.f32 %v5865_v18, %v14361_v7  ;;  %v5878_v7 = vld [vmem:[%s12700_s0 + $0x330] sm:$0xff] }
 0x5bb   :  { %v4988_v34 = vadd.f32 %v4591_v49, %v4124_v14  ;;  %4900 = vperm.xlu0 %5206, %v3322_v1   ;;  %v4134_v1 = vmul.f32 %v5866_v53, %v14362_v45  ;;  %v14363_v49 = vld [vmem:[#allocation6_spill] sm:$0xff] }
 0x5bc   :  { %5127 = vst.msk [vmem:[%s12702_s2 + $0x258] sm:$0xff] %vm155_vm0, %v4983_v13  ;;  %v5867_v13 = vld [vmem:[%s12700_s0 + $0x2b8] sm:$0xff] }
 0x5bd   :  { %5132 = vst.msk [vmem:[%s12702_s2 + $0x280] sm:$0xff] %vm155_vm0, %v4988_v34  ;;  %v4576_v19 = vpop.permute.xlu1 %4575  ;;  %v4131_v34 = vmul.f32 %v5867_v13, %v14363_v49  ;;  %v5880_v49 = vld [vmem:[%s12700_s0 + $0x340] sm:$0xff] }
 0x5be   :  { %v4985_v5 = vadd.f32 %v4576_v19, %v4121_v43  ;;  %4885 = vperm.xlu1 %5205, %v3319_v38   ;;  %v4601_v42 = vpop.permute.xlu0 %4600  ;;  %v4136_v38 = vmul.f32 %v5868_v54, %v14364_v40 }
 0x5bf   :  { %v4990_v36 = vadd.f32 %v4601_v42, %v4126_v46  ;;  %v14365_v46 = vld [vmem:[#allocation62_spill] sm:$0xff]  ;;  %v14366_v42 = vld [vmem:[#allocation4_spill] sm:$0xff] }
 0x5c0   :  { %5129 = vst.msk [vmem:[%s12702_s2 + $0x268] sm:$0xff] %vm155_vm0, %v4985_v5  ;;  %v4133_v19 = vmul.f32 %v5869_v48, %v14365_v46  ;;  %v5870_v5 = vld [vmem:[%s12700_s0 + $0x2f0] sm:$0xff] }
 0x5c1   :  { %5134 = vst.msk [vmem:[%s12702_s2 + $0x290] sm:$0xff] %vm155_vm0, %v4990_v36  ;;  %v4586_v15 = vpop.permute.xlu1 %4585  ;;  %v4138_v36 = vmul.f32 %v5870_v5, %v14366_v42  ;;  %v5882_v46 = vld [vmem:[%s12700_s0 + $0x350] sm:$0xff] }
 0x5c2   :  { %v4987_v23 = vadd.f32 %v4586_v15, %v4123_v58  ;;  %4895 = vperm.xlu1 %5205, %v3321_v60   ;;  %v4611_v59 = vpop.permute.xlu0 %4610  ;;  %v14367_v58 = vld [vmem:[#allocation7_spill] sm:$0xff] }
 0x5c3   :  { %v4992_v39 = vadd.f32 %v4611_v59, %v4128_v17  ;;  %v4135_v37 = vmul.f32 %v5871_v63, %v14367_v58  ;;  %v14368_v17 = vld [vmem:[#allocation215_spill] sm:$0xff]  ;;  %v5884_v58 = vld [vmem:[%s12700_s0 + $0x360] sm:$0xff] }
 0x5c4   :  { %5131 = vst.msk [vmem:[%s12702_s2 + $0x278] sm:$0xff] %vm155_vm0, %v4987_v23  ;;  %v4140_v15 = vmul.f32 %v5872_v3, %v14368_v17 }
 0x5c5   :  { %5136 = vst.msk [vmem:[%s12702_s2 + $0x2a0] sm:$0xff] %vm155_vm0, %v4992_v39  ;;  %v4596_v33 = vpop.permute.xlu1 %4595 }
 0x5c6   :  { %v4989_v35 = vadd.f32 %v4596_v33, %v4125_v8  ;;  %4905 = vperm.xlu1 %5205, %v3323_v26   ;;  %v4621_v57 = vpop.permute.xlu0 %4620  ;;  %v14369_v26 = vld [vmem:[#allocation213_spill] sm:$0xff]  ;;  %v14370_v8 = vld [vmem:[#allocation104_spill] sm:$0xff] }
 0x5c7   :  { %v4994_v51 = vadd.f32 %v4621_v57, %v4130_v2  ;;  %v4137_v41 = vmul.f32 %v5873_v11, %v14369_v26  ;;  %v4142_v25 = vmul.f32 %v5874_v27, %v14370_v8  ;;  %v5875_v57 = vld [vmem:[%s12700_s0 + $0x2f8] sm:$0xff]  ;;  %v5886_v26 = vld [vmem:[%s12700_s0 + $0x370] sm:$0xff] }
 0x5c8   :  { %5133 = vst.msk [vmem:[%s12702_s2 + $0x288] sm:$0xff] %vm155_vm0, %v4989_v35 }
 0x5c9   :  { %5138 = vst.msk [vmem:[%s12702_s2 + $0x2b0] sm:$0xff] %vm155_vm0, %v4994_v51  ;;  %v4606_v44 = vpop.permute.xlu1 %4605  ;;  %v14371_v51 = vld [vmem:[#allocation102_spill] sm:$0xff] }
 0x5ca   :  { %v4991_v29 = vadd.f32 %v4606_v44, %v4127_v22  ;;  %v4631_v21 = vpop.permute.xlu0 %4630  ;;  %v4139_v20 = vmul.f32 %v5875_v57, %v14371_v51  ;;  %v14372_v22 = vld [vmem:[#allocation216_spill] sm:$0xff]  ;;  %v5888_v51 = vld [vmem:[%s12700_s0 + $0x380] sm:$0xff] }
 0x5cb   :  { %v4996_v61 = vadd.f32 %v4631_v21, %v4132_v0  ;;  %v4144_v12 = vmul.f32 %v5876_v28, %v14372_v22  ;;  %v5877_v21 = vld [vmem:[%s12700_s0 + $0x308] sm:$0xff] }
 0x5cc   :  { %5135 = vst.msk [vmem:[%s12702_s2 + $0x298] sm:$0xff] %vm155_vm0, %v4991_v29 }
 0x5cd   :  { %5140 = vst.msk [vmem:[%s12702_s2 + $0x2c0] sm:$0xff] %vm155_vm0, %v4996_v61  ;;  %v4616_v56 = vpop.permute.xlu1 %4615  ;;  %v14373_v61 = vld [vmem:[#allocation15_spill] sm:$0xff] }
 0x5ce   :  { %v4993_v47 = vadd.f32 %v4616_v56, %v4129_v50  ;;  %v4641_v14 = vpop.permute.xlu0 %4640  ;;  %v4141_v18 = vmul.f32 %v5877_v21, %v14373_v61  ;;  %v14374_v50 = vld [vmem:[#allocation39_spill] sm:$0xff]  ;;  %v5890_v61 = vld [vmem:[%s12700_s0 + $0x390] sm:$0xff] }
 0x5cf   :  { %v4998_v16 = vadd.f32 %v4641_v14, %v4134_v1  ;;  %v4146_v53 = vmul.f32 %v5878_v7, %v14374_v50  ;;  %v5879_v14 = vld [vmem:[%s12700_s0 + $0x318] sm:$0xff] }
 0x5d0   :  { %5137 = vst.msk [vmem:[%s12702_s2 + $0x2a8] sm:$0xff] %vm155_vm0, %v4993_v47 }
 0x5d1   :  { %5142 = vst.msk [vmem:[%s12702_s2 + $0x2d0] sm:$0xff] %vm155_vm0, %v4998_v16  ;;  %v4626_v32 = vpop.permute.xlu1 %4625  ;;  %v14375_v16 = vld [vmem:[#allocation98_spill] sm:$0xff] }
 0x5d2   :  { %v4995_v4 = vadd.f32 %v4626_v32, %v4131_v34  ;;  %v4651_v43 = vpop.permute.xlu0 %4650  ;;  %v4143_v13 = vmul.f32 %v5879_v14, %v14375_v16  ;;  %v14376_v34 = vld [vmem:[#allocation116_spill] sm:$0xff]  ;;  %v5892_v16 = vld [vmem:[%s12700_s0 + $0x3a0] sm:$0xff] }
 0x5d3   :  { %v5000_v62 = vadd.f32 %v4651_v43, %v4136_v38  ;;  %v4148_v54 = vmul.f32 %v5880_v49, %v14376_v34  ;;  %v5881_v43 = vld [vmem:[%s12700_s0 + $0x328] sm:$0xff] }
 0x5d4   :  { %5139 = vst.msk [vmem:[%s12702_s2 + $0x2b8] sm:$0xff] %vm155_vm0, %v4995_v4 }
 0x5d5   :  { %5144 = vst.msk [vmem:[%s12702_s2 + $0x2e0] sm:$0xff] %vm155_vm0, %v5000_v62  ;;  %v4636_v30 = vpop.permute.xlu1 %4635  ;;  %v14377_v62 = vld [vmem:[#allocation8_spill] sm:$0xff] }
 0x5d6   :  { %v4997_v31 = vadd.f32 %v4636_v30, %v4133_v19  ;;  %v4661_v60 = vpop.permute.xlu0 %4660  ;;  %v4145_v48 = vmul.f32 %v5881_v43, %v14377_v62  ;;  %v14378_v19 = vld [vmem:[#allocation17_spill] sm:$0xff]  ;;  %v5894_v62 = vld [vmem:[%s12700_s0 + $0x3b0] sm:$0xff] }
 0x5d7   :  { %v5002_v55 = vadd.f32 %v4661_v60, %v4138_v36  ;;  %v4150_v5 = vmul.f32 %v5882_v46, %v14378_v19  ;;  %v5883_v60 = vld [vmem:[%s12700_s0 + $0x338] sm:$0xff] }
 0x5d8   :  { %5141 = vst.msk [vmem:[%s12702_s2 + $0x2c8] sm:$0xff] %vm155_vm0, %v4997_v31 }
 0x5d9   :  { %5146 = vst.msk [vmem:[%s12702_s2 + $0x2f0] sm:$0xff] %vm155_vm0, %v5002_v55  ;;  %v4646_v23 = vpop.permute.xlu1 %4645  ;;  %v14379_v55 = vld [vmem:[#allocation21_spill] sm:$0xff] }
 0x5da   :  { %v4999_v59 = vadd.f32 %v4646_v23, %v4135_v37  ;;  %v4671_v39 = vpop.permute.xlu0 %4670  ;;  %v4147_v63 = vmul.f32 %v5883_v60, %v14379_v55  ;;  %v14380_v37 = vld [vmem:[#allocation19_spill] sm:$0xff]  ;;  %v5896_v55 = vld [vmem:[%s12700_s0 + $0x3c0] sm:$0xff] }
 0x5db   :  { %v5004_v6 = vadd.f32 %v4671_v39, %v4140_v15  ;;  %v4152_v3 = vmul.f32 %v5884_v58, %v14380_v37  ;;  %v5885_v39 = vld [vmem:[%s12700_s0 + $0x348] sm:$0xff] }
 0x5dc   :  { %5143 = vst.msk [vmem:[%s12702_s2 + $0x2d8] sm:$0xff] %vm155_vm0, %v4999_v59 }
 0x5dd   :  { %5148 = vst.msk [vmem:[%s12702_s2 + $0x300] sm:$0xff] %vm155_vm0, %v5004_v6  ;;  %v4656_v52 = vpop.permute.xlu1 %4655  ;;  %v14381_v6 = vld [vmem:[#allocation14_spill] sm:$0xff] }
 0x5de   :  { %v5001_v2 = vadd.f32 %v4656_v52, %v4137_v41  ;;  %v4681_v33 = vpop.permute.xlu0 %4680  ;;  %v4149_v11 = vmul.f32 %v5885_v39, %v14381_v6  ;;  %v14382_v41 = vld [vmem:[#allocation221_spill] sm:$0xff]  ;;  %v5898_v6 = vld [vmem:[%s12700_s0 + $0x3d0] sm:$0xff] }
 0x5df   :  { %v5006_v35 = vadd.f32 %v4681_v33, %v4142_v25  ;;  %v4154_v27 = vmul.f32 %v5886_v26, %v14382_v41  ;;  %v5887_v33 = vld [vmem:[%s12700_s0 + $0x358] sm:$0xff] }
 0x5e0   :  { %5145 = vst.msk [vmem:[%s12702_s2 + $0x2e8] sm:$0xff] %vm155_vm0, %v5001_v2 }
 0x5e1   :  { %5150 = vst.msk [vmem:[%s12702_s2 + $0x310] sm:$0xff] %vm155_vm0, %v5006_v35  ;;  %v4666_v24 = vpop.permute.xlu1 %4665  ;;  %v14383_v35 = vld [vmem:[#allocation13_spill] sm:$0xff] }
 0x5e2   :  { %v5003_v0 = vadd.f32 %v4666_v24, %v4139_v20  ;;  %v4691_v44 = vpop.permute.xlu0 %4690  ;;  %v4151_v57 = vmul.f32 %v5887_v33, %v14383_v35  ;;  %v14384_v20 = vld [vmem:[#allocation23_spill] sm:$0xff]  ;;  %v5900_v35 = vld [vmem:[%s12700_s0 + $0x3e0] sm:$0xff] }
 0x5e3   :  { %v5008_v29 = vadd.f32 %v4691_v44, %v4144_v12  ;;  %v4156_v28 = vmul.f32 %v5888_v51, %v14384_v20  ;;  %v5889_v44 = vld [vmem:[%s12700_s0 + $0x368] sm:$0xff] }
 0x5e4   :  { %5147 = vst.msk [vmem:[%s12702_s2 + $0x2f8] sm:$0xff] %vm155_vm0, %v5003_v0 }
 0x5e5   :  { %5152 = vst.msk [vmem:[%s12702_s2 + $0x320] sm:$0xff] %vm155_vm0, %v5008_v29  ;;  %v4676_v45 = vpop.permute.xlu1 %4675  ;;  %v14385_v29 = vld [vmem:[#allocation71_spill] sm:$0xff] }
 0x5e6   :  { %v5005_v1 = vadd.f32 %v4676_v45, %v4141_v18  ;;  %v4701_v56 = vpop.permute.xlu0 %4700  ;;  %v4153_v21 = vmul.f32 %v5889_v44, %v14385_v29  ;;  %v14386_v18 = vld [vmem:[#allocation30_spill] sm:$0xff]  ;;  %v5902_v29 = vld [vmem:[%s12700_s0 + $0x3f0] sm:$0xff] }
 0x5e7   :  { %v5010_v47 = vadd.f32 %v4701_v56, %v4146_v53  ;;  %v4158_v7 = vmul.f32 %v5890_v61, %v14386_v18  ;;  %v5891_v56 = vld [vmem:[%s12700_s0 + $0x378] sm:$0xff] }
 0x5e8   :  { %5149 = vst.msk [vmem:[%s12702_s2 + $0x308] sm:$0xff] %vm155_vm0, %v5005_v1 }
 0x5e9   :  { %5154 = vst.msk [vmem:[%s12702_s2 + $0x330] sm:$0xff] %vm155_vm0, %v5010_v47  ;;  %v4686_v40 = vpop.permute.xlu1 %4685  ;;  %v14387_v47 = vld [vmem:[#allocation20_spill] sm:$0xff] }
 0x5ea   :  { %v5007_v38 = vadd.f32 %v4686_v40, %v4143_v13  ;;  %v4711_v32 = vpop.permute.xlu0 %4710  ;;  %v4155_v14 = vmul.f32 %v5891_v56, %v14387_v47  ;;  %v14388_v13 = vld [vmem:[#allocation75_spill] sm:$0xff]  ;;  %v5904_v47 = vld [vmem:[%s12700_s0 + $0x400] sm:$0xff] }
 0x5eb   :  { %v5012_v4 = vadd.f32 %v4711_v32, %v4148_v54  ;;  %v4160_v49 = vmul.f32 %v5892_v16, %v14388_v13  ;;  %v5893_v32 = vld [vmem:[%s12700_s0 + $0x388] sm:$0xff] }
 0x5ec   :  { %5151 = vst.msk [vmem:[%s12702_s2 + $0x318] sm:$0xff] %vm155_vm0, %v5007_v38 }
 0x5ed   :  { %5156 = vst.msk [vmem:[%s12702_s2 + $0x340] sm:$0xff] %vm155_vm0, %v5012_v4  ;;  %v4696_v42 = vpop.permute.xlu1 %4695  ;;  %v14389_v4 = vld [vmem:[#allocation228_spill] sm:$0xff] }
 0x5ee   :  { %v5009_v36 = vadd.f32 %v4696_v42, %v4145_v48  ;;  %v4721_v30 = vpop.permute.xlu0 %4720  ;;  %v4157_v43 = vmul.f32 %v5893_v32, %v14389_v4  ;;  %v14390_v48 = vld [vmem:[#allocation124_spill] sm:$0xff] }
 0x5ef   :  { %v5014_v31 = vadd.f32 %v4721_v30, %v4150_v5  ;;  %v4162_v46 = vmul.f32 %v5894_v62, %v14390_v48  ;;  %v5895_v30 = vld [vmem:[%s12700_s0 + $0x398] sm:$0xff]  ;;  %v5906_v4 = vld [vmem:[%s12700_s0 + $0x410] sm:$0xff] }
 0x5f0   :  { %5153 = vst.msk [vmem:[%s12702_s2 + $0x328] sm:$0xff] %vm155_vm0, %v5009_v36 }
 0x5f1   :  { %5158 = vst.msk [vmem:[%s12702_s2 + $0x350] sm:$0xff] %vm155_vm0, %v5014_v31  ;;  %v4706_v17 = vpop.permute.xlu1 %4705  ;;  %v14391_v31 = vld [vmem:[#allocation28_spill] sm:$0xff] }
 0x5f2   :  { %v5011_v15 = vadd.f32 %v4706_v17, %v4147_v63  ;;  %v4731_v23 = vpop.permute.xlu0 %4730  ;;  %v4159_v60 = vmul.f32 %v5895_v30, %v14391_v31  ;;  %v14392_v63 = vld [vmem:[#allocation31_spill] sm:$0xff]  ;;  %v5908_v31 = vld [vmem:[%s12700_s0 + $0x420] sm:$0xff] }
 0x5f3   :  { %v5016_v59 = vadd.f32 %v4731_v23, %v4152_v3  ;;  %v4164_v58 = vmul.f32 %v5896_v55, %v14392_v63  ;;  %v5897_v23 = vld [vmem:[%s12700_s0 + $0x3a8] sm:$0xff] }
 0x5f4   :  { %5155 = vst.msk [vmem:[%s12702_s2 + $0x338] sm:$0xff] %vm155_vm0, %v5011_v15 }
 0x5f5   :  { %5160 = vst.msk [vmem:[%s12702_s2 + $0x360] sm:$0xff] %vm155_vm0, %v5016_v59  ;;  %v4716_v8 = vpop.permute.xlu1 %4715  ;;  %v14393_v59 = vld [vmem:[#allocation119_spill] sm:$0xff] }
 0x5f6   :  { %v5013_v25 = vadd.f32 %v4716_v8, %v4149_v11  ;;  %v4741_v52 = vpop.permute.xlu0 %4740  ;;  %v4161_v39 = vmul.f32 %v5897_v23, %v14393_v59  ;;  %v14394_v11 = vld [vmem:[#allocation34_spill] sm:$0xff]  ;;  %v5910_v59 = vld [vmem:[%s12700_s0 + $0x430] sm:$0xff] }
 0x5f7   :  { %v5018_v2 = vadd.f32 %v4741_v52, %v4154_v27  ;;  %v4166_v26 = vmul.f32 %v5898_v6, %v14394_v11  ;;  %v5899_v52 = vld [vmem:[%s12700_s0 + $0x3b8] sm:$0xff] }
 0x5f8   :  { %5157 = vst.msk [vmem:[%s12702_s2 + $0x348] sm:$0xff] %vm155_vm0, %v5013_v25 }
 0x5f9   :  { %5162 = vst.msk [vmem:[%s12702_s2 + $0x370] sm:$0xff] %vm155_vm0, %v5018_v2  ;;  %v4726_v22 = vpop.permute.xlu1 %4725  ;;  %v14395_v2 = vld [vmem:[#allocation33_spill] sm:$0xff] }
 0x5fa   :  { %v5015_v12 = vadd.f32 %v4726_v22, %v4151_v57  ;;  %v4751_v24 = vpop.permute.xlu0 %4750  ;;  %v4163_v33 = vmul.f32 %v5899_v52, %v14395_v2  ;;  %v14396_v57 = vld [vmem:[#allocation163_spill] sm:$0xff]  ;;  %v5912_v2 = vld [vmem:[%s12700_s0 + $0x440] sm:$0xff] }
 0x5fb   :  { %v5020_v0 = vadd.f32 %v4751_v24, %v4156_v28  ;;  %v4168_v51 = vmul.f32 %v5900_v35, %v14396_v57  ;;  %v5901_v24 = vld [vmem:[%s12700_s0 + $0x3c8] sm:$0xff] }
 0x5fc   :  { %5159 = vst.msk [vmem:[%s12702_s2 + $0x358] sm:$0xff] %vm155_vm0, %v5015_v12 }
 0x5fd   :  { %5164 = vst.msk [vmem:[%s12702_s2 + $0x380] sm:$0xff] %vm155_vm0, %v5020_v0  ;;  %v4736_v50 = vpop.permute.xlu1 %4735  ;;  %v14397_v0 = vld [vmem:[#allocation132_spill] sm:$0xff] }
 0x5fe   :  { %v5017_v53 = vadd.f32 %v4736_v50, %v4153_v21  ;;  %v4761_v45 = vpop.permute.xlu0 %4760  ;;  %v4165_v44 = vmul.f32 %v5901_v24, %v14397_v0  ;;  %v14398_v21 = vld [vmem:[#allocation79_spill] sm:$0xff]  ;;  %v5914_v0 = vld [vmem:[%s12700_s0 + $0x450] sm:$0xff] }
 0x5ff   :  { %v5022_v1 = vadd.f32 %v4761_v45, %v4158_v7  ;;  %v4170_v61 = vmul.f32 %v5902_v29, %v14398_v21  ;;  %v5903_v45 = vld [vmem:[%s12700_s0 + $0x3d8] sm:$0xff] }
 0x600   :  { %5161 = vst.msk [vmem:[%s12702_s2 + $0x368] sm:$0xff] %vm155_vm0, %v5017_v53 }
 0x601   :  { %5166 = vst.msk [vmem:[%s12702_s2 + $0x390] sm:$0xff] %vm155_vm0, %v5022_v1  ;;  %v4746_v34 = vpop.permute.xlu1 %4745  ;;  %v14399_v1 = vld [vmem:[#allocation225_spill] sm:$0xff] }
 0x602   :  { %v5019_v54 = vadd.f32 %v4746_v34, %v4155_v14  ;;  %v4771_v40 = vpop.permute.xlu0 %4770  ;;  %v4167_v56 = vmul.f32 %v5903_v45, %v14399_v1  ;;  %v14400_v14 = vld [vmem:[#allocation140_spill] sm:$0xff]  ;;  %v14411_v45 = vld [vmem:[#allocation67_spill] sm:$0xff] }
 0x603   :  { %v5024_v38 = vadd.f32 %v4771_v40, %v4160_v49  ;;  %v4172_v16 = vmul.f32 %v5904_v47, %v14400_v14  ;;  %v5905_v40 = vld [vmem:[%s12700_s0 + $0x3e8] sm:$0xff] }
 0x604   :  { %5163 = vst.msk [vmem:[%s12702_s2 + $0x378] sm:$0xff] %vm155_vm0, %v5019_v54 }
 0x605   :  { %5168 = vst.msk [vmem:[%s12702_s2 + $0x3a0] sm:$0xff] %vm155_vm0, %v5024_v38  ;;  %v4756_v19 = vpop.permute.xlu1 %4755  ;;  %v14401_v38 = vld [vmem:[#allocation226_spill] sm:$0xff] }
 0x606   :  { %v5021_v5 = vadd.f32 %v4756_v19, %v4157_v43  ;;  %v4781_v42 = vpop.permute.xlu0 %4780  ;;  %v4169_v32 = vmul.f32 %v5905_v40, %v14401_v38  ;;  %v14402_v43 = vld [vmem:[#allocation46_spill] sm:$0xff] }
 0x607   :  { %v5026_v36 = vadd.f32 %v4781_v42, %v4162_v46  ;;  %v4174_v62 = vmul.f32 %v5906_v4, %v14402_v43  ;;  %v5907_v42 = vld [vmem:[%s12700_s0 + $0x3f8] sm:$0xff] }
 0x608   :  { %5165 = vst.msk [vmem:[%s12702_s2 + $0x388] sm:$0xff] %vm155_vm0, %v5021_v5 }
 0x609   :  { %5170 = vst.msk [vmem:[%s12702_s2 + $0x3b0] sm:$0xff] %vm155_vm0, %v5026_v36  ;;  %v4766_v37 = vpop.permute.xlu1 %4765  ;;  %v14403_v36 = vld [vmem:[#allocation78_spill] sm:$0xff] }
 0x60a   :  { %v5023_v3 = vadd.f32 %v4766_v37, %v4159_v60  ;;  %v4791_v17 = vpop.permute.xlu0 %4790  ;;  %v4171_v30 = vmul.f32 %v5907_v42, %v14403_v36  ;;  %v14404_v60 = vld [vmem:[#allocation145_spill] sm:$0xff]  ;;  %v14414_v42 = vld [vmem:[#allocation112_spill] sm:$0xff] }
 0x60b   :  { %v5028_v15 = vadd.f32 %v4791_v17, %v4164_v58  ;;  %v4176_v55 = vmul.f32 %v5908_v31, %v14404_v60  ;;  %v5909_v17 = vld [vmem:[%s12700_s0 + $0x408] sm:$0xff]  ;;  %v5921_v60 = vld [vmem:[%s12700_s0 + $0x478] sm:$0xff] }
 0x60c   :  { %5167 = vst.msk [vmem:[%s12702_s2 + $0x398] sm:$0xff] %vm155_vm0, %v5023_v3 }
 0x60d   :  { %5172 = vst.msk [vmem:[%s12702_s2 + $0x3c0] sm:$0xff] %vm155_vm0, %v5028_v15  ;;  %v4776_v41 = vpop.permute.xlu1 %4775  ;;  %v14405_v15 = vld [vmem:[#allocation137_spill] sm:$0xff] }
 0x60e   :  { %v5025_v27 = vadd.f32 %v4776_v41, %v4161_v39  ;;  %v4801_v8 = vpop.permute.xlu0 %4800  ;;  %v4173_v23 = vmul.f32 %v5909_v17, %v14405_v15  ;;  %v14406_v39 = vld [vmem:[#allocation64_spill] sm:$0xff] }
 0x60f   :  { %v5030_v25 = vadd.f32 %v4801_v8, %v4166_v26  ;;  %v4178_v6 = vmul.f32 %v5910_v59, %v14406_v39  ;;  %v5911_v8 = vld [vmem:[%s12700_s0 + $0x418] sm:$0xff] }
 0x610   :  { %5169 = vst.msk [vmem:[%s12702_s2 + $0x3a8] sm:$0xff] %vm155_vm0, %v5025_v27 }
 0x611   :  { %5174 = vst.msk [vmem:[%s12702_s2 + $0x3d0] sm:$0xff] %vm155_vm0, %v5030_v25  ;;  %v4786_v20 = vpop.permute.xlu1 %4785  ;;  %v14407_v25 = vld [vmem:[#allocation176_spill] sm:$0xff] }
 0x612   :  { %v5027_v28 = vadd.f32 %v4786_v20, %v4163_v33  ;;  %v4811_v22 = vpop.permute.xlu0 %4810  ;;  %v4175_v52 = vmul.f32 %v5911_v8, %v14407_v25  ;;  %v14408_v33 = vld [vmem:[#allocation12_spill] sm:$0xff] }
 0x613   :  { %v5032_v12 = vadd.f32 %v4811_v22, %v4168_v51  ;;  %v4180_v35 = vmul.f32 %v5912_v2, %v14408_v33  ;;  %v5913_v22 = vld [vmem:[%s12700_s0 + $0x428] sm:$0xff] }
 0x614   :  { %5171 = vst.msk [vmem:[%s12702_s2 + $0x3b8] sm:$0xff] %vm155_vm0, %v5027_v28 }
 0x615   :  { %5176 = vst.msk [vmem:[%s12702_s2 + $0x3e0] sm:$0xff] %vm155_vm0, %v5032_v12  ;;  %v4796_v18 = vpop.permute.xlu1 %4795  ;;  %v14409_v12 = vld [vmem:[#allocation181_spill] sm:$0xff] }
 0x616   :  { %v5029_v7 = vadd.f32 %v4796_v18, %v4165_v44  ;;  %v4821_v50 = vpop.permute.xlu0 %4820  ;;  %v4177_v24 = vmul.f32 %v5913_v22, %v14409_v12  ;;  %v4182_v44 = vmul.f32 %v5914_v0, %v11198_v10  ;;  %v5916_v10 = vld [vmem:[%s12700_s0 + $0x460] sm:$0xff] }
 0x617   :  { %v5034_v53 = vadd.f32 %v4821_v50, %v4170_v61  ;;  %v14410_v50 = vld [vmem:[#allocation156_spill] sm:$0xff]  ;;  %v4184_v1 = vmul.f32 %v5916_v10, %v14411_v45 }
 0x618   :  { %5173 = vst.msk [vmem:[%s12702_s2 + $0x3c8] sm:$0xff] %vm155_vm0, %v5029_v7  ;;  %v5915_v7 = vld [vmem:[%s12700_s0 + $0x438] sm:$0xff] }
 0x619   :  { %5178 = vst.msk [vmem:[%s12702_s2 + $0x3f0] sm:$0xff] %vm155_vm0, %v5034_v53  ;;  %v4806_v13 = vpop.permute.xlu1 %4805  ;;  %v4179_v53 = vmul.f32 %v5915_v7, %v14410_v50 }
 0x61a   :  { %v5031_v49 = vadd.f32 %v4806_v13, %v4167_v56  ;;  %v4831_v34 = vpop.permute.xlu0 %4830  ;;  %v5917_v13 = vld [vmem:[%s12700_s0 + $0x448] sm:$0xff] }
 0x61b   :  { %v5036_v54 = vadd.f32 %v4831_v34, %v4172_v16 }
 0x61c   :  { %5175 = vst.msk [vmem:[%s12702_s2 + $0x3d8] sm:$0xff] %vm155_vm0, %v5031_v49  ;;  %v14412_v49 = vld [vmem:[#allocation107_spill] sm:$0xff] }
 0x61d   :  { %5180 = vst.msk [vmem:[%s12702_s2 + $0x400] sm:$0xff] %vm155_vm0, %v5036_v54  ;;  %v4816_v48 = vpop.permute.xlu1 %4815  ;;  %v4181_v34 = vmul.f32 %v5917_v13, %v14412_v49  ;;  %v5918_v54 = vld [vmem:[%s12700_s0 + $0x470] sm:$0xff] }
 0x61e   :  { %v5033_v46 = vadd.f32 %v4816_v48, %v4169_v32  ;;  %v4841_v19 = vpop.permute.xlu0 %4840  ;;  %v4186_v40 = vmul.f32 %v5918_v54, %v11226_v9  ;;  %v14413_v48 = vld [vmem:[#allocation109_spill] sm:$0xff] }
 0x61f   :  { %v5038_v5 = vadd.f32 %v4841_v19, %v4174_v62  ;;  %v5919_v62 = vld [vmem:[%s12700_s0 + $0x458] sm:$0xff] }
 0x620   :  { %5177 = vst.msk [vmem:[%s12702_s2 + $0x3e8] sm:$0xff] %vm155_vm0, %v5033_v46  ;;  %v4183_v46 = vmul.f32 %v5919_v62, %v14413_v48 }
 0x621   :  { %5182 = vst.msk [vmem:[%s12702_s2 + $0x410] sm:$0xff] %vm155_vm0, %v5038_v5  ;;  %v4826_v63 = vpop.permute.xlu1 %4825  ;;  %v5920_v5 = vld [vmem:[%s12700_s0 + $0x468] sm:$0xff] }
 0x622   :  { %v5035_v58 = vadd.f32 %v4826_v63, %v4171_v30  ;;  %v4851_v37 = vpop.permute.xlu0 %4850  ;;  %v4185_v36 = vmul.f32 %v5920_v5, %v14414_v42 }
 0x623   :  { %v5040_v3 = vadd.f32 %v4851_v37, %v4176_v55  ;;  %v14415_v55 = vld [vmem:[#allocation105_spill] sm:$0xff] }
 0x624   :  { %5179 = vst.msk [vmem:[%s12702_s2 + $0x3f8] sm:$0xff] %vm155_vm0, %v5035_v58  ;;  %v4187_v63 = vmul.f32 %v5921_v60, %v14415_v55 }
 0x625   :  { %5184 = vst.msk [vmem:[%s12702_s2 + $0x420] sm:$0xff] %vm155_vm0, %v5040_v3  ;;  %v4836_v11 = vpop.permute.xlu1 %4835 }
 0x626   :  { %v5037_v26 = vadd.f32 %v4836_v11, %v4173_v23  ;;  %v4861_v41 = vpop.permute.xlu0 %4860 }
 0x627   :  { %v5042_v27 = vadd.f32 %v4861_v41, %v4178_v6 }
 0x628   :  { %5181 = vst.msk [vmem:[%s12702_s2 + $0x408] sm:$0xff] %vm155_vm0, %v5037_v26 }
 0x629   :  { %5186 = vst.msk [vmem:[%s12702_s2 + $0x430] sm:$0xff] %vm155_vm0, %v5042_v27  ;;  %v4846_v57 = vpop.permute.xlu1 %4845 }
 0x62a   :  { %v5039_v51 = vadd.f32 %v4846_v57, %v4175_v52  ;;  %v4871_v20 = vpop.permute.xlu0 %4870 }
 0x62b   :  { %v5044_v28 = vadd.f32 %v4871_v20, %v4180_v35 }
 0x62c   :  { %5183 = vst.msk [vmem:[%s12702_s2 + $0x418] sm:$0xff] %vm155_vm0, %v5039_v51 }
 0x62d   :  { %5188 = vst.msk [vmem:[%s12702_s2 + $0x440] sm:$0xff] %vm155_vm0, %v5044_v28  ;;  %v4856_v29 = vpop.permute.xlu1 %4855 }
 0x62e   :  { %v5041_v21 = vadd.f32 %v4856_v29, %v4177_v24  ;;  %v4881_v61 = vpop.permute.xlu0 %4880 }
 0x62f   :  { %v5046_v18 = vadd.f32 %v4881_v61, %v4182_v44 }
 0x630   :  { %5185 = vst.msk [vmem:[%s12702_s2 + $0x428] sm:$0xff] %vm155_vm0, %v5041_v21 }
 0x631   :  { %5190 = vst.msk [vmem:[%s12702_s2 + $0x450] sm:$0xff] %vm155_vm0, %v5046_v18  ;;  %v4866_v56 = vpop.permute.xlu1 %4865 }
 0x632   :  { %v5043_v47 = vadd.f32 %v4866_v56, %v4179_v53  ;;  %v4891_v14 = vpop.permute.xlu0 %4890 }
 0x633   :  { %v5048_v16 = vadd.f32 %v4891_v14, %v4184_v1 }
 0x634   :  { %5187 = vst.msk [vmem:[%s12702_s2 + $0x438] sm:$0xff] %vm155_vm0, %v5043_v47 }
 0x635   :  { %5192 = vst.msk [vmem:[%s12702_s2 + $0x460] sm:$0xff] %vm155_vm0, %v5048_v16  ;;  %v4876_v38 = vpop.permute.xlu1 %4875 }
 0x636   :  { %v5045_v32 = vadd.f32 %v4876_v38, %v4181_v34  ;;  %v4901_v4 = vpop.permute.xlu0 %4900 }
 0x637   :  { %v5050_v43 = vadd.f32 %v4901_v4, %v4186_v40 }
 0x638   :  { %5189 = vst.msk [vmem:[%s12702_s2 + $0x448] sm:$0xff] %vm155_vm0, %v5045_v32 }
 0x639   :  { %5194 = vst.msk [vmem:[%s12702_s2 + $0x470] sm:$0xff] %vm155_vm0, %v5050_v43  ;;  %v4886_v9 = vpop.permute.xlu1 %4885 }
 0x63a   :  { %v5047_v19 = vadd.f32 %v4886_v9, %v4183_v46 }
 0x63c   :  { %5191 = vst.msk [vmem:[%s12702_s2 + $0x458] sm:$0xff] %vm155_vm0, %v5047_v19 }
 0x63d   :  { %v4896_v30 = vpop.permute.xlu1 %4895 }
 0x63e   :  { %v5049_v31 = vadd.f32 %v4896_v30, %v4185_v36 }
 0x640   :  { %5193 = vst.msk [vmem:[%s12702_s2 + $0x468] sm:$0xff] %vm155_vm0, %v5049_v31 }
 0x641   :  { %v4906_v58 = vpop.permute.xlu1 %4905 }
 0x642   :  { %v5051_v37 = vadd.f32 %v4906_v58, %v4187_v63 }
 0x644   :  { %5195 = vst.msk [vmem:[%s12702_s2 + $0x478] sm:$0xff] %vm155_vm0, %v5051_v37 }

</bundles_post_ra>
